<compile_context>
chip_gen: v7x
topology: tpu7x:2x2x1
jax: 0.10.0
libtpu: 0.0.40
codegen_flags: <defaults>
</compile_context>

<pallas_src>
import numpy as np
import jax
import jax.numpy as jnp
from jax.experimental import pallas as pl
from jax.experimental.pallas import tpu as pltpu

WIDTH = 32          # module default
CENTER_X = 1e-4
CENTER_Y = 1e-4


# ----------------------------------------------------------------------------
# Fully fused IPHI kernel: one row-tile of points per grid step.
# ----------------------------------------------------------------------------
def _iphi_kernel(x_ref, e_ref, w0_ref, b0_ref, wnc_ref, bnc_ref,
                 w1_ref, b1_ref, w2_ref, b2_ref, w3_ref, b3_ref,
                 w4_ref, b4_ref, o_ref):
    width = w0_ref.shape[1]

    x = x_ref[...].astype(jnp.float32)                 # (TN, 2)
    x0 = x[:, 0:1]                                     # (TN, 1)
    x1 = x[:, 1:2]                                     # (TN, 1)
    dx = x0 - CENTER_X
    dy = x1 - CENTER_Y
    angle = jnp.arctan2(dy, dx)                        # (TN, 1)
    radius = jnp.sqrt(dx * dx + dy * dy)               # (TN, 1)

    # Fourier-feature arguments, (TN, width).  Row d of `e` holds the
    # frequency vector B = pi*2^k placed in column block d (zeros elsewhere),
    # so four rank-1 broadcasts reproduce torch's (b,n,4,w/4)->(b,n,w) layout.
    e = e_ref[...]                                     # (4, width)
    freq = (x0 * e[0:1, :] + x1 * e[1:2, :]
            + angle * e[2:3, :] + radius * e[3:4, :])  # (TN, width)
    x_sin = jnp.sin(freq)
    x_cos = jnp.cos(freq)

    # fc0 on the 4 geometric scalars: 4 rank-1 updates on the VPU (K=4 is too
    # small to be worth an MXU push).
    w0 = w0_ref[...]                                   # (4, width)
    h0 = (x0 * w0[0:1, :] + x1 * w0[1:2, :]
          + angle * w0[2:3, :] + radius * w0[3:4, :]) + b0_ref[...]   # (TN, width)

    # fc_no_code( cat([h0, sin, cos]) ): concat folded into 3 sliced matmuls.
    h = (jnp.dot(h0, wnc_ref[0:width, :],
                 preferred_element_type=jnp.float32)
         + jnp.dot(x_sin, wnc_ref[width:2 * width, :],
                   preferred_element_type=jnp.float32)
         + jnp.dot(x_cos, wnc_ref[2 * width:3 * width, :],
                   preferred_element_type=jnp.float32)
         + bnc_ref[...])                               # (TN, 4*width)

    # fc1..fc3 with tanh, fc4 head (K = 128, lane-dense).
    h = jnp.tanh(jnp.dot(h, w1_ref[...],
                         preferred_element_type=jnp.float32) + b1_ref[...])
    h = jnp.tanh(jnp.dot(h, w2_ref[...],
                         preferred_element_type=jnp.float32) + b2_ref[...])
    h = jnp.tanh(jnp.dot(h, w3_ref[...],
                         preferred_element_type=jnp.float32) + b3_ref[...])
    xd = jnp.dot(h, w4_ref[...],
                 preferred_element_type=jnp.float32) + b4_ref[...]    # (TN, 2)

    o_ref[...] = (x + x * xd).astype(o_ref.dtype)


def iphi_forward(x, params, *, row_tile=128):
    """x: (b, n, 2) float32 -> (b, n, 2), code=None path of IPHI.forward."""
    b, n, two = x.shape
    assert two == 2
    ntot = b * n
    xf = x.reshape(ntot, 2)                            # contiguous, no HBM copy
    pad = (-ntot) % row_tile
    if pad:
        xf = jnp.pad(xf, ((0, pad), (0, 0)))
    n_rows = xf.shape[0]

    args = (xf, params["E"], params["w0"], params["b0"],
            params["wnc"], params["bnc"],
            params["w1"], params["b1"], params["w2"], params["b2"],
            params["w3"], params["b3"], params["w4"], params["b4"])

    in_specs = [pl.BlockSpec((row_tile, 2), lambda i: (i, 0))]
    for a in args[1:]:
        # full-array blocks, constant index map -> stay resident in VMEM
        in_specs.append(pl.BlockSpec(a.shape, lambda i: (0, 0)))

    out = pl.pallas_call(
        _iphi_kernel,
        out_shape=jax.ShapeDtypeStruct((n_rows, 2), jnp.float32),
        grid=(n_rows // row_tile,),
        in_specs=in_specs,
        out_specs=pl.BlockSpec((row_tile, 2), lambda i: (i, 0)),
        compiler_params=pltpu.CompilerParams(
            dimension_semantics=("parallel",)),
    )(*args)

    if pad:
        out = out[:ntot]
    return out.reshape(b, n, 2)


# ----------------------------------------------------------------------------
# Parameters (synthetic, deterministic) and pure-JAX reference.
# ----------------------------------------------------------------------------
def make_params(key, width=WIDTH):
    ks = jax.random.split(key, 6)

    def linear(k, fan_in, fan_out):
        kw, kb = jax.random.split(k)
        bound = 1.0 / np.sqrt(fan_in)
        w = jax.random.uniform(kw, (fan_in, fan_out), jnp.float32, -bound, bound)
        bias = jax.random.uniform(kb, (1, fan_out), jnp.float32, -bound, bound)
        return w, bias

    w0, b0 = linear(ks[0], 4, width)
    wnc, bnc = linear(ks[1], 3 * width, 4 * width)
    w1, b1 = linear(ks[2], 4 * width, 4 * width)
    w2, b2 = linear(ks[3], 4 * width, 4 * width)
    w3, b3 = linear(ks[4], 4 * width, 4 * width)
    w4, b4 = linear(ks[5], 4 * width, 2)

    # E[d, d*(w/4)+k] = pi * 2^k  -> row-wise broadcast reproduces torch's
    # (B * xd.view(b,n,4,1)).view(b,n,w) column ordering.
    bvec = np.pi * (2.0 ** np.arange(width // 4, dtype=np.float32))
    e = np.zeros((4, width), np.float32)
    for d in range(4):
        e[d, d * (width // 4):(d + 1) * (width // 4)] = bvec

    return dict(E=jnp.asarray(e), w0=w0, b0=b0, wnc=wnc, bnc=bnc,
                w1=w1, b1=b1, w2=w2, b2=b2, w3=w3, b3=b3, w4=w4, b4=b4)


def iphi_reference(x, params, width=WIDTH):
    angle = jnp.arctan2(x[:, :, 1] - CENTER_Y, x[:, :, 0] - CENTER_X)
    radius = jnp.sqrt((x[:, :, 0] - CENTER_X) ** 2 + (x[:, :, 1] - CENTER_Y) ** 2)
    xd = jnp.stack([x[:, :, 0], x[:, :, 1], angle, radius], axis=-1)   # (b,n,4)
    b, n, d = xd.shape
    bvec = jnp.asarray(np.pi * (2.0 ** np.arange(width // 4, dtype=np.float32)))
    arg = xd[..., None] * bvec.reshape(1, 1, 1, -1)                    # (b,n,4,w/4)
    x_sin = jnp.sin(arg).reshape(b, n, d * width // 4)
    x_cos = jnp.cos(arg).reshape(b, n, d * width // 4)

    h0 = xd @ params["w0"] + params["b0"]
    feat = jnp.concatenate([h0, x_sin, x_cos], axis=-1)                # (b,n,3w)
    h = feat @ params["wnc"] + params["bnc"]
    h = jnp.tanh(h @ params["w1"] + params["b1"])
    h = jnp.tanh(h @ params["w2"] + params["b2"])
    h = jnp.tanh(h @ params["w3"] + params["b3"])
    xd_out = h @ params["w4"] + params["b4"]
    return x + x * xd_out


if __name__ == "__main__":
    B, N = 2, 256   # batch of 2 geometries, 256 mesh points each
    key = jax.random.PRNGKey(0)
    kx, kp = jax.random.split(key)

    # Normalized mesh coordinates in (0.1, 1.0).
    x = 0.1 + 0.9 * jax.random.uniform(kx, (B, N, 2), jnp.float32)
    params = make_params(kp)

    out = jax.jit(iphi_forward)(x, params)
    out = jax.block_until_ready(out)
    assert out.shape == (B, N, 2), out.shape
    assert bool(jnp.all(jnp.isfinite(out)))

    ref = iphi_reference(x, params)
    max_err = float(jnp.max(jnp.abs(out - ref)))
    assert jnp.allclose(out, ref, atol=2e-3, rtol=2e-3), f"max abs err {max_err}"

    print("KERNEL_OK")
</pallas_src>

<mosaic_0001>
module attributes {stable_mosaic.version = 11 : i64} {
  func.func @_iphi_kernel(%arg0: i32, %arg1: memref<128x2xf32, #tpu.memory_space<vmem>>, %arg2: memref<4x32xf32, #tpu.memory_space<vmem>>, %arg3: memref<4x32xf32, #tpu.memory_space<vmem>>, %arg4: memref<1x32xf32, #tpu.memory_space<vmem>>, %arg5: memref<96x128xf32, #tpu.memory_space<vmem>>, %arg6: memref<1x128xf32, #tpu.memory_space<vmem>>, %arg7: memref<128x128xf32, #tpu.memory_space<vmem>>, %arg8: memref<1x128xf32, #tpu.memory_space<vmem>>, %arg9: memref<128x128xf32, #tpu.memory_space<vmem>>, %arg10: memref<1x128xf32, #tpu.memory_space<vmem>>, %arg11: memref<128x128xf32, #tpu.memory_space<vmem>>, %arg12: memref<1x128xf32, #tpu.memory_space<vmem>>, %arg13: memref<128x2xf32, #tpu.memory_space<vmem>>, %arg14: memref<1x2xf32, #tpu.memory_space<vmem>>, %arg15: memref<128x2xf32, #tpu.memory_space<vmem>>) attributes {dimension_semantics = [#tpu.dimension_semantics<parallel>], iteration_bounds = array<i64: 4>, scalar_prefetch = 0 : i64, scratch_operands = 0 : i64, tpu.core_type = #tpu.core_type<tc>, window_params = [{transform_indices = @transform_0, window_bounds = array<i64: 128, 2>}, {pipeline_mode = #tpu.pipeline_mode<synchronous>, transform_indices = @transform_1, window_bounds = array<i64: 4, 32>}, {pipeline_mode = #tpu.pipeline_mode<synchronous>, transform_indices = @transform_2, window_bounds = array<i64: 4, 32>}, {pipeline_mode = #tpu.pipeline_mode<synchronous>, transform_indices = @transform_3, window_bounds = array<i64: 1, 32>}, {pipeline_mode = #tpu.pipeline_mode<synchronous>, transform_indices = @transform_4, window_bounds = array<i64: 96, 128>}, {pipeline_mode = #tpu.pipeline_mode<synchronous>, transform_indices = @transform_5, window_bounds = array<i64: 1, 128>}, {pipeline_mode = #tpu.pipeline_mode<synchronous>, transform_indices = @transform_6, window_bounds = array<i64: 128, 128>}, {pipeline_mode = #tpu.pipeline_mode<synchronous>, transform_indices = @transform_7, window_bounds = array<i64: 1, 128>}, {pipeline_mode = #tpu.pipeline_mode<synchronous>, transform_indices = @transform_8, window_bounds = array<i64: 128, 128>}, {pipeline_mode = #tpu.pipeline_mode<synchronous>, transform_indices = @transform_9, window_bounds = array<i64: 1, 128>}, {pipeline_mode = #tpu.pipeline_mode<synchronous>, transform_indices = @transform_10, window_bounds = array<i64: 128, 128>}, {pipeline_mode = #tpu.pipeline_mode<synchronous>, transform_indices = @transform_11, window_bounds = array<i64: 1, 128>}, {pipeline_mode = #tpu.pipeline_mode<synchronous>, transform_indices = @transform_12, window_bounds = array<i64: 128, 2>}, {pipeline_mode = #tpu.pipeline_mode<synchronous>, transform_indices = @transform_13, window_bounds = array<i64: 1, 2>}, {transform_indices = @transform_14, window_bounds = array<i64: 128, 2>}]} {
    %c0 = arith.constant 0 : index
    %c0_0 = arith.constant 0 : index
    %0 = vector.load %arg1[%c0, %c0_0] : memref<128x2xf32, #tpu.memory_space<vmem>>, vector<128x2xf32>
    %1 = vector.extract_strided_slice %0 {offsets = [0, 0], sizes = [128, 1], strides = [1, 1]} : vector<128x2xf32> to vector<128x1xf32>
    %2 = vector.extract_strided_slice %0 {offsets = [0, 1], sizes = [128, 1], strides = [1, 1]} : vector<128x2xf32> to vector<128x1xf32>
    %cst = arith.constant 9.99999974E-5 : f32
    %3 = vector.broadcast %cst : f32 to vector<128x1xf32>
    %4 = arith.subf %1, %3 : vector<128x1xf32>
    %cst_1 = arith.constant 9.99999974E-5 : f32
    %5 = vector.broadcast %cst_1 : f32 to vector<128x1xf32>
    %6 = arith.subf %2, %5 : vector<128x1xf32>
    %7 = math.atan2 %6, %4 : vector<128x1xf32>
    %8 = arith.mulf %4, %4 : vector<128x1xf32>
    %9 = arith.mulf %6, %6 : vector<128x1xf32>
    %10 = arith.addf %8, %9 : vector<128x1xf32>
    %11 = math.sqrt %10 : vector<128x1xf32>
    %c0_2 = arith.constant 0 : index
    %c0_3 = arith.constant 0 : index
    %12 = vector.load %arg2[%c0_2, %c0_3] : memref<4x32xf32, #tpu.memory_space<vmem>>, vector<4x32xf32>
    %13 = vector.extract_strided_slice %12 {offsets = [0, 0], sizes = [1, 32], strides = [1, 1]} : vector<4x32xf32> to vector<1x32xf32>
    %14 = vector.broadcast %1 : vector<128x1xf32> to vector<128x32xf32>
    %15 = vector.broadcast %13 : vector<1x32xf32> to vector<128x32xf32>
    %16 = arith.mulf %14, %15 : vector<128x32xf32>
    %17 = vector.extract_strided_slice %12 {offsets = [1, 0], sizes = [1, 32], strides = [1, 1]} : vector<4x32xf32> to vector<1x32xf32>
    %18 = vector.broadcast %2 : vector<128x1xf32> to vector<128x32xf32>
    %19 = vector.broadcast %17 : vector<1x32xf32> to vector<128x32xf32>
    %20 = arith.mulf %18, %19 : vector<128x32xf32>
    %21 = arith.addf %16, %20 : vector<128x32xf32>
    %22 = vector.extract_strided_slice %12 {offsets = [2, 0], sizes = [1, 32], strides = [1, 1]} : vector<4x32xf32> to vector<1x32xf32>
    %23 = vector.broadcast %7 : vector<128x1xf32> to vector<128x32xf32>
    %24 = vector.broadcast %22 : vector<1x32xf32> to vector<128x32xf32>
    %25 = arith.mulf %23, %24 : vector<128x32xf32>
    %26 = arith.addf %21, %25 : vector<128x32xf32>
    %27 = vector.extract_strided_slice %12 {offsets = [3, 0], sizes = [1, 32], strides = [1, 1]} : vector<4x32xf32> to vector<1x32xf32>
    %28 = vector.broadcast %11 : vector<128x1xf32> to vector<128x32xf32>
    %29 = vector.broadcast %27 : vector<1x32xf32> to vector<128x32xf32>
    %30 = arith.mulf %28, %29 : vector<128x32xf32>
    %31 = arith.addf %26, %30 : vector<128x32xf32>
    %32 = math.sin %31 : vector<128x32xf32>
    %33 = math.cos %31 : vector<128x32xf32>
    %c0_4 = arith.constant 0 : index
    %c0_5 = arith.constant 0 : index
    %34 = vector.load %arg3[%c0_4, %c0_5] : memref<4x32xf32, #tpu.memory_space<vmem>>, vector<4x32xf32>
    %35 = vector.extract_strided_slice %34 {offsets = [0, 0], sizes = [1, 32], strides = [1, 1]} : vector<4x32xf32> to vector<1x32xf32>
    %36 = vector.broadcast %1 : vector<128x1xf32> to vector<128x32xf32>
    %37 = vector.broadcast %35 : vector<1x32xf32> to vector<128x32xf32>
    %38 = arith.mulf %36, %37 : vector<128x32xf32>
    %39 = vector.extract_strided_slice %34 {offsets = [1, 0], sizes = [1, 32], strides = [1, 1]} : vector<4x32xf32> to vector<1x32xf32>
    %40 = vector.broadcast %2 : vector<128x1xf32> to vector<128x32xf32>
    %41 = vector.broadcast %39 : vector<1x32xf32> to vector<128x32xf32>
    %42 = arith.mulf %40, %41 : vector<128x32xf32>
    %43 = arith.addf %38, %42 : vector<128x32xf32>
    %44 = vector.extract_strided_slice %34 {offsets = [2, 0], sizes = [1, 32], strides = [1, 1]} : vector<4x32xf32> to vector<1x32xf32>
    %45 = vector.broadcast %7 : vector<128x1xf32> to vector<128x32xf32>
    %46 = vector.broadcast %44 : vector<1x32xf32> to vector<128x32xf32>
    %47 = arith.mulf %45, %46 : vector<128x32xf32>
    %48 = arith.addf %43, %47 : vector<128x32xf32>
    %49 = vector.extract_strided_slice %34 {offsets = [3, 0], sizes = [1, 32], strides = [1, 1]} : vector<4x32xf32> to vector<1x32xf32>
    %50 = vector.broadcast %11 : vector<128x1xf32> to vector<128x32xf32>
    %51 = vector.broadcast %49 : vector<1x32xf32> to vector<128x32xf32>
    %52 = arith.mulf %50, %51 : vector<128x32xf32>
    %53 = arith.addf %48, %52 : vector<128x32xf32>
    %c0_6 = arith.constant 0 : index
    %c0_7 = arith.constant 0 : index
    %54 = vector.load %arg4[%c0_6, %c0_7] : memref<1x32xf32, #tpu.memory_space<vmem>>, vector<1x32xf32>
    %55 = vector.broadcast %54 : vector<1x32xf32> to vector<128x32xf32>
    %56 = arith.addf %53, %55 : vector<128x32xf32>
    %c0_8 = arith.constant 0 : index
    %c0_9 = arith.constant 0 : index
    %57 = vector.load %arg5[%c0_8, %c0_9] : memref<96x128xf32, #tpu.memory_space<vmem>>, vector<32x128xf32>
    %cst_10 = arith.constant dense<0.000000e+00> : vector<128x128xf32>
    %58 = tpu.matmul %56, %57, %cst_10 {dimension_numbers = #tpu.dot_dimension_numbers<[1], [0], [0], [1], [0, 0, 1, 1], [], []>} : vector<128x32xf32>, vector<32x128xf32>, vector<128x128xf32> -> vector<128x128xf32>
    %c32 = arith.constant 32 : index
    %c0_11 = arith.constant 0 : index
    %59 = vector.load %arg5[%c32, %c0_11] : memref<96x128xf32, #tpu.memory_space<vmem>>, vector<32x128xf32>
    %cst_12 = arith.constant dense<0.000000e+00> : vector<128x128xf32>
    %60 = tpu.matmul %32, %59, %cst_12 {dimension_numbers = #tpu.dot_dimension_numbers<[1], [0], [0], [1], [0, 0, 1, 1], [], []>} : vector<128x32xf32>, vector<32x128xf32>, vector<128x128xf32> -> vector<128x128xf32>
    %61 = arith.addf %58, %60 : vector<128x128xf32>
    %c64 = arith.constant 64 : index
    %c0_13 = arith.constant 0 : index
    %62 = vector.load %arg5[%c64, %c0_13] : memref<96x128xf32, #tpu.memory_space<vmem>>, vector<32x128xf32>
    %cst_14 = arith.constant dense<0.000000e+00> : vector<128x128xf32>
    %63 = tpu.matmul %33, %62, %cst_14 {dimension_numbers = #tpu.dot_dimension_numbers<[1], [0], [0], [1], [0, 0, 1, 1], [], []>} : vector<128x32xf32>, vector<32x128xf32>, vector<128x128xf32> -> vector<128x128xf32>
    %64 = arith.addf %61, %63 : vector<128x128xf32>
    %c0_15 = arith.constant 0 : index
    %c0_16 = arith.constant 0 : index
    %65 = vector.load %arg6[%c0_15, %c0_16] : memref<1x128xf32, #tpu.memory_space<vmem>>, vector<1x128xf32>
    %66 = vector.broadcast %65 : vector<1x128xf32> to vector<128x128xf32>
    %67 = arith.addf %64, %66 : vector<128x128xf32>
    %c0_17 = arith.constant 0 : index
    %c0_18 = arith.constant 0 : index
    %68 = vector.load %arg7[%c0_17, %c0_18] : memref<128x128xf32, #tpu.memory_space<vmem>>, vector<128x128xf32>
    %cst_19 = arith.constant dense<0.000000e+00> : vector<128x128xf32>
    %69 = tpu.matmul %67, %68, %cst_19 {dimension_numbers = #tpu.dot_dimension_numbers<[1], [0], [0], [1], [0, 0, 1, 1], [], []>} : vector<128x128xf32>, vector<128x128xf32>, vector<128x128xf32> -> vector<128x128xf32>
    %c0_20 = arith.constant 0 : index
    %c0_21 = arith.constant 0 : index
    %70 = vector.load %arg8[%c0_20, %c0_21] : memref<1x128xf32, #tpu.memory_space<vmem>>, vector<1x128xf32>
    %71 = vector.broadcast %70 : vector<1x128xf32> to vector<128x128xf32>
    %72 = arith.addf %69, %71 : vector<128x128xf32>
    %73 = math.tanh %72 : vector<128x128xf32>
    %c0_22 = arith.constant 0 : index
    %c0_23 = arith.constant 0 : index
    %74 = vector.load %arg9[%c0_22, %c0_23] : memref<128x128xf32, #tpu.memory_space<vmem>>, vector<128x128xf32>
    %cst_24 = arith.constant dense<0.000000e+00> : vector<128x128xf32>
    %75 = tpu.matmul %73, %74, %cst_24 {dimension_numbers = #tpu.dot_dimension_numbers<[1], [0], [0], [1], [0, 0, 1, 1], [], []>} : vector<128x128xf32>, vector<128x128xf32>, vector<128x128xf32> -> vector<128x128xf32>
    %c0_25 = arith.constant 0 : index
    %c0_26 = arith.constant 0 : index
    %76 = vector.load %arg10[%c0_25, %c0_26] : memref<1x128xf32, #tpu.memory_space<vmem>>, vector<1x128xf32>
    %77 = vector.broadcast %76 : vector<1x128xf32> to vector<128x128xf32>
    %78 = arith.addf %75, %77 : vector<128x128xf32>
    %79 = math.tanh %78 : vector<128x128xf32>
    %c0_27 = arith.constant 0 : index
    %c0_28 = arith.constant 0 : index
    %80 = vector.load %arg11[%c0_27, %c0_28] : memref<128x128xf32, #tpu.memory_space<vmem>>, vector<128x128xf32>
    %cst_29 = arith.constant dense<0.000000e+00> : vector<128x128xf32>
    %81 = tpu.matmul %79, %80, %cst_29 {dimension_numbers = #tpu.dot_dimension_numbers<[1], [0], [0], [1], [0, 0, 1, 1], [], []>} : vector<128x128xf32>, vector<128x128xf32>, vector<128x128xf32> -> vector<128x128xf32>
    %c0_30 = arith.constant 0 : index
    %c0_31 = arith.constant 0 : index
    %82 = vector.load %arg12[%c0_30, %c0_31] : memref<1x128xf32, #tpu.memory_space<vmem>>, vector<1x128xf32>
    %83 = vector.broadcast %82 : vector<1x128xf32> to vector<128x128xf32>
    %84 = arith.addf %81, %83 : vector<128x128xf32>
    %85 = math.tanh %84 : vector<128x128xf32>
    %c0_32 = arith.constant 0 : index
    %c0_33 = arith.constant 0 : index
    %86 = vector.load %arg13[%c0_32, %c0_33] : memref<128x2xf32, #tpu.memory_space<vmem>>, vector<128x2xf32>
    %cst_34 = arith.constant dense<0.000000e+00> : vector<128x2xf32>
    %87 = tpu.matmul %85, %86, %cst_34 {dimension_numbers = #tpu.dot_dimension_numbers<[1], [0], [0], [1], [0, 0, 1, 1], [], []>} : vector<128x128xf32>, vector<128x2xf32>, vector<128x2xf32> -> vector<128x2xf32>
    %c0_35 = arith.constant 0 : index
    %c0_36 = arith.constant 0 : index
    %88 = vector.load %arg14[%c0_35, %c0_36] : memref<1x2xf32, #tpu.memory_space<vmem>>, vector<1x2xf32>
    %89 = vector.broadcast %88 : vector<1x2xf32> to vector<128x2xf32>
    %90 = arith.addf %87, %89 : vector<128x2xf32>
    %91 = arith.mulf %0, %90 : vector<128x2xf32>
    %92 = arith.addf %0, %91 : vector<128x2xf32>
    %c0_37 = arith.constant 0 : index
    %c0_38 = arith.constant 0 : index
    %93 = vector.load %arg15[%c0_37, %c0_38] : memref<128x2xf32, #tpu.memory_space<vmem>>, vector<128x2xf32>
    tpu.vector_store %arg15[%c0_37, %c0_38], %92 {strides = array<i32>} : memref<128x2xf32, #tpu.memory_space<vmem>>, vector<128x2xf32>,
    return
  }
  func.func @transform_0(%arg0: i32) -> (i32, i32) {
    %c0_i32 = arith.constant 0 : i32
    %c0_i32_0 = arith.constant 0 : i32
    return %arg0, %c0_i32 : i32, i32
  }
  func.func @transform_1(%arg0: i32) -> (i32, i32) {
    %c0_i32 = arith.constant 0 : i32
    %c0_i32_0 = arith.constant 0 : i32
    %c0_i32_1 = arith.constant 0 : i32
    return %c0_i32, %c0_i32_0 : i32, i32
  }
  func.func @transform_2(%arg0: i32) -> (i32, i32) {
    %c0_i32 = arith.constant 0 : i32
    %c0_i32_0 = arith.constant 0 : i32
    %c0_i32_1 = arith.constant 0 : i32
    return %c0_i32, %c0_i32_0 : i32, i32
  }
  func.func @transform_3(%arg0: i32) -> (i32, i32) {
    %c0_i32 = arith.constant 0 : i32
    %c0_i32_0 = arith.constant 0 : i32
    %c0_i32_1 = arith.constant 0 : i32
    return %c0_i32, %c0_i32_0 : i32, i32
  }
  func.func @transform_4(%arg0: i32) -> (i32, i32) {
    %c0_i32 = arith.constant 0 : i32
    %c0_i32_0 = arith.constant 0 : i32
    %c0_i32_1 = arith.constant 0 : i32
    return %c0_i32, %c0_i32_0 : i32, i32
  }
  func.func @transform_5(%arg0: i32) -> (i32, i32) {
    %c0_i32 = arith.constant 0 : i32
    %c0_i32_0 = arith.constant 0 : i32
    %c0_i32_1 = arith.constant 0 : i32
    return %c0_i32, %c0_i32_0 : i32, i32
  }
  func.func @transform_6(%arg0: i32) -> (i32, i32) {
    %c0_i32 = arith.constant 0 : i32
    %c0_i32_0 = arith.constant 0 : i32
    %c0_i32_1 = arith.constant 0 : i32
    return %c0_i32, %c0_i32_0 : i32, i32
  }
  func.func @transform_7(%arg0: i32) -> (i32, i32) {
    %c0_i32 = arith.constant 0 : i32
    %c0_i32_0 = arith.constant 0 : i32
    %c0_i32_1 = arith.constant 0 : i32
    return %c0_i32, %c0_i32_0 : i32, i32
  }
  func.func @transform_8(%arg0: i32) -> (i32, i32) {
    %c0_i32 = arith.constant 0 : i32
    %c0_i32_0 = arith.constant 0 : i32
    %c0_i32_1 = arith.constant 0 : i32
    return %c0_i32, %c0_i32_0 : i32, i32
  }
  func.func @transform_9(%arg0: i32) -> (i32, i32) {
    %c0_i32 = arith.constant 0 : i32
    %c0_i32_0 = arith.constant 0 : i32
    %c0_i32_1 = arith.constant 0 : i32
    return %c0_i32, %c0_i32_0 : i32, i32
  }
  func.func @transform_10(%arg0: i32) -> (i32, i32) {
    %c0_i32 = arith.constant 0 : i32
    %c0_i32_0 = arith.constant 0 : i32
    %c0_i32_1 = arith.constant 0 : i32
    return %c0_i32, %c0_i32_0 : i32, i32
  }
  func.func @transform_11(%arg0: i32) -> (i32, i32) {
    %c0_i32 = arith.constant 0 : i32
    %c0_i32_0 = arith.constant 0 : i32
    %c0_i32_1 = arith.constant 0 : i32
    return %c0_i32, %c0_i32_0 : i32, i32
  }
  func.func @transform_12(%arg0: i32) -> (i32, i32) {
    %c0_i32 = arith.constant 0 : i32
    %c0_i32_0 = arith.constant 0 : i32
    %c0_i32_1 = arith.constant 0 : i32
    return %c0_i32, %c0_i32_0 : i32, i32
  }
  func.func @transform_13(%arg0: i32) -> (i32, i32) {
    %c0_i32 = arith.constant 0 : i32
    %c0_i32_0 = arith.constant 0 : i32
    %c0_i32_1 = arith.constant 0 : i32
    return %c0_i32, %c0_i32_0 : i32, i32
  }
  func.func @transform_14(%arg0: i32) -> (i32, i32) {
    %c0_i32 = arith.constant 0 : i32
    %c0_i32_0 = arith.constant 0 : i32
    return %arg0, %c0_i32 : i32, i32
  }
}

</mosaic_0001>

<bundles_post_ra>
// kernel: iphi_forward.1
= control target key start
LH: loop header
LB: loop body
LE: loop exit
PB: predicated region body
PF: predicated region fallthrough
CT: control target
= control target key end

     0   :  { %s8252_s29 = smov 0   ;;  %s13036_s0 = inlined_call_operand.vmem [shape: f32[512,2], index: 0, kind: input, shape index: {}]   ;;  %s13037_s1 = inlined_call_operand.vmem [shape: f32[4,32], index: 1, kind: input, shape index: {}]   ;;  %s13038_s2 = inlined_call_operand.vmem [shape: f32[4,32], index: 2, kind: input, shape index: {}]   ;;  %s13039_s3 = inlined_call_operand.vmem [shape: f32[1,32], index: 3, kind: input, shape index: {}]   ;;  %s13040_s4 = inlined_call_operand.vmem [shape: f32[96,128], index: 4, kind: input, shape index: {}]   ;;  %s13041_s5 = inlined_call_operand.vmem [shape: f32[1,128], index: 5, kind: input, shape index: {}]   ;;  %s13042_s6 = inlined_call_operand.vmem [shape: f32[128,128], index: 6, kind: input, shape index: {}]   ;;  %s13043_s7 = inlined_call_operand.vmem [shape: f32[1,128], index: 7, kind: input, shape index: {}]   ;;  %s13044_s8 = inlined_call_operand.vmem [shape: f32[128,128], index: 8, kind: input, shape index: {}]   ;;  %s13045_s9 = inlined_call_operand.vmem [shape: f32[1,128], index: 9, kind: input, shape index: {}]   ;;  %s13046_s10 = inlined_call_operand.vmem [shape: f32[128,128], index: 10, kind: input, shape index: {}]   ;;  %s13047_s11 = inlined_call_operand.vmem [shape: f32[1,128], index: 11, kind: input, shape index: {}]   ;;  %s13048_s12 = inlined_call_operand.vmem [shape: f32[128,2], index: 12, kind: input, shape index: {}]   ;;  %s13049_s13 = inlined_call_operand.vmem [shape: f32[1,2], index: 13, kind: input, shape index: {}]   ;;  %s13050_s14 = inlined_call_operand.vmem [shape: f32[512,2], index: 14, kind: output, shape index: {}]  }
   0x1 LB: > { %s6880_s30 = sadd.s32 4294967295, %s8163_s29   ;;  %p6884_p0 = scmp.ge.s32.totalorder %s8163_s29, 1  ;;  %s8163_s29 = sphi %s8252_s29, %s24_s29  }
   0x2   : > { %p413_p1 = scmp.lt.s32.totalorder %s8163_s29, 5 }
   0x4   : > { %p414_p2 = pnand %p6884_p0, %p413_p1 }
   0x6   : > { %417 = sbr.rel (%p414_p2) target bundleno = 2104 (0x838), region = 76 }
   0xd   : > { %s6885_s15 = sshll.u32 %s6880_s30, 4  ;;  %v13058_v0 = vmov 1   ;;  %s8166_s20 = smov 1   ;;  %v13051_v49 = vmov 0  }
   0xe   : > { %p460_p3 = scmp.lt.s32.totalorder %s6885_s15, 63  ;;  %7883 = vset.pattern.permute.xlu0 %v13058_v0  ;;  %7881 = vset.pattern.permute.xlu1 %v13058_v0  ;;  %s8167_s21 = smov 127  }
  0x10   : > { %s13906_s15 = smov (!%p460_p3, %s6885_s15), 63 }
  0x11   : > { %s6886_s16 = sshll.u32 %s13906_s15, 3 }
  0x12   : > { %s8270_s19 = scalar_lea.vmem %s13036_s0, %s6886_s16  ;;  %s12970_s24 = scalar_lea.vmem %s13050_s14, %s6886_s16 }
  0x13   : > { %v8273_v1 = vld [vmem:[%s8270_s19 + $0x10] sm:$0xff]  ;;  %v8276_v2 = vld [vmem:[%s8270_s19] sm:$0xff]  ;;  %v8279_v3 = vld [vmem:[%s8270_s19 + $0x18] sm:$0xff] }
  0x14   : > { %v8282_v4 = vadd.f32 -0.0001, %v8273_v1  ;;  %v8285_v5 = vadd.f32 -0.0001, %v8276_v2  ;;  %v8288_v6 = vld [vmem:[%s8270_s19 + $0x8] sm:$0xff]  ;;  %v8304_v10 = vld [vmem:[%s8270_s19 + $0x20] sm:$0xff] }
  0x15   : > { %v8295_v7 = vadd.f32 -0.0001, %v8279_v3  ;;  %v8298_v8 = vadd.f32 -0.0001, %v8288_v6  ;;  %v8301_v9 = vld [vmem:[%s8270_s19 + $0x28] sm:$0xff]  ;;  %v8317_v13 = vld [vmem:[%s8270_s19 + $0x38] sm:$0xff] }
  0x16   : > { %13349 = vst [vmem:[#allocation2_spill] sm:$0xff] %v8282_v4  ;;  %13350 = vst [vmem:[#allocation3_spill] sm:$0xff] %v8285_v5  ;;  %523 = vrot.lane.b32.xlu1 %v8282_v4, %s8166_s20  ;;  %519 = vrot.lane.b32.xlu0 %v8285_v5, %s8166_s20  ;;  %v8311_v11 = vadd.f32 -0.0001, %v8301_v9  ;;  %v8314_v12 = vadd.f32 -0.0001, %v8304_v10  ;;  %v8394_v34 = vmul.f32 %v8285_v5, %v8285_v5 }
  0x17   : > { %13351 = vst [vmem:[#allocation4_spill] sm:$0xff] %v8295_v7  ;;  %13352 = vst [vmem:[#allocation5_spill] sm:$0xff] %v8298_v8  ;;  %v8320_v14 = vld [vmem:[%s8270_s19 + $0x30] sm:$0xff]  ;;  %v8327_v15 = vadd.f32 -0.0001, %v8317_v13  ;;  %v8333_v17 = vld [vmem:[%s8270_s19 + $0x48] sm:$0xff]  ;;  %v8390_v33 = vmul.f32 %v8298_v8, %v8298_v8  ;;  %v8400_v35 = vmul.f32 %v8295_v7, %v8295_v7  ;;  %v8404_v36 = vmul.f32 %v8282_v4, %v8282_v4 }
  0x18   : > { %13353 = vst [vmem:[#allocation6_spill] sm:$0xff] %v8311_v11  ;;  %13354 = vst [vmem:[#allocation7_spill] sm:$0xff] %v8314_v12  ;;  %v8330_v16 = vadd.f32 -0.0001, %v8320_v14  ;;  %v8336_v18 = vld [vmem:[%s8270_s19 + $0x40] sm:$0xff]  ;;  %v8349_v21 = vld [vmem:[%s8270_s19 + $0x58] sm:$0xff]  ;;  %v8410_v37 = vmul.f32 %v8311_v11, %v8311_v11  ;;  %v8414_v38 = vmul.f32 %v8314_v12, %v8314_v12 }
  0x19   : > { %13355 = vst [vmem:[#allocation8_spill] sm:$0xff] %v8327_v15  ;;  %v8343_v19 = vadd.f32 -0.0001, %v8333_v17  ;;  %v8346_v20 = vadd.f32 -0.0001, %v8336_v18  ;;  %v8352_v22 = vld [vmem:[%s8270_s19 + $0x50] sm:$0xff]  ;;  %v8420_v39 = vmul.f32 %v8327_v15, %v8327_v15 }
  0x1a   : > { %525 = vrot.lane.b32.xlu1 %v8295_v7, %s8166_s20  ;;  %521 = vrot.lane.b32.xlu0 %v8298_v8, %s8166_s20  ;;  %13356 = vst [vmem:[#allocation9_spill] sm:$0xff] %v8330_v16  ;;  %v8359_v23 = vadd.f32 -0.0001, %v8349_v21  ;;  %v8362_v24 = vadd.f32 -0.0001, %v8352_v22  ;;  %v484_v25 = vld [vmem:[%s8270_s19 + $0x68] sm:$0xff]  ;;  %v8424_v40 = vmul.f32 %v8330_v16, %v8330_v16 }
  0x1b   : > { %13357 = vst [vmem:[#allocation10_spill] sm:$0xff] %v8343_v19  ;;  %13358 = vst [vmem:[#allocation11_spill] sm:$0xff] %v8346_v20  ;;  %v483_v26 = vld [vmem:[%s8270_s19 + $0x60] sm:$0xff]  ;;  %v8370_v27 = vadd.f32 -0.0001, %v484_v25  ;;  %v486_v29 = vld [vmem:[%s8270_s19 + $0x78] sm:$0xff]  ;;  %v8430_v41 = vmul.f32 %v8343_v19, %v8343_v19  ;;  %v8434_v42 = vmul.f32 %v8346_v20, %v8346_v20 }
  0x1c   : > { %13359 = vst [vmem:[#allocation12_spill] sm:$0xff] %v8359_v23  ;;  %13360 = vst [vmem:[#allocation13_spill] sm:$0xff] %v8362_v24  ;;  %v8372_v28 = vadd.f32 -0.0001, %v483_v26  ;;  %v485_v30 = vld [vmem:[%s8270_s19 + $0x70] sm:$0xff]  ;;  %v8440_v43 = vmul.f32 %v8359_v23, %v8359_v23  ;;  %v8444_v44 = vmul.f32 %v8362_v24, %v8362_v24 }
  0x1d   : > { %13361 = vst [vmem:[#allocation14_spill] sm:$0xff] %v8370_v27  ;;  %v8380_v31 = vadd.f32 -0.0001, %v486_v29  ;;  %v8382_v32 = vadd.f32 -0.0001, %v485_v30  ;;  %13365 = vst [vmem:[#allocation18_spill] sm:$0xff] %v8390_v33  ;;  %v8450_v45 = vmul.f32 %v8370_v27, %v8370_v27 }
  0x1e   : > { %529 = vrot.lane.b32.xlu1 %v8311_v11, %s8166_s20  ;;  %527 = vrot.lane.b32.xlu0 %v8314_v12, %s8166_s20  ;;  %13362 = vst [vmem:[#allocation15_spill] sm:$0xff] %v8372_v28  ;;  %13366 = vst [vmem:[#allocation19_spill] sm:$0xff] %v8394_v34  ;;  %v8454_v46 = vmul.f32 %v8372_v28, %v8372_v28  ;;  %v8494_v50 = vand.u32 2147483647, %v8282_v4  ;;  %v8501_v53 = vand.u32 2147483647, %v8285_v5 }
  0x1f   : > { %13363 = vst [vmem:[#allocation16_spill] sm:$0xff] %v8380_v31  ;;  %13364 = vst [vmem:[#allocation17_spill] sm:$0xff] %v8382_v32  ;;  %v8460_v47 = vmul.f32 %v8380_v31, %v8380_v31  ;;  %v8464_v48 = vmul.f32 %v8382_v32, %v8382_v32  ;;  %v8513_v57 = vand.u32 2147483647, %v8295_v7  ;;  %v8521_v60 = vand.u32 2147483647, %v8298_v8 }
  0x20   : > { %13367 = vst [vmem:[#allocation20_spill] sm:$0xff] %v8400_v35  ;;  %13368 = vst [vmem:[#allocation21_spill] sm:$0xff] %v8404_v36  ;;  %v8560_v30 = vand.u32 2147483647, %v8327_v15 }
  0x21   : > { %13369 = vst [vmem:[#allocation22_spill] sm:$0xff] %v8410_v37  ;;  %13370 = vst [vmem:[#allocation23_spill] sm:$0xff] %v8414_v38 }
  0x22   : > { %533 = vrot.lane.b32.xlu1 %v8327_v15, %s8166_s20  ;;  %531 = vrot.lane.b32.xlu0 %v8330_v16, %s8166_s20  ;;  %13371 = vst [vmem:[#allocation24_spill] sm:$0xff] %v8420_v39  ;;  %13372 = vst [vmem:[#allocation25_spill] sm:$0xff] %v8424_v40 }
  0x23   : > { %13373 = vst [vmem:[#allocation26_spill] sm:$0xff] %v8430_v41  ;;  %13374 = vst [vmem:[#allocation27_spill] sm:$0xff] %v8434_v42 }
  0x24   : > { %13375 = vst [vmem:[#allocation28_spill] sm:$0xff] %v8440_v43  ;;  %13376 = vst [vmem:[#allocation29_spill] sm:$0xff] %v8444_v44 }
  0x25   : > { %13377 = vst [vmem:[#allocation30_spill] sm:$0xff] %v8450_v45  ;;  %13378 = vst [vmem:[#allocation31_spill] sm:$0xff] %v8454_v46 }
  0x26   : > { %537 = vrot.lane.b32.xlu1 %v8343_v19, %s8166_s20  ;;  %535 = vrot.lane.b32.xlu0 %v8346_v20, %s8166_s20  ;;  %13379 = vst [vmem:[#allocation32_spill] sm:$0xff] %v8460_v47  ;;  %13380 = vst [vmem:[#allocation33_spill] sm:$0xff] %v8464_v48 }
  0x27   : > { %13381 = vst [vmem:[#allocation34_spill] sm:$0xff] %v8494_v50  ;;  %13383 = vst [vmem:[#allocation36_spill] sm:$0xff] %v8501_v53 }
  0x28   : > { %13386 = vst [vmem:[#allocation39_spill] sm:$0xff] %v8513_v57  ;;  %13388 = vst [vmem:[#allocation41_spill] sm:$0xff] %v8521_v60 }
  0x29   : > { %13397 = vst [vmem:[#allocation50_spill] sm:$0xff] %v8560_v30 }
  0x2a   : > { %541 = vrot.lane.b32.xlu1 %v8359_v23, %s8166_s20  ;;  %539 = vrot.lane.b32.xlu0 %v8362_v24, %s8166_s20 }
  0x2e   : > { %545 = vrot.lane.b32.xlu1 %v8370_v27, %s8166_s20  ;;  %543 = vrot.lane.b32.xlu0 %v8372_v28, %s8166_s20 }
  0x32   : > { %549 = vrot.lane.b32.xlu1 %v8380_v31, %s8166_s20  ;;  %547 = vrot.lane.b32.xlu0 %v8382_v32, %s8166_s20 }
  0x36   : > { %1353 = vrot.lane.b32.xlu1 %v8390_v33, %s8167_s21  ;;  %1351 = vrot.lane.b32.xlu0 %v8394_v34, %s8167_s21 }
  0x3a   : > { %1357 = vrot.lane.b32.xlu1 %v8400_v35, %s8167_s21  ;;  %1355 = vrot.lane.b32.xlu0 %v8404_v36, %s8167_s21 }
  0x3e   : > { %1361 = vrot.lane.b32.xlu1 %v8410_v37, %s8167_s21  ;;  %1359 = vrot.lane.b32.xlu0 %v8414_v38, %s8167_s21 }
  0x42   : > { %1365 = vrot.lane.b32.xlu1 %v8420_v39, %s8167_s21  ;;  %1363 = vrot.lane.b32.xlu0 %v8424_v40, %s8167_s21 }
  0x46   : > { %1369 = vrot.lane.b32.xlu1 %v8430_v41, %s8167_s21  ;;  %1367 = vrot.lane.b32.xlu0 %v8434_v42, %s8167_s21 }
  0x4a   : > { %1373 = vrot.lane.b32.xlu1 %v8440_v43, %s8167_s21  ;;  %1371 = vrot.lane.b32.xlu0 %v8444_v44, %s8167_s21 }
  0x4e   : > { %1377 = vrot.lane.b32.xlu1 %v8450_v45, %s8167_s21  ;;  %1375 = vrot.lane.b32.xlu0 %v8454_v46, %s8167_s21 }
  0x52   : > { %1381 = vrot.lane.b32.xlu1 %v8460_v47, %s8167_s21  ;;  %1379 = vrot.lane.b32.xlu0 %v8464_v48, %s8167_s21 }
  0x56   : > { %1629 = vperm.xlu1 %7881, %v8276_v2   ;;  %1633 = vperm.xlu0 %7883, %v8288_v6  }
  0x5a   : > { %7882 = vset.pattern.permute.xlu1 %v13051_v49  ;;  %7884 = vset.pattern.permute.xlu0 %v13051_v49 }
  0x5b   : > { %1535 = vperm.xlu1 %7882, %v8288_v6   ;;  %1530 = vperm.xlu0 %7884, %v8276_v2  }
  0x5f   : > { %7885 = vset.pattern.permute.xlu1 %v13058_v0  ;;  %1540 = vperm.xlu0 %7884, %v8273_v1  }
  0x60   : > { %1637 = vperm.xlu1 %7885, %v8273_v1  }
  0x63   : > { %1545 = vperm.xlu0 %7884, %v8279_v3  }
  0x64   : > { %1641 = vperm.xlu1 %7885, %v8279_v3   ;;  %v8536_v3 = vand.u32 2147483647, %v8311_v11 }
  0x66   : > { %13391 = vst [vmem:[#allocation44_spill] sm:$0xff] %v8536_v3 }
  0x68   : > { %7886 = vset.pattern.permute.xlu1 %v13051_v49 }
  0x69   : > { %1550 = vperm.xlu1 %7886, %v8304_v10  }
  0x6d   : > { %7887 = vset.pattern.permute.xlu1 %v13058_v0 }
  0x6e   : > { %1645 = vperm.xlu1 %7887, %v8304_v10   ;;  %v8544_v10 = vand.u32 2147483647, %v8314_v12 }
  0x70   : > { %13393 = vst [vmem:[#allocation46_spill] sm:$0xff] %v8544_v10 }
  0x72   : > { %7888 = vset.pattern.permute.xlu1 %v13051_v49 }
  0x73   : > { %1555 = vperm.xlu1 %7888, %v8301_v9  }
  0x77   : > { %7889 = vset.pattern.permute.xlu1 %v13058_v0 }
  0x78   : > { %1649 = vperm.xlu1 %7889, %v8301_v9  }
  0x7c   : > { %7890 = vset.pattern.permute.xlu1 %v13051_v49 }
  0x7d   : > { %1560 = vperm.xlu1 %7890, %v8320_v14  }
  0x81   : > { %7891 = vset.pattern.permute.xlu1 %v13058_v0 }
  0x82   : > { %1653 = vperm.xlu1 %7891, %v8320_v14  }
  0x86   : > { %7892 = vset.pattern.permute.xlu1 %v13051_v49 }
  0x87   : > { %1565 = vperm.xlu1 %7892, %v8317_v13  }
  0x88   : > { %v8496_v51 = vpop.permute.xlu1 %523  ;;  %v8498_v52 = vpop.permute.xlu0 %519 }
  0x89   : > { %13382 = vst [vmem:[#allocation35_spill] sm:$0xff] %v8496_v51  ;;  %v8504_v54 = vand.u32 2147483647, %v8496_v51  ;;  %v8507_v55 = vand.u32 2147483647, %v8498_v52  ;;  %vm691_vm0 = vcmp.lt.s32.totalorder %v8496_v51, 0 }
  0x8a   : > { %vm597_vm1 = vcmp.lt.s32.totalorder %v8498_v52, 0  ;;  %vm594_vm2 = vcmp.lt.f32.partialorder %v8498_v52, 0.0 }
  0x8b   : > { %13384 = vst [vmem:[#allocation37_spill] sm:$0xff] %v8504_v54  ;;  %13385 = vst [vmem:[#allocation38_spill] sm:$0xff] %v8507_v55  ;;  %v664_v56 = vmax.f32 %v8504_v54, %v8494_v50  ;;  %7893 = vset.pattern.permute.xlu1 %v13058_v0  ;;  %v570_v58 = vmax.f32 %v8507_v55, %v8501_v53  ;;  %vm591_vm5 = vcmp.gt.f32.partialorder %v8501_v53, %v8507_v55 }
  0x8c   : > { %v8517_v59 = vpop.permute.xlu1 %525  ;;  %1657 = vperm.xlu1 %7893, %v8317_v13   ;;  %v8523_v61 = vpop.permute.xlu0 %521  ;;  %vm685_vm9 = vcmp.gt.f32.partialorder %v8494_v50, %v8504_v54 }
  0x8d   : > { %13387 = vst [vmem:[#allocation40_spill] sm:$0xff] %v8517_v59  ;;  %7913 = vrcp.f32 %v664_v56  ;;  %v8526_v62 = vand.u32 2147483647, %v8517_v59  ;;  %v8529_v63 = vand.u32 2147483647, %v8523_v61  ;;  %vm738_vm3 = vcmp.lt.s32.totalorder %v8517_v59, 0 }
  0x8e   : > { %7915 = vrcp.f32 %v570_v58  ;;  %v663_v58 = vmin.f32 %v8504_v54, %v8494_v50  ;;  %vm641_vm4 = vcmp.lt.f32.partialorder %v8523_v61, 0.0  ;;  %vm644_vm6 = vcmp.lt.s32.totalorder %v8523_v61, 0 }
  0x8f   : > { %13389 = vst [vmem:[#allocation42_spill] sm:$0xff] %v8526_v62  ;;  %13390 = vst [vmem:[#allocation43_spill] sm:$0xff] %v8529_v63  ;;  %v711_v1 = vmax.f32 %v8526_v62, %v8513_v57  ;;  %v617_v2 = vmax.f32 %v8529_v63, %v8521_v60  ;;  %vm638_vm8 = vcmp.gt.f32.partialorder %v8521_v60, %v8529_v63 }
  0x90   : > { %v8538_v6 = vpop.permute.xlu1 %529  ;;  %7894 = vset.pattern.permute.xlu1 %v13051_v49  ;;  %v8541_v9 = vpop.permute.xlu0 %527  ;;  %v569_v49 = vmin.f32 %v8507_v55, %v8501_v53 }
  0x91   : > { %13392 = vst [vmem:[#allocation45_spill] sm:$0xff] %v8538_v6  ;;  %7917 = vrcp.f32 %v711_v1  ;;  %1570 = vperm.xlu1 %7894, %v8336_v18   ;;  %v8548_v13 = vand.u32 2147483647, %v8538_v6  ;;  %v8551_v14 = vand.u32 2147483647, %v8541_v9  ;;  %vm832_vm7 = vcmp.lt.s32.totalorder %v8538_v6, 0 }
  0x92   : > { %7919 = vrcp.f32 %v617_v2  ;;  %v8568_v1 = vand.u32 2147483647, %v8330_v16  ;;  %vm785_vm10 = vcmp.lt.s32.totalorder %v8541_v9, 0  ;;  %vm782_vm11 = vcmp.lt.f32.partialorder %v8541_v9, 0.0 }
  0x93   : > { %13394 = vst [vmem:[#allocation47_spill] sm:$0xff] %v8548_v13  ;;  %13395 = vst [vmem:[#allocation48_spill] sm:$0xff] %v8551_v14  ;;  %v805_v25 = vmax.f32 %v8548_v13, %v8536_v3  ;;  %v758_v29 = vmax.f32 %v8551_v14, %v8544_v10  ;;  %v804_v40 = vmin.f32 %v8548_v13, %v8536_v3 }
  0x94   : > { %v8555_v26 = vpop.permute.xlu1 %533  ;;  %v8562_v56 = vpop.permute.xlu0 %531  ;;  %13398 = vst [vmem:[#allocation51_spill] sm:$0xff] %v8568_v1  ;;  %vm779_vm13 = vcmp.gt.f32.partialorder %v8544_v10, %v8551_v14 }
  0x95   : > { %13396 = vst [vmem:[#allocation49_spill] sm:$0xff] %v8555_v26  ;;  %7895 = vset.pattern.permute.xlu1 %v13058_v0  ;;  %7921 = vrcp.f32 %v805_v25  ;;  %v8574_v15 = vand.u32 2147483647, %v8555_v26  ;;  %v8579_v0 = vand.u32 2147483647, %v8562_v56  ;;  %vm926_vm12 = vcmp.lt.s32.totalorder %v8555_v26, 0 }
  0x96   : > { %1661 = vperm.xlu1 %7895, %v8336_v18   ;;  %7923 = vrcp.f32 %v758_v29  ;;  %v710_v29 = vmin.f32 %v8526_v62, %v8513_v57  ;;  %vm879_vm14 = vcmp.lt.s32.totalorder %v8562_v56, 0  ;;  %vm13145_vm15 = vcmp.lt.f32.partialorder %v8562_v56, 0.0 }
  0x97   : > { %v7914_v2 = vpop.eup %7913  ;;  %13399 = vst [vmem:[#allocation52_spill] sm:$0xff] %v8574_v15  ;;  %13400 = vst [vmem:[#allocation53_spill] sm:$0xff] %v8579_v0  ;;  %v899_v7 = vmax.f32 %v8574_v15, %v8560_v30  ;;  %v852_v47 = vmax.f32 %v8579_v0, %v8568_v1 }
  0x98   : > { %v7916_v11 = vpop.eup %7915  ;;  %v8576_v48 = vmul.f32 %v7914_v2, %v663_v58  ;;  %v13401_v58 = vmov 0   ;;  %v8632_v33 = vpop.permute.xlu1 %537 }
  0x99   : > { %v8581_v25 = vmul.f32 %v7916_v11, %v569_v49  ;;  %v616_v49 = vmin.f32 %v8529_v63, %v8521_v60  ;;  %7925 = vrcp.f32 %v899_v7  ;;  %13404 = vst [vmem:[#allocation55_spill] sm:$0xff] %v8632_v33 }
  0x9a   : > { %v8587_v18 = vmul.f32 %v8576_v48, %v8576_v48  ;;  %7896 = vset.pattern.permute.xlu1 %v13401_v58  ;;  %7927 = vrcp.f32 %v852_v47  ;;  %v13432_v50 = vld [vmem:[#allocation47_spill] sm:$0xff] }
  0x9b   : > { %v7918_v2 = vpop.eup %7917  ;;  %v8596_v11 = vmul.f32 %v8581_v25, %v8581_v25  ;;  %1575 = vperm.xlu1 %7896, %v8333_v17  }
  0x9c   : > { %v7920_v4 = vpop.eup %7919  ;;  %v668_v46 = vmul.f32 0.002785687, %v8587_v18  ;;  %v8602_v45 = vmul.f32 %v7918_v2, %v710_v29  ;;  %v13402_v29 = vmov 1  }
  0x9d   : > { %v574_v44 = vmul.f32 0.002785687, %v8596_v11  ;;  %v8605_v43 = vmul.f32 %v7920_v4, %v616_v49 }
  0x9e   : > { %v669_v41 = vadd.f32 -0.015866, %v668_v46  ;;  %v8609_v42 = vmul.f32 %v8602_v45, %v8602_v45  ;;  %v757_v46 = vmin.f32 %v8551_v14, %v8544_v10 }
  0x9f   : > { %v575_v39 = vadd.f32 -0.015866, %v574_v44  ;;  %v8613_v7 = vmul.f32 %v8605_v43, %v8605_v43  ;;  %7897 = vset.pattern.permute.xlu1 %v13402_v29  ;;  %v7922_v47 = vpop.eup %7921 }
  0xa0   : > { %v670_v2 = vmul.f32 %v669_v41, %v8587_v18  ;;  %v715_v4 = vmul.f32 0.002785687, %v8609_v42  ;;  %1665 = vperm.xlu1 %7897, %v8333_v17   ;;  %v7924_v44 = vpop.eup %7923  ;;  %v8625_v37 = vmul.f32 %v7922_v47, %v804_v40  ;;  %v8630_v41 = vand.u32 2147483647, %v8343_v19 }
  0xa1   : > { %v576_v49 = vmul.f32 %v575_v39, %v8596_v11  ;;  %v621_v38 = vmul.f32 0.002785687, %v8613_v7  ;;  %v8627_v34 = vmul.f32 %v7924_v44, %v757_v46  ;;  %v898_v39 = vmin.f32 %v8574_v15, %v8560_v30 }
  0xa2   : > { %v671_v35 = vadd.f32 0.04247222, %v670_v2  ;;  %v716_v36 = vadd.f32 -0.015866, %v715_v4  ;;  %13403 = vst [vmem:[#allocation54_spill] sm:$0xff] %v8630_v41  ;;  %v8636_v17 = vmul.f32 %v8625_v37, %v8625_v37  ;;  %v851_v4 = vmin.f32 %v8579_v0, %v8568_v1 }
  0xa3   : > { %v577_v16 = vadd.f32 0.04247222, %v576_v49  ;;  %v622_v12 = vadd.f32 -0.015866, %v621_v38  ;;  %v8644_v2 = vmul.f32 %v8627_v34, %v8627_v34  ;;  %v7926_v38 = vpop.eup %7925 }
  0xa4   : > { %v672_v40 = vmul.f32 %v671_v35, %v8587_v18  ;;  %v717_v47 = vmul.f32 %v716_v36, %v8609_v42  ;;  %7898 = vset.pattern.permute.xlu1 %v13401_v58  ;;  %v809_v49 = vmul.f32 0.002785687, %v8636_v17  ;;  %v8653_v35 = vand.u32 2147483647, %v8632_v33  ;;  %v7928_v36 = vpop.eup %7927 }
  0xa5   : > { %v578_v46 = vmul.f32 %v577_v16, %v8596_v11  ;;  %v623_v44 = vmul.f32 %v622_v12, %v8613_v7  ;;  %1580 = vperm.xlu1 %7898, %v8352_v22   ;;  %v762_v15 = vmul.f32 0.002785687, %v8644_v2  ;;  %v8657_v1 = vmul.f32 %v7926_v38, %v898_v39 }
  0xa6   : > { %13405 = vst [vmem:[#allocation56_spill] sm:$0xff] %v8653_v35  ;;  %v673_v19 = vadd.f32 -0.074975304, %v672_v40  ;;  %v718_v30 = vadd.f32 0.04247222, %v717_v47  ;;  %v8659_v16 = vmul.f32 %v7928_v36, %v851_v4 }
  0xa7   : > { %13406 = vst [vmem:[#allocation57_spill] sm:$0xff] %v8657_v1  ;;  %v579_v0 = vadd.f32 -0.074975304, %v578_v46  ;;  %v624_v3 = vadd.f32 0.04247222, %v623_v44  ;;  %v8665_v57 = vmul.f32 %v8657_v1, %v8657_v1 }
  0xa8   : > { %v810_v13 = vadd.f32 -0.015866, %v809_v49  ;;  %13407 = vst [vmem:[#allocation58_spill] sm:$0xff] %v8659_v16  ;;  %v674_v12 = vmul.f32 %v673_v19, %v8587_v18  ;;  %v719_v8 = vmul.f32 %v718_v30, %v8609_v42  ;;  %v763_v33 = vadd.f32 -0.015866, %v762_v15 }
  0xa9   : > { %v580_v40 = vmul.f32 %v579_v0, %v8596_v11  ;;  %v625_v47 = vmul.f32 %v624_v3, %v8613_v7  ;;  %v8672_v38 = vmul.f32 %v8659_v16, %v8659_v16  ;;  %7899 = vset.pattern.permute.xlu1 %v13402_v29  ;;  %v903_v30 = vmul.f32 0.002785687, %v8665_v57 }
  0xaa   : > { %v811_v39 = vmul.f32 %v810_v13, %v8636_v17  ;;  %v675_v19 = vadd.f32 0.1064488, %v674_v12  ;;  %v720_v4 = vadd.f32 -0.074975304, %v719_v8  ;;  %v764_v15 = vmul.f32 %v763_v33, %v8644_v2  ;;  %1669 = vperm.xlu1 %7899, %v8352_v22  }
  0xab   : > { %v581_v46 = vadd.f32 0.1064488, %v580_v40  ;;  %v626_v0 = vadd.f32 -0.074975304, %v625_v47  ;;  %v904_v36 = vadd.f32 -0.015866, %v903_v30 }
  0xac   : > { %v812_v44 = vadd.f32 0.04247222, %v811_v39  ;;  %v676_v3 = vmul.f32 %v675_v19, %v8587_v18  ;;  %v721_v13 = vmul.f32 %v720_v4, %v8609_v42  ;;  %v765_v49 = vadd.f32 0.04247222, %v764_v15 }
  0xad   : > { %v582_v16 = vmul.f32 %v581_v46, %v8596_v11  ;;  %v627_v12 = vmul.f32 %v626_v0, %v8613_v7  ;;  %v856_v33 = vmul.f32 0.002785687, %v8672_v38  ;;  %v905_v40 = vmul.f32 %v904_v36, %v8665_v57 }
  0xae   : > { %v813_v8 = vmul.f32 %v812_v44, %v8636_v17  ;;  %v677_v1 = vadd.f32 -0.14207031, %v676_v3  ;;  %v722_v62 = vadd.f32 0.1064488, %v721_v13  ;;  %v766_v22 = vmul.f32 %v765_v49, %v8644_v2  ;;  %7900 = vset.pattern.permute.xlu1 %v13401_v58  ;;  %v13434_v63 = vld [vmem:[#allocation57_spill] sm:$0xff] }
  0xaf   : > { %v583_v47 = vadd.f32 -0.14207031, %v582_v16  ;;  %v628_v39 = vadd.f32 0.1064488, %v627_v12  ;;  %1585 = vperm.xlu1 %7900, %v8349_v21   ;;  %v906_v30 = vadd.f32 0.04247222, %v905_v40  ;;  %v993_v36 = vmax.f32 %v8653_v35, %v8630_v41 }
  0xb0   : > { %v814_v19 = vadd.f32 -0.074975304, %v813_v8  ;;  %v723_v4 = vmul.f32 %v722_v62, %v8609_v42  ;;  %v767_v15 = vadd.f32 -0.074975304, %v766_v22  ;;  %v857_v3 = vadd.f32 -0.015866, %v856_v33 }
  0xb1   : > { %v584_v46 = vmul.f32 %v583_v47, %v8596_v11  ;;  %v629_v0 = vmul.f32 %v628_v39, %v8613_v7  ;;  %v678_v13 = vmul.f32 %v677_v1, %v8587_v18  ;;  %v907_v16 = vmul.f32 %v906_v30, %v8665_v57 }
  0xb2   : > { %v815_v44 = vmul.f32 %v814_v19, %v8636_v17  ;;  %v768_v49 = vmul.f32 %v767_v15, %v8644_v2  ;;  %v858_v8 = vmul.f32 %v857_v3, %v8672_v38  ;;  %v724_v33 = vadd.f32 -0.14207031, %v723_v4 }
  0xb3   : > { %v630_v12 = vadd.f32 -0.14207031, %v629_v0  ;;  %7901 = vset.pattern.permute.xlu1 %v13402_v29  ;;  %v585_v22 = vadd.f32 0.19993454, %v584_v46  ;;  %v908_v47 = vadd.f32 -0.074975304, %v907_v16  ;;  %7929 = vrcp.f32 %v993_v36 }
  0xb4   : > { %v816_v62 = vadd.f32 0.1064488, %v815_v44  ;;  %v769_v40 = vadd.f32 0.1064488, %v768_v49  ;;  %1673 = vperm.xlu1 %7901, %v8349_v21   ;;  %v859_v19 = vadd.f32 0.04247222, %v858_v8  ;;  %v725_v4 = vmul.f32 %v724_v33, %v8609_v42 }
  0xb5   : > { %v631_v1 = vmul.f32 %v630_v12, %v8613_v7  ;;  %v679_v15 = vadd.f32 0.19993454, %v678_v13  ;;  %v909_v0 = vmul.f32 %v908_v47, %v8665_v57  ;;  %v586_v49 = vmul.f32 %v585_v22, %v8596_v11 }
  0xb6   : > { %v817_v39 = vmul.f32 %v816_v62, %v8636_v17  ;;  %v770_v30 = vmul.f32 %v769_v40, %v8644_v2  ;;  %v860_v46 = vmul.f32 %v859_v19, %v8672_v38  ;;  %v8714_v47 = vand.u32 2147483647, %v8346_v20 }
  0xb7   : > { %v632_v44 = vadd.f32 0.19993454, %v631_v1  ;;  %v910_v21 = vadd.f32 0.1064488, %v909_v0  ;;  %v680_v62 = vmul.f32 %v679_v15, %v8587_v18  ;;  %v587_v22 = vadd.f32 -0.33333147, %v586_v49 }
  0xb8   : > { %v818_v3 = vadd.f32 -0.14207031, %v817_v39  ;;  %v771_v16 = vadd.f32 -0.14207031, %v770_v30  ;;  %7902 = vset.pattern.permute.xlu1 %v13401_v58  ;;  %v861_v13 = vadd.f32 -0.074975304, %v860_v46  ;;  %v8721_v46 = vpop.permute.xlu1 %541 }
  0xb9   : > { %v633_v12 = vmul.f32 %v632_v44, %v8613_v7  ;;  %v911_v36 = vmul.f32 %v910_v21, %v8665_v57  ;;  %13408 = vst [vmem:[#allocation59_spill] sm:$0xff] %v8714_v47  ;;  %v726_v19 = vadd.f32 0.19993454, %v725_v4  ;;  %v8718_v0 = vand.u32 2147483647, %v8359_v23 }
  0xba   : > { %v772_v8 = vmul.f32 %v771_v16, %v8644_v2  ;;  %v819_v40 = vmul.f32 %v818_v3, %v8636_v17  ;;  %v862_v33 = vmul.f32 %v861_v13, %v8672_v38  ;;  %v681_v15 = vadd.f32 -0.33333147, %v680_v62 }
  0xbb   : > { %v912_v39 = vadd.f32 -0.14207031, %v911_v36  ;;  %v634_v30 = vadd.f32 -0.33333147, %v633_v12  ;;  %13409 = vst [vmem:[#allocation60_spill] sm:$0xff] %v8718_v0  ;;  %v588_v12 = vmul.f32 %v587_v22, %v8596_v11  ;;  %v13118_v11 = vmov 0.0  }
  0xbc   : > { %v773_v1 = vadd.f32 0.19993454, %v772_v8  ;;  %v8724_v3 = vand.u32 2147483647, %v8362_v24  ;;  %v8727_v16 = vand.u32 2147483647, %v8370_v27  ;;  %v727_v8 = vmul.f32 %v726_v19, %v8609_v42  ;;  %v8743_v27 = vpop.permute.xlu0 %535 }
  0xbd   : > { %v820_v49 = vadd.f32 0.19993454, %v819_v40  ;;  %v8731_v21 = vand.u32 2147483647, %v8372_v28  ;;  %v7930_v4 = vpop.eup %7929  ;;  %v913_v13 = vmul.f32 %v912_v39, %v8665_v57  ;;  %v8737_v62 = vand.u32 2147483647, %v8380_v31 }
  0xbe   : > { %v774_v44 = vmul.f32 %v773_v1, %v8644_v2  ;;  %13410 = vst [vmem:[#allocation61_spill] sm:$0xff] %v8727_v16  ;;  %v635_v36 = vmul.f32 %v634_v30, %v8613_v7  ;;  %v863_v1 = vadd.f32 0.1064488, %v862_v33  ;;  %v992_v40 = vmin.f32 %v8653_v35, %v8630_v41  ;;  %v13435_v41 = vld [vmem:[#allocation7_spill] sm:$0xff] }
  0xbf   : > { %13411 = vst [vmem:[#allocation62_spill] sm:$0xff] %v8737_v62  ;;  %v682_v23 = vmul.f32 %v681_v15, %v8587_v18  ;;  %v8747_v22 = vsel %vm691_vm0, 3.1415927, %v13118_v11  ;;  %v8750_v31 = vand.u32 2147483647, %v8382_v32  ;;  %v821_v7 = vmul.f32 %v820_v49, %v8636_v17 }
  0xc0   : > { %13412 = vst [vmem:[#allocation63_spill] sm:$0xff] %v8747_v22  ;;  %v775_v39 = vadd.f32 -0.33333147, %v774_v44  ;;  %v8755_v19 = vmul.f32 %v7930_v4, %v992_v40  ;;  %v589_v30 = vmul.f32 %v588_v12, %v8581_v25  ;;  %v8761_v18 = vsel %vm597_vm1, 3.1415927, %v13118_v11  ;;  %v8766_v44 = vpop.permute.xlu1 %545 }
  0xc1   : > { %13413 = vst [vmem:[#allocation64_spill] sm:$0xff] %v8750_v31  ;;  %v914_v33 = vadd.f32 0.19993454, %v913_v13  ;;  %v8764_v15 = vand.u32 2147483647, %v8743_v27  ;;  %v636_v22 = vmul.f32 %v635_v36, %v8605_v43  ;;  %v864_v49 = vmul.f32 %v863_v1, %v8672_v38 }
  0xc2   : > { %13414 = vst [vmem:[#allocation65_spill] sm:$0xff] %v8755_v19  ;;  %v728_v32 = vadd.f32 -0.33333147, %v727_v8  ;;  %v683_v4 = vmul.f32 %v682_v23, %v8576_v48  ;;  %v13120_v12 = vmov 0.7853982   ;;  %v776_v58 = vmul.f32 %v775_v39, %v8644_v2 }
  0xc3   : > { %13415 = vst [vmem:[#allocation66_spill] sm:$0xff] %v8764_v15  ;;  %v8775_v40 = vsel %vm594_vm2, 2.3561945, %v13120_v12  ;;  %v8778_v13 = vsel %vm738_vm3, 3.1415927, %v13118_v11  ;;  %v8787_v23 = vmul.f32 %v8755_v19, %v8755_v19  ;;  %v590_v36 = vadd.f32 %v589_v30, %v8581_v25 }
  0xc4   : > { %13416 = vst [vmem:[#allocation67_spill] sm:$0xff] %v8775_v40  ;;  %13417 = vst [vmem:[#allocation68_spill] sm:$0xff] %v8778_v13  ;;  %v822_v8 = vadd.f32 -0.33333147, %v821_v7  ;;  %v8795_v2 = vsel %vm641_vm4, 2.3561945, %v13120_v12  ;;  %v915_v1 = vmul.f32 %v914_v33, %v8665_v57  ;;  %v946_v39 = vmax.f32 %v8764_v15, %v8714_v47  ;;  %v8813_v28 = vpop.permute.xlu1 %549 }
  0xc5   : > { %13418 = vst [vmem:[#allocation69_spill] sm:$0xff] %v8795_v2  ;;  %v729_v7 = vmul.f32 %v728_v32, %v8609_v42  ;;  %v637_v25 = vadd.f32 %v636_v22, %v8605_v43  ;;  %v865_v30 = vadd.f32 -0.14207031, %v864_v49  ;;  %v997_v11 = vmul.f32 0.002785687, %v8787_v23  ;;  %13421 = vst [vmem:[#allocation71_spill] sm:$0xff] %v8813_v28 }
  0xc6   : > { %v684_v13 = vadd.f32 %v683_v4, %v8576_v48  ;;  %v13419_v40 = vmov 0.0   ;;  %v777_v2 = vmul.f32 %v776_v58, %v8627_v34  ;;  %v823_v29 = vmul.f32 %v822_v8, %v8636_v17 }
  0xc7   : > { %v8807_v12 = vsel %vm644_vm6, 3.1415927, %v13419_v40  ;;  %v8810_v33 = vsel %vm832_vm7, 3.1415927, %v13419_v40  ;;  %v998_v32 = vadd.f32 -0.015866, %v997_v11  ;;  %7931 = vrcp.f32 %v946_v39 }
  0xc8   : > { %13420 = vst [vmem:[#allocation70_spill] sm:$0xff] %v8810_v33  ;;  %v592_v42 = vsub.f32 1.5707964, %v590_v36  ;;  %v916_v43 = vadd.f32 -0.33333147, %v915_v1  ;;  %v730_v48 = vmul.f32 %v729_v7, %v8602_v45  ;;  %v866_v58 = vmul.f32 %v865_v30, %v8672_v38 }
  0xc9   : > { %v639_v22 = vsub.f32 1.5707964, %v637_v25  ;;  %v999_v17 = vmul.f32 %v998_v32, %v8787_v23  ;;  %v686_v49 = vsub.f32 1.5707964, %v684_v13  ;;  %v778_v11 = vadd.f32 %v777_v2, %v8627_v34  ;;  %v13424_v34 = vld [vmem:[#allocation42_spill] sm:$0xff]  ;;  %v13425_v2 = vld [vmem:[#allocation39_spill] sm:$0xff] }
  0xca   : > { %v8826_v4 = vsel %vm785_vm10, 3.1415927, %v13419_v40  ;;  %v824_v8 = vmul.f32 %v823_v29, %v8625_v37  ;;  %v13422_v1 = vmov 0.7853982   ;;  %v593_v30 = vsel %vm591_vm5, %v592_v42, %v590_v36  ;;  %v13426_v32 = vld [vmem:[#allocation5_spill] sm:$0xff]  ;;  %v8854_v36 = vpop.permute.xlu1 %1353 }
  0xcb   : > { %v8833_v39 = vsel %vm782_vm11, 2.3561945, %v13422_v1  ;;  %v1000_v7 = vadd.f32 0.04247222, %v999_v17  ;;  %vm599_vm0 = vcmp.eq.f32.partialorder %v8285_v5, 0.0  ;;  %vm732_vm1 = vcmp.gt.f32.partialorder %v13425_v2, %v13424_v34 }
  0xcc   : > { %13423 = vst [vmem:[#allocation72_spill] sm:$0xff] %v8833_v39  ;;  %vm646_vm3 = vcmp.eq.f32.partialorder %v13426_v32, 0.0  ;;  %v917_v29 = vmul.f32 %v916_v43, %v8665_v57  ;;  %v8847_v33 = vsel %vm926_vm12, 3.1415927, %v13419_v40  ;;  %v8850_v17 = vand.u32 2147483647, %v8721_v46  ;;  %v8852_v39 = vpop.permute.xlu0 %539 }
  0xcd   : > { %13427 = vst [vmem:[#allocation73_spill] sm:$0xff] %v8847_v33  ;;  %13429 = vst [vmem:[#allocation75_spill] sm:$0xff] %v8852_v39  ;;  %vm13193_vm5 = vcmp.lt.f32.partialorder %v8496_v51, 0.0  ;;  %vm601_vm6 = vcmp.ne.f32.partialorder %v8498_v52, %v8498_v52  ;;  %vm602_vm7 = vcmp.ne.f32.partialorder %v8285_v5, %v8285_v5  ;;  %v731_v57 = vadd.f32 %v730_v48, %v8602_v45 }
  0xce   : > { %13428 = vst [vmem:[#allocation74_spill] sm:$0xff] %v8850_v17  ;;  %v640_v42 = vsel %vm638_vm8, %v639_v22, %v637_v25  ;;  %v867_v43 = vadd.f32 0.19993454, %v866_v58  ;;  %v8868_v33 = vsel %vm879_vm14, 3.1415927, %v13419_v40  ;;  %v687_v53 = vsel %vm685_vm9, %v686_v49, %v684_v13  ;;  %v13433_v13 = vld [vmem:[#allocation44_spill] sm:$0xff] }
  0xcf   : > { %13430 = vst [vmem:[#allocation76_spill] sm:$0xff] %v8868_v33  ;;  %vm649_vm10 = vcmp.ne.f32.partialorder %v13426_v32, %v13426_v32  ;;  %vm648_vm12 = vcmp.ne.f32.partialorder %v8523_v61, %v8523_v61  ;;  %v780_v45 = vsub.f32 1.5707964, %v778_v11  ;;  %v8880_v25 = vsel %vm13145_vm15, 2.3561945, %v13422_v1 }
  0xd0   : > { %13431 = vst [vmem:[#allocation77_spill] sm:$0xff] %v8880_v25  ;;  %v1087_v48 = vmax.f32 %v8850_v17, %v8718_v0  ;;  %v595_v22 = vsub.f32 3.1415927, %v593_v30  ;;  %v825_v58 = vadd.f32 %v824_v8, %v8625_v37  ;;  %vm826_vm8 = vcmp.gt.f32.partialorder %v13433_v13, %v13432_v50  ;;  %v13436_v8 = vld [vmem:[#allocation55_spill] sm:$0xff]  ;;  %v8926_v10 = vpop.permute.xlu0 %543 }
  0xd1   : > { %v1001_v49 = vmul.f32 %v1000_v7, %v8787_v23  ;;  %v8889_v54 = vand.u32 2147483647, %v8852_v39  ;;  %v642_v60 = vsub.f32 3.1415927, %v640_v42  ;;  %v918_v55 = vmul.f32 %v917_v29, %v13434_v63  ;;  %v7932_v24 = vpop.eup %7931 }
  0xd2   : > { %v945_v25 = vmin.f32 %v8764_v15, %v8714_v47  ;;  %7933 = vrcp.f32 %v1087_v48  ;;  %v733_v20 = vsub.f32 1.5707964, %v731_v57  ;;  %v868_v37 = vmul.f32 %v867_v43, %v8672_v38  ;;  %v8907_v47 = vpop.permute.xlu1 %1357 }
  0xd3   : > { %vm1020_vm14 = vcmp.lt.s32.totalorder %v13436_v8, 0  ;;  %v1040_v7 = vmax.f32 %v8889_v54, %v8724_v3  ;;  %v689_v35 = vsub.f32 3.1415927, %v687_v53  ;;  %v781_v29 = vsel %vm779_vm13, %v780_v45, %v778_v11  ;;  %v13438_v45 = vld [vmem:[#allocation52_spill] sm:$0xff] }
  0xd4   : > { %v8902_v19 = vmul.f32 %v7932_v24, %v945_v25  ;;  %v8905_v48 = vand.u32 2147483647, %v8766_v44  ;;  %v596_v43 = vsel %vm594_vm2, %v595_v22, %v593_v30  ;;  %v827_v15 = vsub.f32 1.5707964, %v825_v58  ;;  %v13439_v25 = vld [vmem:[#allocation50_spill] sm:$0xff] }
  0xd5   : > { %vm790_vm15 = vcmp.ne.f32.partialorder %v13435_v41, %v13435_v41  ;;  %vm789_vm9 = vcmp.ne.f32.partialorder %v8541_v9, %v8541_v9  ;;  %v1002_v33 = vadd.f32 -0.074975304, %v1001_v49  ;;  %7935 = vrcp.f32 %v1040_v7  ;;  %v13459_v9 = vld [vmem:[#allocation51_spill] sm:$0xff] }
  0xd6   : > { %13437 = vst [vmem:[#allocation57_spill] sm:$0xff] %v8905_v48  ;;  %v643_v24 = vsel %vm641_vm4, %v642_v60, %v640_v42  ;;  %v919_v11 = vadd.f32 %v918_v55, %v13434_v63  ;;  %vm920_vm13 = vcmp.gt.f32.partialorder %v13439_v25, %v13438_v45  ;;  %v8922_v30 = vmul.f32 %v8902_v19, %v8902_v19  ;;  %vm8964_vm4 = vmor %vm601_vm6, %vm602_vm7 }
  0xd7   : > { %v1181_v22 = vmax.f32 %v8905_v48, %v8727_v16  ;;  %v8931_v49 = vsel %vm732_vm1, %v733_v20, %v731_v57  ;;  %v783_v60 = vsub.f32 3.1415927, %v781_v29  ;;  %v869_v42 = vadd.f32 -0.33333147, %v868_v37  ;;  %vm9034_vm6 = vmor %vm789_vm9, %vm790_vm15 }
  0xd8   : > { %v8936_v55 = vsel %vm1020_vm14, 3.1415927, %v13419_v40  ;;  %v8940_v63 = vsel %vm13193_vm5, %v689_v35, %v687_v53  ;;  %v950_v7 = vmul.f32 0.002785687, %v8922_v30  ;;  %vm970_vm2 = vcmp.lt.f32.partialorder %v8743_v27, 0.0 }
  0xd9   : > { %13440 = vst [vmem:[#allocation55_spill] sm:$0xff] %v8936_v55  ;;  %13441 = vst [vmem:[#allocation78_spill] sm:$0xff] %v8940_v63  ;;  %7937 = vrcp.f32 %v1181_v22  ;;  %v8947_v20 = vsel %vm599_vm0, %v8761_v18, %v596_v43  ;;  %v8952_v57 = vsel %vm646_vm3, %v8807_v12, %v643_v24  ;;  %v1003_v37 = vmul.f32 %v1002_v33, %v8787_v23  ;;  %v8974_v24 = vpop.permute.xlu1 %1361 }
  0xda   : > { %13442 = vst [vmem:[#allocation79_spill] sm:$0xff] %v8947_v20  ;;  %13443 = vst [vmem:[#allocation80_spill] sm:$0xff] %v8952_v57  ;;  %v8956_v53 = vand.u32 2147483647, %v8926_v10  ;;  %v13444_v35 = vmov 0  ;;  %v8972_v12 = vsel %vm826_vm8, %v827_v15, %v825_v58  ;;  %v13447_v52 = vmov 0 }
  0xdb   : > { %v13445_v35 = vsel %vm8964_vm4, 4294967295, %v13444_v35  ;;  %v921_v33 = vsub.f32 1.5707964, %v919_v11  ;;  %v951_v43 = vadd.f32 -0.015866, %v950_v7  ;;  %vm8982_vm0 = vmor %vm648_vm12, %vm649_vm10  ;;  %v784_v22 = vsel %vm782_vm11, %v783_v60, %v781_v29 }
  0xdc   : > { %13446 = vst [vmem:[#allocation81_spill] sm:$0xff] %v13445_v35  ;;  %v13448_v52 = vsel %vm8982_vm0, 4294967295, %v13447_v52  ;;  %v870_v15 = vmul.f32 %v869_v42, %v8672_v38  ;;  %v1086_v58 = vmin.f32 %v8850_v17, %v8718_v0  ;;  %v1134_v7 = vmax.f32 %v8956_v53, %v8731_v21  ;;  %v7934_v18 = vpop.eup %7933  ;;  %v9048_v38 = vpop.permute.xlu0 %547 }
  0xdd   : > { %13449 = vst [vmem:[#allocation82_spill] sm:$0xff] %v13448_v52  ;;  %v952_v13 = vmul.f32 %v951_v43, %v8922_v30  ;;  %vm973_vm11 = vcmp.lt.s32.totalorder %v8743_v27, 0  ;;  %v1004_v29 = vadd.f32 0.1064488, %v1003_v37  ;;  %vm13192_vm1 = vcmp.lt.f32.partialorder %v8517_v59, 0.0  ;;  %v9050_v25 = vpop.permute.xlu1 %1365 }
  0xde   : > { %v9002_v60 = vmul.f32 %v7934_v18, %v1086_v58  ;;  %7939 = vrcp.f32 %v1134_v7  ;;  %vm13450_vm3 = vcmp.eq.f32.partialorder %v13435_v41, 0.0  ;;  %v1039_v55 = vmin.f32 %v8889_v54, %v8724_v3  ;;  %v13453_v18 = vld [vmem:[#allocation58_spill] sm:$0xff] }
  0xdf   : > { %v9008_v42 = vsel %vm13450_vm3, %v8826_v4, %v784_v22  ;;  %v953_v61 = vadd.f32 0.04247222, %v952_v13  ;;  %v9013_v43 = vand.u32 2147483647, %v8813_v28  ;;  %v7936_v50 = vpop.eup %7935  ;;  %v9018_v37 = vsel %vm920_vm13, %v921_v33, %v919_v11 }
  0xe0   : > { %13451 = vst [vmem:[#allocation83_spill] sm:$0xff] %v9008_v42  ;;  %v871_v58 = vmul.f32 %v870_v15, %v13453_v18  ;;  %v9022_v7 = vsel %vm973_vm11, 3.1415927, %v13419_v40  ;;  %v9026_v4 = vmul.f32 %v9002_v60, %v9002_v60  ;;  %v13454_v13 = vmov 0 }
  0xe1   : > { %13452 = vst [vmem:[#allocation84_spill] sm:$0xff] %v9013_v43  ;;  %v13455_v13 = vsel %vm9034_vm6, 4294967295, %v13454_v13  ;;  %v954_v11 = vmul.f32 %v953_v61, %v8922_v30  ;;  %v9042_v33 = vsel %vm970_vm2, 2.3561945, %v13422_v1  ;;  %v9044_v22 = vmul.f32 %v7936_v50, %v1039_v55  ;;  %v9087_v55 = vpop.permute.xlu1 %1369 }
  0xe2   : > { %13456 = vst [vmem:[#allocation58_spill] sm:$0xff] %v13455_v13  ;;  %13457 = vst [vmem:[#allocation85_spill] sm:$0xff] %v9042_v33  ;;  %v1275_v15 = vmax.f32 %v9013_v43, %v8737_v62  ;;  %v1005_v61 = vmul.f32 %v1004_v29, %v8787_v23  ;;  %v1091_v45 = vmul.f32 0.002785687, %v9026_v4  ;;  %v1180_v2 = vmin.f32 %v8905_v48, %v8727_v16  ;;  %v13458_v13 = vld [vmem:[#allocation53_spill] sm:$0xff] }
  0xe3   : > { %v7938_v50 = vpop.eup %7937  ;;  %v955_v34 = vadd.f32 -0.074975304, %v954_v11  ;;  %v9062_v33 = vmul.f32 %v9044_v22, %v9044_v22  ;;  %v872_v41 = vadd.f32 %v871_v58, %v13453_v18  ;;  %vm873_vm15 = vcmp.gt.f32.partialorder %v13459_v9, %v13458_v13 }
  0xe4   : > { %7941 = vrcp.f32 %v1275_v15  ;;  %v1092_v29 = vadd.f32 -0.015866, %v1091_v45  ;;  %v9067_v42 = vmul.f32 %v7938_v50, %v1180_v2  ;;  %v9070_v14 = vand.u32 2147483647, %v9048_v38 }
  0xe5   : > { %v956_v63 = vmul.f32 %v955_v34, %v8922_v30  ;;  %vm1114_vm7 = vcmp.lt.s32.totalorder %v8721_v46, 0  ;;  %v1044_v11 = vmul.f32 0.002785687, %v9062_v33  ;;  %vm13196_vm10 = vcmp.lt.f32.partialorder %v8852_v39, 0.0 }
  0xe6   : > { %13460 = vst [vmem:[#allocation86_spill] sm:$0xff] %v9070_v14  ;;  %vm13191_vm12 = vcmp.lt.f32.partialorder %v8538_v6, 0.0  ;;  %v1006_v18 = vadd.f32 -0.14207031, %v1005_v61  ;;  %v1093_v58 = vmul.f32 %v1092_v29, %v9026_v4  ;;  %vm1067_vm8 = vcmp.lt.s32.totalorder %v8852_v39, 0 }
  0xe7   : > { %v9081_v2 = vmul.f32 %v9067_v42, %v9067_v42  ;;  %v957_v45 = vadd.f32 0.1064488, %v956_v63  ;;  %v1045_v15 = vadd.f32 -0.015866, %v1044_v11  ;;  %v1133_v34 = vmin.f32 %v8956_v53, %v8731_v21 }
  0xe8   : > { %v1228_v50 = vmax.f32 %v9070_v14, %v8750_v31  ;;  %v7940_v32 = vpop.eup %7939  ;;  %v13461_v61 = vsub.f32 3.1415927, %v8931_v49  ;;  %v874_v57 = vsub.f32 1.5707964, %v872_v41  ;;  %v1094_v52 = vadd.f32 0.04247222, %v1093_v58 }
  0xe9   : > { %v1185_v63 = vmul.f32 0.002785687, %v9081_v2  ;;  %v958_v11 = vmul.f32 %v957_v45, %v8922_v30  ;;  %v1046_v5 = vmul.f32 %v1045_v15, %v9062_v33  ;;  %v9099_v20 = vmul.f32 %v7940_v32, %v1133_v34 }
  0xea   : > { %v9094_v29 = vsel %vm13192_vm1, %v13461_v61, %v8931_v49  ;;  %7943 = vrcp.f32 %v1228_v50  ;;  %v1007_v35 = vmul.f32 %v1006_v18, %v8787_v23  ;;  %v1095_v51 = vmul.f32 %v1094_v52, %v9026_v4 }
  0xeb   : > { %13462 = vst [vmem:[#allocation87_spill] sm:$0xff] %v9094_v29  ;;  %v9106_v49 = vsel %vm1114_vm7, 3.1415927, %v13419_v40  ;;  %v1186_v61 = vadd.f32 -0.015866, %v1185_v63  ;;  %v9115_v32 = vmul.f32 %v9099_v20, %v9099_v20  ;;  %v875_v50 = vsel %vm873_vm15, %v874_v57, %v872_v41 }
  0xec   : > { %13463 = vst [vmem:[#allocation88_spill] sm:$0xff] %v9106_v49  ;;  %v959_v58 = vadd.f32 -0.14207031, %v958_v11  ;;  %v1047_v29 = vadd.f32 0.04247222, %v1046_v5  ;;  %v1274_v5 = vmin.f32 %v9013_v43, %v8737_v62  ;;  %v9131_v49 = vpop.permute.xlu1 %1373  ;;  %vm883_vm13 = vcmp.ne.f32.partialorder %v8562_v56, %v8562_v56 }
  0xed   : > { %v9111_v45 = vsel %vm13196_vm10, 2.3561945, %v13422_v1  ;;  %v1096_v18 = vadd.f32 -0.074975304, %v1095_v51  ;;  %v9120_v52 = vsel %vm1067_vm8, 3.1415927, %v13419_v40  ;;  %v1187_v15 = vmul.f32 %v1186_v61, %v9081_v2 }
  0xee   : > { %13464 = vst [vmem:[#allocation89_spill] sm:$0xff] %v9111_v45  ;;  %13465 = vst [vmem:[#allocation90_spill] sm:$0xff] %v9120_v52  ;;  %v7942_v34 = vpop.eup %7941  ;;  %v960_v63 = vmul.f32 %v959_v58, %v8922_v30  ;;  %v1048_v11 = vmul.f32 %v1047_v29, %v9062_v33  ;;  %v1138_v51 = vmul.f32 0.002785687, %v9115_v32  ;;  %v13467_v45 = vld [vmem:[#allocation9_spill] sm:$0xff]  ;;  %vm1208_vm11 = vcmp.lt.s32.totalorder %v8766_v44, 0 }
  0xef   : > { %13466 = vst [vmem:[#allocation91_spill] sm:$0xff] %v9131_v49  ;;  %vm881_vm9 = vcmp.eq.f32.partialorder %v13467_v45, 0.0  ;;  %v1008_v59 = vadd.f32 0.19993454, %v1007_v35  ;;  %v1097_v61 = vmul.f32 %v1096_v18, %v9026_v4  ;;  %v1188_v52 = vadd.f32 0.04247222, %v1187_v15 }
  0xf0   : > { %v9135_v62 = vmul.f32 %v7942_v34, %v1274_v5  ;;  %v13468_v9 = vsub.f32 3.1415927, %v8972_v12  ;;  %v961_v57 = vadd.f32 0.19993454, %v960_v63  ;;  %v1049_v29 = vadd.f32 -0.074975304, %v1048_v11 }
  0xf1   : > { %v1139_v58 = vadd.f32 -0.015866, %v1138_v51  ;;  %v877_v13 = vsub.f32 3.1415927, %v875_v50  ;;  %v1098_v43 = vadd.f32 0.1064488, %v1097_v61  ;;  %v1189_v49 = vmul.f32 %v1188_v52, %v9081_v2 }
  0xf2   : > { %v9142_v41 = vsel %vm13191_vm12, %v13468_v9, %v8972_v12  ;;  %v9147_v35 = vmul.f32 %v9135_v62, %v9135_v62  ;;  %vm884_vm14 = vcmp.ne.f32.partialorder %v13467_v45, %v13467_v45  ;;  %v962_v12 = vmul.f32 %v961_v57, %v8922_v30 }
  0xf3   : > { %13469 = vst [vmem:[#allocation92_spill] sm:$0xff] %v9142_v41  ;;  %v1050_v9 = vmul.f32 %v1049_v29, %v9062_v33  ;;  %v1140_v18 = vmul.f32 %v1139_v58, %v9115_v32  ;;  %v1099_v52 = vmul.f32 %v1098_v43, %v9026_v4  ;;  %v1190_v15 = vadd.f32 -0.074975304, %v1189_v49  ;;  %v9162_v41 = vpop.permute.xlu1 %1377  ;;  %vm9209_vm7 = vmor %vm883_vm13, %vm884_vm14 }
  0xf4   : > { %v1279_v5 = vmul.f32 0.002785687, %v9147_v35  ;;  %v1227_v34 = vmin.f32 %v9070_v14, %v8750_v31  ;;  %v7944_v63 = vpop.eup %7943  ;;  %v1009_v11 = vmul.f32 %v1008_v59, %v8787_v23  ;;  %v963_v51 = vadd.f32 -0.33333147, %v962_v12 }
  0xf5   : > { %v1051_v61 = vadd.f32 0.1064488, %v1050_v9  ;;  %v1141_v57 = vadd.f32 0.04247222, %v1140_v18  ;;  %v1100_v29 = vadd.f32 -0.14207031, %v1099_v52  ;;  %v1191_v6 = vmul.f32 %v1190_v15, %v9081_v2 }
  0xf6   : > { %v1280_v58 = vadd.f32 -0.015866, %v1279_v5  ;;  %v9165_v39 = vmul.f32 %v7944_v63, %v1227_v34  ;;  %vm13470_vm3 = vcmp.lt.f32.partialorder %v8562_v56, 0.0  ;;  %v964_v49 = vmul.f32 %v963_v51, %v8922_v30  ;;  %v13479_v56 = vld [vmem:[#allocation19_spill] sm:$0xff] }
  0xf7   : > { %v878_v43 = vsel %vm13470_vm3, %v877_v13, %v875_v50  ;;  %v1052_v31 = vmul.f32 %v1051_v61, %v9062_v33  ;;  %v1142_v59 = vmul.f32 %v1141_v57, %v9115_v32  ;;  %vm13190_vm15 = vcmp.lt.f32.partialorder %v8555_v26, 0.0  ;;  %v13471_v50 = vld [vmem:[#allocation18_spill] sm:$0xff] }
  0xf8   : > { %v1101_v12 = vmul.f32 %v1100_v29, %v9026_v4  ;;  %v1192_v9 = vadd.f32 0.1064488, %v1191_v6  ;;  %v1281_v18 = vmul.f32 %v1280_v58, %v9147_v35  ;;  %v9177_v52 = vmul.f32 %v9165_v39, %v9165_v39  ;;  %v13472_v6 = vld [vmem:[#allocation76_spill] sm:$0xff]  ;;  %v1352_v58 = vpop.permute.xlu0 %1351 }
  0xf9   : > { %v1010_v15 = vadd.f32 -0.33333147, %v1009_v11  ;;  %v1053_v5 = vadd.f32 -0.14207031, %v1052_v31  ;;  %v1143_v13 = vadd.f32 -0.074975304, %v1142_v59  ;;  %v9181_v30 = vadd.f32 %v8854_v36, %v13471_v50  ;;  %v9193_v36 = vpop.permute.xlu1 %1381 }
  0xfa   : > { %v1102_v34 = vadd.f32 0.19993454, %v1101_v12  ;;  %v1193_v63 = vmul.f32 %v1192_v9, %v9081_v2  ;;  %v1282_v51 = vadd.f32 0.04247222, %v1281_v18  ;;  %v1232_v61 = vmul.f32 0.002785687, %v9177_v52 }
  0xfb   : > { %v9188_v57 = vsel %vm881_vm9, %v13472_v6, %v878_v43  ;;  %v965_v29 = vmul.f32 %v964_v49, %v8902_v19  ;;  %v1054_v31 = vmul.f32 %v1053_v5, %v9062_v33  ;;  %v1144_v11 = vmul.f32 %v1143_v13, %v9115_v32  ;;  %13474 = vst [vmem:[#allocation76_spill] sm:$0xff] %v9193_v36 }
  0xfc   : > { %13473 = vst [vmem:[#allocation18_spill] sm:$0xff] %v9188_v57  ;;  %v1103_v59 = vmul.f32 %v1102_v34, %v9026_v4  ;;  %v1194_v12 = vadd.f32 -0.14207031, %v1193_v63  ;;  %v1283_v9 = vmul.f32 %v1282_v51, %v9147_v35  ;;  %v1233_v18 = vadd.f32 -0.015866, %v1232_v61  ;;  %v1356_v36 = vpop.permute.xlu0 %1355  ;;  %v13485_v57 = vld [vmem:[#allocation65_spill] sm:$0xff] }
  0xfd   : > { %v1011_v50 = vmul.f32 %v1010_v15, %v8787_v23  ;;  %v1055_v14 = vadd.f32 0.19993454, %v1054_v31  ;;  %v9201_v43 = vsel %vm1208_vm11, 3.1415927, %v13419_v40  ;;  %v1145_v49 = vadd.f32 0.1064488, %v1144_v11  ;;  %v9224_v6 = vpop.permute.xlu1 %1629 }
  0xfe   : > { %13475 = vst [vmem:[#allocation93_spill] sm:$0xff] %v9201_v43  ;;  %v13476_v5 = vmov 0  ;;  %v1195_v13 = vmul.f32 %v1194_v12, %v9081_v2  ;;  %v1284_v23 = vadd.f32 -0.074975304, %v1283_v9  ;;  %v1234_v15 = vmul.f32 %v1233_v18, %v9177_v52  ;;  %13480 = vst [vmem:[#allocation19_spill] sm:$0xff] %v9224_v6  ;;  %v13481_v11 = vld [vmem:[#allocation66_spill] sm:$0xff] }
  0xff   : > { %v13477_v5 = vsel %vm9209_vm7, 4294967295, %v13476_v5  ;;  %7945 = vrsqrt.f32 %v9181_v30  ;;  %v1056_v63 = vmul.f32 %v1055_v14, %v9062_v33  ;;  %v1146_v51 = vmul.f32 %v1145_v49, %v9115_v32  ;;  %v13482_v12 = vld [vmem:[#allocation59_spill] sm:$0xff] }
 0x100   : > { %13478 = vst [vmem:[#allocation94_spill] sm:$0xff] %v13477_v5  ;;  %v9222_v61 = vadd.f32 %v1352_v58, %v13479_v56  ;;  %v966_v31 = vadd.f32 %v965_v29, %v8902_v19  ;;  %vm967_vm8 = vcmp.gt.f32.partialorder %v13482_v12, %v13481_v11  ;;  %v1104_v9 = vadd.f32 -0.33333147, %v1103_v59 }
 0x101   : > { %v1196_v18 = vadd.f32 0.19993454, %v1195_v13  ;;  %v1285_v43 = vmul.f32 %v1284_v23, %v9147_v35  ;;  %v13483_v34 = vsub.f32 3.1415927, %v9018_v37  ;;  %v1057_v58 = vadd.f32 -0.33333147, %v1056_v63 }
 0x102   : > { %v1147_v49 = vadd.f32 -0.14207031, %v1146_v51  ;;  %v1235_v56 = vadd.f32 0.04247222, %v1234_v15  ;;  %v1012_v19 = vmul.f32 %v1011_v50, %v13485_v57  ;;  %vm13194_vm9 = vcmp.lt.f32.partialorder %v8926_v10, 0.0  ;;  %v13487_v63 = vld [vmem:[#allocation56_spill] sm:$0xff] }
 0x103   : > { %v9235_v14 = vsel %vm13190_vm15, %v13483_v34, %v9018_v37  ;;  %vm1161_vm14 = vcmp.lt.s32.totalorder %v8926_v10, 0  ;;  %v1286_v29 = vadd.f32 0.1064488, %v1285_v43  ;;  %vm1302_vm13 = vcmp.lt.s32.totalorder %v8813_v28, 0  ;;  %v13486_v34 = vld [vmem:[#allocation21_spill] sm:$0xff]  ;;  %v13488_v51 = vld [vmem:[#allocation54_spill] sm:$0xff] }
 0x104   : > { %13484 = vst [vmem:[#allocation66_spill] sm:$0xff] %v9235_v14  ;;  %v1148_v59 = vmul.f32 %v1147_v49, %v9115_v32  ;;  %v1236_v13 = vmul.f32 %v1235_v56, %v9177_v52  ;;  %7947 = vrsqrt.f32 %v9222_v61  ;;  %v968_v37 = vsub.f32 1.5707964, %v966_v31  ;;  %v9253_v56 = vpop.permute.xlu1 %1535 }
 0x105   : > { %v1105_v23 = vmul.f32 %v1104_v9, %v9026_v4  ;;  %v1287_v15 = vmul.f32 %v1286_v29, %v9147_v35  ;;  %v9247_v50 = vadd.f32 %v1356_v36, %v13486_v34  ;;  %vm1014_vm11 = vcmp.gt.f32.partialorder %v13488_v51, %v13487_v63  ;;  %13489 = vst [vmem:[#allocation59_spill] sm:$0xff] %v9253_v56  ;;  %v13495_v56 = vld [vmem:[#allocation23_spill] sm:$0xff] }
 0x106   : > { %v1058_v43 = vmul.f32 %v1057_v58, %v9062_v33  ;;  %v1197_v49 = vmul.f32 %v1196_v18, %v9081_v2  ;;  %v1149_v14 = vadd.f32 0.19993454, %v1148_v59  ;;  %v1237_v26 = vadd.f32 -0.074975304, %v1236_v13  ;;  %v1360_v58 = vpop.permute.xlu0 %1359  ;;  %v13492_v13 = vld [vmem:[#allocation20_spill] sm:$0xff] }
 0x107   : > { %v1013_v5 = vadd.f32 %v1012_v19, %v13485_v57  ;;  %v9259_v4 = vsel %vm1161_vm14, 3.1415927, %v13419_v40  ;;  %v9264_v36 = vsel %vm13194_vm9, 2.3561945, %v13422_v1  ;;  %v1288_v9 = vadd.f32 -0.14207031, %v1287_v15 }
 0x108   : > { %13490 = vst [vmem:[#allocation65_spill] sm:$0xff] %v9264_v36  ;;  %v1150_v33 = vmul.f32 %v1149_v14, %v9115_v32  ;;  %v9270_v18 = vsel %vm1302_vm13, 3.1415927, %v13419_v40  ;;  %v1238_v57 = vmul.f32 %v1237_v26, %v9177_v52  ;;  %vm13195_vm3 = vcmp.lt.f32.partialorder %v9048_v38, 0.0  ;;  %v13493_v14 = vld [vmem:[#allocation11_spill] sm:$0xff] }
 0x109   : > { %13491 = vst [vmem:[#allocation21_spill] sm:$0xff] %v9270_v18  ;;  %v7946_v19 = vpop.eup %7945  ;;  %v1106_v29 = vmul.f32 %v1105_v23, %v9002_v60  ;;  %v1289_v59 = vmul.f32 %v1288_v9, %v9147_v35  ;;  %v9278_v15 = vadd.f32 %v8907_v47, %v13492_v13  ;;  %7949 = vrsqrt.f32 %v9247_v50  ;;  %v13494_v9 = vld [vmem:[#allocation22_spill] sm:$0xff] }
 0x10a   : > { %vm975_vm14 = vcmp.eq.f32.partialorder %v13493_v14, 0.0  ;;  %v969_v26 = vsel %vm967_vm8, %v968_v37, %v966_v31  ;;  %v1059_v34 = vmul.f32 %v1058_v43, %v9044_v22  ;;  %v1198_v18 = vadd.f32 -0.33333147, %v1197_v49  ;;  %v9296_v37 = vpop.permute.xlu1 %1637 }
 0x10b   : > { %v1151_v28 = vadd.f32 -0.33333147, %v1150_v33  ;;  %v1015_v36 = vsub.f32 1.5707964, %v1013_v5  ;;  %v1239_v23 = vadd.f32 0.1064488, %v1238_v57  ;;  %v9289_v47 = vadd.f32 %v8974_v24, %v13494_v9  ;;  %v1364_v57 = vpop.permute.xlu0 %1363 }
 0x10c   : > { %vm1255_vm13 = vcmp.lt.s32.totalorder %v9048_v38, 0  ;;  %v1290_v45 = vadd.f32 0.19993454, %v1289_v59  ;;  %v9293_v6 = vadd.f32 %v1360_v58, %v13495_v56  ;;  %v1423_v31 = vmul.f32 %v7946_v19, %v9181_v30 }
 0x10d   : > { %v1152_v13 = vmul.f32 %v1151_v28, %v9115_v32  ;;  %v971_v43 = vsub.f32 3.1415927, %v969_v26  ;;  %v1107_v49 = vadd.f32 %v1106_v29, %v9002_v60  ;;  %vm1061_vm8 = vcmp.gt.f32.partialorder %v8724_v3, %v8889_v54 }
 0x10e   : > { %v1240_v33 = vmul.f32 %v1239_v23, %v9177_v52  ;;  %7951 = vrsqrt.f32 %v9278_v15  ;;  %v7948_v24 = vpop.eup %7947  ;;  %vm978_vm15 = vcmp.ne.f32.partialorder %v13493_v14, %v13493_v14  ;;  %vm977_vm12 = vcmp.ne.f32.partialorder %v8743_v27, %v8743_v27  ;;  %v9340_v9 = vpop.permute.xlu1 %1641 }
 0x10f   : > { %vm1108_vm1 = vcmp.gt.f32.partialorder %v8718_v0, %v8850_v17  ;;  %v1060_v28 = vadd.f32 %v1059_v34, %v9044_v22  ;;  %v1199_v60 = vmul.f32 %v1198_v18, %v9081_v2  ;;  %v9314_v32 = vsel %vm1255_vm13, 3.1415927, %v13419_v40 }
 0x110   : > { %13496 = vst [vmem:[#allocation20_spill] sm:$0xff] %v9314_v32  ;;  %v9319_v56 = vsel %vm13195_vm3, 2.3561945, %v13422_v1  ;;  %v1016_v58 = vsel %vm1014_vm11, %v1015_v36, %v1013_v5  ;;  %v1241_v19 = vadd.f32 -0.14207031, %v1240_v33  ;;  %7953 = vrsqrt.f32 %v9289_v47  ;;  %v13498_v5 = vld [vmem:[#allocation25_spill] sm:$0xff] }
 0x111   : > { %13497 = vst [vmem:[#allocation11_spill] sm:$0xff] %v9319_v56  ;;  %vm1424_vm5 = vcmp.eq.f32.partialorder %v9181_v30, inf  ;;  %vm1017_vm9 = vcmp.lt.f32.partialorder %v13436_v8, 0.0  ;;  %v1153_v40 = vmul.f32 %v1152_v13, %v9099_v20  ;;  %v1291_v22 = vmul.f32 %v1290_v45, %v9147_v35 }
 0x112   : > { %7955 = vrsqrt.f32 %v9293_v6  ;;  %v1425_v2 = vsel %vm1424_vm5, %v9181_v30, %v1423_v31  ;;  %v972_v18 = vsel %vm970_vm2, %v971_v43, %v969_v26  ;;  %v1109_v29 = vsub.f32 1.5707964, %v1107_v49  ;;  %v13499_v31 = vld [vmem:[#allocation24_spill] sm:$0xff] }
 0x113   : > { %v9334_v36 = vadd.f32 %v1364_v57, %v13498_v5  ;;  %v1427_v59 = vand.u32 2147483648, %v9181_v30  ;;  %v1062_v34 = vsub.f32 1.5707964, %v1060_v28  ;;  %v1200_v23 = vmul.f32 %v1199_v60, %v9067_v42  ;;  %v7950_v13 = vpop.eup %7949 }
 0x114   : > { %vm1426_vm11 = vcmp.eq.f32.partialorder %v9181_v30, 0.0  ;;  %v1416_v45 = vmul.f32 %v7948_v24, %v9222_v61  ;;  %vm1155_vm5 = vcmp.gt.f32.partialorder %v8731_v21, %v8956_v53  ;;  %v1242_v26 = vmul.f32 %v1241_v19, %v9177_v52 }
 0x115   : > { %v9347_v43 = vadd.f32 %v9050_v25, %v13499_v31  ;;  %v1428_v33 = vsel %vm1426_vm11, %v1427_v59, %v1425_v2  ;;  %vm1417_vm2 = vcmp.eq.f32.partialorder %v9222_v61, inf  ;;  %v1154_v60 = vadd.f32 %v1153_v40, %v9099_v20  ;;  %v13500_v25 = vld [vmem:[#allocation13_spill] sm:$0xff] }
 0x116   : > { %v1292_v30 = vadd.f32 -0.33333147, %v1291_v22  ;;  %1851 = vperm.xlu0 %7884, %v1428_v33   ;;  %v1418_v24 = vsel %vm1417_vm2, %v9222_v61, %v1416_v45  ;;  %v1420_v57 = vand.u32 2147483648, %v9222_v61  ;;  %v1018_v5 = vsub.f32 3.1415927, %v1016_v58 }
 0x117   : > { %v9356_v19 = vsel %vm975_vm14, %v9022_v7, %v972_v18  ;;  %vm1202_vm13 = vcmp.gt.f32.partialorder %v8727_v16, %v8905_v48  ;;  %7957 = vrsqrt.f32 %v9334_v36  ;;  %vm1419_vm11 = vcmp.eq.f32.partialorder %v9222_v61, 0.0  ;;  %v1368_v7 = vpop.permute.xlu0 %1367  ;;  %v9369_v18 = vpop.permute.xlu1 %1550 }
 0x118   : > { %vm13203_vm3 = vcmp.lt.f32.partialorder %v8721_v46, 0.0  ;;  %vm1069_vm10 = vcmp.eq.f32.partialorder %v13500_v25, 0.0  ;;  %v1063_v20 = vsel %vm1061_vm8, %v1062_v34, %v1060_v28  ;;  %v1201_v40 = vadd.f32 %v1200_v23, %v9067_v42  ;;  %v7952_v59 = vpop.eup %7951 }
 0x119   : > { %v1421_v22 = vsel %vm1419_vm11, %v1420_v57, %v1418_v24  ;;  %v1430_v2 = vmul.f32 %v7950_v13, %v9247_v50  ;;  %v1110_v61 = vsel %vm1108_vm1, %v1109_v29, %v1107_v49  ;;  %v1243_v45 = vadd.f32 0.19993454, %v1242_v26  ;;  %vm9389_vm1 = vmor %vm977_vm12, %vm978_vm15  ;;  %v13504_v29 = vld [vmem:[#allocation27_spill] sm:$0xff] }
 0x11a   : > { %7959 = vrsqrt.f32 %v9347_v43  ;;  %1846 = vperm.xlu1 %7902, %v1421_v22   ;;  %vm1431_vm14 = vcmp.eq.f32.partialorder %v9247_v50, inf  ;;  %v1156_v28 = vsub.f32 1.5707964, %v1154_v60  ;;  %v1293_v42 = vmul.f32 %v1292_v30, %v9147_v35  ;;  %v7954_v13 = vpop.eup %7953 }
 0x11b   : > { %v1432_v34 = vsel %vm1431_vm14, %v9247_v50, %v1430_v2  ;;  %v1434_v23 = vand.u32 2147483648, %v9247_v50  ;;  %v9381_v31 = vsel %vm1017_vm9, %v1018_v5, %v1016_v58  ;;  %v1065_v35 = vsub.f32 3.1415927, %v1063_v20  ;;  %v1372_v27 = vpop.permute.xlu0 %1371  ;;  %v13505_v2 = vld [vmem:[#allocation26_spill] sm:$0xff] }
 0x11c   : > { %13501 = vst [vmem:[#allocation22_spill] sm:$0xff] %v9381_v31  ;;  %v9394_v26 = vadd.f32 %v1368_v7, %v13504_v29  ;;  %vm1433_vm8 = vcmp.eq.f32.partialorder %v9247_v50, 0.0  ;;  %v7956_v33 = vpop.eup %7955  ;;  %v1203_v30 = vsub.f32 1.5707964, %v1201_v40  ;;  %v1437_v57 = vmul.f32 %v7952_v59, %v9278_v15  ;;  %v8137_v7 = vld [vmem:[%s8270_s19 + $0x60] sm:$0xff]  ;;  %v13506_v29 = vld [vmem:[#allocation75_spill] sm:$0xff] }
 0x11d   : > { %v1435_v24 = vsel %vm1433_vm8, %v1434_v23, %v1432_v34  ;;  %v1112_v5 = vsub.f32 3.1415927, %v1110_v61  ;;  %v1244_v22 = vmul.f32 %v1243_v45, %v9177_v52  ;;  %v9404_v56 = vadd.f32 %v9087_v55, %v13505_v2  ;;  %v9414_v45 = vpop.permute.xlu1 %1645 }
 0x11e   : > { %1590 = vperm.xlu1 %7902, %v8137_v7   ;;  %1856 = vperm.xlu0 %7884, %v1435_v24   ;;  %vm1438_vm12 = vcmp.eq.f32.partialorder %v9278_v15, inf  ;;  %v1157_v50 = vsel %vm1155_vm5, %v1156_v28, %v1154_v60  ;;  %v1294_v34 = vmul.f32 %v1293_v42, %v9135_v62  ;;  %v1441_v23 = vand.u32 2147483648, %v9278_v15  ;;  %v13508_v28 = vld [vmem:[#allocation28_spill] sm:$0xff]  ;;  %v13509_v42 = vld [vmem:[#allocation91_spill] sm:$0xff] }
 0x11f   : > { %v1439_v59 = vsel %vm1438_vm12, %v9278_v15, %v1437_v57  ;;  %vm13507_vm15 = vcmp.lt.f32.partialorder %v13506_v29, 0.0  ;;  %7961 = vrsqrt.f32 %v9394_v26  ;;  %vm1440_vm2 = vcmp.eq.f32.partialorder %v9278_v15, 0.0  ;;  %v1376_v58 = vpop.permute.xlu0 %1375 }
 0x120   : > { %v1066_v55 = vsel %vm13507_vm15, %v1065_v35, %v1063_v20  ;;  %v1444_v24 = vmul.f32 %v7956_v33, %v9293_v6  ;;  %v9424_v60 = vsel %vm1202_vm13, %v1203_v30, %v1201_v40  ;;  %v9428_v57 = vadd.f32 %v13509_v42, %v13508_v28  ;;  %v13513_v42 = vld [vmem:[#allocation29_spill] sm:$0xff] }
 0x121   : > { %v1442_v2 = vsel %vm1440_vm2, %v1441_v23, %v1439_v59  ;;  %vm1445_vm5 = vcmp.eq.f32.partialorder %v9293_v6, inf  ;;  %v7958_v20 = vpop.eup %7957  ;;  %v9433_v35 = vsel %vm13203_vm3, %v1112_v5, %v1110_v61  ;;  %v1159_v15 = vsub.f32 3.1415927, %v1157_v50  ;;  %v9443_v28 = vpop.permute.xlu1 %1555  ;;  %v13512_v5 = vld [vmem:[#allocation90_spill] sm:$0xff] }
 0x122   : > { %13510 = vst [vmem:[#allocation23_spill] sm:$0xff] %v9433_v35  ;;  %v1245_v33 = vadd.f32 -0.33333147, %v1244_v22  ;;  %v13511_v0 = vmov 1   ;;  %1861 = vperm.xlu0 %7884, %v1442_v2   ;;  %v1446_v40 = vsel %vm1445_vm5, %v9293_v6, %v1444_v24  ;;  %v9438_v30 = vadd.f32 %v1294_v34, %v9135_v62  ;;  %v13519_v24 = vld [vmem:[#allocation36_spill] sm:$0xff]  ;;  %v13524_v35 = vld [vmem:[#allocation30_spill] sm:$0xff] }
 0x123   : > { %7903 = vset.pattern.permute.xlu1 %v13511_v0  ;;  %7963 = vrsqrt.f32 %v9404_v56  ;;  %v1448_v59 = vand.u32 2147483648, %v9293_v6  ;;  %v1451_v23 = vmul.f32 %v7954_v13, %v9289_v47  ;;  %v9448_v22 = vsel %vm1069_vm10, %v13512_v5, %v1066_v55  ;;  %v9460_v55 = vpop.permute.xlu0 %1379  ;;  %v13516_v5 = vld [vmem:[#allocation15_spill] sm:$0xff] }
 0x124   : > { %1677 = vperm.xlu1 %7903, %v8137_v7   ;;  %v7960_v61 = vpop.eup %7959  ;;  %v9452_v62 = vadd.f32 %v1372_v27, %v13513_v42  ;;  %vm1447_vm13 = vcmp.eq.f32.partialorder %v9293_v6, 0.0  ;;  %v13514_v7 = vld [vmem:[#allocation35_spill] sm:$0xff]  ;;  %7965 = vrsqrt.f32 %v9428_v57  ;;  %vm1452_vm14 = vcmp.eq.f32.partialorder %v9289_v47, inf  ;;  %v13518_v42 = vld [vmem:[#allocation38_spill] sm:$0xff] }
 0x125   : > { %vm695_vm11 = vcmp.ne.f32.partialorder %v13514_v7, %v13514_v7  ;;  %v1449_v13 = vsel %vm1447_vm13, %v1448_v59, %v1446_v40  ;;  %v1458_v34 = vmul.f32 %v7958_v20, %v9334_v36  ;;  %vm13515_vm10 = vcmp.lt.f32.partialorder %v8926_v10, 0.0  ;;  %v13523_v40 = vld [vmem:[#allocation67_spill] sm:$0xff]  ;;  %v9487_v48 = vpop.permute.xlu1 %1649 }
 0x126   : > { %v9464_v2 = vsel %vm13515_vm10, %v1159_v15, %v1157_v50  ;;  %v1246_v27 = vmul.f32 %v1245_v33, %v9177_v52  ;;  %1866 = vperm.xlu0 %7884, %v1449_v13   ;;  %v1453_v6 = vsel %vm1452_vm14, %v9289_v47, %v1451_v23  ;;  %vm1459_vm8 = vcmp.eq.f32.partialorder %v9334_v36, inf  ;;  %v8138_v52 = vld [vmem:[%s8270_s19 + $0x68] sm:$0xff] }
 0x127   : > { %vm1163_vm12 = vcmp.eq.f32.partialorder %v13516_v5, 0.0  ;;  %v13517_v59 = vmov 0   ;;  %v1455_v20 = vand.u32 2147483648, %v9289_v47  ;;  %vm607_vm15 = vcmp.eq.s32.totalorder %v13518_v42, inf  ;;  %v13521_v42 = vld [vmem:[#allocation79_spill] sm:$0xff] }
 0x128   : > { %7904 = vset.pattern.permute.xlu1 %v13517_v59  ;;  %vm608_vm2 = vcmp.eq.s32.totalorder %v13519_v24, inf  ;;  %7967 = vrsqrt.f32 %v9452_v62  ;;  %vm1454_vm5 = vcmp.eq.f32.partialorder %v9289_v47, 0.0  ;;  %v1462_v50 = vand.u32 2147483648, %v9334_v36  ;;  %v13527_v13 = vld [vmem:[#allocation43_spill] sm:$0xff] }
 0x129   : > { %1595 = vperm.xlu1 %7904, %v8138_v52   ;;  %vm609_vm13 = vmand %vm607_vm15, %vm608_vm2  ;;  %v1465_v15 = vmul.f32 %v7960_v61, %v9347_v43  ;;  %v1456_v33 = vsel %vm1454_vm5, %v1455_v20, %v1453_v6  ;;  %v1460_v23 = vsel %vm1459_vm8, %v9334_v36, %v1458_v34  ;;  %vm1461_vm14 = vcmp.eq.f32.partialorder %v9334_v36, 0.0  ;;  %v7962_v17 = vpop.eup %7961  ;;  %v13525_v61 = vld [vmem:[#allocation31_spill] sm:$0xff] }
 0x12a   : > { %v13522_v24 = vsel %vm8964_vm4, nan, %v13521_v42  ;;  %v1247_v47 = vmul.f32 %v1246_v27, %v9165_v39  ;;  %v9492_v51 = vadd.f32 %v9162_v41, %v13524_v35  ;;  %1871 = vperm.xlu0 %7884, %v1456_v33   ;;  %v9495_v34 = vadd.f32 %v1376_v58, %v13525_v61  ;;  %v13526_v36 = vld [vmem:[#allocation3_spill] sm:$0xff]  ;;  %v9501_v42 = vpop.permute.xlu0 %1633 }
 0x12b   : > { %v610_v16 = vsel %vm609_vm13, %v13523_v40, %v13522_v24  ;;  %v612_v6 = vand.u32 2147483648, %v13526_v36  ;;  %vm1466_vm4 = vcmp.eq.f32.partialorder %v9347_v43, inf  ;;  %vm654_vm10 = vcmp.eq.s32.totalorder %v13527_v13, inf  ;;  %v13528_v40 = vld [vmem:[#allocation41_spill] sm:$0xff]  ;;  %13529 = vst [vmem:[#allocation25_spill] sm:$0xff] %v9501_v42  ;;  %v13531_v24 = vld [vmem:[#allocation80_spill] sm:$0xff] }
 0x12c   : > { %v611_v20 = vand.u32 2147483647, %v610_v16  ;;  %vm655_vm8 = vcmp.eq.s32.totalorder %v13528_v40, inf  ;;  %v1463_v27 = vsel %vm1461_vm14, %v1462_v50, %v1460_v23  ;;  %v1467_v41 = vsel %vm1466_vm4, %v9347_v43, %v1465_v15  ;;  %v13533_v36 = vld [vmem:[#allocation69_spill] sm:$0xff]  ;;  %v9514_v23 = vpop.permute.xlu1 %1560 }
 0x12d   : > { %7905 = vset.pattern.permute.xlu1 %v13511_v0  ;;  %vm1468_vm15 = vcmp.eq.f32.partialorder %v9347_v43, 0.0  ;;  %vm656_vm2 = vmand %vm654_vm10, %vm655_vm8  ;;  %v1608_v58 = vlaneseq  ;;  %v7964_v35 = vpop.eup %7963  ;;  %v1469_v16 = vand.u32 2147483648, %v9347_v43  ;;  %v13532_v61 = vsel %vm8982_vm0, nan, %v13531_v24  ;;  %v13534_v40 = vld [vmem:[#allocation5_spill] sm:$0xff]  ;;  %13535 = vst [vmem:[#allocation24_spill] sm:$0xff] %v9514_v23  ;;  %v13539_v24 = vld [vmem:[#allocation63_spill] sm:$0xff] }
 0x12e   : > { %1681 = vperm.xlu1 %7905, %v8138_v52   ;;  %v657_v13 = vsel %vm656_vm2, %v13533_v36, %v13532_v61  ;;  %v659_v63 = vand.u32 2147483648, %v13534_v40  ;;  %v1472_v50 = vmul.f32 %v7962_v17, %v9394_v26  ;;  %1876 = vperm.xlu0 %7884, %v1463_v27   ;;  %vm1473_vm5 = vcmp.eq.f32.partialorder %v9394_v26, inf  ;;  %v13537_v52 = vld [vmem:[#allocation2_spill] sm:$0xff]  ;;  %v9520_v59 = vpop.eup %7965 }
 0x12f   : > { %v658_v15 = vand.u32 2147483647, %v657_v13  ;;  %v9516_v31 = vshrl.u32 %v1608_v58, 7  ;;  %vm693_vm13 = vcmp.eq.f32.partialorder %v13537_v52, 0.0  ;;  %vm1072_vm0 = vcmp.ne.f32.partialorder %v13500_v25, %v13500_v25  ;;  %v13538_v27 = vld [vmem:[#allocation78_spill] sm:$0xff] }
 0x130   : > { %vm1071_vm14 = vcmp.ne.f32.partialorder %v13506_v29, %v13506_v29  ;;  %v613_v33 = vor.u32 %v612_v6, %v611_v20  ;;  %v1470_v17 = vsel %vm1468_vm15, %v1469_v16, %v1467_v41  ;;  %v694_v58 = vsel %vm693_vm13, %v13539_v24, %v13538_v27  ;;  %v9540_v6 = vld [vmem:[%s13038_s2] sm:$0xf]  ;;  %v13543_v41 = vld [vmem:[#allocation37_spill] sm:$0xff]  ;;  %v9559_v27 = vpop.permute.xlu0 %1530  ;;  %v9579_v20 = vpop.permute.xlu1 %1653 }
 0x131   : > { %13536 = vst [vmem:[#allocation13_spill] sm:$0xff] %v9516_v31  ;;  %vm696_vm4 = vcmp.ne.f32.partialorder %v13537_v52, %v13537_v52  ;;  %vm1166_vm10 = vcmp.ne.f32.partialorder %v13516_v5, %v13516_v5  ;;  %vm1165_vm8 = vcmp.ne.f32.partialorder %v8926_v10, %v8926_v10  ;;  %v13204_v61 = vsub.s32 1, %v9516_v31  ;;  %13540 = vst [vmem:[#allocation27_spill] sm:$0xff] %v9540_v6  ;;  %v13544_v13 = vld [vmem:[#allocation34_spill] sm:$0xff] }
 0x132   : > { %vm1475_vm15 = vcmp.eq.f32.partialorder %v9394_v26, 0.0  ;;  %v1476_v43 = vand.u32 2147483648, %v9394_v26  ;;  %vm9547_vm2 = vmor %vm695_vm11, %vm696_vm4  ;;  %vm701_vm13 = vcmp.eq.s32.totalorder %v13543_v41, inf  ;;  %1730 = vperm.xlu1 %7905, %v613_v33   ;;  %v1474_v16 = vsel %vm1473_vm5, %v9394_v26, %v1472_v50  ;;  %13545 = vst [vmem:[#allocation26_spill] sm:$0xff] %v9559_v27  ;;  %v7968_v24 = vpop.eup %7967  ;;  %1881 = vperm.xlu0 %7884, %v1470_v17   ;;  %v13549_v17 = vld [vmem:[#allocation62_spill] sm:$0xff] }
 0x133   : > { %v698_v36 = vsel %vm9547_vm2, nan, %v694_v58  ;;  %vm702_vm3 = vcmp.eq.s32.totalorder %v13544_v13, inf  ;;  %v1479_v40 = vmul.f32 %v7964_v35, %v9404_v56  ;;  %v9565_v41 = vsel %vm1163_vm12, %v9259_v4, %v9464_v2  ;;  %13547 = vst [vmem:[#allocation75_spill] sm:$0xff] %v9579_v20  ;;  %v13550_v13 = vld [vmem:[#allocation86_spill] sm:$0xff] }
 0x134   : > { %7969 = vrsqrt.f32 %v9492_v51  ;;  %v660_v50 = vor.u32 %v659_v63, %v658_v15  ;;  %vm13546_vm11 = vcmp.lt.f32.partialorder %v13514_v7, 0.0  ;;  %vm703_vm5 = vmand %vm701_vm13, %vm702_vm3  ;;  %vm13214_vm4 = vcmp.lt.f32.partialorder %v8766_v44, 0.0  ;;  %v13548_v15 = vld [vmem:[#allocation84_spill] sm:$0xff]  ;;  %v9609_v20 = vpop.permute.xlu1 %1565 }
 0x135   : > { %v700_v33 = vsel %vm13546_vm11, 2.3561945, %v13422_v1  ;;  %v9575_v35 = vrot.slane %v9540_v6, %v13204_v61  ;;  %v706_v4 = vand.u32 2147483648, %v13537_v52  ;;  %v13207_v2 = vsub.s32 0, %v9516_v31 }
 0x136   : > { %v704_v58 = vsel %vm703_vm5, %v700_v33, %v698_v36  ;;  %v1248_v63 = vadd.f32 %v1247_v47, %v9165_v39  ;;  %7971 = vrsqrt.f32 %v9495_v34  ;;  %v1477_v7 = vsel %vm1475_vm15, %v1476_v43, %v1474_v16  ;;  %v13551_v36 = vld [vmem:[#allocation64_spill] sm:$0xff]  ;;  %1735 = vperm.xlu1 %7905, %v660_v50   ;;  %v13553_v43 = vld [vmem:[#allocation46_spill] sm:$0xff]  ;;  %v13554_v50 = vld [vmem:[#allocation19_spill] sm:$0xff] }
 0x137   : > { %vm1480_vm3 = vcmp.eq.f32.partialorder %v9404_v56, inf  ;;  %vm1296_vm12 = vcmp.gt.f32.partialorder %v13549_v17, %v13548_v15  ;;  %vm1249_vm2 = vcmp.gt.f32.partialorder %v13551_v36, %v13550_v13  ;;  %v705_v52 = vand.u32 2147483647, %v704_v58  ;;  %1886 = vperm.xlu0 %7884, %v1477_v7   ;;  %v13552_v47 = vld [vmem:[#allocation48_spill] sm:$0xff]  ;;  %v9607_v7 = vpop.permute.xlu0 %1540 }
 0x138   : > { %v1481_v33 = vsel %vm1480_vm3, %v9404_v56, %v1479_v40  ;;  %v1483_v61 = vand.u32 2147483648, %v9404_v56  ;;  %v9595_v39 = vrot.slane %v9540_v6, %v13207_v2  ;;  %v5298_v26 = vmul.f32 %v9575_v35, %v9501_v42  ;;  %v13555_v2 = vld [vmem:[#allocation7_spill] sm:$0xff] }
 0x139   : > { %vm795_vm15 = vcmp.eq.s32.totalorder %v13552_v47, inf  ;;  %vm796_vm13 = vcmp.eq.s32.totalorder %v13553_v43, inf  ;;  %v1486_v16 = vmul.f32 %v7968_v24, %v9452_v62  ;;  %v5297_v40 = vmul.f32 %v9575_v35, %v13554_v50  ;;  %v13556_v47 = vld [vmem:[#allocation59_spill] sm:$0xff] }
 0x13a   : > { %v707_v58 = vor.u32 %v706_v4, %v705_v52  ;;  %v5277_v31 = vmul.f32 %v9595_v39, %v9559_v27  ;;  %vm797_vm11 = vmand %vm795_vm15, %vm796_vm13  ;;  %v800_v6 = vand.u32 2147483648, %v13555_v2  ;;  %vm1482_vm5 = vcmp.eq.f32.partialorder %v9404_v56, 0.0  ;;  %v13558_v42 = vld [vmem:[#allocation83_spill] sm:$0xff]  ;;  %v13560_v4 = vld [vmem:[#allocation72_spill] sm:$0xff] }
 0x13b   : > { %v5278_v43 = vmul.f32 %v9595_v39, %v13556_v47  ;;  %v13559_v50 = vsel %vm9034_vm6, nan, %v13558_v42  ;;  %vm1487_vm3 = vcmp.eq.f32.partialorder %v9452_v62, inf  ;;  %v1250_v27 = vsub.f32 1.5707964, %v1248_v63  ;;  %vm9628_vm15 = vmor %vm1071_vm14, %vm1072_vm0 }
 0x13c   : > { %v798_v52 = vsel %vm797_vm11, %v13560_v4, %v13559_v50  ;;  %1740 = vperm.xlu1 %7905, %v707_v58   ;;  %v1484_v2 = vsel %vm1482_vm5, %v1483_v61, %v1481_v33  ;;  %v9620_v23 = vadd.f32 %v5297_v40, %v5277_v31  ;;  %v1488_v50 = vsel %vm1487_vm3, %v9452_v62, %v1486_v16  ;;  %vm9646_vm0 = vmor %vm1165_vm8, %vm1166_vm10  ;;  %v13568_v4 = vld [vmem:[#allocation9_spill] sm:$0xff] }
 0x13d   : > { %v799_v32 = vand.u32 2147483647, %v798_v52  ;;  %1891 = vperm.xlu0 %7884, %v1484_v2   ;;  %v9632_v42 = vadd.f32 %v5298_v26, %v5278_v43  ;;  %vm1489_vm6 = vcmp.eq.f32.partialorder %v9452_v62, 0.0  ;;  %v1490_v31 = vand.u32 2147483648, %v9452_v62  ;;  %v13566_v43 = vld [vmem:[#allocation53_spill] sm:$0xff] }
 0x13e   : > { %v5299_v26 = vmul.f32 %v9575_v35, %v9296_v37  ;;  %v5279_v62 = vmul.f32 %v9595_v39, %v9607_v7  ;;  %v7970_v16 = vpop.eup %7969  ;;  %v13565_v40 = vsub.f32 3.1415927, %v9424_v60  ;;  %vm889_vm14 = vcmp.eq.s32.totalorder %v13566_v43, inf }
 0x13f   : > { %v801_v33 = vor.u32 %v800_v6, %v799_v32  ;;  %v13567_v32 = vld [vmem:[#allocation51_spill] sm:$0xff]  ;;  %v1491_v6 = vsel %vm1489_vm6, %v1490_v31, %v1488_v50  ;;  %v894_v52 = vand.u32 2147483648, %v13568_v4  ;;  %v1493_v2 = vmul.f32 %v9520_v59, %v9428_v57  ;;  %v13574_v4 = vld [vmem:[#allocation40_spill] sm:$0xff] }
 0x140   : > { %v9659_v58 = vsel %vm13214_vm4, %v13565_v40, %v9424_v60  ;;  %vm890_vm10 = vcmp.eq.s32.totalorder %v13567_v32, inf  ;;  %v9666_v24 = vadd.f32 %v5299_v26, %v5279_v62  ;;  %v9671_v60 = vpop.permute.xlu0 %1545  ;;  %v9673_v40 = vpop.permute.xlu1 %1657  ;;  %v13569_v43 = vsub.f32 1.5707964, %v9438_v30  ;;  %v13573_v62 = vld [vmem:[#allocation77_spill] sm:$0xff] }
 0x141   : > { %1750 = vperm.xlu1 %7905, %v801_v33   ;;  %vm891_vm8 = vmand %vm889_vm14, %vm890_vm10  ;;  %v7972_v61 = vpop.eup %7971  ;;  %v9686_v31 = vsel %vm1249_vm2, %v1250_v27, %v1248_v63  ;;  %1896 = vperm.xlu0 %7884, %v1491_v6   ;;  %v13571_v33 = vld [vmem:[#allocation18_spill] sm:$0xff]  ;;  %vm1494_vm13 = vcmp.eq.f32.partialorder %v9428_v57, inf  ;;  %vm742_vm11 = vcmp.ne.f32.partialorder %v13574_v4, %v13574_v4  ;;  %v5300_v27 = vmul.f32 %v9575_v35, %v9340_v9 }
 0x142   : > { %v9681_v50 = vsel %vm1296_vm12, %v13569_v43, %v9438_v30  ;;  %v13572_v26 = vsel %vm9209_vm7, nan, %v13571_v33  ;;  %v1495_v30 = vsel %vm1494_vm13, %v9428_v57, %v1493_v2  ;;  %v1497_v43 = vand.u32 2147483648, %v9428_v57 }
 0x143   : > { %v892_v32 = vsel %vm891_vm8, %v13573_v62, %v13572_v26  ;;  %vm1496_vm12 = vcmp.eq.f32.partialorder %v9428_v57, 0.0  ;;  %v5280_v63 = vmul.f32 %v9595_v39, %v9671_v60  ;;  %vm983_vm7 = vcmp.eq.s32.totalorder %v13481_v11, inf  ;;  %v13575_v62 = vld [vmem:[#allocation45_spill] sm:$0xff] }
 0x144   : > { %v893_v10 = vand.u32 2147483647, %v892_v32  ;;  %vm984_vm2 = vcmp.eq.s32.totalorder %v13482_v12, inf  ;;  %v1498_v59 = vsel %vm1496_vm12, %v1497_v43, %v1495_v30  ;;  %v988_v33 = vand.u32 2147483648, %v13493_v14  ;;  %v9707_v26 = vpop.permute.xlu1 %1570  ;;  %v13577_v12 = vld [vmem:[#allocation85_spill] sm:$0xff] }
 0x145   : > { %vm985_vm5 = vmand %vm983_vm7, %vm984_vm2  ;;  %v1500_v2 = vmul.f32 %v7972_v61, %v9495_v34  ;;  %vm836_vm3 = vcmp.ne.f32.partialorder %v13575_v62, %v13575_v62  ;;  %1901 = vperm.xlu0 %7884, %v1498_v59   ;;  %v9711_v57 = vadd.f32 %v5300_v27, %v5280_v63  ;;  %v13576_v11 = vsel %vm9389_vm1, nan, %v9356_v19 }
 0x146   : > { %v895_v6 = vor.u32 %v894_v52, %v893_v10  ;;  %v986_v10 = vsel %vm985_vm5, %v13577_v12, %v13576_v11  ;;  %vm1501_vm6 = vcmp.eq.f32.partialorder %v9495_v34, inf  ;;  %vm1503_vm14 = vcmp.eq.f32.partialorder %v9495_v34, 0.0  ;;  %v13583_v11 = vld [vmem:[#allocation76_spill] sm:$0xff] }
 0x147   : > { %v1300_v14 = vsub.f32 3.1415927, %v9681_v50  ;;  %v987_v61 = vand.u32 2147483647, %v986_v10  ;;  %v1502_v52 = vsel %vm1501_vm6, %v9495_v34, %v1500_v2  ;;  %v1504_v32 = vand.u32 2147483648, %v9495_v34  ;;  %v13579_v34 = vld [vmem:[#allocation17_spill] sm:$0xff] }
 0x148   : > { %1760 = vperm.xlu1 %7905, %v895_v6   ;;  %v1253_v30 = vsub.f32 3.1415927, %v9686_v31  ;;  %v5281_v49 = vmul.f32 %v9595_v39, %v9369_v18  ;;  %vm1077_vm1 = vcmp.eq.s32.totalorder %v8889_v54, inf  ;;  %vm1078_vm10 = vcmp.eq.s32.totalorder %v8724_v3, inf  ;;  %v13578_v6 = vld [vmem:[#allocation49_spill] sm:$0xff]  ;;  %v9745_v56 = vpop.permute.xlu1 %1661 }
 0x149   : > { %v989_v19 = vor.u32 %v988_v33, %v987_v61  ;;  %v1505_v43 = vsel %vm1503_vm14, %v1504_v32, %v1502_v52  ;;  %vm1079_vm8 = vmand %vm1077_vm1, %vm1078_vm10  ;;  %v1082_v27 = vand.u32 2147483648, %v13500_v25  ;;  %v1507_v63 = vmul.f32 %v7970_v16, %v9492_v51  ;;  %v13581_v54 = vld [vmem:[#allocation89_spill] sm:$0xff]  ;;  %v13584_v32 = vld [vmem:[#allocation4_spill] sm:$0xff] }
 0x14a   : > { %vm930_vm13 = vcmp.ne.f32.partialorder %v13578_v6, %v13578_v6  ;;  %vm1257_vm12 = vcmp.eq.f32.partialorder %v13579_v34, 0.0  ;;  %1906 = vperm.xlu0 %7884, %v1505_v43   ;;  %v13580_v59 = vsel %vm9628_vm15, nan, %v9448_v22  ;;  %vm1508_vm7 = vcmp.eq.f32.partialorder %v9492_v51, inf  ;;  %v13582_v22 = vld [vmem:[#allocation32_spill] sm:$0xff]  ;;  %v13588_v43 = vld [vmem:[#allocation87_spill] sm:$0xff] }
 0x14b   : > { %v1080_v2 = vsel %vm1079_vm8, %v13581_v54, %v13580_v59  ;;  %vm1510_vm2 = vcmp.eq.f32.partialorder %v9492_v51, 0.0  ;;  %v1511_v3 = vand.u32 2147483648, %v9492_v51  ;;  %v1509_v16 = vsel %vm1508_vm7, %v9492_v51, %v1507_v63  ;;  %v13592_v59 = vld [vmem:[#allocation42_spill] sm:$0xff]  ;;  %v13594_v54 = vld [vmem:[#allocation39_spill] sm:$0xff] }
 0x14c   : > { %1770 = vperm.xlu1 %7905, %v989_v19   ;;  %v1081_v25 = vand.u32 2147483647, %v1080_v2  ;;  %v5301_v33 = vmul.f32 %v9575_v35, %v9414_v45  ;;  %vm1171_vm5 = vcmp.eq.s32.totalorder %v8956_v53, inf  ;;  %v9749_v12 = vadd.f32 %v13583_v11, %v13582_v22  ;;  %v9789_v2 = vpop.permute.xlu1 %1575 }
 0x14d   : > { %v1512_v10 = vsel %vm1510_vm2, %v1511_v3, %v1509_v16  ;;  %vm1172_vm15 = vcmp.eq.s32.totalorder %v8731_v21, inf  ;;  %v1176_v61 = vand.u32 2147483648, %v13516_v5  ;;  %vm1024_vm6 = vcmp.ne.f32.partialorder %v13436_v8, %v13436_v8  ;;  %v13587_v5 = vld [vmem:[#allocation65_spill] sm:$0xff]  ;;  %v13595_v3 = vld [vmem:[#allocation71_spill] sm:$0xff]  ;;  %v13597_v16 = vld [vmem:[#allocation6_spill] sm:$0xff] }
 0x14e   : > { %v1083_v51 = vor.u32 %v1082_v27, %v1081_v25  ;;  %v9755_v52 = vadd.f32 %v5301_v33, %v5281_v49  ;;  %vm1173_vm14 = vmand %vm1171_vm5, %vm1172_vm15  ;;  %vm740_vm1 = vcmp.eq.f32.partialorder %v13584_v32, 0.0  ;;  %vm743_vm10 = vcmp.ne.f32.partialorder %v13584_v32, %v13584_v32  ;;  %1911 = vperm.xlu0 %7884, %v1512_v10   ;;  %v13589_v49 = vld [vmem:[#allocation68_spill] sm:$0xff] }
 0x14f   : > { %vm13585_vm8 = vcmp.lt.f32.partialorder %v9048_v38, 0.0  ;;  %v13586_v21 = vsel %vm9646_vm0, nan, %v9565_v41  ;;  %v741_v27 = vsel %vm740_vm1, %v13589_v49, %v13588_v43  ;;  %vm9773_vm7 = vmor %vm742_vm11, %vm743_vm10  ;;  %vm748_vm2 = vcmp.eq.s32.totalorder %v13592_v59, inf  ;;  %v13593_v41 = vld [vmem:[#allocation33_spill] sm:$0xff]  ;;  %v13598_v10 = vld [vmem:[#allocation92_spill] sm:$0xff] }
 0x150   : > { %v1254_v53 = vsel %vm13585_vm8, %v1253_v30, %v9686_v31  ;;  %v1174_v19 = vsel %vm1173_vm14, %v13587_v5, %v13586_v21  ;;  %vm1260_vm5 = vcmp.ne.f32.partialorder %v13579_v34, %v13579_v34  ;;  %vm1259_vm0 = vcmp.ne.f32.partialorder %v9048_v38, %v9048_v38  ;;  %1780 = vperm.xlu1 %7905, %v1083_v51   ;;  %v13599_v51 = vld [vmem:[#allocation70_spill] sm:$0xff]  ;;  %v13602_v5 = vld [vmem:[#allocation47_spill] sm:$0xff]  ;;  %v13604_v43 = vld [vmem:[#allocation16_spill] sm:$0xff] }
 0x151   : > { %v9784_v29 = vadd.f32 %v9460_v55, %v13593_v41  ;;  %v1175_v31 = vand.u32 2147483647, %v1174_v19  ;;  %v745_v30 = vsel %vm9773_vm7, nan, %v741_v27  ;;  %vm749_vm11 = vcmp.eq.s32.totalorder %v13594_v54, inf  ;;  %v13603_v19 = vld [vmem:[#allocation44_spill] sm:$0xff]  ;;  %v13608_v54 = vld [vmem:[#allocation73_spill] sm:$0xff] }
 0x152   : > { %vm1118_vm15 = vcmp.ne.f32.partialorder %v8721_v46, %v8721_v46  ;;  %vm1299_vm14 = vcmp.lt.f32.partialorder %v13595_v3, 0.0  ;;  %vm13596_vm1 = vcmp.lt.f32.partialorder %v13574_v4, 0.0  ;;  %vm750_vm10 = vmand %vm748_vm2, %vm749_vm11  ;;  %v753_v55 = vand.u32 2147483648, %v13584_v32  ;;  %7910 = vset.pattern.permute.xlu0 %v13511_v0  ;;  %v13606_v59 = vld [vmem:[#allocation8_spill] sm:$0xff] }
 0x153   : > { %v747_v25 = vsel %vm13596_vm1, 2.3561945, %v13422_v1  ;;  %vm834_vm8 = vcmp.eq.f32.partialorder %v13597_v16, 0.0  ;;  %vm837_vm7 = vcmp.ne.f32.partialorder %v13597_v16, %v13597_v16  ;;  %v1177_v33 = vor.u32 %v1176_v61, %v1175_v31 }
 0x154   : > { %v751_v22 = vsel %vm750_vm10, %v747_v25, %v745_v30  ;;  %v5282_v11 = vmul.f32 %v9595_v39, %v9443_v28  ;;  %v835_v21 = vsel %vm834_vm8, %v13599_v51, %v13598_v10  ;;  %vm9808_vm1 = vmor %vm836_vm3, %vm837_vm7  ;;  %vm842_vm2 = vcmp.eq.s32.totalorder %v13602_v5, inf  ;;  %v13607_v30 = vld [vmem:[#allocation66_spill] sm:$0xff]  ;;  %v9852_v10 = vpop.permute.xlu1 %1665 }
 0x155   : > { %v752_v32 = vand.u32 2147483647, %v751_v22  ;;  %v839_v61 = vsel %vm9808_vm1, nan, %v835_v21  ;;  %vm843_vm11 = vcmp.eq.s32.totalorder %v13603_v19, inf  ;;  %vm1266_vm8 = vcmp.eq.s32.totalorder %v13551_v36, inf  ;;  %1790 = vperm.xlu1 %7905, %v1177_v33   ;;  %v13614_v21 = vld [vmem:[#allocation52_spill] sm:$0xff] }
 0x156   : > { %vm13605_vm3 = vcmp.lt.f32.partialorder %v13575_v62, 0.0  ;;  %vm844_vm7 = vmand %vm842_vm2, %vm843_vm11  ;;  %v847_v27 = vand.u32 2147483648, %v13597_v16  ;;  %v5302_v63 = vmul.f32 %v9575_v35, %v9487_v48  ;;  %vm928_vm1 = vcmp.eq.f32.partialorder %v13606_v59, 0.0  ;;  %v13609_v62 = vld [vmem:[#allocation20_spill] sm:$0xff]  ;;  %v13617_v5 = vld [vmem:[#allocation10_spill] sm:$0xff] }
 0x157   : > { %v841_v49 = vsel %vm13605_vm3, 2.3561945, %v13422_v1  ;;  %vm1212_vm10 = vcmp.ne.f32.partialorder %v8766_v44, %v8766_v44  ;;  %v754_v41 = vor.u32 %v753_v55, %v752_v32  ;;  %v929_v25 = vsel %vm928_vm1, %v13608_v54, %v13607_v30  ;;  %v8139_v19 = vld [vmem:[%s8270_s19 + $0x70] sm:$0xff]  ;;  %v13641_v36 = vld [vmem:[#allocation57_spill] sm:$0xff] }
 0x158   : > { %v845_v31 = vsel %vm844_vm7, %v841_v49, %v839_v61  ;;  %vm931_vm4 = vcmp.ne.f32.partialorder %v13606_v59, %v13606_v59  ;;  %vm1307_vm2 = vcmp.ne.f32.partialorder %v13604_v43, %v13604_v43  ;;  %v9840_v16 = vsel %vm1257_vm12, %v13609_v62, %v1254_v53  ;;  %v9882_v62 = vpop.permute.xlu1 %1580 }
 0x159   : > { %7973 = vrsqrt.f32 %v9784_v29  ;;  %v846_v55 = vand.u32 2147483647, %v845_v31  ;;  %v9843_v33 = vadd.f32 %v5302_v63, %v5282_v11  ;;  %vm9848_vm3 = vmor %vm930_vm13, %vm931_vm4  ;;  %1745 = vperm.xlu0 %7910, %v754_v41   ;;  %vm13613_vm12 = vcmp.lt.f32.partialorder %v13578_v6, 0.0  ;;  %v13615_v11 = vld [vmem:[#allocation50_spill] sm:$0xff]  ;;  %v13619_v63 = vld [vmem:[#allocation55_spill] sm:$0xff] }
 0x15a   : > { %v933_v53 = vsel %vm9848_vm3, nan, %v929_v25  ;;  %v935_v51 = vsel %vm13613_vm12, 2.3561945, %v13422_v1  ;;  %vm936_vm7 = vcmp.eq.s32.totalorder %v13614_v21, inf  ;;  %vm937_vm1 = vcmp.eq.s32.totalorder %v13615_v11, inf  ;;  %v13618_v6 = vld [vmem:[#allocation22_spill] sm:$0xff] }
 0x15b   : > { %13610 = vst [vmem:[#allocation28_spill] sm:$0xff] %v9843_v33  ;;  %v13616_v4 = vmov 0   ;;  %v848_v32 = vor.u32 %v847_v27, %v846_v55  ;;  %vm938_vm4 = vmand %vm936_vm7, %vm937_vm1  ;;  %v941_v61 = vand.u32 2147483648, %v13606_v59  ;;  %vm1022_vm13 = vcmp.eq.f32.partialorder %v13617_v5, 0.0  ;;  %v13620_v31 = vld [vmem:[#allocation56_spill] sm:$0xff]  ;;  %v13621_v27 = vld [vmem:[#allocation54_spill] sm:$0xff] }
 0x15c   : > { %7906 = vset.pattern.permute.xlu1 %v13616_v4  ;;  %vm1025_vm11 = vcmp.ne.f32.partialorder %v13617_v5, %v13617_v5  ;;  %v939_v49 = vsel %vm938_vm4, %v935_v51, %v933_v53  ;;  %v1023_v41 = vsel %vm1022_vm13, %v13619_v63, %v13618_v6  ;;  %vm1030_vm12 = vcmp.eq.s32.totalorder %v13620_v31, inf  ;;  %v13625_v53 = vld [vmem:[#allocation23_spill] sm:$0xff]  ;;  %v13626_v51 = vld [vmem:[#allocation88_spill] sm:$0xff] }
 0x15d   : > { %1600 = vperm.xlu1 %7906, %v8139_v19   ;;  %vm1026_vm3 = vmor %vm1024_vm6, %vm1025_vm11  ;;  %vm1031_vm7 = vcmp.eq.s32.totalorder %v13621_v27, inf  ;;  %v1301_v59 = vsel %vm1299_vm14, %v1300_v14, %v9681_v50  ;;  %v940_v30 = vand.u32 2147483647, %v939_v49  ;;  %v1029_v25 = vsel %vm1017_vm9, 2.3561945, %v13422_v1  ;;  %1755 = vperm.xlu0 %7910, %v848_v32   ;;  %v13624_v14 = vld [vmem:[#allocation12_spill] sm:$0xff] }
 0x15e   : > { %v1027_v54 = vsel %vm1026_vm3, nan, %v1023_v41  ;;  %vm1032_vm1 = vmand %vm1030_vm12, %vm1031_vm7  ;;  %7975 = vrsqrt.f32 %v9749_v12  ;;  %vm1116_vm11 = vcmp.eq.f32.partialorder %v13624_v14, 0.0  ;;  %vm1119_vm9 = vcmp.ne.f32.partialorder %v13624_v14, %v13624_v14  ;;  %v13633_v41 = vld [vmem:[#allocation75_spill] sm:$0xff]  ;;  %v13634_v27 = vld [vmem:[#allocation14_spill] sm:$0xff] }
 0x15f   : > { %vm9890_vm6 = vmor %vm1259_vm0, %vm1260_vm5  ;;  %v1033_v50 = vsel %vm1032_vm1, %v1029_v25, %v1027_v54  ;;  %v942_v22 = vor.u32 %v941_v61, %v940_v30  ;;  %v1035_v38 = vand.u32 2147483648, %v13617_v5  ;;  %v1117_v21 = vsel %vm1116_vm11, %v13626_v51, %v13625_v53  ;;  %v13630_v61 = vld [vmem:[#allocation60_spill] sm:$0xff]  ;;  %v13635_v30 = vld [vmem:[#allocation21_spill] sm:$0xff] }
 0x160   : > { %v1262_v8 = vsel %vm9890_vm6, nan, %v9840_v16  ;;  %vm9907_vm5 = vmor %vm1118_vm15, %vm1119_vm9  ;;  %v1034_v32 = vand.u32 2147483647, %v1033_v50  ;;  %v13629_v16 = vld [vmem:[#allocation74_spill] sm:$0xff]  ;;  %vm1125_vm4 = vcmp.eq.s32.totalorder %v13630_v61, inf  ;;  %v13631_v5 = vld [vmem:[#allocation24_spill] sm:$0xff]  ;;  %v5303_v31 = vmul.f32 %v9575_v35, %v13633_v41 }
 0x161   : > { %7907 = vset.pattern.permute.xlu1 %v13511_v0  ;;  %v1121_v49 = vsel %vm9907_vm5, nan, %v1117_v21  ;;  %vm1124_vm0 = vcmp.eq.s32.totalorder %v13629_v16, inf  ;;  %v5283_v6 = vmul.f32 %v9595_v39, %v13631_v5  ;;  %vm13632_vm15 = vcmp.lt.f32.partialorder %v8721_v46, 0.0  ;;  %1765 = vperm.xlu0 %7910, %v942_v22   ;;  %v13638_v46 = vld [vmem:[#allocation93_spill] sm:$0xff] }
 0x162   : > { %1685 = vperm.xlu1 %7907, %v8139_v19   ;;  %v1123_v63 = vsel %vm13632_vm15, 2.3561945, %v13422_v1  ;;  %vm1126_vm13 = vmand %vm1124_vm0, %vm1125_vm4  ;;  %vm1210_vm3 = vcmp.eq.f32.partialorder %v13634_v27, 0.0  ;;  %vm13636_vm12 = vcmp.eq.f32.partialorder %v13604_v43, 0.0  ;;  %vm13637_vm7 = vcmp.eq.s32.totalorder %v13550_v13, inf }
 0x163   : > { %v1305_v54 = vsel %vm13636_vm12, %v13635_v30, %v1301_v59  ;;  %vm1267_vm1 = vmand %vm13637_vm7, %vm1266_vm8  ;;  %v1127_v19 = vsel %vm1126_vm13, %v1123_v63, %v1121_v49  ;;  %v1211_v25 = vsel %vm1210_vm3, %v13638_v46, %v9659_v58  ;;  %vm1213_vm6 = vcmp.ne.f32.partialorder %v13634_v27, %v13634_v27  ;;  %v7974_v55 = vpop.eup %7973  ;;  %v1670_v58 = vpop.permute.xlu1 %1669  ;;  %v13646_v49 = vld [vmem:[#allocation61_spill] sm:$0xff] }
 0x164   : > { %v1128_v50 = vand.u32 2147483647, %v1127_v19  ;;  %v1129_v53 = vand.u32 2147483648, %v13624_v14  ;;  %v9936_v51 = vadd.f32 %v5303_v31, %v5283_v6  ;;  %vm9941_vm11 = vmor %vm1212_vm10, %vm1213_vm6  ;;  %vm1218_vm8 = vcmp.eq.s32.totalorder %v13641_v36, inf  ;;  %v13645_v14 = vld [vmem:[#allocation11_spill] sm:$0xff] }
 0x165   : > { %vm13642_vm9 = vcmp.ne.f32.partialorder %v13595_v3, %v13595_v3  ;;  %v1268_v22 = vsel %vm1267_vm1, %v13645_v14, %v1262_v8  ;;  %v1036_v21 = vor.u32 %v1035_v38, %v1034_v32  ;;  %v1215_v11 = vsel %vm9941_vm11, nan, %v1211_v25  ;;  %v8140_v38 = vld [vmem:[%s8270_s19 + $0x78] sm:$0xff] }
 0x166   : > { %vm9952_vm5 = vmor %vm13642_vm9, %vm1307_vm2  ;;  %vm1219_vm10 = vcmp.eq.s32.totalorder %v13646_v49, inf  ;;  %7908 = vset.pattern.permute.xlu1 %v13616_v4  ;;  %vm13647_vm0 = vcmp.lt.f32.partialorder %v8766_v44, 0.0  ;;  %vm1312_vm4 = vcmp.eq.s32.totalorder %v13548_v15, inf  ;;  %v1311_v8 = vsel %vm1299_vm14, 2.3561945, %v13422_v1 }
 0x167   : > { %v1309_v16 = vsel %vm9952_vm5, nan, %v1305_v54  ;;  %v1217_v61 = vsel %vm13647_vm0, 2.3561945, %v13422_v1  ;;  %vm1220_vm2 = vmand %vm1218_vm8, %vm1219_vm10  ;;  %1775 = vperm.xlu0 %7910, %v1036_v21   ;;  %1605 = vperm.xlu1 %7908, %v8140_v38   ;;  %vm1313_vm15 = vcmp.eq.s32.totalorder %v13549_v17, inf  ;;  %v1269_v6 = vand.u32 2147483647, %v1268_v22  ;;  %v1586_v30 = vpop.permute.xlu1 %1585 }
 0x168   : > { %v1221_v32 = vsel %vm1220_vm2, %v1217_v61, %v1215_v11  ;;  %v1130_v63 = vor.u32 %v1129_v53, %v1128_v50  ;;  %v1223_v31 = vand.u32 2147483648, %v13634_v27  ;;  %v1270_v44 = vand.u32 2147483648, %v13579_v34  ;;  %vm1314_vm13 = vmand %vm1312_vm4, %vm1313_vm15  ;;  %v7976_v54 = vpop.eup %7975  ;;  %v9977_v15 = vld [vmem:[%s13037_s1] sm:$0xf]  ;;  %v13649_v50 = vld [vmem:[#allocation13_spill] sm:$0xff] }
 0x169   : > { %v1222_v1 = vand.u32 2147483647, %v1221_v32  ;;  %v5284_v3 = vmul.f32 %v9595_v39, %v9609_v20  ;;  %v1315_v19 = vsel %vm1314_vm13, %v1311_v8, %v1309_v16  ;;  %v5304_v17 = vmul.f32 %v9575_v35, %v9673_v40 }
 0x16a   : > { %v1514_v27 = vmul.f32 %v7974_v55, %v9784_v29  ;;  %v1316_v34 = vand.u32 2147483647, %v1315_v19  ;;  %v1317_v46 = vand.u32 2147483648, %v13604_v43  ;;  %vm1515_vm14 = vcmp.eq.f32.partialorder %v9784_v29, inf }
 0x16b   : > { %1785 = vperm.xlu0 %7910, %v1130_v63   ;;  %7909 = vset.pattern.permute.xlu1 %v13511_v0  ;;  %v9987_v25 = vadd.f32 %v5304_v17, %v5284_v3  ;;  %v13650_v53 = vsub.s32 1, %v13649_v50  ;;  %v13651_v36 = vsub.s32 0, %v13649_v50  ;;  %v1224_v55 = vor.u32 %v1223_v31, %v1222_v1  ;;  %v1674_v49 = vpop.permute.xlu1 %1673 }
 0x16c   : > { %1689 = vperm.xlu1 %7909, %v8140_v38   ;;  %v1271_v0 = vor.u32 %v1270_v44, %v1269_v6  ;;  %v5285_v43 = vmul.f32 %v9595_v39, %v9707_v26  ;;  %v5305_v14 = vmul.f32 %v9575_v35, %v9745_v56  ;;  %v1516_v22 = vsel %vm1515_vm14, %v9784_v29, %v1514_v27 }
 0x16d   : > { %13648 = vst [vmem:[#allocation91_spill] sm:$0xff] %v9987_v25  ;;  %v9992_v13 = vrot.slane %v9977_v15, %v13650_v53  ;;  %v9997_v59 = vrot.slane %v9977_v15, %v13651_v36  ;;  %vm1517_vm3 = vcmp.eq.f32.partialorder %v9784_v29, 0.0  ;;  %v1518_v21 = vand.u32 2147483648, %v9784_v29  ;;  %v13655_v29 = vld [vmem:[#allocation27_spill] sm:$0xff] }
 0x16e   : > { %v1521_v11 = vmul.f32 %v7976_v54, %v9749_v12  ;;  %v1318_v16 = vor.u32 %v1317_v46, %v1316_v34  ;;  %v10007_v61 = vadd.f32 %v5305_v14, %v5285_v43  ;;  %v5286_v8 = vmul.f32 %v9595_v39, %v9789_v2 }
 0x16f   : > { %1795 = vperm.xlu0 %7910, %v1224_v55   ;;  %v5306_v38 = vmul.f32 %v9575_v35, %v9852_v10  ;;  %v1622_v32 = vmul.f32 %v9997_v59, %v9882_v62  ;;  %v5287_v6 = vmul.f32 %v9595_v39, %v9882_v62  ;;  %v1706_v63 = vmul.f32 %v9992_v13, %v1670_v58 }
 0x170   : > { %1800 = vperm.xlu1 %7909, %v1271_v0   ;;  %v5307_v31 = vmul.f32 %v9575_v35, %v1670_v58  ;;  %v1623_v54 = vmul.f32 %v9997_v59, %v1586_v30  ;;  %v5288_v1 = vmul.f32 %v9595_v39, %v1586_v30  ;;  %v1707_v3 = vmul.f32 %v9992_v13, %v1674_v49 }
 0x171   : > { %v10019_v44 = vadd.f32 %v5306_v38, %v5286_v8  ;;  %v10024_v19 = vadd.f32 %v1706_v63, %v1622_v32  ;;  %v5308_v27 = vmul.f32 %v9575_v35, %v1674_v49  ;;  %v1519_v58 = vsel %vm1517_vm3, %v1518_v21, %v1516_v22 }
 0x172   : > { %v10026_v17 = vadd.f32 %v5307_v31, %v5287_v6  ;;  %v10029_v62 = vadd.f32 %v1707_v3, %v1623_v54  ;;  %vm1522_vm12 = vcmp.eq.f32.partialorder %v9749_v12, inf  ;;  %v1525_v46 = vand.u32 2147483648, %v9749_v12 }
 0x173   : > { %13652 = vst [vmem:[#allocation90_spill] sm:$0xff] %v10019_v44  ;;  %1805 = vperm.xlu0 %7910, %v1318_v16   ;;  %v10035_v34 = vadd.f32 %v5308_v27, %v5288_v1  ;;  %v1523_v30 = vsel %vm1522_vm12, %v9749_v12, %v1521_v11  ;;  %vm1524_vm7 = vcmp.eq.f32.partialorder %v9749_v12, 0.0  ;;  %v13215_v36 = vsub.s32 3, %v13649_v50 }
 0x174   : > { %13653 = vst [vmem:[#allocation29_spill] sm:$0xff] %v10029_v62  ;;  %7911 = vset.pattern.permute.xlu1 %v13616_v4  ;;  %v1526_v53 = vsel %vm1524_vm7, %v1525_v46, %v1523_v30  ;;  %v1810_v30 = vsub.s32 2, %v13649_v50 }
 0x175   : > { %13654 = vst [vmem:[#allocation35_spill] sm:$0xff] %v10035_v34  ;;  %1916 = vperm.xlu1 %7911, %v1519_v58   ;;  %v10045_v55 = vrot.slane %v13655_v29, %v13215_v36 }
 0x177   : > { %7912 = vset.pattern.permute.xlu0 %v13616_v4 }
 0x179   : > { %1921 = vperm.xlu1 %7911, %v1526_v53  }
 0x195   : > { %v10047_v0 = vpop.permute.xlu0 %1851 }
 0x196   : > { %v5370_v43 = vmul.f32 %v10045_v55, %v10047_v0 }
 0x199   : > { %v10051_v14 = vpop.permute.xlu1 %1846 }
 0x19a   : > { %v5369_v12 = vmul.f32 %v10045_v55, %v10051_v14 }
 0x19d   : > { %v1591_v4 = vpop.permute.xlu1 %1590  ;;  %v10055_v22 = vpop.permute.xlu0 %1856 }
 0x19e   : > { %v5289_v21 = vmul.f32 %v9595_v39, %v1591_v4  ;;  %v5371_v11 = vmul.f32 %v10045_v55, %v10055_v22  ;;  %v1624_v38 = vmul.f32 %v9997_v59, %v1591_v4 }
 0x1a1   : > { %v10060_v49 = vpop.permute.xlu0 %1861 }
 0x1a2   : > { %13656 = vst [vmem:[#allocation15_spill] sm:$0xff] %v10060_v49  ;;  %v10064_v16 = vmul.f32 %v10045_v55, %v10060_v49 }
 0x1a3   : > { %v1678_v8 = vpop.permute.xlu1 %1677 }
 0x1a4   : > { %v1708_v32 = vmul.f32 %v9992_v13, %v1678_v8  ;;  %v5309_v6 = vmul.f32 %v9575_v35, %v1678_v8 }
 0x1a5   : > { %v10073_v54 = vpop.permute.xlu0 %1866 }
 0x1a6   : > { %v10069_v63 = vadd.f32 %v1708_v32, %v1624_v38  ;;  %v10071_v31 = vadd.f32 %v5309_v6, %v5289_v21  ;;  %13657 = vst [vmem:[#allocation38_spill] sm:$0xff] %v10073_v54  ;;  %v5373_v1 = vmul.f32 %v10045_v55, %v10073_v54  ;;  %v10089_v32 = vrot.slane %v13655_v29, %v1810_v30 }
 0x1a8   : > { %v1596_v3 = vpop.permute.xlu1 %1595 }
 0x1a9   : > { %v5290_v27 = vmul.f32 %v9595_v39, %v1596_v3  ;;  %v10078_v58 = vpop.permute.xlu0 %1871  ;;  %v1625_v4 = vmul.f32 %v9997_v59, %v1596_v3 }
 0x1aa   : > { %v10083_v46 = vmul.f32 %v10045_v55, %v10078_v58 }
 0x1ac   : > { %13658 = vst [vmem:[#allocation36_spill] sm:$0xff] %v10083_v46 }
 0x1ad   : > { %v1682_v53 = vpop.permute.xlu1 %1681  ;;  %v1877_v38 = vpop.permute.xlu0 %1876 }
 0x1ae   : > { %v1709_v21 = vmul.f32 %v9992_v13, %v1682_v53  ;;  %v5310_v8 = vmul.f32 %v9575_v35, %v1682_v53  ;;  %v10092_v6 = vmul.f32 %v10045_v55, %v1877_v38 }
 0x1b0   : > { %v10094_v36 = vadd.f32 %v1709_v21, %v1625_v4  ;;  %v10096_v34 = vadd.f32 %v5310_v8, %v5290_v27  ;;  %v5428_v27 = vld [vmem:[%s13040_s4 + $0x20] sm:$0xff]  ;;  %v5429_v21 = vld [vmem:[%s13040_s4 + $0x28] sm:$0xff]  ;;  %v5430_v8 = vld [vmem:[%s13040_s4 + $0x30] sm:$0xff] }
 0x1b1   : > { %v1731_v62 = vpop.permute.xlu1 %1730  ;;  %v10099_v49 = vpop.permute.xlu0 %1881 }
 0x1b2   : > { %13659 = vst [vmem:[#allocation81_spill] sm:$0xff] %v10094_v36  ;;  %13660 = vst [vmem:[#allocation79_spill] sm:$0xff] %v10096_v34  ;;  %v5333_v44 = vmul.f32 %v10089_v32, %v1731_v62  ;;  %v10103_v3 = vmul.f32 %v10045_v55, %v10099_v49 }
 0x1b3   : > { %13661 = vst [vmem:[#allocation67_spill] sm:$0xff] %v10099_v49 }
 0x1b4   : > { %13662 = vst [vmem:[#allocation30_spill] sm:$0xff] %v10103_v3  ;;  %v5349_v53 = vadd.f32 %v5333_v44, %v9620_v23  ;;  %v7597_v44 = vpack.c.bf16 %v5429_v21, %v5428_v27 }
 0x1b5   : > { %v1736_v29 = vpop.permute.xlu1 %1735 }
 0x1b6   : > { %v10106_v25 = vadd.f32 %v5369_v12, %v5349_v53  ;;  %v5334_v46 = vmul.f32 %v10089_v32, %v1736_v29  ;;  %v1887_v4 = vpop.permute.xlu0 %1886  ;;  %v5431_v12 = vld [vmem:[%s13040_s4 + $0x38] sm:$0xff]  ;;  %7598 = vmatprep.subr.bf16.mxu0 %v7597_v44 }
 0x1b7   : > { %v10119_v23 = vmul.f32 %v10045_v55, %v1887_v4  ;;  %7600 = vmatpush3.bf16.msra.mxu0 %v7597_v44 }
 0x1b8   : > { %13663 = vst [vmem:[#allocation31_spill] sm:$0xff] %v10106_v25  ;;  %v5350_v53 = vadd.f32 %v5334_v46, %v9632_v42  ;;  %v7601_v25 = vpack.c.bf16 %v5431_v12, %v5430_v8  ;;  %v1702_v12 = vmul.f32 %v9992_v13, %v13633_v41 }
 0x1ba   : > { %v10127_v36 = vadd.f32 %v5370_v43, %v5350_v53  ;;  %7602 = vmatprep.subr.bf16.mxu0 %v7601_v25 }
 0x1bb   : > { %v10125_v34 = vpop.permute.xlu1 %1740  ;;  %7604 = vmatpush3.bf16.msra.mxu0 %v7601_v25  ;;  %v13669_v25 = vld [vmem:[#allocation26_spill] sm:$0xff] }
 0x1bc   : > { %13664 = vst [vmem:[#allocation3_spill] sm:$0xff] %v10127_v36  ;;  %v10129_v3 = vpop.permute.xlu0 %1891  ;;  %v5335_v49 = vmul.f32 %v10089_v32, %v10125_v34  ;;  %v1618_v36 = vmul.f32 %v9997_v59, %v13631_v5  ;;  %v13672_v5 = vsub.s32 3, %v13649_v50  ;;  %v13674_v50 = vld [vmem:[#allocation25_spill] sm:$0xff] }
 0x1bd   : > { %13665 = vst [vmem:[#allocation43_spill] sm:$0xff] %v10129_v3  ;;  %v10135_v27 = vmul.f32 %v10045_v55, %v10129_v3  ;;  %v13673_v3 = vld [vmem:[#allocation19_spill] sm:$0xff] }
 0x1be   : > { %v5351_v21 = vadd.f32 %v5335_v49, %v9666_v24  ;;  %v10151_v24 = vrot.slane %v9977_v15, %v1810_v30  ;;  %v1718_v41 = vadd.f32 %v1702_v12, %v1618_v36  ;;  %v10168_v30 = vrot.slane %v9977_v15, %v13672_v5 }
 0x1bf   : > { %13666 = vst [vmem:[#allocation41_spill] sm:$0xff] %v10135_v27  ;;  %v1697_v15 = vmul.f32 %v9992_v13, %v13674_v50  ;;  %v1613_v5 = vmul.f32 %v9997_v59, %v13556_v47 }
 0x1c0   : > { %v10138_v42 = vpop.permute.xlu1 %1750  ;;  %v1897_v46 = vpop.permute.xlu0 %1896  ;;  %v10140_v8 = vadd.f32 %v5371_v11, %v5351_v21  ;;  %v1612_v11 = vmul.f32 %v9997_v59, %v13669_v25  ;;  %v1620_v25 = vmul.f32 %v9997_v59, %v9707_v26  ;;  %v1934_v36 = vmul.f32 %v10168_v30, %v1877_v38 }
 0x1c1   : > { %v5337_v43 = vmul.f32 %v10089_v32, %v10138_v42  ;;  %v5379_v44 = vmul.f32 %v10045_v55, %v1897_v46  ;;  %v1812_v12 = vmul.f32 %v10151_v24, %v1731_v62  ;;  %v1936_v50 = vmul.f32 %v10168_v30, %v1887_v4 }
 0x1c2   : > { %13667 = vst [vmem:[#allocation82_spill] sm:$0xff] %v10140_v8 }
 0x1c3   : > { %v5353_v53 = vadd.f32 %v5337_v43, %v9755_v52  ;;  %v1704_v52 = vmul.f32 %v9992_v13, %v9745_v56 }
 0x1c4   : > { %v10153_v49 = vpop.permute.xlu0 %1901 }
 0x1c5   : > { %13668 = vst [vmem:[#allocation80_spill] sm:$0xff] %v10153_v49  ;;  %v10157_v21 = vadd.f32 %v5373_v1, %v5353_v53  ;;  %v10161_v27 = vmul.f32 %v10045_v55, %v10153_v49  ;;  %v1696_v1 = vmul.f32 %v9992_v13, %v13673_v3  ;;  %v1720_v54 = vadd.f32 %v1704_v52, %v1620_v25 }
 0x1c7   : > { %13670 = vst [vmem:[#allocation69_spill] sm:$0xff] %v10157_v21  ;;  %v1761_v8 = vpop.permute.xlu1 %1760  ;;  %13671 = vst [vmem:[#allocation5_spill] sm:$0xff] %v10161_v27  ;;  %v1712_v49 = vadd.f32 %v1696_v1, %v1612_v11 }
 0x1c8   : > { %v1818_v43 = vmul.f32 %v10151_v24, %v1761_v8  ;;  %v5339_v53 = vmul.f32 %v10089_v32, %v1761_v8 }
 0x1c9   : > { %v1907_v21 = vpop.permute.xlu0 %1906 }
 0x1ca   : > { %v1834_v56 = vadd.f32 %v1818_v43, %v1718_v41  ;;  %v5355_v27 = vadd.f32 %v5339_v53, %v9936_v51  ;;  %v5381_v8 = vmul.f32 %v10045_v55, %v1907_v21  ;;  %v1828_v43 = vadd.f32 %v1812_v12, %v1712_v49 }
 0x1cb   : > { %v1771_v3 = vpop.permute.xlu1 %1770  ;;  %v1813_v51 = vmul.f32 %v10151_v24, %v1736_v29  ;;  %v1713_v53 = vadd.f32 %v1697_v15, %v1613_v5  ;;  %v1614_v29 = vmul.f32 %v9997_v59, %v9607_v7 }
 0x1cc   : > { %v10184_v26 = vadd.f32 %v1934_v36, %v1834_v56  ;;  %v1820_v38 = vmul.f32 %v10151_v24, %v1771_v3  ;;  %v10188_v62 = vadd.f32 %v10092_v6, %v5355_v27  ;;  %v5341_v41 = vmul.f32 %v10089_v32, %v1771_v3 }
 0x1cd   : > { %v10192_v33 = vpop.permute.xlu0 %1911  ;;  %v1928_v6 = vmul.f32 %v10168_v30, %v10051_v14  ;;  %v1938_v36 = vmul.f32 %v10168_v30, %v1897_v46  ;;  %v1829_v12 = vadd.f32 %v1813_v51, %v1713_v53  ;;  %v1929_v3 = vmul.f32 %v10168_v30, %v10047_v0 }
 0x1ce   : > { %13675 = vst [vmem:[#allocation2_spill] sm:$0xff] %v10184_v26  ;;  %13676 = vst [vmem:[#allocation78_spill] sm:$0xff] %v10188_v62  ;;  %v1836_v47 = vadd.f32 %v1820_v38, %v1720_v54  ;;  %v5357_v11 = vadd.f32 %v5341_v41, %v10007_v61  ;;  %v10198_v1 = vmul.f32 %v10045_v55, %v10192_v33 }
 0x1cf   : > { %v1781_v52 = vpop.permute.xlu1 %1780  ;;  %v1698_v54 = vmul.f32 %v9992_v13, %v9296_v37  ;;  %v10213_v25 = vadd.f32 %v1928_v6, %v1828_v43  ;;  %v1814_v37 = vmul.f32 %v10151_v24, %v10125_v34  ;;  %v1700_v51 = vmul.f32 %v9992_v13, %v9414_v45 }
 0x1d0   : > { %v10202_v27 = vadd.f32 %v1936_v50, %v1836_v47  ;;  %v1822_v4 = vmul.f32 %v10151_v24, %v1781_v52  ;;  %v10210_v61 = vadd.f32 %v10119_v23, %v5357_v11  ;;  %v5343_v49 = vmul.f32 %v10089_v32, %v1781_v52 }
 0x1d1   : > { %v1714_v23 = vadd.f32 %v1698_v54, %v1614_v29  ;;  %v1963_v34 = vand.u32 2139095040, %v10213_v25  ;;  %v10234_v50 = vadd.f32 %v1929_v3, %v1829_v12  ;;  %v1940_v47 = vmul.f32 %v10168_v30, %v1907_v21 }
 0x1d2   : > { %13677 = vst [vmem:[#allocation63_spill] sm:$0xff] %v10202_v27  ;;  %13678 = vst [vmem:[#allocation37_spill] sm:$0xff] %v10210_v61  ;;  %v1838_v14 = vadd.f32 %v1822_v4, %v10024_v19  ;;  %v5359_v56 = vadd.f32 %v5343_v49, %v10026_v17  ;;  %v1699_v19 = vmul.f32 %v9992_v13, %v9340_v9 }
 0x1d3   : > { %v1615_v17 = vmul.f32 %v9997_v59, %v9671_v60  ;;  %v1830_v9 = vadd.f32 %v1814_v37, %v1714_v23  ;;  %v1701_v60 = vmul.f32 %v9992_v13, %v9487_v48  ;;  %v1930_v45 = vmul.f32 %v10168_v30, %v10055_v22 }
 0x1d4   : > { %v1791_v15 = vpop.permute.xlu1 %1790  ;;  %v10220_v5 = vadd.f32 %v1938_v36, %v1838_v14  ;;  %v10225_v38 = vadd.f32 %v5379_v44, %v5359_v56  ;;  %v1964_v6 = vshrl.u32 %v1963_v34, 23  ;;  %v1617_v54 = vmul.f32 %v9997_v59, %v9443_v28 }
 0x1d5   : > { %v1824_v7 = vmul.f32 %v10151_v24, %v1791_v15  ;;  %v5345_v46 = vmul.f32 %v10089_v32, %v1791_v15  ;;  %v10250_v21 = vadd.f32 %v1699_v19, %v1615_v17  ;;  %v2067_v48 = vand.u32 2139095040, %v10234_v50  ;;  %v13685_v17 = vld [vmem:[#allocation28_spill] sm:$0xff] }
 0x1d6   : > { %13679 = vst [vmem:[#allocation34_spill] sm:$0xff] %v10220_v5  ;;  %13680 = vst [vmem:[#allocation84_spill] sm:$0xff] %v10225_v38  ;;  %v10266_v49 = vadd.f32 %v1930_v45, %v1830_v9  ;;  %v1717_v36 = vadd.f32 %v1701_v60, %v1617_v54  ;;  %v1705_v28 = vmul.f32 %v9992_v13, %v9852_v10  ;;  %v6905_v56 = vadd.s32 4294967169, %v1964_v6  ;;  %v13689_v60 = vld [vmem:[#allocation36_spill] sm:$0xff] }
 0x1d7   : > { %v1840_v41 = vadd.f32 %v1824_v7, %v10069_v63  ;;  %v5361_v0 = vadd.f32 %v5345_v46, %v10071_v31  ;;  %v1616_v31 = vmul.f32 %v9997_v59, %v9369_v18  ;;  %v1703_v18 = vmul.f32 %v9992_v13, %v9673_v40 }
 0x1d8   : > { %v1746_v43 = vpop.permute.xlu0 %1745  ;;  %13684 = vst [vmem:[#allocation48_spill] sm:$0xff] %v10266_v49  ;;  %v1621_v40 = vmul.f32 %v9997_v59, %v9789_v2  ;;  %v1933_v10 = vmul.f32 %v10168_v30, %v10078_v58  ;;  %v2068_v7 = vshrl.u32 %v2067_v48, 23  ;;  %v2171_v19 = vand.u32 2139095040, %v10266_v49  ;;  %v13686_v2 = vld [vmem:[#allocation38_spill] sm:$0xff]  ;;  %v13688_v58 = vld [vmem:[#allocation67_spill] sm:$0xff] }
 0x1d9   : > { %v5336_v44 = vmul.f32 %v10089_v32, %v1746_v43  ;;  %v10245_v52 = vadd.f32 %v1940_v47, %v1840_v41  ;;  %v10247_v63 = vadd.f32 %v5381_v8, %v5361_v0  ;;  %v1816_v8 = vmul.f32 %v10151_v24, %v10138_v42  ;;  %v13692_v48 = vld [vmem:[#allocation91_spill] sm:$0xff] }
 0x1da   : > { %v1716_v29 = vadd.f32 %v1700_v51, %v1616_v31  ;;  %v1721_v41 = vadd.f32 %v1705_v28, %v1621_v40  ;;  %v1932_v47 = vmul.f32 %v10168_v30, %v13686_v2  ;;  %v1970_v51 = vadd.s32 1, %v6905_v56  ;;  %v13695_v40 = vld [vmem:[#allocation30_spill] sm:$0xff] }
 0x1db   : > { %13681 = vst [vmem:[#allocation62_spill] sm:$0xff] %v10245_v52  ;;  %13682 = vst [vmem:[#allocation86_spill] sm:$0xff] %v10247_v63  ;;  %v5352_v53 = vadd.f32 %v5336_v44, %v9711_v57  ;;  %v1935_v9 = vmul.f32 %v10168_v30, %v13688_v58  ;;  %v13221_v2 = vand.u32 2147483647, %v10213_v25 }
 0x1dc   : > { %v10241_v11 = vpop.permute.xlu1 %1600  ;;  %v1756_v4 = vpop.permute.xlu0 %1755  ;;  %v1832_v23 = vadd.f32 %v1816_v8, %v1716_v29  ;;  %v2172_v29 = vshrl.u32 %v2171_v19, 23  ;;  %vm1971_vm1 = vcmp.gt.s32.totalorder %v1970_v51, 0  ;;  %v2587_v19 = vand.u32 2139095040, %v10184_v26 }
 0x1dd   : > { %v10262_v57 = vadd.f32 %v10064_v16, %v5352_v53  ;;  %v5291_v22 = vmul.f32 %v9595_v39, %v10241_v11  ;;  %v1817_v14 = vmul.f32 %v10151_v24, %v1756_v4  ;;  %v5338_v42 = vmul.f32 %v10089_v32, %v1756_v4 }
 0x1de   : > { %v1619_v16 = vmul.f32 %v9997_v59, %v9609_v20  ;;  %v6909_v4 = vadd.s32 4294967169, %v2068_v7  ;;  %v10299_v54 = vadd.f32 %v1932_v47, %v1832_v23  ;;  %v13697_v7 = vld [vmem:[#allocation15_spill] sm:$0xff]  ;;  %v13699_v47 = vld [vmem:[#allocation80_spill] sm:$0xff] }
 0x1df   : > { %13683 = vst [vmem:[#allocation64_spill] sm:$0xff] %v10262_v57  ;;  %v1833_v3 = vadd.f32 %v1817_v14, %v1717_v36  ;;  %v5354_v34 = vadd.f32 %v5338_v42, %v13685_v17  ;;  %v13694_v14 = vld [vmem:[#allocation43_spill] sm:$0xff]  ;;  %v1931_v23 = vmul.f32 %v10168_v30, %v13697_v7  ;;  %v3003_v7 = vand.u32 2139095040, %v10220_v5 }
 0x1e0   : > { %v1766_v15 = vpop.permute.xlu0 %1765  ;;  %v1719_v46 = vadd.f32 %v1703_v18, %v1619_v16  ;;  %13691 = vst [vmem:[#allocation59_spill] sm:$0xff] %v10299_v54  ;;  %v1937_v42 = vmul.f32 %v10168_v30, %v13694_v14  ;;  %v1815_v16 = vmul.f32 %v10151_v24, %v1746_v43  ;;  %v10320_v43 = vsel %vm1971_vm1, %v1970_v51, 0 }
 0x1e1   : > { %v10274_v12 = vpop.permute.xlu1 %1685  ;;  %v1819_v20 = vmul.f32 %v10151_v24, %v1766_v15  ;;  %v10289_v0 = vadd.f32 %v1933_v10, %v1833_v3  ;;  %v5340_v44 = vmul.f32 %v10089_v32, %v1766_v15  ;;  %v10295_v53 = vadd.f32 %v13689_v60, %v5354_v34 }
 0x1e2   : > { %v5311_v37 = vmul.f32 %v9575_v35, %v10274_v12  ;;  %v2074_v3 = vadd.s32 1, %v6909_v4  ;;  %v1831_v58 = vadd.f32 %v1815_v16, %v10250_v21  ;;  %v2795_v14 = vand.u32 2139095040, %v10202_v27  ;;  %v13705_v16 = vld [vmem:[#allocation35_spill] sm:$0xff] }
 0x1e3   : > { %13687 = vst [vmem:[#allocation46_spill] sm:$0xff] %v10289_v0  ;;  %13690 = vst [vmem:[#allocation7_spill] sm:$0xff] %v10295_v53  ;;  %v1835_v31 = vadd.f32 %v1819_v20, %v1719_v46  ;;  %v5356_v8 = vadd.f32 %v5340_v44, %v13692_v48  ;;  %v6913_v46 = vadd.s32 4294967169, %v2172_v29  ;;  %v1939_v44 = vmul.f32 %v10168_v30, %v13699_v47  ;;  %v13707_v47 = vld [vmem:[#allocation5_spill] sm:$0xff] }
 0x1e4   : > { %v10304_v36 = vadd.f32 %v5311_v37, %v5291_v22  ;;  %v2379_v22 = vand.u32 2139095040, %v10299_v54  ;;  %vm2075_vm6 = vcmp.gt.s32.totalorder %v2074_v3, 0 }
 0x1e5   : > { %v10302_v18 = vadd.f32 %v1935_v9, %v1835_v31  ;;  %v10311_v56 = vadd.f32 %v13695_v40, %v5356_v8  ;;  %v13700_v9 = vld [vmem:[#allocation90_spill] sm:$0xff]  ;;  %v2178_v29 = vadd.s32 1, %v6913_v46 }
 0x1e6   : > { %v1776_v45 = vpop.permute.xlu0 %1775  ;;  %v10297_v6 = vpop.permute.xlu1 %1605  ;;  %v2380_v51 = vshrl.u32 %v2379_v22, 23 }
 0x1e7   : > { %13693 = vst [vmem:[#allocation58_spill] sm:$0xff] %v10302_v18  ;;  %v1821_v28 = vmul.f32 %v10151_v24, %v1776_v45  ;;  %13696 = vst [vmem:[#allocation83_spill] sm:$0xff] %v10311_v56  ;;  %v5342_v34 = vmul.f32 %v10089_v32, %v1776_v45  ;;  %v5292_v20 = vmul.f32 %v9595_v39, %v10297_v6  ;;  %v13701_v45 = vld [vmem:[#allocation29_spill] sm:$0xff]  ;;  %vm2179_vm11 = vcmp.gt.s32.totalorder %v2178_v29, 0 }
 0x1e9   : > { %v1837_v15 = vadd.f32 %v1821_v28, %v1721_v41  ;;  %v5358_v60 = vadd.f32 %v5342_v34, %v13700_v9  ;;  %v2588_v28 = vshrl.u32 %v2587_v19, 23  ;;  %v10351_v19 = vand.u32 31, %v10320_v43 }
 0x1ea   : > { %v1786_v10 = vpop.permute.xlu0 %1785  ;;  %v10354_v34 = vsel %vm2075_vm6, %v2074_v3, 0 }
 0x1eb   : > { %v1690_v37 = vpop.permute.xlu1 %1689  ;;  %v10317_v17 = vadd.f32 %v1937_v42, %v1837_v15  ;;  %v1823_v41 = vmul.f32 %v10151_v24, %v1786_v10  ;;  %v5344_v31 = vmul.f32 %v10089_v32, %v1786_v10  ;;  %v13702_v42 = vld [vmem:[#allocation41_spill] sm:$0xff]  ;;  %v10344_v10 = vand.u32 8388607, %v13221_v2 }
 0x1ec   : > { %v5312_v39 = vmul.f32 %v9575_v35, %v1690_v37  ;;  %v10337_v40 = vadd.f32 %v13702_v42, %v5358_v60  ;;  %v10347_v35 = vadd.f32 %v1931_v23, %v1831_v58  ;;  %v6929_v9 = vadd.s32 4294967169, %v2588_v28 }
 0x1ed   : > { %13698 = vst [vmem:[#allocation72_spill] sm:$0xff] %v10317_v17  ;;  %v1839_v48 = vadd.f32 %v1823_v41, %v13701_v45  ;;  %v5360_v15 = vadd.f32 %v5344_v31, %v13705_v16  ;;  %v6921_v41 = vadd.s32 4294967169, %v2380_v51  ;;  %v2796_v60 = vshrl.u32 %v2795_v14, 23  ;;  %v13709_v14 = vld [vmem:[#allocation81_spill] sm:$0xff] }
 0x1ee   : > { %v1796_v4 = vpop.permute.xlu0 %1795  ;;  %13703 = vst [vmem:[#allocation53_spill] sm:$0xff] %v10337_v40  ;;  %13706 = vst [vmem:[#allocation9_spill] sm:$0xff] %v10347_v35  ;;  %v5328_v22 = vadd.f32 %v5312_v39, %v5292_v20  ;;  %v3211_v20 = vand.u32 2139095040, %v10245_v52  ;;  %v1711_v45 = vmul.f32 %v9992_v13, %v1690_v37  ;;  %v3004_v51 = vshrl.u32 %v3003_v7, 23 }
 0x1ef   : > { %v10333_v8 = vpop.permute.xlu1 %1800  ;;  %v10339_v21 = vadd.f32 %v1939_v44, %v1839_v48  ;;  %v10357_v44 = vadd.f32 %v13707_v47, %v5360_v15  ;;  %v1825_v31 = vmul.f32 %v10151_v24, %v1796_v4  ;;  %v5346_v48 = vmul.f32 %v10089_v32, %v1796_v4  ;;  %v13710_v47 = vld [vmem:[#allocation79_spill] sm:$0xff] }
 0x1f0   : > { %v5347_v3 = vmul.f32 %v10089_v32, %v10333_v8  ;;  %v1941_v39 = vmul.f32 %v10168_v30, %v10192_v33  ;;  %v2275_v28 = vand.u32 2139095040, %v10347_v35  ;;  %v2386_v16 = vadd.s32 1, %v6921_v41 }
 0x1f1   : > { %13704 = vst [vmem:[#allocation51_spill] sm:$0xff] %v10339_v21  ;;  %13708 = vst [vmem:[#allocation94_spill] sm:$0xff] %v10357_v44  ;;  %v1841_v42 = vadd.f32 %v1825_v31, %v13709_v14  ;;  %v1627_v15 = vmul.f32 %v9997_v59, %v10297_v6  ;;  %v5362_v2 = vadd.f32 %v5346_v48, %v13710_v47  ;;  %v2594_v4 = vadd.s32 1, %v6929_v9 }
 0x1f2   : > { %v1806_v23 = vpop.permute.xlu0 %1805  ;;  %v6937_v46 = vadd.s32 4294967169, %v2796_v60  ;;  %v5363_v7 = vadd.f32 %v5347_v3, %v10304_v36  ;;  %v3212_v33 = vshrl.u32 %v3211_v20, 23  ;;  %v6945_v31 = vadd.s32 4294967169, %v3004_v51 }
 0x1f3   : > { %v1827_v37 = vmul.f32 %v10151_v24, %v1806_v23  ;;  %v10375_v63 = vadd.f32 %v1941_v39, %v1841_v42  ;;  %v1727_v38 = vadd.f32 %v1711_v45, %v1627_v15  ;;  %v10379_v40 = vadd.f32 %v10198_v1, %v5362_v2 }
 0x1f4   : > { %v10360_v58 = vpop.permute.xlu1 %1916  ;;  %v5348_v41 = vmul.f32 %v10089_v32, %v1806_v23  ;;  %v2276_v6 = vshrl.u32 %v2275_v28, 23  ;;  %v2483_v48 = vand.u32 2139095040, %v10289_v0  ;;  %v2180_v20 = vsel %vm2179_vm11, %v2178_v29, 0 }
 0x1f5   : > { %13711 = vst [vmem:[#allocation18_spill] sm:$0xff] %v10375_v63  ;;  %13712 = vst [vmem:[#allocation77_spill] sm:$0xff] %v10379_v40  ;;  %v5383_v9 = vmul.f32 %v10045_v55, %v10360_v58  ;;  %v1843_v60 = vadd.f32 %v1827_v37, %v1727_v38  ;;  %vm2387_vm8 = vcmp.gt.s32.totalorder %v2386_v16, 0  ;;  %vm2595_vm9 = vcmp.gt.s32.totalorder %v2594_v4, 0 }
 0x1f6   : > { %v5364_v39 = vadd.f32 %v5348_v41, %v5328_v22  ;;  %v2802_v32 = vadd.s32 1, %v6937_v46  ;;  %v6953_v2 = vadd.s32 4294967169, %v3212_v33  ;;  %v3010_v3 = vadd.s32 1, %v6945_v31 }
 0x1f7   : > { %v10388_v1 = vadd.f32 %v5383_v9, %v5363_v7  ;;  %v6917_v51 = vadd.s32 4294967169, %v2276_v6  ;;  %v2484_v38 = vshrl.u32 %v2483_v48, 23  ;;  %v2691_v22 = vand.u32 2139095040, %v10302_v18 }
 0x1f8   : > { %v1922_v44 = vpop.permute.xlu1 %1921  ;;  %v10396_v28 = vshrl.u32 %v10320_v43, 5  ;;  %v10406_v42 = vand.u32 31, %v2180_v20  ;;  %v2388_v15 = vsel %vm2387_vm8, %v2386_v16, 0  ;;  %v13224_v47 = vmov 683565275  }
 0x1f9   : > { %v1943_v14 = vmul.f32 %v10168_v30, %v1922_v44  ;;  %v5384_v36 = vmul.f32 %v10045_v55, %v1922_v44  ;;  %13713 = vst [vmem:[#allocation40_spill] sm:$0xff] %v10388_v1  ;;  %v10399_v55 = vand.u32 31, %v10354_v34  ;;  %v10404_v44 = vsub.s32 32, %v10351_v19 }
 0x1fa   : > { %v1977_v37 = vshll.u32 %v13224_v47, %v10351_v19  ;;  %v2596_v43 = vsel %vm2595_vm9, %v2594_v4, 0  ;;  %vm2803_vm5 = vcmp.gt.s32.totalorder %v2802_v32, 0  ;;  %v3218_v7 = vadd.s32 1, %v6953_v2 }
 0x1fb   : > { %v10390_v23 = vadd.f32 %v1943_v14, %v1843_v60  ;;  %v10392_v45 = vadd.f32 %v5384_v36, %v5364_v39  ;;  %vm3011_vm10 = vcmp.gt.s32.totalorder %v3010_v3, 0  ;;  %v2282_v41 = vadd.s32 1, %v6917_v51 }
 0x1fc   : > { %v6925_v31 = vadd.s32 4294967169, %v2484_v38  ;;  %v2692_v6 = vshrl.u32 %v2691_v22, 23  ;;  %v10413_v48 = vshrl.u32 %v10354_v34, 5  ;;  %v10416_v9 = vsub.s32 32, %v10399_v55 }
 0x1fd   : > { %13714 = vst [vmem:[#allocation45_spill] sm:$0xff] %v10390_v23  ;;  %13715 = vst [vmem:[#allocation85_spill] sm:$0xff] %v10392_v45  ;;  %v3523_v29 = vand.u32 2139095040, %v10390_v23  ;;  %v10418_v16 = vand.u32 31, %v2388_v15  ;;  %v10420_v39 = vshrl.u32 %v2180_v20, 5  ;;  %v10423_v4 = vsub.s32 32, %v10406_v42 }
 0x1fe   : > { %v2804_v14 = vsel %vm2803_vm5, %v2802_v32, 0  ;;  %v13222_v36 = vmov 2475754826   ;;  %v10427_v51 = vand.u32 31, %v2596_v43  ;;  %v3012_v34 = vsel %vm3011_vm10, %v3010_v3, 0 }
 0x1ff   : > { %v3524_v33 = vshrl.u32 %v3523_v29, 23  ;;  %v1978_v2 = vshrl.u32 %v13222_v36, %v10404_v44  ;;  %vm3219_vm0 = vcmp.gt.s32.totalorder %v3218_v7, 0  ;;  %vm2283_vm2 = vcmp.gt.s32.totalorder %v2282_v41, 0 }
 0x200   : > { %13716 = vst [vmem:[#allocation49_spill] sm:$0xff] %v10427_v51  ;;  %v2490_v22 = vadd.s32 1, %v6925_v31  ;;  %v6933_v29 = vadd.s32 4294967169, %v2692_v6  ;;  %v10430_v20 = vshrl.u32 %v2388_v15, 5  ;;  %v10433_v46 = vsub.s32 32, %v10418_v16 }
 0x201   : > { %v6965_v60 = vadd.s32 4294967169, %v3524_v33  ;;  %v2899_v33 = vand.u32 2139095040, %v10317_v17  ;;  %v10435_v32 = vand.u32 31, %v2804_v14  ;;  %v1976_v36 = vshrl.u32 %v13224_v47, %v10404_v44 }
 0x202   : > { %13717 = vst [vmem:[#allocation17_spill] sm:$0xff] %v10430_v20  ;;  %v10439_v45 = vshrl.u32 %v2596_v43, 5  ;;  %v10441_v3 = vand.u32 31, %v3012_v34  ;;  %v10444_v31 = vsub.s32 32, %v10427_v51  ;;  %v3220_v6 = vsel %vm3219_vm0, %v3218_v7, 0 }
 0x203   : > { %v3530_v38 = vadd.s32 1, %v6965_v60  ;;  %13718 = vst [vmem:[#allocation89_spill] sm:$0xff] %v10435_v32  ;;  %v1979_v60 = vor.u32 %v1978_v2, %v1977_v37  ;;  %v2284_v15 = vsel %vm2283_vm2, %v2282_v41, 0  ;;  %v1710_v1 = vmul.f32 %v9992_v13, %v10274_v12 }
 0x204   : > { %13719 = vst [vmem:[#allocation32_spill] sm:$0xff] %v10439_v45  ;;  %13720 = vst [vmem:[#allocation76_spill] sm:$0xff] %v10441_v3  ;;  %v1626_v40 = vmul.f32 %v9997_v59, %v10241_v11  ;;  %vm2491_vm15 = vcmp.gt.s32.totalorder %v2490_v22, 0  ;;  %v2698_v61 = vadd.s32 1, %v6933_v29  ;;  %v2900_v47 = vshrl.u32 %v2899_v33, 23 }
 0x205   : > { %vm3531_vm4 = vcmp.gt.s32.totalorder %v3530_v38, 0  ;;  %13721 = vst [vmem:[#allocation4_spill] sm:$0xff] %v10444_v31  ;;  %v10450_v43 = vshrl.u32 %v2804_v14, 5  ;;  %v10453_v56 = vsub.s32 32, %v10435_v32  ;;  %v10456_v62 = vshrl.u32 %v3012_v34, 5 }
 0x206   : > { %v3532_v2 = vsel %vm3531_vm4, %v3530_v38, 0  ;;  %v10459_v7 = vsub.s32 32, %v10441_v3  ;;  %v10461_v13 = vand.u32 31, %v3220_v6  ;;  %v10463_v12 = vand.u32 31, %v2284_v15 }
 0x207   : > { %13722 = vst [vmem:[#allocation65_spill] sm:$0xff] %v10450_v43  ;;  %13723 = vst [vmem:[#allocation87_spill] sm:$0xff] %v10453_v56  ;;  %v10465_v59 = vshrl.u32 %v3220_v6, 5  ;;  %v10467_v11 = vsel %vm2491_vm15, %v2490_v22, 0  ;;  %v10469_v41 = vadd.f32 %v1710_v1, %v1626_v40  ;;  %v13226_v14 = vmov 2102212464  }
 0x208   : > { %13724 = vst [vmem:[#allocation68_spill] sm:$0xff] %v10456_v62  ;;  %13725 = vst [vmem:[#allocation42_spill] sm:$0xff] %v10459_v7  ;;  %v1984_v29 = vshrl.u32 %v13226_v14, %v10404_v44  ;;  %vm2699_vm13 = vcmp.gt.s32.totalorder %v2698_v61, 0  ;;  %v6941_v34 = vadd.s32 4294967169, %v2900_v47  ;;  %v3534_v38 = vand.u32 31, %v3532_v2 }
 0x209   : > { %13726 = vst [vmem:[#allocation33_spill] sm:$0xff] %v10461_v13  ;;  %13727 = vst [vmem:[#allocation39_spill] sm:$0xff] %v10465_v59  ;;  %v13233_v33 = vmov 2131351028   ;;  %v13728_v53 = vand.u32 2147483647, %v10390_v23 }
 0x20a   : > { %v1981_v37 = vshrl.u32 %v13233_v33, %v10404_v44  ;;  %v1983_v22 = vshll.u32 %v13233_v33, %v10351_v19  ;;  %v13236_v40 = vmov 920167782   ;;  %v13240_v6 = vmov 1326507024  }
 0x20b   : > { %v10477_v57 = vand.u32 8388607, %v13728_v53  ;;  %v1987_v1 = vshrl.u32 %v13236_v40, %v10404_v44  ;;  %v1990_v47 = vshrl.u32 %v13240_v6, %v10404_v44  ;;  %v10486_v14 = vsub.s32 32, %v10461_v13 }
 0x20c   : > { %v10488_v59 = vshrl.u32 %v2284_v15, 5  ;;  %v10491_v23 = vsub.s32 32, %v10463_v12  ;;  %v13730_v53 = vmov 2475754826   ;;  %v10496_v33 = vand.u32 31, %v10467_v11 }
 0x20d   : > { %13729 = vst [vmem:[#allocation71_spill] sm:$0xff] %v10486_v14  ;;  %v1980_v52 = vshll.u32 %v13730_v53, %v10351_v19  ;;  %v1985_v62 = vor.u32 %v1984_v29, %v1983_v22  ;;  %v13731_v40 = vmov 2102212464   ;;  %v13732_v44 = vmov 920167782  }
 0x20e   : > { %v1986_v3 = vshll.u32 %v13731_v40, %v10351_v19  ;;  %v1989_v6 = vshll.u32 %v13732_v44, %v10351_v19  ;;  %v10503_v13 = vsel %vm2699_vm13, %v2698_v61, 0  ;;  %v10506_v14 = vsub.s32 32, %v3534_v38 }
 0x20f   : > { %v1982_v7 = vor.u32 %v1981_v37, %v1980_v52  ;;  %v10508_v5 = vadd.s32 1, %v6941_v34  ;;  %vm1992_vm14 = vcmp.lt.s32.totalorder %v10396_v28, 1  ;;  %vm1993_vm3 = vcmp.lt.s32.totalorder %v10396_v28, 2 }
 0x210   : > { %v1988_v43 = vor.u32 %v1987_v1, %v1986_v3  ;;  %v1991_v29 = vor.u32 %v1990_v47, %v1989_v6  ;;  %vm1994_vm12 = vcmp.lt.s32.totalorder %v10396_v28, 3  ;;  %vm1995_vm7 = vcmp.lt.s32.totalorder %v10396_v28, 4 }
 0x211   : > { %v10515_v61 = vshrl.u32 %v3532_v2, 5  ;;  %v13733_v19 = vmov 683565275   ;;  %v1996_v15 = vsel %vm1992_vm14, %v1976_v36, %v1979_v60  ;;  %v1997_v52 = vsel %vm1995_vm7, %v1985_v62, 2102212464 }
 0x212   : > { %v3537_v22 = vshll.u32 %v13733_v19, %v3534_v38  ;;  %v3538_v37 = vshrl.u32 %v13730_v53, %v10506_v14  ;;  %v3540_v3 = vshll.u32 %v13730_v53, %v3534_v38  ;;  %v13734_v34 = vmov 2131351028  }
 0x213   : > { %v3543_v1 = vshll.u32 %v13734_v34, %v3534_v38  ;;  %v2000_v6 = vsel %vm1992_vm14, %v1979_v60, %v1982_v7  ;;  %v3541_v47 = vshrl.u32 %v13734_v34, %v10506_v14  ;;  %v2001_v17 = vsel %vm1995_vm7, %v1988_v43, 920167782 }
 0x214   : > { %v2004_v32 = vsel %vm1992_vm14, %v1982_v7, %v1985_v62  ;;  %v2005_v56 = vsel %vm1995_vm7, %v1991_v29, 1326507024  ;;  %v1998_v2 = vsel %vm1994_vm12, %v1982_v7, %v1997_v52  ;;  %v2002_v36 = vsel %vm1994_vm12, %v1985_v62, %v2001_v17 }
 0x215   : > { %v2006_v27 = vsel %vm1994_vm12, %v1988_v43, %v2005_v56  ;;  %v13735_v18 = vor.u32 8388608, %v10344_v10  ;;  %v3546_v60 = vshll.u32 %v13731_v40, %v3534_v38  ;;  %v10534_v51 = vshll.u32 %v13732_v44, %v3534_v38 }
 0x216   : > { %v2003_v29 = vsel %vm1993_vm3, %v2000_v6, %v2002_v36  ;;  %v2007_v7 = vsel %vm1993_vm3, %v2004_v32, %v2006_v27  ;;  %v3544_v62 = vshrl.u32 %v13731_v40, %v10506_v14  ;;  %v3547_v56 = vshrl.u32 %v13732_v44, %v10506_v14 }
 0x217   : > { %v2008_v45 = vshll.u32 %v13735_v18, 8  ;;  %v13736_v18 = vmov 1326507024   ;;  %v1999_v38 = vsel %vm1993_vm3, %v1996_v15, %v1998_v2  ;;  %v10557_v27 = vor.u32 %v3538_v37, %v3537_v22 }
 0x218   : > { %v10549_v43 = vshrl.u32 %v13736_v18, %v10506_v14  ;;  %v10559_v32 = vor.u32 %v3541_v47, %v3540_v3  ;;  %v13737_v36 = vand.u32 2147483647, %v10234_v50  ;;  %v2084_v28 = vshll.u32 %v13730_v53, %v10399_v55 }
 0x219   : > { %v10544_v17 = vmul.u32.u64.low %v2008_v45, %v2007_v7  ;;  %v10545_v10 = vmul.u32.u64.high %v2008_v45, %v2007_v7, %v10544_v17  ;;  %v10553_v52 = vmul.u32.u64.low %v2008_v45, %v2003_v29  ;;  %v10554_v6 = vmul.u32.u64.high %v2008_v45, %v2003_v29, %v10553_v52 }
 0x21a   : > { %v2071_v31 = vand.u32 8388607, %v13737_v36  ;;  %v2082_v7 = vshrl.u32 %v13730_v53, %v10416_v9  ;;  %v2081_v17 = vshll.u32 %v13733_v19, %v10399_v55  ;;  %v2085_v15 = vshrl.u32 %v13734_v34, %v10416_v9 }
 0x21b   : > { %v2088_v22 = vshrl.u32 %v13731_v40, %v10416_v9  ;;  %v10573_v37 = vor.u32 %v3544_v62, %v3543_v1  ;;  %v10575_v3 = vor.u32 %v3547_v56, %v3546_v60  ;;  %v2015_v47 = vmul.u32 %v2008_v45, %v1999_v38 }
 0x21c   : > { %vm2017_vm1 = vc.u32 %v10545_v10, %v10553_v52  ;;  %vm3552_vm6 = vcmp.lt.s32.totalorder %v10515_v61, 1  ;;  %v2018_v2 = vadd.s32 1, %v10554_v6  ;;  %v2083_v29 = vor.u32 %v2082_v7, %v2081_v17 }
 0x21d   : > { %v2086_v36 = vor.u32 %v2085_v15, %v2084_v28  ;;  %v2087_v26 = vshll.u32 %v13734_v34, %v10399_v55  ;;  %v2090_v0 = vshll.u32 %v13731_v40, %v10399_v55  ;;  %v2091_v1 = vshrl.u32 %v13732_v44, %v10416_v9 }
 0x21e   : > { %v2093_v45 = vshll.u32 %v13732_v44, %v10399_v55  ;;  %v2094_v60 = vshrl.u32 %v13736_v18, %v10416_v9  ;;  %vm3555_vm11 = vcmp.lt.s32.totalorder %v10515_v61, 4  ;;  %v2019_v62 = vsel %vm2017_vm1, %v2018_v2, %v10554_v6 }
 0x21f   : > { %v2072_v56 = vor.u32 8388608, %v2071_v31  ;;  %v2089_v38 = vor.u32 %v2088_v22, %v2087_v26  ;;  %v2020_v7 = vadd.s32 %v2019_v62, %v2015_v47  ;;  %v2092_v17 = vor.u32 %v2091_v1, %v2090_v0 }
 0x220   : > { %v2095_v28 = vor.u32 %v2094_v60, %v2093_v45  ;;  %vm2096_vm8 = vcmp.lt.s32.totalorder %v10413_v48, 1  ;;  %v3551_v15 = vor.u32 %v10549_v43, %v10534_v51  ;;  %v3561_v55 = vsel %vm3555_vm11, %v10575_v3, 920167782 }
 0x221   : > { %vm2099_vm9 = vcmp.lt.s32.totalorder %v10413_v48, 4  ;;  %v2104_v20 = vsel %vm2096_vm8, %v2083_v29, %v2086_v36  ;;  %v2021_v6 = vadd.s32 536870912, %v2020_v7  ;;  %vm2097_vm5 = vcmp.lt.s32.totalorder %v10413_v48, 2 }
 0x222   : > { %vm2098_vm10 = vcmp.lt.s32.totalorder %v10413_v48, 3  ;;  %v2105_v26 = vsel %vm2099_vm9, %v2092_v17, 920167782  ;;  %v2108_v51 = vsel %vm2096_vm8, %v2086_v36, %v2089_v38  ;;  %v2109_v31 = vsel %vm2099_vm9, %v2095_v28, 1326507024 }
 0x223   : > { %v2106_v0 = vsel %vm2098_vm10, %v2089_v38, %v2105_v26  ;;  %v2112_v43 = vshll.u32 %v2072_v56, 8  ;;  %vm3554_vm0 = vcmp.lt.s32.totalorder %v10515_v61, 3  ;;  %v2022_v22 = vshrl.u32 %v2021_v6, 30 }
 0x224   : > { %v2101_v47 = vsel %vm2099_vm9, %v2089_v38, 2102212464  ;;  %v2107_v2 = vsel %vm2097_vm5, %v2104_v20, %v2106_v0  ;;  %v2080_v1 = vshrl.u32 %v13733_v19, %v10416_v9  ;;  %v2110_v45 = vsel %vm2098_vm10, %v2092_v17, %v2109_v31 }
 0x225   : > { %v10615_v60 = vmul.u32.u64.low %v2112_v43, %v2107_v2  ;;  %v10616_v62 = vmul.u32.u64.high %v2112_v43, %v2107_v2, %v10615_v60  ;;  %v3560_v56 = vsel %vm3552_vm6, %v10557_v27, %v10559_v32  ;;  %v3562_v38 = vsel %vm3554_vm0, %v10573_v37, %v3561_v55 }
 0x226   : > { %v2023_v20 = vshll.u32 %v2022_v22, 30  ;;  %v2111_v9 = vsel %vm2097_vm5, %v2108_v51, %v2110_v45  ;;  %vm1962_vm2 = vcmp.lt.s32.totalorder %v10213_v25, 0  ;;  %v2100_v17 = vsel %vm2096_vm8, %v2080_v1, %v2083_v29 }
 0x227   : > { %v2102_v28 = vsel %vm2098_vm10, %v2086_v36, %v2101_v47  ;;  %v10633_v6 = vmul.u32.u64.low %v2112_v43, %v2111_v9  ;;  %v10634_v26 = vmul.u32.u64.high %v2112_v43, %v2111_v9, %v10633_v6  ;;  %v10637_v0 = vshrl.u32 %v10467_v11, 5 }
 0x228   : > { %v10640_v55 = vsub.s32 32, %v10496_v33  ;;  %v10643_v31 = vshrl.u32 %v10503_v13, 5  ;;  %v10645_v51 = vsub.s32 %v2020_v7, %v2023_v20  ;;  %v10648_v2 = vand.u32 31, %v10503_v13 }
 0x229   : > { %vm3553_vm4 = vcmp.lt.s32.totalorder %v10515_v61, 2  ;;  %v3565_v29 = vsel %vm3555_vm11, %v3551_v15, 1326507024  ;;  %v2122_v36 = vadd.s32 1, %v10616_v62  ;;  %v13740_v11 = vand.u32 2139095040, %v10339_v21 }
 0x22a   : > { %13738 = vst [vmem:[#allocation6_spill] sm:$0xff] %v10643_v31  ;;  %13739 = vst [vmem:[#allocation92_spill] sm:$0xff] %v10648_v2  ;;  %v3563_v1 = vsel %vm3553_vm4, %v3560_v56, %v3562_v38  ;;  %v13741_v45 = vand.u32 2147483647, %v10213_v25  ;;  %v2026_v13 = vsub.s32 0, %v10645_v51  ;;  %v2103_v20 = vsel %vm2097_vm5, %v2100_v17, %v2102_v28 }
 0x22b   : > { %v3108_v47 = vshrl.u32 %v13740_v11, 23  ;;  %vm2907_vm13 = vcmp.gt.s32.totalorder %v10508_v5, 0  ;;  %v1826_v15 = vmul.f32 %v10151_v24, %v10333_v8  ;;  %v13744_v9 = vor.u32 8388608, %v10477_v57 }
 0x22c   : > { %vm10660_vm15 = vcmp.le.f32.partialorder %v13741_v45, 0.7853982  ;;  %vm2121_vm14 = vc.u32 %v10634_v26, %v10615_v60  ;;  %v3564_v56 = vsel %vm3552_vm6, %v10559_v32, %v10573_v37  ;;  %v3566_v48 = vsel %vm3554_vm0, %v10575_v3, %v3565_v29 }
 0x22d   : > { %v10672_v6 = vshll.u32 %v13744_v9, 8  ;;  %v6906_v38 = vmin.u32 %v2026_v13, %v10645_v51  ;;  %v2046_v17 = vsub.s32 4, %v2022_v22  ;;  %v2119_v8 = vmul.u32 %v2112_v43, %v2103_v20 }
 0x22e   : > { %v2123_v28 = vsel %vm2121_vm14, %v2122_v36, %v10616_v62  ;;  %v10691_v11 = vsub.s32 32, %v10648_v2  ;;  %v10694_v45 = vsel %vm2907_vm13, %v10508_v5, 0  ;;  %v10696_v9 = vadd.s32 4294967169, %v3108_v47 }
 0x22f   : > { %v10685_v24 = vmul.u32.u64.low %v10672_v6, %v3563_v1  ;;  %v10686_v57 = vmul.u32.u64.high %v10672_v6, %v3563_v1, %v10685_v24  ;;  %v2028_v3 = vclz %v6906_v38  ;;  %v3536_v29 = vshrl.u32 %v13733_v19, %v10506_v14 }
 0x230   : > { %13745 = vst [vmem:[#allocation70_spill] sm:$0xff] %v10691_v11  ;;  %v3557_v1 = vsel %vm3555_vm11, %v10573_v37, 2102212464  ;;  %v3567_v43 = vsel %vm3553_vm4, %v3564_v56, %v3566_v48  ;;  %v2124_v62 = vadd.s32 %v2123_v28, %v2119_v8  ;;  %v3315_v36 = vand.u32 2139095040, %v10375_v63 }
 0x231   : > { %v6907_v13 = vadd.s32 4294967294, %v2028_v3  ;;  %v2047_v5 = vsel %vm1962_vm2, %v2046_v17, %v2022_v22  ;;  %v13267_v47 = vand.u32 2147483647, %v10266_v49  ;;  %v10710_v20 = vshrl.u32 %v10694_v45, 5 }
 0x232   : > { %v10713_v14 = vadd.f32 %v1826_v15, %v10469_v41  ;;  %v3556_v37 = vsel %vm3552_vm6, %v3536_v29, %v10557_v27  ;;  %v2125_v56 = vadd.s32 536870912, %v2124_v62  ;;  %v3558_v48 = vsel %vm3554_vm0, %v10559_v32, %v3557_v1 }
 0x233   : > { %13746 = vst [vmem:[#allocation47_spill] sm:$0xff] %v10710_v20  ;;  %v10722_v38 = vmul.u32.u64.low %v10672_v6, %v3567_v43  ;;  %v10723_v22 = vmul.u32.u64.high %v10672_v6, %v3567_v43, %v10722_v38  ;;  %vm6908_vm3 = vcmp.lt.s32.totalorder %v6907_v13, 0  ;;  %vm2066_vm12 = vcmp.lt.s32.totalorder %v10234_v50, 0 }
 0x234   : > { %v10728_v41 = vmul.f32 %v10168_v30, %v10360_v58  ;;  %v2031_v15 = vsel %vm6908_vm3, 0, %v6907_v13  ;;  %v2049_v27 = vsel %vm10660_vm15, 0, %v2047_v5  ;;  %v2126_v17 = vshrl.u32 %v2125_v56, 30 }
 0x235   : > { %v10732_v8 = vshrl.u32 %v3315_v36, 23  ;;  %v2016_v32 = vadd.s32 %v10553_v52, %v10545_v10  ;;  %v2032_v28 = vsub.s32 32, %v2031_v15  ;;  %v10738_v3 = vand.u32 8388607, %v13267_v47 }
 0x236   : > { %v10742_v29 = vsel %vm3553_vm4, %v3556_v37, %v3558_v48  ;;  %v10745_v30 = vadd.s32 1, %v10686_v57  ;;  %v2036_v58 = vsub.s32 4294967266, %v2031_v15  ;;  %v13747_v1 = vand.u32 2147483647, %v10234_v50 }
 0x237   : > { %v2127_v10 = vshll.u32 %v2126_v17, 30  ;;  %v2034_v52 = vshrl.u32 %v2016_v32, %v2032_v28  ;;  %v2053_v36 = vadd.s32 3, %v2049_v27  ;;  %v10753_v13 = vand.u32 3, %v2049_v27 }
 0x238   : > { %vm10749_vm7 = vcmp.le.f32.partialorder %v13747_v1, 0.7853982  ;;  %v2120_v61 = vadd.s32 %v10615_v60, %v10634_v26  ;;  %v2033_v5 = vshll.u32 %v10645_v51, %v2031_v15  ;;  %v2037_v37 = vadd.s32 127, %v2036_v58 }
 0x239   : > { %v10758_v56 = vsub.s32 %v2124_v62, %v2127_v10  ;;  %v2150_v48 = vsub.s32 4, %v2126_v17  ;;  %v2176_v38 = vor.u32 8388608, %v10738_v3  ;;  %v2186_v1 = vshrl.u32 %v13730_v53, %v10423_v4 }
 0x23a   : > { %v2189_v32 = vshrl.u32 %v13734_v34, %v10423_v4  ;;  %v2195_v27 = vshrl.u32 %v13732_v44, %v10423_v4  ;;  %v2035_v28 = vor.u32 %v2034_v52, %v2033_v5  ;;  %v2038_v47 = vshll.u32 %v2037_v37, 23 }
 0x23b   : > { %v2130_v60 = vsub.s32 0, %v10758_v56  ;;  %v2192_v26 = vshrl.u32 %v13731_v40, %v10423_v4  ;;  %v2185_v51 = vshll.u32 %v13733_v19, %v10406_v42  ;;  %v2188_v62 = vshll.u32 %v13730_v53, %v10406_v42 }
 0x23c   : > { %v2194_v15 = vshll.u32 %v13731_v40, %v10406_v42  ;;  %v2198_v3 = vshrl.u32 %v13736_v18, %v10423_v4  ;;  %v2039_v58 = vor.u32 4788187, %v2038_v47  ;;  %v2151_v52 = vsel %vm2066_vm12, %v2150_v48, %v2126_v17 }
 0x23d   : > { %v6910_v10 = vmin.u32 %v2130_v60, %v10758_v56  ;;  %v2191_v5 = vshll.u32 %v13734_v34, %v10406_v42  ;;  %v2187_v37 = vor.u32 %v2186_v1, %v2185_v51  ;;  %v2190_v63 = vor.u32 %v2189_v32, %v2188_v62 }
 0x23e   : > { %v2196_v21 = vor.u32 %v2195_v27, %v2194_v15  ;;  %v2197_v20 = vshll.u32 %v13732_v44, %v10406_v42  ;;  %vm3577_vm1 = vc.u32 %v10723_v22, %v10685_v24  ;;  %v2040_v31 = vand.u32 2147483647, %v2039_v58 }
 0x23f   : > { %v2042_v11 = vcvt.s32.f32 %v2035_v28  ;;  %v2132_v47 = vclz %v6910_v10  ;;  %v2193_v2 = vor.u32 %v2192_v26, %v2191_v5  ;;  %v10787_v60 = vand.u32 3, %v2053_v36 }
 0x240   : > { %v2153_v17 = vsel %vm10749_vm7, 0, %v2151_v52  ;;  %v2184_v48 = vshrl.u32 %v13733_v19, %v10423_v4  ;;  %v2199_v1 = vor.u32 %v2198_v3, %v2197_v20  ;;  %vm2200_vm6 = vcmp.lt.s32.totalorder %v10420_v39, 1 }
 0x241   : > { %v2043_v32 = vmul.f32 %v2042_v11, %v2040_v31  ;;  %v6911_v27 = vadd.s32 4294967294, %v2132_v47  ;;  %vm2203_vm11 = vcmp.lt.s32.totalorder %v10420_v39, 4  ;;  %vm2201_vm8 = vcmp.lt.s32.totalorder %v10420_v39, 2 }
 0x242   : > { %vm2202_vm9 = vcmp.lt.s32.totalorder %v10420_v39, 3  ;;  %v2208_v42 = vsel %vm2200_vm6, %v2187_v37, %v2190_v63  ;;  %v2209_v36 = vsel %vm2203_vm11, %v2196_v21, 920167782  ;;  %v2204_v26 = vsel %vm2200_vm6, %v2184_v48, %v2187_v37 }
 0x243   : > { %v2044_v28 = vxor.u32 2147483648, %v2043_v32  ;;  %vm6912_vm5 = vcmp.lt.s32.totalorder %v6911_v27, 0  ;;  %v2210_v51 = vsel %vm2202_vm9, %v2193_v2, %v2209_v36  ;;  %v2205_v20 = vsel %vm2203_vm11, %v2193_v2, 2102212464 }
 0x244   : > { %v2135_v4 = vsel %vm6912_vm5, 0, %v6911_v27  ;;  %v2212_v31 = vsel %vm2200_vm6, %v2190_v63, %v2193_v2  ;;  %v2213_v11 = vsel %vm2203_vm11, %v2199_v1, 1326507024  ;;  %v2211_v58 = vsel %vm2201_vm8, %v2208_v42, %v2210_v51 }
 0x245   : > { %v2045_v62 = vsel %vm1962_vm2, %v2044_v28, %v2043_v32  ;;  %v2136_v15 = vsub.s32 32, %v2135_v4  ;;  %v2140_v3 = vsub.s32 4294967266, %v2135_v4  ;;  %v2137_v52 = vshll.u32 %v10758_v56, %v2135_v4 }
 0x246   : > { %v2048_v10 = vsel %vm10660_vm15, %v10213_v25, %v2045_v62  ;;  %v2214_v5 = vsel %vm2202_vm9, %v2196_v21, %v2213_v11  ;;  %v2216_v37 = vshll.u32 %v2176_v38, 8  ;;  %v2206_v1 = vsel %vm2202_vm9, %v2190_v63, %v2205_v20 }
 0x247   : > { %7977 = vcosq.f32 %v2048_v10  ;;  %v2138_v2 = vshrl.u32 %v2120_v61, %v2136_v15  ;;  %v2141_v47 = vadd.s32 127, %v2140_v3  ;;  %v2215_v48 = vsel %vm2201_vm8, %v2212_v31, %v2214_v5 }
 0x248   : > { %7979 = vsinq.f32 %v2048_v10  ;;  %v10813_v32 = vmul.u32.u64.low %v2216_v37, %v2215_v48  ;;  %v10814_v27 = vmul.u32.u64.high %v2216_v37, %v2215_v48, %v10813_v32  ;;  %v10822_v21 = vadd.f32 %v10728_v41, %v10713_v14 }
 0x249   : > { %v2139_v7 = vor.u32 %v2138_v2, %v2137_v52  ;;  %v2142_v42 = vshll.u32 %v2141_v47, 23  ;;  %v10816_v56 = vmul.u32.u64.low %v2216_v37, %v2211_v58  ;;  %v10817_v36 = vmul.u32.u64.high %v2216_v37, %v2211_v58, %v10816_v56 }
 0x24a   : > { %v3575_v61 = vmul.u32 %v10672_v6, %v10742_v29  ;;  %v10831_v63 = vsel %vm3577_vm1, %v10745_v30, %v10686_v57  ;;  %v2272_v38 = vand.u32 2147483647, %v10347_v35  ;;  %vm2059_vm10 = vcmp.eq.s32.totalorder %v10787_v60, 2 }
 0x24b   : > { %vm3722_vm0 = vcmp.eq.s32.totalorder %v10753_v13, 2  ;;  %v2143_v28 = vor.u32 4788187, %v2142_v42  ;;  %v10836_v51 = vadd.s32 3, %v2153_v17  ;;  %v2207_v14 = vsel %vm2201_vm8, %v2204_v26, %v2206_v1 }
 0x24c   : > { %vm2056_vm2 = vcmp.eq.s32.totalorder %v10787_v60, 0  ;;  %vm3719_vm4 = vcmp.eq.s32.totalorder %v10753_v13, 0  ;;  %v10842_v41 = vand.u32 3, %v2153_v17  ;;  %vm2225_vm15 = vc.u32 %v10814_v27, %v10816_v56 }
 0x24d   : > { %v10848_v57 = vand.u32 8388607, %v2272_v38  ;;  %v2290_v30 = vshrl.u32 %v13730_v53, %v10491_v23  ;;  %vm2055_vm13 = vcmp.lt.s32.totalorder %v10787_v60, 2  ;;  %vm3718_vm14 = vcmp.lt.s32.totalorder %v10753_v13, 2 }
 0x24e   : > { %vm5432_vm3 = vcmask 261120   ;;  %v2144_v39 = vand.u32 2147483647, %v2143_v28  ;;  %v2146_v26 = vcvt.s32.f32 %v2139_v7  ;;  %v2226_v17 = vadd.s32 1, %v10817_v36 }
 0x24f   : > { %v2293_v4 = vshrl.u32 %v13734_v34, %v10491_v23  ;;  %vm2052_vm1 = vweird.f32 %v10213_v25  ;;  %v2223_v20 = vmul.u32 %v2216_v37, %v2207_v14  ;;  %v2288_v31 = vshrl.u32 %v13733_v19, %v10491_v23 }
 0x250   : > { %v2289_v11 = vshll.u32 %v13733_v19, %v10463_v12  ;;  %v2296_v62 = vshrl.u32 %v13731_v40, %v10491_v23  ;;  %v2147_v15 = vmul.f32 %v2146_v26, %v2144_v39  ;;  %v2227_v3 = vsel %vm2225_vm15, %v2226_v17, %v10817_v36 }
 0x251   : > { %v2292_v58 = vshll.u32 %v13730_v53, %v10463_v12  ;;  %v2299_v10 = vshrl.u32 %v13732_v44, %v10491_v23  ;;  %v2228_v52 = vadd.s32 %v2227_v3, %v2223_v20  ;;  %v2280_v5 = vor.u32 8388608, %v10848_v57  ;;  %v7978_v47 = vpop.eup %7977 }
 0x252   : > { %v2291_v37 = vor.u32 %v2290_v30, %v2289_v11  ;;  %v2295_v2 = vshll.u32 %v13734_v34, %v10463_v12  ;;  %v2148_v48 = vxor.u32 2147483648, %v2147_v15  ;;  %v2298_v32 = vshll.u32 %v13731_v40, %v10463_v12  ;;  %v7980_v42 = vpop.eup %7979 }
 0x253   : > { %v2294_v1 = vor.u32 %v2293_v4, %v2292_v58  ;;  %v2302_v7 = vshrl.u32 %v13736_v18, %v10491_v23  ;;  %v2060_v36 = vxor.u32 2147483648, %v7978_v47  ;;  %v2229_v28 = vadd.s32 536870912, %v2228_v52 }
 0x254   : > { %v2297_v14 = vor.u32 %v2296_v62, %v2295_v2  ;;  %v2301_v57 = vshll.u32 %v13732_v44, %v10463_v12  ;;  %v2057_v30 = vxor.u32 2147483648, %v7980_v42  ;;  %v2149_v39 = vsel %vm2066_vm12, %v2148_v48, %v2147_v15 }
 0x255   : > { %v2300_v26 = vor.u32 %v2299_v10, %v2298_v32  ;;  %vm2304_vm6 = vcmp.lt.s32.totalorder %v10488_v59, 1  ;;  %v2061_v17 = vsel %vm2059_vm10, %v2060_v36, %v7980_v42  ;;  %v3724_v23 = vsel %vm3722_vm0, %v2060_v36, %v7980_v42  ;;  %v5424_v42 = vld [vmem:[%s13040_s4] sm:$0xff] }
 0x256   : > { %v2152_v4 = vsel %vm10749_vm7, %v10234_v50, %v2149_v39  ;;  %v2230_v20 = vshrl.u32 %v2229_v28, 30  ;;  %v2058_v12 = vsel %vm2056_vm2, %v7978_v47, %v2057_v30  ;;  %v3721_v11 = vsel %vm3719_vm4, %v7978_v47, %v2057_v30 }
 0x257   : > { %7981 = vcosq.f32 %v2152_v4  ;;  %v2303_v62 = vor.u32 %v2302_v7, %v2301_v57  ;;  %v2062_v15 = vsel %vm2055_vm13, %v2058_v12, %v2061_v17  ;;  %v3725_v3 = vsel %vm3718_vm14, %v3721_v11, %v3724_v23 }
 0x258   : > { %7983 = vsinq.f32 %v2152_v4  ;;  %v2231_v58 = vshll.u32 %v2230_v20, 30  ;;  %v2063_v43 = vsel %vm2052_vm1, nan, %v2062_v15  ;;  %v10903_v10 = vsel %vm2052_vm1, nan, %v3725_v3 }
 0x259   : > { %13750 = vst [vmem:[#allocation44_spill] sm:$0xff] %v10903_v10  ;;  %vm2306_vm12 = vcmp.lt.s32.totalorder %v10488_v59, 3  ;;  %vm2307_vm7 = vcmp.lt.s32.totalorder %v10488_v59, 4  ;;  %7285 = vmatprep.mubr.msk.f32.mxu0 %vm5432_vm3, %v2063_v43  ;;  %v2312_v13 = vsel %vm2304_vm6, %v2291_v37, %v2294_v1  ;;  %v2158_v48 = vand.u32 3, %v10836_v51 }
 0x25a   : > { %v10908_v60 = vsub.s32 %v2228_v52, %v2231_v58  ;;  %v2309_v2 = vsel %vm2307_vm7, %v2297_v14, 2102212464  ;;  %v2313_v47 = vsel %vm2307_vm7, %v2300_v26, 920167782  ;;  %v2316_v32 = vsel %vm2304_vm6, %v2294_v1, %v2297_v14  ;;  %v5425_v52 = vld [vmem:[%s13040_s4 + $0x8] sm:$0xff] }
 0x25b   : > { %v2314_v25 = vsel %vm2306_vm12, %v2297_v14, %v2313_v47  ;;  %v2317_v7 = vsel %vm2307_vm7, %v2303_v62, 1326507024  ;;  %vm2305_vm11 = vcmp.lt.s32.totalorder %v10488_v59, 2  ;;  %v2308_v51 = vsel %vm2304_vm6, %v2288_v31, %v2291_v37 }
 0x25c   : > { %v2234_v36 = vsub.s32 0, %v10908_v60  ;;  %v2318_v28 = vsel %vm2306_vm12, %v2300_v26, %v2317_v7  ;;  %v2310_v14 = vsel %vm2306_vm12, %v2294_v1, %v2309_v2  ;;  %v2315_v57 = vsel %vm2305_vm11, %v2312_v13, %v2314_v25 }
 0x25d   : > { %v2319_v30 = vsel %vm2305_vm11, %v2316_v32, %v2318_v28  ;;  %v2320_v39 = vshll.u32 %v2280_v5, 8  ;;  %vm2156_vm8 = vweird.f32 %v10234_v50  ;;  %vm3821_vm9 = vcmp.lt.s32.totalorder %v10842_v41, 2 }
 0x25e   : > { %vm2170_vm5 = vcmp.lt.s32.totalorder %v10266_v49, 0  ;;  %v6914_v31 = vmin.u32 %v2234_v36, %v10908_v60  ;;  %v7605_v37 = vpack.c.bf16 %v5425_v52, %v5424_v42  ;;  %vm3822_vm10 = vcmp.eq.s32.totalorder %v10842_v41, 0 }
 0x25f   : > { %v2254_v26 = vsub.s32 4, %v2230_v20  ;;  %v10940_v1 = vmul.u32.u64.low %v2320_v39, %v2319_v30  ;;  %v10941_v17 = vmul.u32.u64.high %v2320_v39, %v2319_v30, %v10940_v1  ;;  %v2311_v4 = vsel %vm2305_vm11, %v2308_v51, %v2310_v14 }
 0x260   : > { %v2236_v23 = vclz %v6914_v31  ;;  %v10945_v5 = vmul.u32.u64.low %v2320_v39, %v2315_v57  ;;  %v10946_v12 = vmul.u32.u64.high %v2320_v39, %v2315_v57, %v10945_v5  ;;  %7606 = vmatprep.subr.bf16.mxu0 %v7605_v37  ;;  %vm2159_vm0 = vcmp.lt.s32.totalorder %v2158_v48, 2 }
 0x261   : > { %v7982_v11 = vpop.eup %7981  ;;  %vm2160_vm2 = vcmp.eq.s32.totalorder %v2158_v48, 0  ;;  %vm3825_vm4 = vcmp.eq.s32.totalorder %v10842_v41, 2  ;;  %v2376_v62 = vand.u32 2147483647, %v10299_v54  ;;  %vm2163_vm15 = vcmp.eq.s32.totalorder %v2158_v48, 2 }
 0x262   : > { %v7984_v15 = vpop.eup %7983  ;;  %v2164_v3 = vxor.u32 2147483648, %v7982_v11  ;;  %v2224_v58 = vadd.s32 %v10816_v56, %v10814_v27  ;;  %v6915_v59 = vadd.s32 4294967294, %v2236_v23  ;;  %v13751_v2 = vand.u32 2147483647, %v10266_v49 }
 0x263   : > { %v2161_v43 = vxor.u32 2147483648, %v7984_v15  ;;  %v2255_v47 = vsel %vm2170_vm5, %v2254_v26, %v2230_v20  ;;  %v2327_v25 = vmul.u32 %v2320_v39, %v2311_v4  ;;  %vm2329_vm14 = vc.u32 %v10941_v17, %v10945_v5 }
 0x264   : > { %vm10955_vm13 = vcmp.le.f32.partialorder %v13751_v2, 0.7853982  ;;  %v2165_v32 = vsel %vm2163_vm15, %v2164_v3, %v7984_v15  ;;  %v3827_v7 = vsel %vm3825_vm4, %v2164_v3, %v7984_v15  ;;  %vm6916_vm1 = vcmp.lt.s32.totalorder %v6915_v59, 0 }
 0x265   : > { %v2330_v27 = vadd.s32 1, %v10946_v12  ;;  %v2162_v56 = vsel %vm2160_vm2, %v7982_v11, %v2161_v43  ;;  %v3824_v42 = vsel %vm3822_vm10, %v7982_v11, %v2161_v43  ;;  %v2239_v52 = vsel %vm6916_vm1, 0, %v6915_v59 }
 0x266   : > { %v2383_v36 = vand.u32 8388607, %v2376_v62  ;;  %v2166_v20 = vsel %vm2159_vm0, %v2162_v56, %v2165_v32  ;;  %v3828_v51 = vsel %vm3821_vm9, %v3824_v42, %v3827_v7  ;;  %v2240_v28 = vsub.s32 32, %v2239_v52 }
 0x267   : > { %v2394_v14 = vshrl.u32 %v13730_v53, %v10433_v46  ;;  %v2167_v57 = vsel %vm2156_vm8, nan, %v2166_v20  ;;  %v10978_v30 = vsel %vm2156_vm8, nan, %v3828_v51  ;;  %v2244_v39 = vsub.s32 4294967266, %v2239_v52 }
 0x268   : > { %13754 = vst [vmem:[#allocation16_spill] sm:$0xff] %v10978_v30  ;;  %v2331_v48 = vsel %vm2329_vm14, %v2330_v27, %v10946_v12  ;;  %7286 = vmatmul.mubr.msk.f32.vlgmr.msra.gmra.mrb[0].mxu0 %vm5432_vm3, %v2167_v57  ;;  %v2241_v41 = vshll.u32 %v10908_v60, %v2239_v52  ;;  %v2242_v31 = vshrl.u32 %v2224_v58, %v2240_v28  ;;  %vm2274_vm6 = vcmp.lt.s32.totalorder %v10347_v35, 0 }
 0x269   : > { %v2332_v26 = vadd.s32 %v2331_v48, %v2327_v25  ;;  %v2393_v1 = vshll.u32 %v13733_v19, %v10418_v16  ;;  %v2245_v23 = vadd.s32 127, %v2244_v39  ;;  %v2396_v50 = vshll.u32 %v13730_v53, %v10418_v16  ;;  %7608 = vmatpush3.bf16.msra.mxu0 %v7605_v37 }
 0x26a   : > { %v2397_v4 = vshrl.u32 %v13734_v34, %v10433_v46  ;;  %v2400_v11 = vshrl.u32 %v13731_v40, %v10433_v46  ;;  %v2243_v12 = vor.u32 %v2242_v31, %v2241_v41  ;;  %v2402_v15 = vshll.u32 %v13731_v40, %v10418_v16 }
 0x26b   : > { %v2333_v60 = vadd.s32 536870912, %v2332_v26  ;;  %v2403_v3 = vshrl.u32 %v13732_v44, %v10433_v46  ;;  %v2246_v58 = vshll.u32 %v2245_v23, 23  ;;  %v2395_v59 = vor.u32 %v2394_v14, %v2393_v1  ;;  %v13757_v14 = vld [vmem:[#allocation17_spill] sm:$0xff] }
 0x26c   : > { %v2398_v43 = vor.u32 %v2397_v4, %v2396_v50  ;;  %v2399_v2 = vshll.u32 %v13734_v34, %v10418_v16  ;;  %v11003_v25 = vsel %vm10955_vm13, 0, %v2255_v47  ;;  %v2406_v7 = vshrl.u32 %v13736_v18, %v10433_v46 }
 0x26d   : > { %v2334_v37 = vshrl.u32 %v2333_v60, 30  ;;  %v2404_v32 = vor.u32 %v2403_v3, %v2402_v15  ;;  %v2247_v27 = vor.u32 4788187, %v2246_v58  ;;  %vm11009_vm12 = vcmp.le.f32.partialorder %v2272_v38, 0.7853982 }
 0x26e   : > { %v2384_v42 = vor.u32 8388608, %v2383_v36  ;;  %v2401_v52 = vor.u32 %v2400_v11, %v2399_v2  ;;  %v2405_v20 = vshll.u32 %v13732_v44, %v10418_v16  ;;  %v2250_v51 = vcvt.s32.f32 %v2243_v12 }
 0x26f   : > { %v2335_v47 = vshll.u32 %v2334_v37, 30  ;;  %v2358_v28 = vsub.s32 4, %v2334_v37  ;;  %vm2408_vm7 = vcmp.lt.s32.totalorder %v13757_v14, 1  ;;  %v2248_v57 = vand.u32 2147483647, %v2247_v27 }
 0x270   : > { %v2407_v39 = vor.u32 %v2406_v7, %v2405_v20  ;;  %vm2411_vm11 = vcmp.lt.s32.totalorder %v13757_v14, 4  ;;  %v2416_v38 = vsel %vm2408_vm7, %v2395_v59, %v2398_v43  ;;  %v2261_v48 = vadd.s32 3, %v11003_v25 }
 0x271   : > { %v11020_v41 = vsub.s32 %v2332_v26, %v2335_v47  ;;  %vm2410_vm8 = vcmp.lt.s32.totalorder %v13757_v14, 3  ;;  %v2417_v16 = vsel %vm2411_vm11, %v2404_v32, 920167782  ;;  %v2251_v36 = vmul.f32 %v2250_v51, %v2248_v57  ;;  %v13758_v57 = vld [vmem:[#allocation46_spill] sm:$0xff] }
 0x272   : > { %vm2409_vm9 = vcmp.lt.s32.totalorder %v13757_v14, 2  ;;  %v2413_v31 = vsel %vm2411_vm11, %v2401_v52, 2102212464  ;;  %v2418_v1 = vsel %vm2410_vm8, %v2401_v52, %v2417_v16  ;;  %v2392_v26 = vshrl.u32 %v13733_v19, %v10433_v46 }
 0x273   : > { %v2338_v23 = vsub.s32 0, %v11020_v41  ;;  %v2419_v50 = vsel %vm2409_vm9, %v2416_v38, %v2418_v1  ;;  %v2420_v4 = vsel %vm2408_vm7, %v2398_v43, %v2401_v52  ;;  %v2252_v11 = vxor.u32 2147483648, %v2251_v36 }
 0x274   : > { %v2359_v12 = vsel %vm2274_vm6, %v2358_v28, %v2334_v37  ;;  %v2421_v60 = vsel %vm2411_vm11, %v2407_v39, 1326507024  ;;  %v2424_v15 = vshll.u32 %v2384_v42, 8  ;;  %v2412_v58 = vsel %vm2408_vm7, %v2392_v26, %v2395_v59 }
 0x275   : > { %v6918_v3 = vmin.u32 %v2338_v23, %v11020_v41  ;;  %v2414_v46 = vsel %vm2410_vm8, %v2398_v43, %v2413_v31  ;;  %v2422_v2 = vsel %vm2410_vm8, %v2404_v32, %v2421_v60  ;;  %v2253_v7 = vsel %vm2170_vm5, %v2252_v11, %v2251_v36 }
 0x276   : > { %v2423_v37 = vsel %vm2409_vm9, %v2420_v4, %v2422_v2  ;;  %v11052_v27 = vmul.u32.u64.low %v2424_v15, %v2419_v50  ;;  %v11053_v52 = vmul.u32.u64.high %v2424_v15, %v2419_v50, %v11052_v27  ;;  %v11060_v59 = vadd.s32 %v10831_v63, %v3575_v61 }
 0x277   : > { %v2256_v43 = vsel %vm10955_vm13, %v10266_v49, %v2253_v7  ;;  %v2340_v32 = vclz %v6918_v3  ;;  %v11067_v42 = vsel %vm11009_vm12, 0, %v2359_v12  ;;  %v11069_v20 = vand.u32 3, %v2261_v48 }
 0x278   : > { %7985 = vcosq.f32 %v2256_v43  ;;  %v11071_v51 = vmul.u32.u64.low %v2424_v15, %v2423_v37  ;;  %v11072_v47 = vmul.u32.u64.high %v2424_v15, %v2423_v37, %v11071_v51  ;;  %v11075_v6 = vand.u32 31, %v10694_v45 }
 0x279   : > { %7987 = vsinq.f32 %v2256_v43  ;;  %v6919_v29 = vadd.s32 4294967294, %v2340_v32  ;;  %v2415_v61 = vsel %vm2409_vm9, %v2412_v58, %v2414_v46  ;;  %v11080_v63 = vadd.s32 1, %v10696_v9 }
 0x27a   : > { %v2365_v13 = vadd.s32 3, %v11067_v42  ;;  %v2434_v28 = vadd.s32 1, %v11053_v52  ;;  %v2480_v39 = vand.u32 2147483647, %v13758_v57  ;;  %v11086_v38 = vadd.s32 4294967169, %v10732_v8 }
 0x27b   : > { %v3419_v45 = vand.u32 2139095040, %v10822_v21  ;;  %v11090_v48 = vadd.s32 536870912, %v11060_v59  ;;  %vm6920_vm5 = vcmp.lt.s32.totalorder %v6919_v29, 0  ;;  %vm2267_vm10 = vcmp.eq.s32.totalorder %v11069_v20, 2 }
 0x27c   : > { %v2343_v14 = vsel %vm6920_vm5, 0, %v6919_v29  ;;  %v2431_v9 = vmul.u32 %v2424_v15, %v2415_v61  ;;  %vm2433_vm0 = vc.u32 %v11072_v47, %v11052_v27  ;;  %vm2264_vm2 = vcmp.eq.s32.totalorder %v11069_v20, 0 }
 0x27d   : > { %v2328_v16 = vadd.s32 %v10945_v5, %v10941_v17  ;;  %v2344_v8 = vsub.s32 32, %v2343_v14  ;;  %v2348_v36 = vsub.s32 4294967266, %v2343_v14  ;;  %v2435_v31 = vsel %vm2433_vm0, %v2434_v28, %v11053_v52 }
 0x27e   : > { %vm2263_vm4 = vcmp.lt.s32.totalorder %v11069_v20, 2  ;;  %v11100_v1 = vand.u32 3, %v2365_v13  ;;  %v2436_v23 = vadd.s32 %v2435_v31, %v2431_v9  ;;  %v11104_v26 = vand.u32 8388607, %v2480_v39 }
 0x27f   : > { %v2498_v50 = vshrl.u32 %v13730_v53, %v10640_v55  ;;  %vm2260_vm15 = vweird.f32 %v10266_v49  ;;  %v2345_v17 = vshll.u32 %v11020_v41, %v2343_v14  ;;  %v2346_v5 = vshrl.u32 %v2328_v16, %v2344_v8 }
 0x280   : > { %v2349_v4 = vadd.s32 127, %v2348_v36  ;;  %v2501_v11 = vshrl.u32 %v13734_v34, %v10640_v55  ;;  %v2437_v12 = vadd.s32 536870912, %v2436_v23  ;;  %v2496_v60 = vshrl.u32 %v13733_v19, %v10640_v55 }
 0x281   : > { %v2497_v15 = vshll.u32 %v13733_v19, %v10496_v33  ;;  %v2504_v3 = vshrl.u32 %v13731_v40, %v10640_v55  ;;  %v2347_v58 = vor.u32 %v2346_v5, %v2345_v17  ;;  %v2500_v41 = vshll.u32 %v13730_v53, %v10496_v33 }
 0x282   : > { %v2350_v46 = vshll.u32 %v2349_v4, 23  ;;  %v2507_v2 = vshrl.u32 %v13732_v44, %v10640_v55  ;;  %v11122_v7 = vpop.eup %7985  ;;  %vm2378_vm13 = vcmp.lt.s32.totalorder %v10299_v54, 0  ;;  %v2438_v37 = vshrl.u32 %v2437_v12, 30 }
 0x283   : > { %v2499_v52 = vor.u32 %v2498_v50, %v2497_v15  ;;  %v2503_v43 = vshll.u32 %v13734_v34, %v10496_v33  ;;  %v2510_v32 = vshrl.u32 %v13736_v18, %v10640_v55  ;;  %v11129_v51 = vpop.eup %7987  ;;  %v13279_v29 = vxor.u32 2147483648, %v11122_v7 }
 0x284   : > { %v2351_v61 = vor.u32 4788187, %v2350_v46  ;;  %v2502_v13 = vor.u32 %v2501_v11, %v2500_v41  ;;  %v2506_v28 = vshll.u32 %v13731_v40, %v10496_v33  ;;  %v13280_v14 = vxor.u32 2147483648, %v11129_v51 }
 0x285   : > { %v2439_v9 = vshll.u32 %v2438_v37, 30  ;;  %v2505_v16 = vor.u32 %v2504_v3, %v2503_v43  ;;  %v2509_v8 = vshll.u32 %v13732_v44, %v10496_v33  ;;  %v2269_v55 = vsel %vm2267_vm10, %v13279_v29, %v11129_v51 }
 0x286   : > { %v2352_v36 = vand.u32 2147483647, %v2351_v61  ;;  %v2354_v31 = vcvt.s32.f32 %v2347_v58  ;;  %v2508_v50 = vor.u32 %v2507_v2, %v2506_v28  ;;  %v2266_v17 = vsel %vm2264_vm2, %v11122_v7, %v13280_v14 }
 0x287   : > { %vm11149_vm14 = vcmp.le.f32.partialorder %v2376_v62, 0.7853982  ;;  %v11153_v33 = vsub.s32 %v2436_v23, %v2439_v9  ;;  %v2488_v4 = vor.u32 8388608, %v11104_v26  ;;  %v2511_v11 = vor.u32 %v2510_v32, %v2509_v8 }
 0x288   : > { %v2270_v12 = vsel %vm2263_vm4, %v2266_v17, %v2269_v55  ;;  %v2355_v15 = vmul.f32 %v2354_v31, %v2352_v36  ;;  %v2462_v3 = vsub.s32 4, %v2438_v37  ;;  %vm2512_vm1 = vcmp.lt.s32.totalorder %v10637_v0, 1 }
 0x289   : > { %v2271_v58 = vsel %vm2260_vm15, nan, %v2270_v12  ;;  %v2442_v62 = vsub.s32 0, %v11153_v33  ;;  %vm2514_vm7 = vcmp.lt.s32.totalorder %v10637_v0, 3  ;;  %vm2515_vm11 = vcmp.lt.s32.totalorder %v10637_v0, 4 }
 0x28a   : > { %7288 = vmatprep.mubr.msk.f32.mxu0 %vm5432_vm3, %v2271_v58  ;;  %v2356_v23 = vxor.u32 2147483648, %v2355_v15  ;;  %v2517_v26 = vsel %vm2515_vm11, %v2505_v16, 2102212464  ;;  %v2520_v20 = vsel %vm2512_vm1, %v2499_v52, %v2502_v13  ;;  %v2521_v46 = vsel %vm2515_vm11, %v2508_v50, 920167782 }
 0x28b   : > { %v6922_v41 = vmin.u32 %v2442_v62, %v11153_v33  ;;  %v2522_v2 = vsel %vm2514_vm7, %v2505_v16, %v2521_v46  ;;  %v2524_v43 = vsel %vm2512_vm1, %v2502_v13, %v2505_v16  ;;  %v2525_v32 = vsel %vm2515_vm11, %v2511_v11, 1326507024 }
 0x28c   : > { %v2357_v61 = vsel %vm2274_vm6, %v2356_v23, %v2355_v15  ;;  %v2463_v28 = vsel %vm2378_vm13, %v2462_v3, %v2438_v37  ;;  %vm2513_vm8 = vcmp.lt.s32.totalorder %v10637_v0, 2  ;;  %v2526_v9 = vsel %vm2514_vm7, %v2508_v50, %v2525_v32 }
 0x28d   : > { %v2360_v8 = vsel %vm11009_vm12, %v10347_v35, %v2357_v61  ;;  %v2444_v55 = vclz %v6922_v41  ;;  %v2523_v16 = vsel %vm2513_vm8, %v2520_v20, %v2522_v2  ;;  %v2528_v36 = vshll.u32 %v2488_v4, 8 }
 0x28e   : > { %7989 = vcosq.f32 %v2360_v8  ;;  %v2516_v31 = vsel %vm2512_vm1, %v2496_v60, %v2499_v52  ;;  %v2518_v37 = vsel %vm2514_vm7, %v2502_v13, %v2517_v26  ;;  %v2527_v17 = vsel %vm2513_vm8, %v2524_v43, %v2526_v9  ;;  %v13761_v60 = vld [vmem:[#allocation2_spill] sm:$0xff]  ;;  %v13762_v26 = vld [vmem:[#allocation4_spill] sm:$0xff]  ;;  %v13763_v43 = vld [vmem:[#allocation49_spill] sm:$0xff] }
 0x28f   : > { %7991 = vsinq.f32 %v2360_v8  ;;  %v6923_v50 = vadd.s32 4294967294, %v2444_v55  ;;  %v11190_v11 = vmul.u32.u64.low %v2528_v36, %v2527_v17  ;;  %v11191_v56 = vmul.u32.u64.high %v2528_v36, %v2527_v17, %v11190_v11 }
 0x290   : > { %v11195_v12 = vsel %vm11149_vm14, 0, %v2463_v28  ;;  %v11197_v4 = vmul.u32.u64.low %v2528_v36, %v2523_v16  ;;  %v11198_v15 = vmul.u32.u64.high %v2528_v36, %v2523_v16, %v11197_v4  ;;  %v2584_v52 = vand.u32 2147483647, %v13761_v60 }
 0x291   : > { %v11204_v13 = vshrl.u32 %v3419_v45, 23  ;;  %v11207_v3 = vshrl.u32 %v11090_v48, 30  ;;  %vm6924_vm6 = vcmp.lt.s32.totalorder %v6923_v50, 0  ;;  %v2519_v58 = vsel %vm2513_vm8, %v2516_v31, %v2518_v37 }
 0x292   : > { %vm2371_vm12 = vcmp.eq.s32.totalorder %v11100_v1, 2  ;;  %v2447_v62 = vsel %vm6924_vm6, 0, %v6923_v50  ;;  %v11214_v23 = vand.u32 8388607, %v2584_v52  ;;  %v2602_v20 = vshrl.u32 %v13730_v53, %v13762_v26 }
 0x293   : > { %vm2368_vm9 = vcmp.eq.s32.totalorder %v11100_v1, 0  ;;  %v2432_v45 = vadd.s32 %v11052_v27, %v11072_v47  ;;  %v2448_v48 = vsub.s32 32, %v2447_v62  ;;  %v2452_v46 = vsub.s32 4294967266, %v2447_v62 }
 0x294   : > { %v2469_v0 = vadd.s32 3, %v11195_v12  ;;  %vm2367_vm5 = vcmp.lt.s32.totalorder %v11100_v1, 2  ;;  %v2535_v41 = vmul.u32 %v2528_v36, %v2519_v58  ;;  %vm2537_vm10 = vc.u32 %v11191_v56, %v11197_v4 }
 0x295   : > { %v2538_v2 = vadd.s32 1, %v11198_v15  ;;  %v2601_v32 = vshll.u32 %v13733_v19, %v13763_v43  ;;  %vm2364_vm0 = vweird.f32 %v10347_v35  ;;  %v2449_v61 = vshll.u32 %v11153_v33, %v2447_v62 }
 0x296   : > { %v2450_v27 = vshrl.u32 %v2432_v45, %v2448_v48  ;;  %v2453_v47 = vadd.s32 127, %v2452_v46  ;;  %v2600_v28 = vshrl.u32 %v13733_v19, %v13762_v26  ;;  %v2592_v8 = vor.u32 8388608, %v11214_v23 }
 0x297   : > { %v2539_v9 = vsel %vm2537_vm10, %v2538_v2, %v11198_v15  ;;  %v2603_v55 = vor.u32 %v2602_v20, %v2601_v32  ;;  %v2605_v16 = vshrl.u32 %v13734_v34, %v13762_v26  ;;  %v2604_v17 = vshll.u32 %v13730_v53, %v13763_v43 }
 0x298   : > { %v2451_v36 = vor.u32 %v2450_v27, %v2449_v61  ;;  %v2454_v31 = vshll.u32 %v2453_v47, 23  ;;  %v2540_v37 = vadd.s32 %v2539_v9, %v2535_v41  ;;  %v11238_v33 = vpop.eup %7989  ;;  %v2608_v50 = vshrl.u32 %v13731_v40, %v13762_v26 }
 0x299   : > { %13764 = vst [vmem:[#allocation8_spill] sm:$0xff] %v11238_v33  ;;  %v2610_v11 = vshll.u32 %v13731_v40, %v13763_v43  ;;  %v2611_v15 = vshrl.u32 %v13732_v44, %v13762_v26  ;;  %v2614_v58 = vshrl.u32 %v13736_v18, %v13762_v26  ;;  %v11248_v62 = vpop.eup %7991  ;;  %v13277_v23 = vxor.u32 2147483648, %v11238_v33 }
 0x29a   : > { %13765 = vst [vmem:[#allocation66_spill] sm:$0xff] %v11248_v62  ;;  %v2455_v20 = vor.u32 4788187, %v2454_v31  ;;  %vm2482_vm2 = vcmp.lt.s32.totalorder %v13758_v57, 0  ;;  %v2541_v45 = vadd.s32 536870912, %v2540_v37  ;;  %v2607_v48 = vshll.u32 %v13734_v34, %v13763_v43 }
 0x29b   : > { %vm3115_vm4 = vcmp.gt.s32.totalorder %v11080_v63, 0  ;;  %v13278_v46 = vxor.u32 2147483648, %v11248_v62  ;;  %v2606_v41 = vor.u32 %v2605_v16, %v2604_v17  ;;  %v2612_v2 = vor.u32 %v2611_v15, %v2610_v11  ;;  %v13766_v17 = vld [vmem:[#allocation32_spill] sm:$0xff] }
 0x29c   : > { %v2613_v26 = vshll.u32 %v13732_v44, %v13763_v43  ;;  %v2373_v32 = vsel %vm2371_vm12, %v13277_v23, %v11248_v62  ;;  %v2456_v61 = vand.u32 2147483647, %v2455_v20  ;;  %v2458_v27 = vcvt.s32.f32 %v2451_v36 }
 0x29d   : > { %v2542_v47 = vshrl.u32 %v2541_v45, 30  ;;  %v2370_v9 = vsel %vm2368_vm9, %v11238_v33, %v13278_v46  ;;  %v2609_v16 = vor.u32 %v2608_v50, %v2607_v48  ;;  %vm2616_vm1 = vcmp.lt.s32.totalorder %v13766_v17, 1 }
 0x29e   : > { %v2615_v31 = vor.u32 %v2614_v58, %v2613_v26  ;;  %v2374_v43 = vsel %vm2367_vm5, %v2370_v9, %v2373_v32  ;;  %v2459_v11 = vmul.f32 %v2458_v27, %v2456_v61  ;;  %vm2619_vm7 = vcmp.lt.s32.totalorder %v13766_v17, 4 }
 0x29f   : > { %v2543_v15 = vshll.u32 %v2542_v47, 30  ;;  %v2375_v36 = vsel %vm2364_vm0, nan, %v2374_v43  ;;  %v2566_v20 = vsub.s32 4, %v2542_v47  ;;  %v2624_v45 = vsel %vm2616_vm1, %v2603_v55, %v2606_v41 }
 0x2a0   : > { %v2625_v50 = vsel %vm2619_vm7, %v2612_v2, 920167782  ;;  %7289 = vmatmul.mubr.msk.f32.gmra.mrb[2].mxu0 %vm5432_vm3, %v2375_v36  ;;  %v2460_v58 = vxor.u32 2147483648, %v2459_v11  ;;  %v11279_v48 = vand.u32 3, %v2469_v0  ;;  %vm2618_vm11 = vcmp.lt.s32.totalorder %v13766_v17, 3 }
 0x2a1   : > { %v11281_v1 = vsub.s32 %v2540_v37, %v2543_v15  ;;  %vm2617_vm8 = vcmp.lt.s32.totalorder %v13766_v17, 2  ;;  %v2620_v26 = vsel %vm2616_vm1, %v2600_v28, %v2603_v55  ;;  %v2621_v32 = vsel %vm2619_vm7, %v2609_v16, 2102212464  ;;  %v13769_v17 = vld [vmem:[#allocation58_spill] sm:$0xff] }
 0x2a2   : > { %v2626_v61 = vsel %vm2618_vm11, %v2609_v16, %v2625_v50  ;;  %v2461_v27 = vsel %vm2378_vm13, %v2460_v58, %v2459_v11  ;;  %v2628_v9 = vsel %vm2616_vm1, %v2606_v41, %v2609_v16  ;;  %v2567_v55 = vsel %vm2482_vm2, %v2566_v20, %v2542_v47 }
 0x2a3   : > { %v2546_v0 = vsub.s32 0, %v11281_v1  ;;  %v2627_v37 = vsel %vm2617_vm8, %v2624_v45, %v2626_v61  ;;  %v2464_v28 = vsel %vm11149_vm14, %v10299_v54, %v2461_v27  ;;  %v2629_v43 = vsel %vm2619_vm7, %v2615_v31, 1326507024 }
 0x2a4   : > { %v2632_v15 = vshll.u32 %v2592_v8, 8  ;;  %7993 = vcosq.f32 %v2464_v28  ;;  %v2622_v36 = vsel %vm2618_vm11, %v2606_v41, %v2621_v32  ;;  %v2630_v16 = vsel %vm2618_vm11, %v2612_v2, %v2629_v43  ;;  %v13771_v43 = vld [vmem:[#allocation70_spill] sm:$0xff] }
 0x2a5   : > { %v6926_v11 = vmin.u32 %v2546_v0, %v11281_v1  ;;  %7995 = vsinq.f32 %v2464_v28  ;;  %v2631_v5 = vsel %vm2617_vm8, %v2628_v9, %v2630_v16  ;;  %v11317_v47 = vsub.s32 32, %v11075_v6  ;;  %v13770_v28 = vld [vmem:[#allocation92_spill] sm:$0xff] }
 0x2a6   : > { %v11312_v45 = vmul.u32.u64.low %v2632_v15, %v2627_v37  ;;  %v11313_v50 = vmul.u32.u64.high %v2632_v15, %v2627_v37, %v11312_v45  ;;  %v11322_v8 = vsel %vm3115_vm4, %v11080_v63, 0  ;;  %vm11326_vm13 = vcmp.le.f32.partialorder %v2480_v39, 0.7853982 }
 0x2a7   : > { %v2548_v2 = vclz %v6926_v11  ;;  %v11332_v31 = vsel %vm11326_vm13, 0, %v2567_v55  ;;  %v2623_v20 = vsel %vm2617_vm8, %v2620_v26, %v2622_v36  ;;  %v11340_v63 = vadd.s32 1, %v11086_v38 }
 0x2a8   : > { %v11336_v58 = vmul.u32.u64.low %v2632_v15, %v2631_v5  ;;  %v11337_v32 = vmul.u32.u64.high %v2632_v15, %v2631_v5, %v11336_v58  ;;  %v11343_v61 = vadd.s32 4294967169, %v11204_v13  ;;  %vm2472_vm14 = vcmp.eq.s32.totalorder %v11279_v48, 0 }
 0x2a9   : > { %v6927_v27 = vadd.s32 4294967294, %v2548_v2  ;;  %vm2475_vm6 = vcmp.eq.s32.totalorder %v11279_v48, 2  ;;  %v2642_v0 = vadd.s32 1, %v11313_v50  ;;  %v13281_v26 = vand.u32 2147483647, %v13769_v17 }
 0x2aa   : > { %vm2471_vm12 = vcmp.lt.s32.totalorder %v11279_v48, 2  ;;  %v2536_v38 = vadd.s32 %v11197_v4, %v11191_v56  ;;  %v2573_v13 = vadd.s32 3, %v11332_v31  ;;  %v2639_v37 = vmul.u32 %v2632_v15, %v2623_v20 }
 0x2ab   : > { %vm6928_vm9 = vcmp.lt.s32.totalorder %v6927_v27, 0  ;;  %vm13348_vm5 = vweird.f32 %v10299_v54  ;;  %vm2641_vm10 = vc.u32 %v11337_v32, %v11312_v45  ;;  %v2705_v55 = vshll.u32 %v13733_v19, %v13770_v28 }
 0x2ac   : > { %v2551_v9 = vsel %vm6928_vm9, 0, %v6927_v27  ;;  %v2706_v11 = vshrl.u32 %v13730_v53, %v13771_v43  ;;  %v2643_v56 = vsel %vm2641_vm10, %v2642_v0, %v11313_v50  ;;  %v2709_v4 = vshrl.u32 %v13734_v34, %v13771_v43 }
 0x2ad   : > { %v2552_v36 = vsub.s32 32, %v2551_v9  ;;  %v2556_v16 = vsub.s32 4294967266, %v2551_v9  ;;  %v2644_v15 = vadd.s32 %v2643_v56, %v2639_v37  ;;  %v2695_v5 = vand.u32 8388607, %v13281_v26 }
 0x2ae   : > { %v2708_v2 = vshll.u32 %v13730_v53, %v13770_v28  ;;  %v2711_v20 = vshll.u32 %v13734_v34, %v13770_v28  ;;  %v11370_v58 = vpop.eup %7993  ;;  %v2553_v27 = vshll.u32 %v11281_v1, %v2551_v9  ;;  %vm2586_vm4 = vcmp.lt.s32.totalorder %v13761_v60, 0 }
 0x2af   : > { %13772 = vst [vmem:[#allocation73_spill] sm:$0xff] %v11370_v58  ;;  %v2554_v23 = vshrl.u32 %v2536_v38, %v2552_v36  ;;  %v2557_v46 = vadd.s32 127, %v2556_v16  ;;  %v2712_v50 = vshrl.u32 %v13731_v40, %v13771_v43  ;;  %v11376_v0 = vpop.eup %7995  ;;  %v13282_v37 = vxor.u32 2147483648, %v11370_v58 }
 0x2b0   : > { %13773 = vst [vmem:[#allocation20_spill] sm:$0xff] %v11376_v0  ;;  %v2645_v56 = vadd.s32 536870912, %v2644_v15  ;;  %v2707_v29 = vor.u32 %v2706_v11, %v2705_v55  ;;  %v2715_v14 = vshrl.u32 %v13732_v44, %v13771_v43  ;;  %v13284_v26 = vxor.u32 2147483648, %v11376_v0 }
 0x2b1   : > { %v2555_v39 = vor.u32 %v2554_v23, %v2553_v27  ;;  %v2558_v1 = vshll.u32 %v2557_v46, 23  ;;  %v2710_v38 = vor.u32 %v2709_v4, %v2708_v2  ;;  %v2477_v9 = vsel %vm2475_vm6, %v13282_v37, %v11376_v0 }
 0x2b2   : > { %v2646_v36 = vshrl.u32 %v2645_v56, 30  ;;  %v2714_v16 = vshll.u32 %v13731_v40, %v13770_v28  ;;  %v2718_v55 = vshrl.u32 %v13736_v18, %v13771_v43  ;;  %v2474_v23 = vsel %vm2472_vm14, %v11370_v58, %v13284_v26 }
 0x2b3   : > { %v2559_v46 = vor.u32 4788187, %v2558_v1  ;;  %vm11398_vm1 = vcmp.le.f32.partialorder %v2584_v52, 0.7853982  ;;  %v2713_v4 = vor.u32 %v2712_v50, %v2711_v20  ;;  %v2717_v2 = vshll.u32 %v13732_v44, %v13770_v28 }
 0x2b4   : > { %vm3323_vm7 = vcmp.gt.s32.totalorder %v11340_v63, 0  ;;  %v2478_v27 = vsel %vm2471_vm12, %v2474_v23, %v2477_v9  ;;  %v2647_v56 = vshll.u32 %v2646_v36, 30  ;;  %v2670_v37 = vsub.s32 4, %v2646_v36  ;;  %v13776_v23 = vld [vmem:[#allocation6_spill] sm:$0xff] }
 0x2b5   : > { %v2716_v35 = vor.u32 %v2715_v14, %v2714_v16  ;;  %v2479_v1 = vsel %vm13348_vm5, nan, %v2478_v27  ;;  %v2560_v26 = vand.u32 2147483647, %v2559_v46  ;;  %v2562_v52 = vcvt.s32.f32 %v2555_v39 }
 0x2b6   : > { %v2719_v30 = vor.u32 %v2718_v55, %v2717_v2  ;;  %7291 = vmatprep.mubr.msk.f32.mxu0 %vm5432_vm3, %v2479_v1  ;;  %v11410_v20 = vand.u32 3, %v2573_v13  ;;  %v11412_v50 = vsub.s32 %v2644_v15, %v2647_v56  ;;  %v2696_v28 = vor.u32 8388608, %v2695_v5 }
 0x2b7   : > { %v2704_v48 = vshrl.u32 %v13733_v19, %v13771_v43  ;;  %v2563_v9 = vmul.f32 %v2562_v52, %v2560_v26  ;;  %vm2720_vm11 = vcmp.lt.s32.totalorder %v13776_v23, 1  ;;  %vm2722_vm8 = vcmp.lt.s32.totalorder %v13776_v23, 3 }
 0x2b8   : > { %vm2723_vm14 = vcmp.lt.s32.totalorder %v13776_v23, 4  ;;  %v2650_v14 = vsub.s32 0, %v11412_v50  ;;  %v2671_v39 = vsel %vm2586_vm4, %v2670_v37, %v2646_v36  ;;  %v2728_v13 = vsel %vm2720_vm11, %v2707_v29, %v2710_v38 }
 0x2b9   : > { %v2729_v15 = vsel %vm2723_vm14, %v2716_v35, 920167782  ;;  %v2564_v5 = vxor.u32 2147483648, %v2563_v9  ;;  %v2732_v26 = vsel %vm2720_vm11, %v2710_v38, %v2713_v4  ;;  %v2733_v16 = vsel %vm2723_vm14, %v2719_v30, 1326507024 }
 0x2ba   : > { %v2730_v43 = vsel %vm2722_vm8, %v2713_v4, %v2729_v15  ;;  %v6930_v55 = vmin.u32 %v2650_v14, %v11412_v50  ;;  %vm2721_vm6 = vcmp.lt.s32.totalorder %v13776_v23, 2  ;;  %v2725_v46 = vsel %vm2723_vm14, %v2713_v4, 2102212464  ;;  %v13780_v23 = vld [vmem:[#allocation87_spill] sm:$0xff] }
 0x2bb   : > { %v2734_v37 = vsel %vm2722_vm8, %v2716_v35, %v2733_v16  ;;  %v2565_v36 = vsel %vm2482_vm2, %v2564_v5, %v2563_v9  ;;  %v2731_v2 = vsel %vm2721_vm6, %v2728_v13, %v2730_v43  ;;  %v2736_v56 = vshll.u32 %v2696_v28, 8 }
 0x2bc   : > { %v2735_v27 = vsel %vm2721_vm6, %v2732_v26, %v2734_v37  ;;  %v2568_v30 = vsel %vm11326_vm13, %v13758_v57, %v2565_v36  ;;  %v2652_v1 = vclz %v6930_v55  ;;  %v11443_v4 = vsel %vm11398_vm1, 0, %v2671_v39 }
 0x2bd   : > { %13777 = vst [vmem:[#allocation52_spill] sm:$0xff] %v11443_v4  ;;  %v2724_v35 = vsel %vm2720_vm11, %v2704_v48, %v2707_v29  ;;  %7997 = vcosq.f32 %v2568_v30  ;;  %v2726_v52 = vsel %vm2722_vm8, %v2710_v38, %v2725_v46  ;;  %v11457_v15 = vshrl.u32 %v11322_v8, 5  ;;  %v13778_v38 = vld [vmem:[#allocation63_spill] sm:$0xff] }
 0x2be   : > { %v11449_v9 = vmul.u32.u64.low %v2736_v56, %v2735_v27  ;;  %v11450_v14 = vmul.u32.u64.high %v2736_v56, %v2735_v27, %v11449_v9  ;;  %7999 = vsinq.f32 %v2568_v30  ;;  %v6931_v28 = vadd.s32 4294967294, %v2652_v1 }
 0x2bf   : > { %v11452_v13 = vmul.u32.u64.low %v2736_v56, %v2731_v2  ;;  %v11453_v41 = vmul.u32.u64.high %v2736_v56, %v2731_v2, %v11452_v13  ;;  %v11460_v39 = vand.u32 31, %v11322_v8  ;;  %v11465_v29 = vsel %vm3323_vm7, %v11340_v63, 0  ;;  %v13781_v2 = vld [vmem:[#allocation89_spill] sm:$0xff] }
 0x2c0   : > { %v13285_v48 = vand.u32 2147483647, %v13778_v38  ;;  %v11469_v5 = vadd.s32 1, %v11343_v61  ;;  %v13779_v43 = vshll.u32 %v11207_v3, 30  ;;  %vm6932_vm2 = vcmp.lt.s32.totalorder %v6931_v28, 0 }
 0x2c1   : > { %v2727_v8 = vsel %vm2721_vm6, %v2724_v35, %v2726_v52  ;;  %vm2579_vm13 = vcmp.eq.s32.totalorder %v11410_v20, 2  ;;  %v2640_v63 = vadd.s32 %v11312_v45, %v11337_v32  ;;  %v2655_v16 = vsel %vm6932_vm2, 0, %v6931_v28 }
 0x2c2   : > { %v11474_v26 = vsub.s32 %v11060_v59, %v13779_v43  ;;  %v11482_v55 = vadd.s32 3, %v11443_v4  ;;  %vm2745_vm12 = vc.u32 %v11450_v14, %v11452_v13  ;;  %vm2576_vm9 = vcmp.eq.s32.totalorder %v11410_v20, 0 }
 0x2c3   : > { %v2656_v59 = vsub.s32 32, %v2655_v16  ;;  %v2660_v61 = vsub.s32 4294967266, %v2655_v16  ;;  %v2746_v46 = vadd.s32 1, %v11453_v41  ;;  %v2810_v37 = vshrl.u32 %v13730_v53, %v13780_v23 }
 0x2c4   : > { %vm2575_vm10 = vcmp.lt.s32.totalorder %v11410_v20, 2  ;;  %v2657_v45 = vshll.u32 %v11412_v50, %v2655_v16  ;;  %v2743_v32 = vmul.u32 %v2736_v56, %v2727_v8  ;;  %v2799_v36 = vand.u32 8388607, %v13285_v48 }
 0x2c5   : > { %v2809_v27 = vshll.u32 %v13733_v19, %v13781_v2  ;;  %vm13347_vm7 = vweird.f32 %v13758_v57  ;;  %v2658_v30 = vshrl.u32 %v2640_v63, %v2656_v59  ;;  %v2661_v1 = vadd.s32 127, %v2660_v61 }
 0x2c6   : > { %v2747_v35 = vsel %vm2745_vm12, %v2746_v46, %v11453_v41  ;;  %v2813_v52 = vshrl.u32 %v13734_v34, %v13780_v23  ;;  %v2808_v50 = vshrl.u32 %v13733_v19, %v13780_v23  ;;  %v2812_v56 = vshll.u32 %v13730_v53, %v13781_v2 }
 0x2c7   : > { %v2748_v9 = vadd.s32 %v2747_v35, %v2743_v32  ;;  %v2816_v28 = vshrl.u32 %v13731_v40, %v13780_v23  ;;  %v2659_v43 = vor.u32 %v2658_v30, %v2657_v45  ;;  %v2662_v8 = vshll.u32 %v2661_v1, 23  ;;  %v11508_v41 = vpop.eup %7997 }
 0x2c8   : > { %v2811_v16 = vor.u32 %v2810_v37, %v2809_v27  ;;  %v2819_v63 = vshrl.u32 %v13732_v44, %v13780_v23  ;;  %13782 = vst [vmem:[#allocation50_spill] sm:$0xff] %v11508_v41  ;;  %v2800_v61 = vor.u32 8388608, %v2799_v36  ;;  %v2815_v46 = vshll.u32 %v13734_v34, %v13781_v2  ;;  %v11514_v35 = vpop.eup %7999 }
 0x2c9   : > { %v2749_v59 = vadd.s32 536870912, %v2748_v9  ;;  %v2822_v32 = vshrl.u32 %v13736_v18, %v13780_v23  ;;  %13783 = vst [vmem:[#allocation10_spill] sm:$0xff] %v11514_v35  ;;  %v13288_v48 = vxor.u32 2147483648, %v11508_v41  ;;  %v2663_v45 = vor.u32 4788187, %v2662_v8 }
 0x2ca   : > { %v2814_v30 = vor.u32 %v2813_v52, %v2812_v56  ;;  %v2818_v37 = vshll.u32 %v13731_v40, %v13781_v2  ;;  %v13289_v27 = vxor.u32 2147483648, %v11514_v35  ;;  %v2817_v54 = vor.u32 %v2816_v28, %v2815_v46 }
 0x2cb   : > { %v2750_v1 = vshrl.u32 %v2749_v59, 30  ;;  %v2821_v36 = vshll.u32 %v13732_v44, %v13781_v2  ;;  %vm3427_vm11 = vcmp.gt.s32.totalorder %v11469_v5, 0  ;;  %v2581_v23 = vsel %vm2579_vm13, %v13288_v48, %v11514_v35  ;;  %v13784_v2 = vld [vmem:[#allocation65_spill] sm:$0xff] }
 0x2cc   : > { %v2664_v8 = vand.u32 2147483647, %v2663_v45  ;;  %v2666_v52 = vcvt.s32.f32 %v2659_v43  ;;  %v2820_v56 = vor.u32 %v2819_v63, %v2818_v37  ;;  %v2578_v28 = vsel %vm2576_vm9, %v11508_v41, %v13289_v27 }
 0x2cd   : > { %v2751_v59 = vshll.u32 %v2750_v1, 30  ;;  %v2823_v46 = vor.u32 %v2822_v32, %v2821_v36  ;;  %vm2824_vm8 = vcmp.lt.s32.totalorder %v13784_v2, 1  ;;  %v2582_v49 = vsel %vm2575_vm10, %v2578_v28, %v2581_v23 }
 0x2ce   : > { %v2667_v10 = vmul.f32 %v2666_v52, %v2664_v8  ;;  %vm2825_vm14 = vcmp.lt.s32.totalorder %v13784_v2, 2  ;;  %vm2826_vm6 = vcmp.lt.s32.totalorder %v13784_v2, 3  ;;  %v2583_v43 = vsel %vm13347_vm7, nan, %v2582_v49 }
 0x2cf   : > { %v11540_v63 = vsub.s32 %v2748_v9, %v2751_v59  ;;  %vm2827_vm2 = vcmp.lt.s32.totalorder %v13784_v2, 4  ;;  %v2832_v32 = vsel %vm2824_vm8, %v2811_v16, %v2814_v30  ;;  %7292 = vmatmul.mubr.msk.f32.gmra.mrb[4].mxu0 %vm5432_vm3, %v2583_v43  ;;  %v2774_v20 = vsub.s32 4, %v2750_v1 }
 0x2d0   : > { %v2668_v45 = vxor.u32 2147483648, %v2667_v10  ;;  %v2829_v37 = vsel %vm2827_vm2, %v2817_v54, 2102212464  ;;  %v2833_v36 = vsel %vm2827_vm2, %v2820_v56, 920167782  ;;  %v2828_v8 = vsel %vm2824_vm8, %v2808_v50, %v2811_v16 }
 0x2d1   : > { %v2754_v23 = vsub.s32 0, %v11540_v63  ;;  %v2834_v49 = vsel %vm2826_vm6, %v2817_v54, %v2833_v36  ;;  %v2836_v9 = vsel %vm2824_vm8, %v2814_v30, %v2817_v54  ;;  %v2837_v59 = vsel %vm2827_vm2, %v2823_v46, 1326507024 }
 0x2d2   : > { %v2669_v52 = vsel %vm2586_vm4, %v2668_v45, %v2667_v10  ;;  %v2835_v28 = vsel %vm2825_vm14, %v2832_v32, %v2834_v49  ;;  %v2840_v43 = vshll.u32 %v2800_v61, 8  ;;  %v2830_v16 = vsel %vm2826_vm6, %v2814_v30, %v2829_v37 }
 0x2d3   : > { %v2672_v48 = vsel %vm11398_vm1, %v13761_v60, %v2669_v52  ;;  %v6934_v50 = vmin.u32 %v2754_v23, %v11540_v63  ;;  %v2838_v54 = vsel %vm2826_vm6, %v2820_v56, %v2837_v59  ;;  %v11572_v11 = vand.u32 3, %v11482_v55  ;;  %v13788_v52 = vld [vmem:[#allocation72_spill] sm:$0xff] }
 0x2d4   : > { %8001 = vcosq.f32 %v2672_v48  ;;  %v2839_v10 = vsel %vm2825_vm14, %v2836_v9, %v2838_v54  ;;  %v11567_v45 = vmul.u32.u64.low %v2840_v43, %v2835_v28  ;;  %v11568_v32 = vmul.u32.u64.high %v2840_v43, %v2835_v28, %v11567_v45 }
 0x2d5   : > { %8003 = vsinq.f32 %v2672_v48  ;;  %vm2690_vm4 = vcmp.lt.s32.totalorder %v13769_v17, 0  ;;  %v2756_v61 = vclz %v6934_v50  ;;  %v11576_v30 = vsub.s32 32, %v11460_v39 }
 0x2d6   : > { %v2775_v56 = vsel %vm2690_vm4, %v2774_v20, %v2750_v1  ;;  %v11580_v46 = vmul.u32.u64.low %v2840_v43, %v2839_v10  ;;  %v11581_v37 = vmul.u32.u64.high %v2840_v43, %v2839_v10, %v11580_v46  ;;  %v11584_v36 = vand.u32 31, %v11465_v29 }
 0x2d7   : > { %v11589_v48 = vsel %vm3427_vm11, %v11469_v5, 0  ;;  %v6935_v55 = vadd.s32 4294967294, %v2756_v61  ;;  %v2831_v23 = vsel %vm2825_vm14, %v2828_v8, %v2830_v16  ;;  %v13785_v9 = vand.u32 2147483647, %v13769_v17 }
 0x2d8   : > { %v2850_v20 = vadd.s32 1, %v11568_v32  ;;  %v13290_v28 = vand.u32 2147483647, %v13788_v52  ;;  %vm2680_vm13 = vcmp.eq.s32.totalorder %v11572_v11, 0  ;;  %vm2683_vm12 = vcmp.eq.s32.totalorder %v11572_v11, 2 }
 0x2d9   : > { %vm11596_vm1 = vcmp.le.f32.partialorder %v13785_v9, 0.7853982  ;;  %vm6936_vm9 = vcmp.lt.s32.totalorder %v6935_v55, 0  ;;  %vm2679_vm10 = vcmp.lt.s32.totalorder %v11572_v11, 2  ;;  %v2847_v8 = vmul.u32 %v2840_v43, %v2831_v23 }
 0x2da   : > { %v11606_v5 = vsel %vm11596_vm1, 0, %v2775_v56  ;;  %v2759_v2 = vsel %vm6936_vm9, 0, %v6935_v55  ;;  %vm2849_vm11 = vc.u32 %v11581_v37, %v11567_v45  ;;  %v2914_v59 = vshrl.u32 %v13730_v53, %v11317_v47 }
 0x2db   : > { %13789 = vst [vmem:[#allocation22_spill] sm:$0xff] %v11606_v5  ;;  %vm13346_vm8 = vweird.f32 %v13761_v60  ;;  %v2744_v50 = vadd.s32 %v11452_v13, %v11450_v14  ;;  %v2760_v16 = vsub.s32 32, %v2759_v2  ;;  %v2764_v54 = vsub.s32 4294967266, %v2759_v2 }
 0x2dc   : > { %v2851_v10 = vsel %vm2849_vm11, %v2850_v20, %v11568_v32  ;;  %v2781_v61 = vadd.s32 3, %v11606_v5  ;;  %v11620_v43 = vand.u32 8388607, %v13290_v28  ;;  %v2913_v46 = vshll.u32 %v13733_v19, %v11075_v6 }
 0x2dd   : > { %v2852_v56 = vadd.s32 %v2851_v10, %v2847_v8  ;;  %v2761_v55 = vshll.u32 %v11540_v63, %v2759_v2  ;;  %v2762_v23 = vshrl.u32 %v2744_v50, %v2760_v16  ;;  %v2765_v9 = vadd.s32 127, %v2764_v54 }
 0x2de   : > { %v2917_v14 = vshrl.u32 %v13734_v34, %v11317_v47  ;;  %v11627_v13 = vpop.eup %8001  ;;  %v2915_v20 = vor.u32 %v2914_v59, %v2913_v46  ;;  %v2916_v8 = vshll.u32 %v13730_v53, %v11075_v6  ;;  %v2920_v10 = vshrl.u32 %v13731_v40, %v11317_v47 }
 0x2df   : > { %13790 = vst [vmem:[#allocation55_spill] sm:$0xff] %v11627_v13  ;;  %v2853_v32 = vadd.s32 536870912, %v2852_v56  ;;  %v11633_v27 = vpop.eup %8003  ;;  %v13297_v28 = vxor.u32 2147483648, %v11627_v13  ;;  %v2763_v63 = vor.u32 %v2762_v23, %v2761_v55  ;;  %v2766_v2 = vshll.u32 %v2765_v9, 23 }
 0x2e0   : > { %13791 = vst [vmem:[#allocation56_spill] sm:$0xff] %v11633_v27  ;;  %v2923_v50 = vshrl.u32 %v13732_v44, %v11317_v47  ;;  %v13301_v16 = vxor.u32 2147483648, %v11633_v27  ;;  %vm2794_vm14 = vcmp.lt.s32.totalorder %v13778_v38, 0  ;;  %v2919_v54 = vshll.u32 %v13734_v34, %v11075_v6 }
 0x2e1   : > { %v2854_v59 = vshrl.u32 %v2853_v32, 30  ;;  %v2926_v46 = vshrl.u32 %v13736_v18, %v11317_v47  ;;  %v2685_v55 = vsel %vm2683_vm12, %v13297_v28, %v11633_v27  ;;  %v2767_v23 = vor.u32 4788187, %v2766_v2 }
 0x2e2   : > { %v2918_v9 = vor.u32 %v2917_v14, %v2916_v8  ;;  %v2922_v49 = vshll.u32 %v13731_v40, %v11075_v6  ;;  %v2682_v32 = vsel %vm2680_vm13, %v11627_v13, %v13301_v16  ;;  %v2921_v5 = vor.u32 %v2920_v10, %v2919_v54 }
 0x2e3   : > { %v2855_v57 = vshll.u32 %v2854_v59, 30  ;;  %v2925_v41 = vshll.u32 %v13732_v44, %v11075_v6  ;;  %v2686_v35 = vsel %vm2679_vm10, %v2682_v32, %v2685_v55  ;;  %v2768_v28 = vand.u32 2147483647, %v2767_v23 }
 0x2e4   : > { %v2770_v2 = vcvt.s32.f32 %v2763_v63  ;;  %v2924_v14 = vor.u32 %v2923_v50, %v2922_v49  ;;  %v2687_v8 = vsel %vm13346_vm8, nan, %v2686_v35  ;;  %v11662_v4 = vand.u32 3, %v2781_v61  ;;  %v13795_v63 = vld [vmem:[#allocation47_spill] sm:$0xff] }
 0x2e5   : > { %v13792_v27 = vand.u32 2147483647, %v13778_v38  ;;  %v11670_v10 = vsub.s32 %v2852_v56, %v2855_v57  ;;  %v2927_v6 = vor.u32 %v2926_v46, %v2925_v41  ;;  %7294 = vmatprep.mubr.msk.f32.mxu0 %vm5432_vm3, %v2687_v8  ;;  %v2878_v54 = vsub.s32 4, %v2854_v59 }
 0x2e6   : > { %v2771_v11 = vmul.f32 %v2770_v2, %v2768_v28  ;;  %v2904_v49 = vor.u32 8388608, %v11620_v43  ;;  %v2912_v35 = vshrl.u32 %v13733_v19, %v11317_v47  ;;  %vm2928_vm2 = vcmp.lt.s32.totalorder %v13795_v63, 1 }
 0x2e7   : > { %vm11666_vm6 = vcmp.le.f32.partialorder %v13792_v27, 0.7853982  ;;  %v2858_v61 = vsub.s32 0, %v11670_v10  ;;  %vm2930_vm13 = vcmp.lt.s32.totalorder %v13795_v63, 3  ;;  %vm2931_vm12 = vcmp.lt.s32.totalorder %v13795_v63, 4 }
 0x2e8   : > { %v2772_v57 = vxor.u32 2147483648, %v2771_v11  ;;  %v2933_v27 = vsel %vm2931_vm12, %v2921_v5, 2102212464  ;;  %v2936_v41 = vsel %vm2928_vm2, %v2915_v20, %v2918_v9  ;;  %v2937_v28 = vsel %vm2931_vm12, %v2924_v14, 920167782 }
 0x2e9   : > { %v6938_v56 = vmin.u32 %v2858_v61, %v11670_v10  ;;  %v2938_v43 = vsel %vm2930_vm13, %v2921_v5, %v2937_v28  ;;  %v2940_v47 = vsel %vm2928_vm2, %v2918_v9, %v2921_v5  ;;  %v2941_v50 = vsel %vm2931_vm12, %v2927_v6, 1326507024 }
 0x2ea   : > { %v2773_v46 = vsel %vm2690_vm4, %v2772_v57, %v2771_v11  ;;  %v2879_v55 = vsel %vm2794_vm14, %v2878_v54, %v2854_v59  ;;  %vm2929_vm9 = vcmp.lt.s32.totalorder %v13795_v63, 2  ;;  %v2942_v23 = vsel %vm2930_vm13, %v2924_v14, %v2941_v50 }
 0x2eb   : > { %v2776_v32 = vsel %vm11596_vm1, %v13769_v17, %v2773_v46  ;;  %v2860_v2 = vclz %v6938_v56  ;;  %v2939_v5 = vsel %vm2929_vm9, %v2936_v41, %v2938_v43  ;;  %v2944_v8 = vshll.u32 %v2904_v49, 8 }
 0x2ec   : > { %8005 = vcosq.f32 %v2776_v32  ;;  %v2932_v6 = vsel %vm2928_vm2, %v2912_v35, %v2915_v20  ;;  %v2934_v59 = vsel %vm2930_vm13, %v2918_v9, %v2933_v27  ;;  %v2943_v11 = vsel %vm2929_vm9, %v2940_v47, %v2942_v23  ;;  %v13797_v20 = vld [vmem:[#allocation34_spill] sm:$0xff] }
 0x2ed   : > { %8007 = vsinq.f32 %v2776_v32  ;;  %v6939_v14 = vadd.s32 4294967294, %v2860_v2  ;;  %v11705_v54 = vmul.u32.u64.low %v2944_v8, %v2943_v11  ;;  %v11706_v1 = vmul.u32.u64.high %v2944_v8, %v2943_v11, %v11705_v54  ;;  %v13799_v47 = vld [vmem:[#allocation42_spill] sm:$0xff] }
 0x2ee   : > { %v11710_v61 = vsel %vm11666_vm6, 0, %v2879_v55  ;;  %v11712_v49 = vmul.u32.u64.low %v2944_v8, %v2939_v5  ;;  %v11713_v57 = vmul.u32.u64.high %v2944_v8, %v2939_v5, %v11712_v49  ;;  %v13302_v35 = vand.u32 2147483647, %v13797_v20  ;;  %v13800_v5 = vld [vmem:[#allocation76_spill] sm:$0xff] }
 0x2ef   : > { %13796 = vst [vmem:[#allocation54_spill] sm:$0xff] %v11710_v61  ;;  %v11718_v9 = vand.u32 31, %v11589_v48  ;;  %v13798_v27 = vsub.s32 0, %v11474_v26  ;;  %vm6940_vm4 = vcmp.lt.s32.totalorder %v6939_v14, 0  ;;  %v2935_v28 = vsel %vm2929_vm9, %v2932_v6, %v2934_v59 }
 0x2f0   : > { %vm2787_vm1 = vcmp.eq.s32.totalorder %v11662_v4, 2  ;;  %v2863_v56 = vsel %vm6940_vm4, 0, %v6939_v14  ;;  %v11730_v43 = vand.u32 8388607, %v13302_v35  ;;  %v3018_v50 = vshrl.u32 %v13730_v53, %v13799_v47 }
 0x2f1   : > { %v11723_v41 = vmin.u32 %v13798_v27, %v11474_v26  ;;  %vm2784_vm10 = vcmp.eq.s32.totalorder %v11662_v4, 0  ;;  %v2848_v46 = vadd.s32 %v11567_v45, %v11581_v37  ;;  %v2864_v55 = vsub.s32 32, %v2863_v56 }
 0x2f2   : > { %v2868_v23 = vsub.s32 4294967266, %v2863_v56  ;;  %v2885_v63 = vadd.s32 3, %v11710_v61  ;;  %vm2783_vm11 = vcmp.lt.s32.totalorder %v11662_v4, 2  ;;  %v2951_v32 = vmul.u32 %v2944_v8, %v2935_v28 }
 0x2f3   : > { %vm2953_vm2 = vc.u32 %v11706_v1, %v11712_v49  ;;  %v2954_v2 = vadd.s32 1, %v11713_v57  ;;  %v3017_v6 = vshll.u32 %v13733_v19, %v13800_v5  ;;  %vm13336_vm13 = vweird.f32 %v13769_v17 }
 0x2f4   : > { %v2865_v59 = vshll.u32 %v11670_v10, %v2863_v56  ;;  %v2866_v45 = vshrl.u32 %v2848_v46, %v2864_v55  ;;  %v2869_v37 = vadd.s32 127, %v2868_v23  ;;  %v3016_v11 = vshrl.u32 %v13733_v19, %v13799_v47 }
 0x2f5   : > { %v2955_v14 = vsel %vm2953_vm2, %v2954_v2, %v11713_v57  ;;  %v3008_v8 = vor.u32 8388608, %v11730_v43  ;;  %v3019_v54 = vor.u32 %v3018_v50, %v3017_v6  ;;  %v3021_v27 = vshrl.u32 %v13734_v34, %v13799_v47 }
 0x2f6   : > { %v2867_v28 = vor.u32 %v2866_v45, %v2865_v59  ;;  %v2870_v35 = vshll.u32 %v2869_v37, 23  ;;  %v2956_v60 = vadd.s32 %v2955_v14, %v2951_v32  ;;  %v3020_v61 = vshll.u32 %v13730_v53, %v13800_v5  ;;  %v11754_v10 = vpop.eup %8005 }
 0x2f7   : > { %13801 = vst [vmem:[#allocation12_spill] sm:$0xff] %v11754_v10  ;;  %v3024_v56 = vshrl.u32 %v13731_v40, %v13799_v47  ;;  %v3026_v57 = vshll.u32 %v13731_v40, %v13800_v5  ;;  %v3027_v43 = vshrl.u32 %v13732_v44, %v13799_v47  ;;  %v3030_v50 = vshrl.u32 %v13736_v18, %v13799_v47  ;;  %v11764_v46 = vpop.eup %8007 }
 0x2f8   : > { %13802 = vst [vmem:[#allocation23_spill] sm:$0xff] %v11764_v46  ;;  %v13311_v55 = vxor.u32 2147483648, %v11754_v10  ;;  %v2871_v23 = vor.u32 4788187, %v2870_v35  ;;  %vm2898_vm12 = vcmp.lt.s32.totalorder %v13788_v52, 0  ;;  %v2957_v32 = vadd.s32 536870912, %v2956_v60 }
 0x2f9   : > { %v3023_v2 = vshll.u32 %v13734_v34, %v13800_v5  ;;  %v13312_v6 = vxor.u32 2147483648, %v11764_v46  ;;  %v3022_v59 = vor.u32 %v3021_v27, %v3020_v61  ;;  %v3028_v45 = vor.u32 %v3027_v43, %v3026_v57  ;;  %v13803_v57 = vld [vmem:[#allocation68_spill] sm:$0xff] }
 0x2fa   : > { %v3029_v37 = vshll.u32 %v13732_v44, %v13800_v5  ;;  %v2789_v47 = vsel %vm2787_vm1, %v13311_v55, %v11764_v46  ;;  %v2872_v35 = vand.u32 2147483647, %v2871_v23  ;;  %v2874_v14 = vcvt.s32.f32 %v2867_v28 }
 0x2fb   : > { %v2958_v13 = vshrl.u32 %v2957_v32, 30  ;;  %v2786_v58 = vsel %vm2784_vm10, %v11754_v10, %v13312_v6  ;;  %v3025_v61 = vor.u32 %v3024_v56, %v3023_v2  ;;  %vm3032_vm9 = vcmp.lt.s32.totalorder %v13803_v57, 1 }
 0x2fc   : > { %v3031_v27 = vor.u32 %v3030_v50, %v3029_v37  ;;  %v2790_v5 = vsel %vm2783_vm11, %v2786_v58, %v2789_v47  ;;  %v2875_v43 = vmul.f32 %v2874_v14, %v2872_v35  ;;  %vm3035_vm4 = vcmp.lt.s32.totalorder %v13803_v57, 4 }
 0x2fd   : > { %v2959_v0 = vshll.u32 %v2958_v13, 30  ;;  %v2791_v28 = vsel %vm13336_vm13, nan, %v2790_v5  ;;  %v2982_v23 = vsub.s32 4, %v2958_v13  ;;  %v3040_v32 = vsel %vm3032_vm9, %v3019_v54, %v3022_v59 }
 0x2fe   : > { %v3041_v56 = vsel %vm3035_vm4, %v3028_v45, 920167782  ;;  %7295 = vmatmul.mubr.msk.f32.gmra.mrb[6].mxu0 %vm5432_vm3, %v2791_v28  ;;  %v2876_v50 = vxor.u32 2147483648, %v2875_v43  ;;  %v11794_v2 = vand.u32 3, %v2885_v63  ;;  %vm3034_vm1 = vcmp.lt.s32.totalorder %v13803_v57, 3 }
 0x2ff   : > { %v11796_v58 = vsub.s32 %v2956_v60, %v2959_v0  ;;  %vm3033_vm10 = vcmp.lt.s32.totalorder %v13803_v57, 2  ;;  %v3036_v4 = vsel %vm3032_vm9, %v3016_v11, %v3019_v54  ;;  %v3037_v37 = vsel %vm3035_vm4, %v3025_v61, 2102212464  ;;  %v13808_v57 = vld [vmem:[#allocation51_spill] sm:$0xff] }
 0x300   : > { %v3042_v47 = vsel %vm3034_vm1, %v3025_v61, %v3041_v56  ;;  %v2877_v35 = vsel %vm2794_vm14, %v2876_v50, %v2875_v43  ;;  %v3044_v0 = vsel %vm3032_vm9, %v3022_v59, %v3025_v61  ;;  %v2983_v54 = vsel %vm2898_vm12, %v2982_v23, %v2958_v13 }
 0x301   : > { %v2962_v63 = vsub.s32 0, %v11796_v58  ;;  %v3043_v60 = vsel %vm3033_vm10, %v3040_v32, %v3042_v47  ;;  %v2880_v11 = vsel %vm11666_vm6, %v13778_v38, %v2877_v35  ;;  %v3045_v14 = vsel %vm3035_vm4, %v3031_v27, 1326507024 }
 0x302   : > { %v3048_v5 = vshll.u32 %v3008_v8, 8  ;;  %8009 = vcosq.f32 %v2880_v11  ;;  %v3038_v28 = vsel %vm3034_vm1, %v3022_v59, %v3037_v37  ;;  %v3046_v61 = vsel %vm3034_vm1, %v3028_v45, %v3045_v14 }
 0x303   : > { %v6942_v43 = vmin.u32 %v2962_v63, %v11796_v58  ;;  %8011 = vsinq.f32 %v2880_v11  ;;  %v3047_v16 = vsel %vm3033_vm10, %v3044_v0, %v3046_v61  ;;  %v11832_v13 = vshrl.u32 %v11465_v29, 5 }
 0x304   : > { %v11827_v32 = vmul.u32.u64.low %v3048_v5, %v3043_v60  ;;  %v11828_v56 = vmul.u32.u64.high %v3048_v5, %v3043_v60, %v11827_v32  ;;  %v11835_v8 = vsub.s32 32, %v11584_v36  ;;  %v13804_v27 = vand.u32 2147483647, %v13788_v52 }
 0x305   : > { %v2964_v45 = vclz %v6942_v43  ;;  %v3039_v50 = vsel %vm3033_vm10, %v3036_v4, %v3038_v28  ;;  %v11849_v37 = vmul.u32.u64.low %v3048_v5, %v3047_v16  ;;  %v11850_v29 = vmul.u32.u64.high %v3048_v5, %v3047_v16, %v11849_v37 }
 0x306   : > { %vm11839_vm14 = vcmp.le.f32.partialorder %v13804_v27, 0.7853982  ;;  %v11853_v47 = vshrl.u32 %v11589_v48, 5  ;;  %v11856_v35 = vsub.s32 32, %v11718_v9  ;;  %vm2888_vm6 = vcmp.eq.s32.totalorder %v11794_v2, 0 }
 0x307   : > { %v11845_v23 = vsel %vm11839_vm14, 0, %v2983_v54  ;;  %v6943_v60 = vadd.s32 4294967294, %v2964_v45  ;;  %vm2891_vm11 = vcmp.eq.s32.totalorder %v11794_v2, 2  ;;  %v3058_v0 = vadd.s32 1, %v11828_v56 }
 0x308   : > { %13807 = vst [vmem:[#allocation88_spill] sm:$0xff] %v11845_v23  ;;  %v13313_v4 = vand.u32 2147483647, %v13808_v57  ;;  %vm2887_vm2 = vcmp.lt.s32.totalorder %v11794_v2, 2  ;;  %v2952_v48 = vadd.s32 %v11712_v49, %v11706_v1  ;;  %v2989_v11 = vadd.s32 3, %v11845_v23 }
 0x309   : > { %vm6944_vm9 = vcmp.lt.s32.totalorder %v6943_v60, 0  ;;  %v3055_v54 = vmul.u32 %v3048_v5, %v3039_v50  ;;  %vm13334_vm4 = vweird.f32 %v13778_v38  ;;  %vm3057_vm1 = vc.u32 %v11850_v29, %v11827_v32 }
 0x30a   : > { %v2967_v14 = vsel %vm6944_vm9, 0, %v6943_v60  ;;  %v3121_v43 = vshll.u32 %v13733_v19, %v11460_v39  ;;  %v3122_v28 = vshrl.u32 %v13730_v53, %v11576_v30  ;;  %v3059_v1 = vsel %vm3057_vm1, %v3058_v0, %v11828_v56 }
 0x30b   : > { %v2968_v61 = vsub.s32 32, %v2967_v14  ;;  %v2972_v16 = vsub.s32 4294967266, %v2967_v14  ;;  %v3125_v49 = vshrl.u32 %v13734_v34, %v11576_v30  ;;  %v3060_v5 = vadd.s32 %v3059_v1, %v3055_v54 }
 0x30c   : > { %v3111_v27 = vand.u32 8388607, %v13313_v4  ;;  %v3124_v45 = vshll.u32 %v13730_v53, %v11460_v39  ;;  %v3127_v50 = vshll.u32 %v13734_v34, %v11460_v39  ;;  %v11883_v37 = vpop.eup %8009  ;;  %v2969_v60 = vshll.u32 %v11796_v58, %v2967_v14 }
 0x30d   : > { %13809 = vst [vmem:[#allocation74_spill] sm:$0xff] %v11883_v37  ;;  %v2970_v55 = vshrl.u32 %v2952_v48, %v2968_v61  ;;  %v2973_v6 = vadd.s32 127, %v2972_v16  ;;  %vm3002_vm10 = vcmp.lt.s32.totalorder %v13797_v20, 0  ;;  %v3128_v56 = vshrl.u32 %v13731_v40, %v11576_v30  ;;  %v11889_v0 = vpop.eup %8011 }
 0x30e   : > { %13810 = vst [vmem:[#allocation60_spill] sm:$0xff] %v11889_v0  ;;  %v13316_v54 = vxor.u32 2147483648, %v11883_v37  ;;  %v3061_v1 = vadd.s32 536870912, %v3060_v5  ;;  %v3123_v4 = vor.u32 %v3122_v28, %v3121_v43  ;;  %v3131_v63 = vshrl.u32 %v13732_v44, %v11576_v30 }
 0x30f   : > { %v13321_v17 = vxor.u32 2147483648, %v11889_v0  ;;  %v2971_v23 = vor.u32 %v2970_v55, %v2969_v60  ;;  %v2974_v58 = vshll.u32 %v2973_v6, 23  ;;  %v3126_v48 = vor.u32 %v3125_v49, %v3124_v45 }
 0x310   : > { %v2893_v14 = vsel %vm2891_vm11, %v13316_v54, %v11889_v0  ;;  %v3062_v61 = vshrl.u32 %v3061_v1, 30  ;;  %v3130_v16 = vshll.u32 %v13731_v40, %v11460_v39  ;;  %v3134_v43 = vshrl.u32 %v13736_v18, %v11576_v30 }
 0x311   : > { %v2890_v55 = vsel %vm2888_vm6, %v11883_v37, %v13321_v17  ;;  %v2975_v6 = vor.u32 4788187, %v2974_v58  ;;  %v13811_v28 = vand.u32 2147483647, %v13797_v20  ;;  %v3129_v45 = vor.u32 %v3128_v56, %v3127_v50 }
 0x312   : > { %v3133_v60 = vshll.u32 %v13732_v44, %v11460_v39  ;;  %v2894_v1 = vsel %vm2887_vm2, %v2890_v55, %v2893_v14  ;;  %v3063_v54 = vshll.u32 %v3062_v61, 30  ;;  %v3086_v0 = vsub.s32 4, %v3062_v61 }
 0x313   : > { %vm11911_vm9 = vcmp.le.f32.partialorder %v13811_v28, 0.7853982  ;;  %v3132_v10 = vor.u32 %v3131_v63, %v3130_v16  ;;  %v2895_v17 = vsel %vm13334_vm4, nan, %v2894_v1  ;;  %v2976_v58 = vand.u32 2147483647, %v2975_v6  ;;  %v5427_v1 = vld [vmem:[%s13040_s4 + $0x18] sm:$0xff] }
 0x314   : > { %v2978_v37 = vcvt.s32.f32 %v2971_v23  ;;  %v3135_v46 = vor.u32 %v3134_v43, %v3133_v60  ;;  %7297 = vmatprep.mubr.msk.f32.mxu0 %vm5432_vm3, %v2895_v17  ;;  %v11922_v28 = vand.u32 3, %v2989_v11  ;;  %v11924_v50 = vsub.s32 %v3060_v5, %v3063_v54  ;;  %v5426_v60 = vld [vmem:[%s13040_s4 + $0x10] sm:$0xff] }
 0x315   : > { %v3112_v56 = vor.u32 8388608, %v3111_v27  ;;  %v3120_v39 = vshrl.u32 %v13733_v19, %v11576_v30  ;;  %vm3136_vm6 = vcmp.lt.s32.totalorder %v11457_v15, 1  ;;  %vm3138_vm11 = vcmp.lt.s32.totalorder %v11457_v15, 3 }
 0x316   : > { %v2979_v2 = vmul.f32 %v2978_v37, %v2976_v58  ;;  %vm3139_vm2 = vcmp.lt.s32.totalorder %v11457_v15, 4  ;;  %v3066_v23 = vsub.s32 0, %v11924_v50  ;;  %v3087_v17 = vsel %vm3002_vm10, %v3086_v0, %v3062_v61 }
 0x317   : > { %v3144_v63 = vsel %vm3136_vm6, %v3123_v4, %v3126_v48  ;;  %v3145_v11 = vsel %vm3139_vm2, %v3132_v10, 920167782  ;;  %v3148_v27 = vsel %vm3136_vm6, %v3126_v48, %v3129_v45  ;;  %v3149_v37 = vsel %vm3139_vm2, %v3135_v46, 1326507024 }
 0x318   : > { %v2980_v5 = vxor.u32 2147483648, %v2979_v2  ;;  %v3146_v30 = vsel %vm3138_vm11, %v3129_v45, %v3145_v11  ;;  %v6946_v54 = vmin.u32 %v3066_v23, %v11924_v50  ;;  %vm3137_vm1 = vcmp.lt.s32.totalorder %v11457_v15, 2 }
 0x319   : > { %v3141_v14 = vsel %vm3139_vm2, %v3129_v45, 2102212464  ;;  %v3150_v0 = vsel %vm3138_vm11, %v3132_v10, %v3149_v37  ;;  %v3147_v16 = vsel %vm3137_vm1, %v3144_v63, %v3146_v30  ;;  %v3152_v55 = vshll.u32 %v3112_v56, 8 }
 0x31a   : > { %v2981_v61 = vsel %vm2898_vm12, %v2980_v5, %v2979_v2  ;;  %v3151_v43 = vsel %vm3137_vm1, %v3148_v27, %v3150_v0  ;;  %v3068_v6 = vclz %v6946_v54  ;;  %v11955_v45 = vsel %vm11911_vm9, 0, %v3087_v17 }
 0x31b   : > { %v2984_v46 = vsel %vm11839_vm14, %v13788_v52, %v2981_v61  ;;  %13814 = vst [vmem:[#allocation24_spill] sm:$0xff] %v11955_v45  ;;  %v3140_v10 = vsel %vm3136_vm6, %v3120_v39, %v3123_v4  ;;  %v3142_v59 = vsel %vm3138_vm11, %v3126_v48, %v3141_v14  ;;  %v11976_v4 = vshll.u32 %v13731_v40, %v11718_v9  ;;  %v13816_v61 = vld [vmem:[#allocation62_spill] sm:$0xff] }
 0x31c   : > { %8013 = vcosq.f32 %v2984_v46  ;;  %v11967_v58 = vmul.u32.u64.low %v3152_v55, %v3151_v43  ;;  %v11968_v56 = vmul.u32.u64.high %v3152_v55, %v3151_v43, %v11967_v58  ;;  %v6947_v2 = vadd.s32 4294967294, %v3068_v6 }
 0x31d   : > { %8015 = vsinq.f32 %v2984_v46  ;;  %v11970_v23 = vmul.u32.u64.low %v3152_v55, %v3147_v16  ;;  %v11971_v17 = vmul.u32.u64.high %v3152_v55, %v3147_v16, %v11970_v23  ;;  %v11980_v39 = vshrl.u32 %v13732_v44, %v11856_v35 }
 0x31e   : > { %v3093_v63 = vadd.s32 3, %v11955_v45  ;;  %v7609_v48 = vpack.c.bf16 %v5427_v1, %v5426_v60  ;;  %v11985_v11 = vshrl.u32 %v13736_v18, %v11856_v35  ;;  %v13815_v5 = vclz %v11723_v41 }
 0x31f   : > { %vm6948_vm12 = vcmp.lt.s32.totalorder %v6947_v2, 0  ;;  %v3143_v27 = vsel %vm3137_vm1, %v3140_v10, %v3142_v59  ;;  %vm2995_vm14 = vcmp.eq.s32.totalorder %v11922_v28, 2  ;;  %v3056_v37 = vadd.s32 %v11827_v32, %v11850_v29  ;;  %v13817_v29 = vld [vmem:[#allocation71_spill] sm:$0xff] }
 0x320   : > { %v11989_v30 = vadd.s32 4294967294, %v13815_v5  ;;  %v3071_v54 = vsel %vm6948_vm12, 0, %v6947_v2  ;;  %vm3161_vm6 = vc.u32 %v11968_v56, %v11970_v23  ;;  %7610 = vmatprep.subr.bf16.mxu0 %v7609_v48  ;;  %vm2992_vm11 = vcmp.eq.s32.totalorder %v11922_v28, 0 }
 0x321   : > { %v3072_v14 = vsub.s32 32, %v3071_v54  ;;  %v3076_v41 = vsub.s32 4294967266, %v3071_v54  ;;  %v3162_v0 = vadd.s32 1, %v11971_v17  ;;  %v13326_v16 = vand.u32 2147483647, %v13816_v61  ;;  %7612 = vmatpush3.bf16.msra.mxu0 %v7609_v48 }
 0x322   : > { %vm2991_vm2 = vcmp.lt.s32.totalorder %v11922_v28, 2  ;;  %v3073_v15 = vshll.u32 %v11924_v50, %v3071_v54  ;;  %v12003_v43 = vand.u32 3, %v3093_v63  ;;  %v3159_v32 = vmul.u32 %v3152_v55, %v3143_v27  ;;  %v13818_v55 = vld [vmem:[#allocation33_spill] sm:$0xff] }
 0x323   : > { %v3226_v46 = vshrl.u32 %v13730_v53, %v13817_v29  ;;  %vm13345_vm1 = vweird.f32 %v13788_v52  ;;  %v3074_v6 = vshrl.u32 %v3056_v37, %v3072_v14  ;;  %v3077_v10 = vadd.s32 127, %v3076_v41 }
 0x324   : > { %v3163_v60 = vsel %vm3161_vm6, %v3162_v0, %v11971_v17  ;;  %v3229_v1 = vshrl.u32 %v13734_v34, %v13817_v29  ;;  %v3224_v50 = vshrl.u32 %v13733_v19, %v13817_v29  ;;  %v3225_v58 = vshll.u32 %v13733_v19, %v13818_v55 }
 0x325   : > { %v3164_v59 = vadd.s32 %v3163_v60, %v3159_v32  ;;  %v3232_v2 = vshrl.u32 %v13731_v40, %v13817_v29  ;;  %v3075_v63 = vor.u32 %v3074_v6, %v3073_v15  ;;  %v3078_v48 = vshll.u32 %v3077_v10, 23 }
 0x326   : > { %vm3106_vm12 = vcmp.lt.s32.totalorder %v13808_v57, 0  ;;  %v3215_v17 = vand.u32 8388607, %v13326_v16  ;;  %v3228_v5 = vshll.u32 %v13730_v53, %v13818_v55  ;;  %v12025_v27 = vpop.eup %8013  ;;  %v3227_v54 = vor.u32 %v3226_v46, %v3225_v58 }
 0x327   : > { %13819 = vst [vmem:[#allocation75_spill] sm:$0xff] %v12025_v27  ;;  %v3165_v37 = vadd.s32 536870912, %v3164_v59  ;;  %v3231_v14 = vshll.u32 %v13734_v34, %v13818_v55  ;;  %v3235_v41 = vshrl.u32 %v13732_v44, %v13817_v29  ;;  %v12031_v0 = vpop.eup %8015  ;;  %v13333_v15 = vxor.u32 2147483648, %v12025_v27 }
 0x328   : > { %13820 = vst [vmem:[#allocation14_spill] sm:$0xff] %v12031_v0  ;;  %v3079_v32 = vor.u32 4788187, %v3078_v48  ;;  %v3230_v6 = vor.u32 %v3229_v1, %v3228_v5  ;;  %v3238_v10 = vshrl.u32 %v13736_v18, %v13817_v29  ;;  %vm6968_vm6 = vcmp.lt.s32.totalorder %v11989_v30, 0 }
 0x329   : > { %v13335_v60 = vxor.u32 2147483648, %v12031_v0  ;;  %v3166_v46 = vshrl.u32 %v3165_v37, 30  ;;  %v3233_v58 = vor.u32 %v3232_v2, %v3231_v14  ;;  %v3234_v16 = vshll.u32 %v13731_v40, %v13818_v55 }
 0x32a   : > { %v2997_v38 = vsel %vm2995_vm14, %v13333_v15, %v12031_v0  ;;  %v3080_v48 = vand.u32 2147483647, %v3079_v32  ;;  %v3082_v1 = vcvt.s32.f32 %v3075_v63  ;;  %v3237_v29 = vshll.u32 %v13732_v44, %v13818_v55  ;;  %v13821_v55 = vld [vmem:[#allocation39_spill] sm:$0xff] }
 0x32b   : > { %v2994_v2 = vsel %vm2992_vm11, %v12025_v27, %v13335_v60  ;;  %v3167_v5 = vshll.u32 %v3166_v46, 30  ;;  %v3190_v37 = vsub.s32 4, %v3166_v46  ;;  %v3236_v14 = vor.u32 %v3235_v41, %v3234_v16 }
 0x32c   : > { %v2998_v45 = vsel %vm2991_vm2, %v2994_v2, %v2997_v38  ;;  %v3083_v33 = vmul.f32 %v3082_v1, %v3080_v48  ;;  %v3216_v62 = vor.u32 8388608, %v3215_v17  ;;  %v3239_v15 = vor.u32 %v3238_v10, %v3237_v29 }
 0x32d   : > { %v2999_v63 = vsel %vm13345_vm1, nan, %v2998_v45  ;;  %v12056_v32 = vsub.s32 %v3164_v59, %v3167_v5  ;;  %vm3240_vm14 = vcmp.lt.s32.totalorder %v13821_v55, 1  ;;  %vm3241_vm4 = vcmp.lt.s32.totalorder %v13821_v55, 2 }
 0x32e   : > { %7298 = vmatmul.mubr.msk.f32.gmra.mrb[8].mxu0 %vm5432_vm3, %v2999_v63  ;;  %v3084_v60 = vxor.u32 2147483648, %v3083_v33  ;;  %vm3242_vm11 = vcmp.lt.s32.totalorder %v13821_v55, 3  ;;  %vm3243_vm13 = vcmp.lt.s32.totalorder %v13821_v55, 4  ;;  %v3248_v38 = vsel %vm3240_vm14, %v3227_v54, %v3230_v6 }
 0x32f   : > { %v3170_v28 = vsub.s32 0, %v12056_v32  ;;  %v3191_v45 = vsel %vm3106_vm12, %v3190_v37, %v3166_v46  ;;  %v3245_v16 = vsel %vm3243_vm13, %v3233_v58, 2102212464  ;;  %v3249_v59 = vsel %vm3243_vm13, %v3236_v14, 920167782 }
 0x330   : > { %v3085_v17 = vsel %vm3002_vm10, %v3084_v60, %v3083_v33  ;;  %v3250_v41 = vsel %vm3242_vm11, %v3233_v58, %v3249_v59  ;;  %v3253_v10 = vsel %vm3243_vm13, %v3239_v15, 1326507024  ;;  %v3256_v48 = vshll.u32 %v3216_v62, 8 }
 0x331   : > { %v3088_v1 = vsel %vm11911_vm9, %v13797_v20, %v3085_v17  ;;  %v6950_v29 = vmin.u32 %v3170_v28, %v12056_v32  ;;  %v3251_v2 = vsel %vm3241_vm4, %v3248_v38, %v3250_v41  ;;  %v3252_v46 = vsel %vm3240_vm14, %v3230_v6, %v3233_v58  ;;  %v13825_v17 = vld [vmem:[#allocation18_spill] sm:$0xff] }
 0x332   : > { %8017 = vcosq.f32 %v3088_v1  ;;  %v3254_v33 = vsel %vm3242_vm11, %v3236_v14, %v3253_v10  ;;  %v12082_v60 = vmul.u32.u64.low %v3256_v48, %v3251_v2  ;;  %v12083_v5 = vmul.u32.u64.high %v3256_v48, %v3251_v2, %v12082_v60 }
 0x333   : > { %8019 = vsinq.f32 %v3088_v1  ;;  %v3172_v62 = vclz %v6950_v29  ;;  %v3244_v49 = vsel %vm3240_vm14, %v3224_v50, %v3227_v54  ;;  %v3246_v15 = vsel %vm3242_vm11, %v3230_v6, %v3245_v16 }
 0x334   : > { %v12092_v37 = vshll.u32 %v13732_v44, %v11718_v9  ;;  %v12097_v58 = vsel %vm6968_vm6, 0, %v11989_v30  ;;  %v13822_v14 = vand.u32 2147483647, %v13808_v57  ;;  %v3255_v50 = vsel %vm3241_vm4, %v3252_v46, %v3254_v33 }
 0x335   : > { %v6951_v54 = vadd.s32 4294967294, %v3172_v62  ;;  %v12111_v38 = vmul.u32.u64.low %v3256_v48, %v3255_v50  ;;  %v12112_v28 = vmul.u32.u64.high %v3256_v48, %v3255_v50, %v12111_v38  ;;  %v12116_v30 = vor.u32 %v11980_v39, %v11976_v4 }
 0x336   : > { %vm12101_vm13 = vcmp.le.f32.partialorder %v13822_v14, 0.7853982  ;;  %v3247_v59 = vsel %vm3241_vm4, %v3244_v49, %v3246_v15  ;;  %v13337_v41 = vand.u32 2147483647, %v13825_v17  ;;  %vm3096_vm10 = vcmp.eq.s32.totalorder %v12003_v43, 0 }
 0x337   : > { %v12109_v6 = vsel %vm12101_vm13, 0, %v3191_v45  ;;  %vm6952_vm9 = vcmp.lt.s32.totalorder %v6951_v54, 0  ;;  %v3266_v45 = vadd.s32 1, %v12083_v5  ;;  %vm3095_vm2 = vcmp.lt.s32.totalorder %v12003_v43, 2 }
 0x338   : > { %vm3099_vm6 = vcmp.eq.s32.totalorder %v12003_v43, 2  ;;  %v3160_v4 = vadd.s32 %v11970_v23, %v11968_v56  ;;  %v3175_v39 = vsel %vm6952_vm9, 0, %v6951_v54  ;;  %v12131_v55 = vadd.s32 3, %v12109_v6 }
 0x339   : > { %vm13344_vm4 = vweird.f32 %v13797_v20  ;;  %v3176_v1 = vsub.s32 32, %v3175_v39  ;;  %v3180_v29 = vsub.s32 4294967266, %v3175_v39  ;;  %v3263_v2 = vmul.u32 %v3256_v48, %v3247_v59 }
 0x33a   : > { %v3329_v46 = vshll.u32 %v13733_v19, %v11584_v36  ;;  %vm3265_vm14 = vc.u32 %v12112_v28, %v12082_v60  ;;  %v3319_v33 = vand.u32 8388607, %v13337_v41  ;;  %v3330_v56 = vshrl.u32 %v13730_v53, %v11835_v8 }
 0x33b   : > { %v3332_v23 = vshll.u32 %v13730_v53, %v11584_v36  ;;  %v3177_v62 = vshll.u32 %v12056_v32, %v3175_v39  ;;  %v3178_v49 = vshrl.u32 %v3160_v4, %v3176_v1  ;;  %v3181_v15 = vadd.s32 127, %v3180_v29 }
 0x33c   : > { %v3267_v48 = vsel %vm3265_vm14, %v3266_v45, %v12083_v5  ;;  %v12146_v14 = vpop.eup %8017  ;;  %v3333_v54 = vshrl.u32 %v13734_v34, %v11835_v8  ;;  %v3336_v38 = vshrl.u32 %v13731_v40, %v11835_v8  ;;  %v3339_v59 = vshrl.u32 %v13732_v44, %v11835_v8 }
 0x33d   : > { %v3268_v50 = vadd.s32 %v3267_v48, %v3263_v2  ;;  %v12154_v41 = vpop.eup %8019  ;;  %v13343_v32 = vxor.u32 2147483648, %v12146_v14  ;;  %v3179_v4 = vor.u32 %v3178_v49, %v3177_v62  ;;  %v3182_v39 = vshll.u32 %v3181_v15, 23 }
 0x33e   : > { %v3338_v5 = vshll.u32 %v13731_v40, %v11584_v36  ;;  %v3097_v45 = vxor.u32 2147483648, %v12154_v41  ;;  %v3335_v29 = vshll.u32 %v13734_v34, %v11584_v36  ;;  %v3342_v2 = vshrl.u32 %v13736_v18, %v11835_v8 }
 0x33f   : > { %v3269_v1 = vadd.s32 536870912, %v3268_v50  ;;  %v3101_v48 = vsel %vm3099_vm6, %v13343_v32, %v12154_v41  ;;  %v3183_v62 = vor.u32 4788187, %v3182_v39  ;;  %v3331_v49 = vor.u32 %v3330_v56, %v3329_v46 }
 0x340   : > { %v3340_v15 = vor.u32 %v3339_v59, %v3338_v5  ;;  %v3098_v10 = vsel %vm3096_vm10, %v12146_v14, %v3097_v45  ;;  %v3337_v52 = vor.u32 %v3336_v38, %v3335_v29  ;;  %v3341_v18 = vshll.u32 %v13732_v44, %v11584_v36 }
 0x341   : > { %v12174_v16 = vshrl.u32 %v3269_v1, 30  ;;  %v3102_v27 = vsel %vm3095_vm2, %v3098_v10, %v3101_v48  ;;  %v3184_v0 = vand.u32 2147483647, %v3183_v62  ;;  %v3186_v32 = vcvt.s32.f32 %v3179_v4 }
 0x342   : > { %v3334_v39 = vor.u32 %v3333_v54, %v3332_v23  ;;  %v3103_v46 = vsel %vm13344_vm4, nan, %v3102_v27  ;;  %v3343_v59 = vor.u32 %v3342_v2, %v3341_v18  ;;  %vm3347_vm11 = vcmp.lt.s32.totalorder %v11832_v13, 4 }
 0x343   : > { %v3271_v56 = vshll.u32 %v12174_v16, 30  ;;  %7300 = vmatprep.mubr.msk.f32.mxu0 %vm5432_vm3, %v3103_v46  ;;  %v3187_v38 = vmul.f32 %v3186_v32, %v3184_v0  ;;  %v3320_v5 = vor.u32 8388608, %v3319_v33  ;;  %v3328_v44 = vshrl.u32 %v13733_v19, %v11835_v8 }
 0x344   : > { %v3353_v36 = vsel %vm3347_vm11, %v3340_v15, 920167782  ;;  %vm3344_vm10 = vcmp.lt.s32.totalorder %v11832_v13, 1  ;;  %vm3346_vm9 = vcmp.lt.s32.totalorder %v11832_v13, 3  ;;  %v3349_v27 = vsel %vm3347_vm11, %v3337_v52, 2102212464 }
 0x345   : > { %v12189_v43 = vsub.s32 %v3268_v50, %v3271_v56  ;;  %v3188_v10 = vxor.u32 2147483648, %v3187_v38  ;;  %vm3345_vm2 = vcmp.lt.s32.totalorder %v11832_v13, 2  ;;  %v3352_v0 = vsel %vm3344_vm10, %v3331_v49, %v3334_v39 }
 0x346   : > { %v3354_v33 = vsel %vm3346_vm9, %v3337_v52, %v3353_v36  ;;  %v3348_v8 = vsel %vm3344_vm10, %v3328_v44, %v3331_v49  ;;  %v3356_v54 = vsel %vm3344_vm10, %v3334_v39, %v3337_v52  ;;  %v3357_v50 = vsel %vm3347_vm11, %v3343_v59, 1326507024 }
 0x347   : > { %v3274_v23 = vsub.s32 0, %v12189_v43  ;;  %v3189_v32 = vsel %vm3106_vm12, %v3188_v10, %v3187_v38  ;;  %v3350_v4 = vsel %vm3346_vm9, %v3334_v39, %v3349_v27  ;;  %v3358_v1 = vsel %vm3346_vm9, %v3340_v15, %v3357_v50 }
 0x348   : > { %v3360_v29 = vshll.u32 %v3320_v5, 8  ;;  %v3192_v2 = vsel %vm12101_vm13, %v13808_v57, %v3189_v32  ;;  %v3355_v62 = vsel %vm3345_vm2, %v3352_v0, %v3354_v33  ;;  %v3359_v52 = vsel %vm3345_vm2, %v3356_v54, %v3358_v1 }
 0x349   : > { %v6954_v48 = vmin.u32 %v3274_v23, %v12189_v43  ;;  %8021 = vcosq.f32 %v3192_v2  ;;  %v12210_v49 = vand.u32 3, %v12131_v55  ;;  %vm3451_vm12 = vcmp.lt.s32.totalorder %v11853_v47, 4 }
 0x34a   : > { %v12212_v18 = vmul.u32.u64.low %v3360_v29, %v3359_v52  ;;  %v12213_v39 = vmul.u32.u64.high %v3360_v29, %v3359_v52, %v12212_v18  ;;  %8023 = vsinq.f32 %v3192_v2  ;;  %v3351_v15 = vsel %vm3345_vm2, %v3348_v8, %v3350_v4 }
 0x34b   : > { %v3276_v63 = vclz %v6954_v48  ;;  %v12218_v46 = vmul.u32.u64.low %v3360_v29, %v3355_v62  ;;  %v12219_v56 = vmul.u32.u64.high %v3360_v29, %v3355_v62, %v12218_v46  ;;  %v3416_v59 = vand.u32 2147483647, %v10822_v21 }
 0x34c   : > { %v3457_v55 = vsel %vm3451_vm12, %v12116_v30, 920167782  ;;  %v13826_v38 = vor.u32 %v11985_v11, %v12092_v37  ;;  %v12233_v13 = vadd.s32 %v10685_v24, %v10723_v22  ;;  %v3592_v36 = vsub.s32 32, %v12097_v58 }
 0x34d   : > { %v6955_v44 = vadd.s32 4294967294, %v3276_v63  ;;  %v13827_v27 = vsub.s32 4294967266, %v12097_v58  ;;  %vm3203_vm13 = vcmp.eq.s32.totalorder %v12210_v49, 2  ;;  %v3264_v0 = vadd.s32 %v12082_v60, %v12112_v28 }
 0x34e   : > { %v3461_v5 = vsel %vm3451_vm12, %v13826_v38, 1326507024  ;;  %vm3200_vm6 = vcmp.eq.s32.totalorder %v12210_v49, 0  ;;  %v3367_v11 = vmul.u32 %v3360_v29, %v3351_v15  ;;  %vm3369_vm11 = vc.u32 %v12213_v39, %v12218_v46 }
 0x34f   : > { %v12238_v10 = vadd.s32 127, %v13827_v27  ;;  %vm6956_vm14 = vcmp.lt.s32.totalorder %v6955_v44, 0  ;;  %v3437_v24 = vshrl.u32 %v13734_v34, %v11856_v35  ;;  %vm3199_vm10 = vcmp.lt.s32.totalorder %v12210_v49, 2 }
 0x350   : > { %v3279_v22 = vsel %vm6956_vm14, 0, %v6955_v44  ;;  %v3370_v37 = vadd.s32 1, %v12219_v56  ;;  %v3423_v33 = vand.u32 8388607, %v3416_v59  ;;  %v3434_v60 = vshrl.u32 %v13730_v53, %v11856_v35 }
 0x351   : > { %vm3196_vm9 = vweird.f32 %v13808_v57  ;;  %v3280_v28 = vsub.s32 32, %v3279_v22  ;;  %v3284_v23 = vsub.s32 4294967266, %v3279_v22  ;;  %v3433_v8 = vshll.u32 %v13733_v19, %v11718_v9 }
 0x352   : > { %v3436_v54 = vshll.u32 %v13730_v53, %v11718_v9  ;;  %v3281_v50 = vshll.u32 %v12189_v43, %v3279_v22  ;;  %v3371_v32 = vsel %vm3369_vm11, %v3370_v37, %v12219_v56  ;;  %v3439_v4 = vshll.u32 %v13734_v34, %v11718_v9 }
 0x353   : > { %v3440_v1 = vshrl.u32 %v13731_v40, %v11856_v35  ;;  %v3282_v29 = vshrl.u32 %v3264_v0, %v3280_v28  ;;  %v3285_v2 = vadd.s32 127, %v3284_v23  ;;  %v3372_v48 = vadd.s32 %v3371_v32, %v3367_v11  ;;  %v12265_v52 = vpop.eup %8021 }
 0x354   : > { %v3438_v62 = vor.u32 %v3437_v24, %v3436_v54  ;;  %v3294_v18 = vsub.s32 4, %v12174_v16  ;;  %v3424_v63 = vor.u32 8388608, %v3423_v33  ;;  %v3435_v53 = vor.u32 %v3434_v60, %v3433_v8  ;;  %v12268_v43 = vpop.eup %8023 }
 0x355   : > { %v3441_v15 = vor.u32 %v3440_v1, %v3439_v4  ;;  %v3204_v56 = vxor.u32 2147483648, %v12265_v52  ;;  %v3283_v38 = vor.u32 %v3282_v29, %v3281_v50  ;;  %v3286_v34 = vshll.u32 %v3285_v2, 23 }
 0x356   : > { %v3373_v9 = vadd.s32 536870912, %v3372_v48  ;;  %v3201_v40 = vxor.u32 2147483648, %v12268_v43  ;;  %vm3448_vm2 = vcmp.lt.s32.totalorder %v11853_v47, 1  ;;  %vm3449_vm14 = vcmp.lt.s32.totalorder %v11853_v47, 2 }
 0x357   : > { %vm3450_vm11 = vcmp.lt.s32.totalorder %v11853_v47, 3  ;;  %v3205_v44 = vsel %vm3203_vm13, %v3204_v56, %v12268_v43  ;;  %v3287_v27 = vor.u32 4788187, %v3286_v34  ;;  %v3460_v11 = vsel %vm3448_vm2, %v3438_v62, %v3441_v15 }
 0x358   : > { %v12280_v0 = vshrl.u32 %v3373_v9, 30  ;;  %v3202_v24 = vsel %vm3200_vm6, %v12265_v52, %v3201_v40  ;;  %v3456_v22 = vsel %vm3448_vm2, %v3435_v53, %v3438_v62  ;;  %v3458_v37 = vsel %vm3450_vm11, %v3441_v15, %v3457_v55 }
 0x359   : > { %v3462_v33 = vsel %vm3450_vm11, %v12116_v30, %v3461_v5  ;;  %v3206_v60 = vsel %vm3199_vm10, %v3202_v24, %v3205_v44  ;;  %v3288_v28 = vand.u32 2147483647, %v3287_v27  ;;  %v3290_v23 = vcvt.s32.f32 %v3283_v38 }
 0x35a   : > { %v3375_v8 = vshll.u32 %v12280_v0, 30  ;;  %v3207_v54 = vsel %vm3196_vm9, nan, %v3206_v60  ;;  %v3453_v50 = vsel %vm3451_vm12, %v3441_v15, 2102212464  ;;  %v3463_v55 = vsel %vm3449_vm14, %v3460_v11, %v3462_v33 }
 0x35b   : > { %v3464_v32 = vshll.u32 %v3424_v63, 8  ;;  %7301 = vmatmul.mubr.msk.f32.gmra.mrb[10].mxu0 %vm5432_vm3, %v3207_v54  ;;  %v3291_v30 = vmul.f32 %v3290_v23, %v3288_v28  ;;  %v3432_v49 = vshrl.u32 %v13733_v19, %v11856_v35  ;;  %v3459_v4 = vsel %vm3449_vm14, %v3456_v22, %v3458_v37 }
 0x35c   : > { %v3376_v5 = vsub.s32 %v3372_v48, %v3375_v8  ;;  %v3598_v1 = vshll.u32 %v12238_v10, 23  ;;  %vm3210_vm13 = vcmp.lt.s32.totalorder %v13816_v61, 0  ;;  %v3454_v48 = vsel %vm3450_vm11, %v3438_v62, %v3453_v50 }
 0x35d   : > { %v12312_v29 = vmul.u32.u64.low %v3464_v32, %v3463_v55  ;;  %v12313_v2 = vmul.u32.u64.high %v3464_v32, %v3463_v55, %v12312_v29  ;;  %v3292_v15 = vxor.u32 2147483648, %v3291_v30  ;;  %v3452_v63 = vsel %vm3448_vm2, %v3432_v49, %v3435_v53 }
 0x35e   : > { %v3378_v38 = vsub.s32 0, %v3376_v5  ;;  %v3594_v19 = vshrl.u32 %v12233_v13, %v3592_v36  ;;  %v3295_v35 = vsel %vm3210_vm13, %v3294_v18, %v12174_v16  ;;  %v13828_v9 = vand.u32 2147483647, %v13816_v61  ;;  %v5819_v18 = vld [vmem:[%s13040_s4 + $0x40] sm:$0xff] }
 0x35f   : > { %v12323_v10 = vmul.u32.u64.low %v3464_v32, %v3459_v4  ;;  %v12324_v34 = vmul.u32.u64.high %v3464_v32, %v3459_v4, %v12323_v10  ;;  %v3293_v44 = vsel %vm3210_vm13, %v3292_v15, %v3291_v30  ;;  %v3593_v53 = vshll.u32 %v11474_v26, %v12097_v58  ;;  %v5820_v26 = vld [vmem:[%s13040_s4 + $0x48] sm:$0xff] }
 0x360   : > { %vm3209_vm12 = vcmp.le.f32.partialorder %v13828_v9, 0.7853982  ;;  %v6958_v27 = vmin.u32 %v3378_v38, %v3376_v5  ;;  %v3599_v11 = vor.u32 4788187, %v3598_v1  ;;  %v3455_v13 = vsel %vm3449_vm14, %v3452_v63, %v3454_v48 }
 0x361   : > { %v3296_v62 = vsel %vm3209_vm12, %v13816_v61, %v3293_v44  ;;  %v12334_v36 = vsel %vm3209_vm12, 0, %v3295_v35  ;;  %vm3473_vm6 = vc.u32 %v12313_v2, %v12323_v10  ;;  %v3595_v58 = vor.u32 %v3594_v19, %v3593_v53 }
 0x362   : > { %8025 = vcosq.f32 %v3296_v62  ;;  %v3380_v16 = vclz %v6958_v27  ;;  %v3474_v47 = vadd.s32 1, %v12324_v34  ;;  %v3471_v22 = vmul.u32 %v3464_v32, %v3455_v13  ;;  %v13829_v27 = vld [vmem:[#allocation45_spill] sm:$0xff] }
 0x363   : > { %8027 = vsinq.f32 %v3296_v62  ;;  %v3600_v37 = vand.u32 2147483647, %v3599_v11  ;;  %v3301_v33 = vadd.s32 3, %v12334_v36  ;;  %v12347_v28 = vpack.c.bf16 %v5820_v26, %v5819_v18 }
 0x364   : > { %v6959_v24 = vadd.s32 4294967294, %v3380_v16  ;;  %v3475_v60 = vsel %vm3473_vm6, %v3474_v47, %v12324_v34  ;;  %v3602_v8 = vcvt.s32.f32 %v3595_v58  ;;  %v3368_v50 = vadd.s32 %v12218_v46, %v12213_v39 }
 0x365   : > { %v3476_v23 = vadd.s32 %v3475_v60, %v3471_v22  ;;  %7614 = vmatprep.subr.bf16.mxu0 %v12347_v28  ;;  %v3302_v4 = vand.u32 3, %v3301_v33  ;;  %vm3522_vm14 = vcmp.lt.s32.totalorder %v13829_v27, 0  ;;  %vm3300_vm12 = vweird.f32 %v13816_v61  ;;  %v6059_v61 = vld [vmem:[%s13042_s6 + $0x20] sm:$0xff] }
 0x366   : > { %vm6960_vm10 = vcmp.lt.s32.totalorder %v6959_v24, 0  ;;  %v3603_v32 = vmul.f32 %v3602_v8, %v3600_v37  ;;  %v3398_v58 = vsub.s32 4, %v12280_v0  ;;  %v13830_v37 = vand.u32 2147483647, %v13829_v27 }
 0x367   : > { %v3383_v54 = vsel %vm6960_vm10, 0, %v6959_v24  ;;  %v3477_v49 = vadd.s32 536870912, %v3476_v23  ;;  %vm3307_vm2 = vcmp.eq.s32.totalorder %v3302_v4, 2  ;;  %vm3303_vm11 = vcmp.lt.s32.totalorder %v3302_v4, 2 }
 0x368   : > { %v3384_v55 = vsub.s32 32, %v3383_v54  ;;  %v3388_v30 = vsub.s32 4294967266, %v3383_v54  ;;  %v3385_v1 = vshll.u32 %v3376_v5, %v3383_v54  ;;  %v3604_v9 = vxor.u32 2147483648, %v3603_v32 }
 0x369   : > { %v12352_v38 = vshrl.u32 %v3477_v49, 30  ;;  %vm3304_vm13 = vcmp.eq.s32.totalorder %v3302_v4, 0  ;;  %vm12377_vm6 = vcmp.le.f32.partialorder %v13830_v37, 0.7853982  ;;  %vm3314_vm10 = vcmp.lt.s32.totalorder %v13825_v17, 0 }
 0x36a   : > { %v3386_v29 = vshrl.u32 %v3368_v50, %v3384_v55  ;;  %v3389_v15 = vadd.s32 127, %v3388_v30  ;;  %v3605_v18 = vsel %vm3522_vm14, %v3604_v9, %v3603_v32  ;;  %v3399_v54 = vsel %vm3314_vm10, %v3398_v58, %v12280_v0 }
 0x36b   : > { %v3479_v35 = vshll.u32 %v12352_v38, 30  ;;  %v3608_v8 = vsel %vm12377_vm6, %v13829_v27, %v3605_v18  ;;  %v13833_v50 = vand.u32 2147483647, %v13825_v17  ;;  %v3606_v4 = vsub.s32 4, %v11207_v3 }
 0x36c   : > { %v12354_v63 = vpop.eup %8025  ;;  %v3387_v48 = vor.u32 %v3386_v29, %v3385_v1  ;;  %v3390_v19 = vshll.u32 %v3389_v15, 23  ;;  %8029 = vcosq.f32 %v3608_v8  ;;  %v3472_v29 = vadd.s32 %v12323_v10, %v12313_v2 }
 0x36d   : > { %v12357_v34 = vpop.eup %8027  ;;  %v3308_v39 = vxor.u32 2147483648, %v12354_v63  ;;  %v3480_v5 = vsub.s32 %v3476_v23, %v3479_v35  ;;  %vm3612_vm8 = vweird.f32 %v13829_v27 }
 0x36e   : > { %v3305_v46 = vxor.u32 2147483648, %v12357_v34  ;;  %v3391_v44 = vor.u32 4788187, %v3390_v19  ;;  %v3394_v13 = vcvt.s32.f32 %v3387_v48 }
 0x36f   : > { %v3309_v53 = vsel %vm3307_vm2, %v3308_v39, %v12357_v34  ;;  %v3482_v16 = vsub.s32 0, %v3480_v5  ;;  %vm3313_vm2 = vcmp.le.f32.partialorder %v13833_v50, 0.7853982 }
 0x370   : > { %v3306_v11 = vsel %vm3304_vm13, %v12354_v63, %v3305_v46  ;;  %v3392_v62 = vand.u32 2147483647, %v3391_v44  ;;  %v3401_v32 = vsel %vm3313_vm2, 0, %v3399_v54  ;;  %v3607_v44 = vsel %vm3522_vm14, %v3606_v4, %v11207_v3 }
 0x371   : > { %v3310_v26 = vsel %vm3303_vm11, %v3306_v11, %v3309_v53  ;;  %v6962_v22 = vmin.u32 %v3482_v16, %v3480_v5  ;;  %v3405_v48 = vadd.s32 3, %v3401_v32  ;;  %v3502_v53 = vsub.s32 4, %v12352_v38 }
 0x372   : > { %v3311_v47 = vsel %vm3300_vm12, nan, %v3310_v26  ;;  %v3395_v24 = vmul.f32 %v3394_v13, %v3392_v62  ;;  %v12398_v13 = vsel %vm12377_vm6, 0, %v3607_v44  ;;  %vm3418_vm13 = vcmp.lt.s32.totalorder %v10822_v21, 0 }
 0x373   : > { %7303 = vmatprep.mubr.msk.f32.mxu0 %vm5432_vm3, %v3311_v47  ;;  %v3484_v23 = vclz %v6962_v22  ;;  %v3406_v2 = vand.u32 3, %v3405_v48  ;;  %v3613_v58 = vadd.s32 3, %v12398_v13  ;;  %vm12412_vm14 = vcmp.le.f32.partialorder %v3416_v59, 0.7853982 }
 0x374   : > { %v3396_v60 = vxor.u32 2147483648, %v3395_v24 }
 0x375   : > { %v6963_v30 = vadd.s32 4294967294, %v3484_v23  ;;  %vm3411_vm6 = vcmp.eq.s32.totalorder %v3406_v2, 2  ;;  %v3614_v59 = vand.u32 3, %v3613_v58 }
 0x376   : > { %v3397_v55 = vsel %vm3314_vm10, %v3396_v60, %v3395_v24  ;;  %v12401_v16 = vpop.eup %8029  ;;  %vm3404_vm10 = vweird.f32 %v13825_v17 }
 0x377   : > { %v3400_v49 = vsel %vm3313_vm2, %v13825_v17, %v3397_v55  ;;  %vm6964_vm11 = vcmp.lt.s32.totalorder %v6963_v30, 0  ;;  %vm3408_vm2 = vcmp.eq.s32.totalorder %v3406_v2, 0 }
 0x378   : > { %8031 = vcosq.f32 %v3400_v49  ;;  %v3487_v1 = vsel %vm6964_vm11, 0, %v6963_v30  ;;  %vm3407_vm11 = vcmp.lt.s32.totalorder %v3406_v2, 2 }
 0x379   : > { %8033 = vsinq.f32 %v3400_v49  ;;  %v3488_v15 = vsub.s32 32, %v3487_v1  ;;  %v3492_v0 = vsub.s32 4294967266, %v3487_v1  ;;  %v3489_v19 = vshll.u32 %v3480_v5, %v3487_v1 }
 0x37a   : > { %8035 = vsinq.f32 %v3608_v8  ;;  %v3503_v5 = vsel %vm3418_vm13, %v3502_v53, %v12352_v38  ;;  %v3620_v49 = vxor.u32 2147483648, %v12401_v16 }
 0x37b   : > { %v3490_v35 = vshrl.u32 %v3472_v29, %v3488_v15  ;;  %v3493_v9 = vadd.s32 127, %v3492_v0  ;;  %v3505_v60 = vsel %vm12412_vm14, 0, %v3503_v5  ;;  %v5262_v5 = vand.u32 3, %v12398_v13  ;;  %v6060_v13 = vld [vmem:[%s13042_s6 + $0x28] sm:$0xff] }
 0x37c   : > { %v3509_v55 = vadd.s32 3, %v3505_v60  ;;  %v5159_v2 = vand.u32 3, %v3505_v60  ;;  %v7629_v60 = vpack.c.bf16 %v6060_v13, %v6059_v61  ;;  %v13844_v13 = vld [vmem:[#allocation37_spill] sm:$0xff] }
 0x37d   : > { %v3491_v11 = vor.u32 %v3490_v35, %v3489_v19  ;;  %v3494_v62 = vshll.u32 %v3493_v9, 23  ;;  %v4850_v19 = vand.u32 3, %v12109_v6  ;;  %v4953_v35 = vand.u32 3, %v12334_v36  ;;  %v6055_v36 = vld [vmem:[%s13042_s6] sm:$0xff] }
 0x37e   : > { %v12432_v15 = vand.u32 3, %v3509_v55  ;;  %v5056_v9 = vand.u32 3, %v3401_v32 }
 0x37f   : > { %v3495_v10 = vor.u32 4788187, %v3494_v62  ;;  %v3498_v26 = vcvt.s32.f32 %v3491_v11  ;;  %vm4851_vm1 = vcmp.lt.s32.totalorder %v4850_v19, 2  ;;  %vm4958_vm7 = vcmp.eq.s32.totalorder %v4953_v35, 2 }
 0x380   : > { %vm3512_vm4 = vcmp.eq.s32.totalorder %v12432_v15, 0  ;;  %vm5057_vm5 = vcmp.lt.s32.totalorder %v5056_v9, 2 }
 0x381   : > { %v3496_v3 = vand.u32 2147483647, %v3495_v10 }
 0x382   : > { %v12406_v18 = vpop.eup %8031 }
 0x383   : > { %v8034_v47 = vpop.eup %8033  ;;  %v3412_v24 = vxor.u32 2147483648, %v12406_v18  ;;  %v3499_v38 = vmul.f32 %v3498_v26, %v3496_v3 }
 0x384   : > { %v12416_v37 = vpop.eup %8035  ;;  %v3409_v33 = vxor.u32 2147483648, %v8034_v47 }
 0x385   : > { %v3413_v23 = vsel %vm3411_vm6, %v3412_v24, %v8034_v47  ;;  %v3500_v54 = vxor.u32 2147483648, %v3499_v38  ;;  %v3617_v30 = vxor.u32 2147483648, %v12416_v37  ;;  %vm3616_vm6 = vcmp.eq.s32.totalorder %v3614_v59, 0 }
 0x386   : > { %v3410_v8 = vsel %vm3408_vm2, %v12406_v18, %v3409_v33  ;;  %vm3619_vm2 = vcmp.eq.s32.totalorder %v3614_v59, 2 }
 0x387   : > { %v3414_v50 = vsel %vm3407_vm11, %v3410_v8, %v3413_v23  ;;  %v3501_v1 = vsel %vm3418_vm13, %v3500_v54, %v3499_v38  ;;  %v3618_v0 = vsel %vm3616_vm6, %v12401_v16, %v3617_v30  ;;  %v3621_v48 = vsel %vm3619_vm2, %v3620_v49, %v12416_v37  ;;  %v12505_v23 = vld [vmem:[%s13039_s3] ss:$0 sm:$0xff] }
 0x388   : > { %v3415_v4 = vsel %vm3404_vm10, nan, %v3414_v50  ;;  %v3504_v29 = vsel %vm12412_vm14, %v10822_v21, %v3501_v1  ;;  %vm3615_vm13 = vcmp.lt.s32.totalorder %v3614_v59, 2  ;;  %vm4852_vm14 = vcmp.eq.s32.totalorder %v4850_v19, 0  ;;  %v13836_v1 = vld [vmem:[#allocation31_spill] sm:$0xff] }
 0x389   : > { %7304 = vmatmul.mubr.msk.f32.gmra.mrb[12].mxu0 %vm5432_vm3, %v3415_v4  ;;  %8037 = vcosq.f32 %v3504_v29  ;;  %v12442_v44 = vsel %vm3615_vm13, %v3618_v0, %v3621_v48  ;;  %vm4855_vm11 = vcmp.eq.s32.totalorder %v4850_v19, 2  ;;  %v4854_v53 = vsel %vm4852_vm14, %v12265_v52, %v3201_v40  ;;  %v6056_v40 = vld [vmem:[%s13042_s6 + $0x8] sm:$0xff]  ;;  %v5822_v0 = vld [vmem:[%s13040_s4 + $0x58] sm:$0xff]  ;;  %v6063_v48 = vld [vmem:[%s13042_s6 + $0x40] sm:$0xff] }
 0x38a   : > { %8039 = vsinq.f32 %v3504_v29  ;;  %v4857_v11 = vsel %vm4855_vm11, %v3204_v56, %v12268_v43  ;;  %vm4954_vm6 = vcmp.lt.s32.totalorder %v4953_v35, 2  ;;  %vm3511_vm2 = vcmp.lt.s32.totalorder %v12432_v15, 2  ;;  %v6064_v19 = vld [vmem:[%s13042_s6 + $0x48] sm:$0xff] }
 0x38b   : > { %v4858_v6 = vsel %vm4851_vm1, %v4854_v53, %v4857_v11  ;;  %vm4955_vm13 = vcmp.eq.s32.totalorder %v4953_v35, 0  ;;  %vm3508_vm14 = vweird.f32 %v10822_v21  ;;  %v4960_v56 = vsel %vm4958_vm7, %v3308_v39, %v12357_v34  ;;  %v13837_v35 = vld [vmem:[#allocation3_spill] sm:$0xff]  ;;  %v13838_v53 = vld [vmem:[#allocation82_spill] sm:$0xff] }
 0x38c   : > { %v12462_v52 = vsel %vm3196_vm9, nan, %v4858_v6  ;;  %v4957_v43 = vsel %vm4955_vm13, %v12354_v63, %v3305_v46  ;;  %vm5058_vm1 = vcmp.eq.s32.totalorder %v5056_v9, 0  ;;  %vm5061_vm11 = vcmp.eq.s32.totalorder %v5056_v9, 2  ;;  %v6057_v46 = vld [vmem:[%s13042_s6 + $0x10] sm:$0xff]  ;;  %v6058_v63 = vld [vmem:[%s13042_s6 + $0x18] sm:$0xff]  ;;  %v6239_v21 = vld [vmem:[%s13044_s8] sm:$0xff] }
 0x38d   : > { %v4961_v32 = vsel %vm4954_vm6, %v4957_v43, %v4960_v56  ;;  %v5060_v62 = vsel %vm5058_vm1, %v12406_v18, %v3409_v33  ;;  %v5063_v57 = vsel %vm5061_vm11, %v3412_v24, %v8034_v47  ;;  %v7621_v3 = vpack.c.bf16 %v6056_v40, %v6055_v36  ;;  %v6065_v36 = vld [vmem:[%s13042_s6 + $0x50] sm:$0xff]  ;;  %v6066_v40 = vld [vmem:[%s13042_s6 + $0x58] sm:$0xff] }
 0x38e   : > { %v12473_v10 = vsel %vm3300_vm12, nan, %v4961_v32  ;;  %vm3515_vm7 = vcmp.eq.s32.totalorder %v12432_v15, 2  ;;  %v5064_v39 = vsel %vm5057_vm5, %v5060_v62, %v5063_v57  ;;  %vm5161_vm9 = vcmp.eq.s32.totalorder %v5159_v2, 0  ;;  %v5821_v15 = vld [vmem:[%s13040_s4 + $0x50] sm:$0xff]  ;;  %v13840_v32 = vld [vmem:[#allocation69_spill] sm:$0xff]  ;;  %v6067_v57 = vld [vmem:[%s13042_s6 + $0x60] sm:$0xff] }
 0x38f   : > { %vm5164_vm12 = vcmp.eq.s32.totalorder %v5159_v2, 2  ;;  %v12492_v58 = vsel %vm3404_vm10, nan, %v5064_v39  ;;  %vm5263_vm6 = vcmp.lt.s32.totalorder %v5262_v5, 2  ;;  %vm5264_vm13 = vcmp.eq.s32.totalorder %v5262_v5, 0  ;;  %7622 = vmatprep.subr.bf16.mxu1 %v7621_v3  ;;  %v13839_v43 = vld [vmem:[#allocation64_spill] sm:$0xff]  ;;  %v13843_v39 = vld [vmem:[#allocation83_spill] sm:$0xff] }
 0x390   : > { %v5266_v24 = vsel %vm5264_vm13, %v12401_v16, %v3617_v30  ;;  %vm5267_vm5 = vcmp.eq.s32.totalorder %v5262_v5, 2  ;;  %7624 = vmatpush3.bf16.msra.mxu1 %v7621_v3  ;;  %v7625_v22 = vpack.c.bf16 %v6058_v63, %v6057_v46  ;;  %vm5160_vm10 = vcmp.lt.s32.totalorder %v5159_v2, 2  ;;  %v6061_v16 = vld [vmem:[%s13042_s6 + $0x30] sm:$0xff]  ;;  %v13841_v5 = vld [vmem:[#allocation7_spill] sm:$0xff]  ;;  %v13842_v46 = vld [vmem:[#allocation78_spill] sm:$0xff] }
 0x391   : > { %v5269_v17 = vsel %vm5267_vm5, %v3620_v49, %v12416_v37  ;;  %v6062_v37 = vld [vmem:[%s13042_s6 + $0x38] sm:$0xff]  ;;  %v3623_v55 = vsel %vm3612_vm8, nan, %v12442_v44  ;;  %v5408_v29 = vadd.f32 %v12505_v23, %v13836_v1  ;;  %v5409_v9 = vadd.f32 %v12505_v23, %v13837_v35  ;;  %v13852_v1 = vld [vmem:[#allocation40_spill] sm:$0xff] }
 0x392   : > { %v5270_v59 = vsel %vm5263_vm6, %v5266_v24, %v5269_v17  ;;  %7626 = vmatprep.subr.bf16.mxu1 %v7625_v22  ;;  %v7633_v27 = vpack.c.bf16 %v6062_v37, %v6061_v16  ;;  %v7617_v44 = vpack.c.bf16 %v5822_v0, %v5821_v15  ;;  %v5410_v11 = vadd.f32 %v12505_v23, %v13838_v53  ;;  %v13846_v24 = vld [vmem:[#allocation84_spill] sm:$0xff] }
 0x393   : > { %v8038_v34 = vpop.eup %8037  ;;  %v12526_v49 = vsel %vm3612_vm8, nan, %v5270_v59  ;;  %v7637_v6 = vpack.c.bf16 %v6064_v19, %v6063_v48  ;;  %v5411_v56 = vadd.f32 %v12505_v23, %v13839_v43  ;;  %v5412_v62 = vadd.f32 %v12505_v23, %v13840_v32  ;;  %v13849_v59 = vld [vmem:[#allocation77_spill] sm:$0xff]  ;;  %v13854_v48 = vld [vmem:[#allocation66_spill] sm:$0xff] }
 0x394   : > { %v8040_v18 = vpop.eup %8039  ;;  %v3516_v26 = vxor.u32 2147483648, %v8038_v34  ;;  %7628 = vmatpush3.bf16.msra.mxu1 %v7625_v22  ;;  %v7641_v2 = vpack.c.bf16 %v6066_v40, %v6065_v36  ;;  %v5413_v3 = vadd.f32 %v12505_v23, %v13841_v5  ;;  %v5414_v63 = vadd.f32 %v12505_v23, %v13842_v46  ;;  %v13863_v40 = vld [vmem:[#allocation44_spill] sm:$0xff] }
 0x395   : > { %v3513_v47 = vxor.u32 2147483648, %v8040_v18  ;;  %7630 = vmatprep.subr.bf16.mxu1 %v7629_v60  ;;  %v5415_v61 = vadd.f32 %v12505_v23, %v13843_v39  ;;  %v5418_v22 = vadd.f32 %v12505_v23, %v13846_v24  ;;  %v5421_v16 = vadd.f32 %v12505_v23, %v13849_v59 }
 0x396   : > { %v3517_v33 = vsel %vm3515_vm7, %v3516_v26, %v8040_v18  ;;  %v5166_v38 = vsel %vm5164_vm12, %v3516_v26, %v8040_v18  ;;  %v5416_v18 = vadd.f32 %v12505_v23, %v13844_v13  ;;  %v13845_v26 = vld [vmem:[#allocation53_spill] sm:$0xff]  ;;  %v13850_v37 = vxor.u32 2147483648, %v11129_v51 }
 0x397   : > { %v3514_v8 = vsel %vm3512_vm4, %v8038_v34, %v3513_v47  ;;  %v5163_v54 = vsel %vm5161_vm9, %v8038_v34, %v3513_v47  ;;  %v5417_v47 = vadd.f32 %v12505_v23, %v13845_v26 }
 0x398   : > { %v3518_v50 = vsel %vm3511_vm2, %v3514_v8, %v3517_v33  ;;  %v12522_v30 = vsel %vm5160_vm10, %v5163_v54, %v5166_v38  ;;  %7632 = vmatpush3.bf16.msra.mxu1 %v7629_v60  ;;  %v3923_v33 = vand.u32 3, %v11003_v25  ;;  %v13847_v38 = vld [vmem:[#allocation94_spill] sm:$0xff]  ;;  %v4026_v54 = vand.u32 3, %v11067_v42  ;;  %v13853_v42 = vld [vmem:[#allocation85_spill] sm:$0xff] }
 0x399   : > { %v3519_v4 = vsel %vm3508_vm14, nan, %v3518_v50  ;;  %7634 = vmatprep.subr.bf16.mxu1 %v7633_v27  ;;  %v5419_v17 = vadd.f32 %v12505_v23, %v13847_v38  ;;  %v13848_v60 = vld [vmem:[#allocation86_spill] sm:$0xff]  ;;  %v13851_v50 = vxor.u32 2147483648, %v11122_v7  ;;  %v5423_v15 = vadd.f32 %v12505_v23, %v13853_v42  ;;  %v13884_v42 = vld [vmem:[#allocation60_spill] sm:$0xff] }
 0x39a   : > { %7306 = vmatprep.mubr.msk.f32.mxu0 %vm5432_vm3, %v3519_v4  ;;  %v5420_v8 = vadd.f32 %v12505_v23, %v13848_v60  ;;  %vm3925_vm8 = vcmp.eq.s32.totalorder %v3923_v33, 0  ;;  %vm3928_vm4 = vcmp.eq.s32.totalorder %v3923_v33, 2  ;;  %v4129_v4 = vand.u32 3, %v11195_v12  ;;  %v13877_v60 = vld [vmem:[#allocation59_spill] sm:$0xff] }
 0x39b   : > { %7307 = vmatmul.mubr.msk.f32.gmra.mrb[14].mxu0 %vm5432_vm3, %v3623_v55  ;;  %v3927_v25 = vsel %vm3925_vm8, %v11122_v7, %v13850_v37  ;;  %v3930_v55 = vsel %vm3928_vm4, %v13851_v50, %v11129_v51  ;;  %vm3924_vm2 = vcmp.lt.s32.totalorder %v3923_v33, 2  ;;  %vm4028_vm1 = vcmp.eq.s32.totalorder %v4026_v54, 0  ;;  %v13856_v51 = vld [vmem:[#allocation8_spill] sm:$0xff] }
 0x39c   : > { %7317 = vmatprep.mubr.msk.f32.mxu0 %vm5432_vm3, %v5408_v29  ;;  %7636 = vmatpush3.bf16.msra.mxu1 %v7633_v27  ;;  %v5422_v29 = vadd.f32 %v12505_v23, %v13852_v1  ;;  %v3931_v0 = vsel %vm3924_vm2, %v3927_v25, %v3930_v55  ;;  %v4232_v27 = vand.u32 3, %v11332_v31  ;;  %v13855_v7 = vxor.u32 2147483648, %v13854_v48  ;;  %v13860_v23 = vld [vmem:[#allocation73_spill] sm:$0xff]  ;;  %v13862_v31 = vld [vmem:[#allocation52_spill] sm:$0xff] }
 0x39d   : > { %7638 = vmatprep.subr.bf16.mxu1 %v7637_v6  ;;  %vm4031_vm11 = vcmp.eq.s32.totalorder %v4026_v54, 2  ;;  %vm4131_vm7 = vcmp.eq.s32.totalorder %v4129_v4, 0  ;;  %vm4134_vm9 = vcmp.eq.s32.totalorder %v4129_v4, 2  ;;  %v13857_v12 = vxor.u32 2147483648, %v13856_v51  ;;  %v13881_v25 = vld [vmem:[#allocation12_spill] sm:$0xff] }
 0x39e   : > { %v4030_v19 = vsel %vm4028_vm1, %v13856_v51, %v13855_v7  ;;  %v4335_v36 = vand.u32 3, %v13862_v31  ;;  %vm4027_vm12 = vcmp.lt.s32.totalorder %v4026_v54, 2  ;;  %vm4130_vm6 = vcmp.lt.s32.totalorder %v4129_v4, 2  ;;  %v13882_v55 = vld [vmem:[#allocation88_spill] sm:$0xff]  ;;  %v13895_v31 = vld [vmem:[#allocation75_spill] sm:$0xff] }
 0x39f   : > { %7318 = vmatmul.mubr.msk.f32.vlgmr.msra.gmra.mrb[0].mxu0 %vm5432_vm3, %v5409_v9  ;;  %v4033_v35 = vsel %vm4031_vm11, %v13857_v12, %v13854_v48  ;;  %v13858_v9 = vld [vmem:[#allocation20_spill] sm:$0xff]  ;;  %vm4234_vm13 = vcmp.eq.s32.totalorder %v4232_v27, 0  ;;  %vm4237_vm5 = vcmp.eq.s32.totalorder %v4232_v27, 2  ;;  %vm4233_vm4 = vcmp.lt.s32.totalorder %v4232_v27, 2  ;;  %v13889_v12 = vld [vmem:[#allocation46_spill] sm:$0xff] }
 0x3a0   : > { %7616 = vmatpush3.bf16.msra.mxu0 %v12347_v28  ;;  %7320 = vmatprep.mubr.msk.f32.mxu0 %vm5432_vm3, %v5410_v11  ;;  %v6068_v28 = vld [vmem:[%s13042_s6 + $0x68] sm:$0xff]  ;;  %v13861_v11 = vxor.u32 2147483648, %v13860_v23  ;;  %v4034_v32 = vsel %vm4027_vm12, %v4030_v19, %v4033_v35  ;;  %vm4337_vm10 = vcmp.eq.s32.totalorder %v4335_v36, 0  ;;  %vm4340_vm8 = vcmp.eq.s32.totalorder %v4335_v36, 2  ;;  %v13888_v51 = vld [vmem:[#allocation24_spill] sm:$0xff] }
 0x3a1   : > { %7618 = vmatprep.subr.bf16.mxu0 %v7617_v44  ;;  %7640 = vmatpush3.bf16.msra.mxu1 %v7637_v6  ;;  %v7645_v34 = vpack.c.bf16 %v6068_v28, %v6067_v57  ;;  %v13867_v28 = vld [vmem:[#allocation50_spill] sm:$0xff]  ;;  %vm4336_vm2 = vcmp.lt.s32.totalorder %v4335_v36, 2  ;;  %v4644_v4 = vand.u32 3, %v13882_v55  ;;  %v13883_v1 = vxor.u32 2147483648, %v13881_v25 }
 0x3a2   : > { %7642 = vmatprep.subr.bf16.mxu1 %v7641_v2  ;;  %v4136_v6 = vsel %vm4134_vm9, %v13861_v11, %v13858_v9  ;;  %v4747_v19 = vand.u32 3, %v13888_v51  ;;  %v13893_v11 = vld [vmem:[#allocation14_spill] sm:$0xff] }
 0x3a3   : > { %7321 = vmatmul.mubr.msk.f32.gmra.mrb[2].mxu0 %vm5432_vm3, %v5411_v56  ;;  %v3932_v56 = vsel %vm2260_vm15, nan, %v3931_v0  ;;  %vm13878_vm15 = vweird.f32 %v13877_v60  ;;  %v13886_v0 = vld [vmem:[#allocation74_spill] sm:$0xff] }
 0x3a4   : > { %7323 = vmatprep.mubr.msk.f32.mxu0 %vm5432_vm3, %v5412_v62  ;;  %7620 = vmatpush3.bf16.msra.mxu0 %v7617_v44  ;;  %v13859_v44 = vxor.u32 2147483648, %v13858_v9  ;;  %v13887_v48 = vxor.u32 2147483648, %v13886_v0  ;;  %v13891_v9 = vld [vmem:[#allocation2_spill] sm:$0xff] }
 0x3a5   : > { %7644 = vmatpush3.bf16.msra.mxu1 %v7641_v2  ;;  %v13865_v2 = vld [vmem:[#allocation10_spill] sm:$0xff]  ;;  %vm13892_vm12 = vweird.f32 %v13891_v9 }
 0x3a6   : > { %7646 = vmatprep.subr.bf16.mxu1 %v7645_v34  ;;  %v4133_v53 = vsel %vm4131_vm7, %v13860_v23, %v13859_v44  ;;  %v13866_v57 = vxor.u32 2147483648, %v13865_v2 }
 0x3a7   : > { %7324 = vmatmul.mubr.msk.f32.gmra.mrb[4].mxu0 %vm5432_vm3, %v5413_v3  ;;  %v4137_v62 = vsel %vm4130_vm6, %v4133_v53, %v4136_v6  ;;  %v13868_v3 = vld [vmem:[#allocation22_spill] sm:$0xff]  ;;  %v13894_v6 = vxor.u32 2147483648, %v13893_v11 }
 0x3a8   : > { %7326 = vmatprep.mubr.msk.f32.mxu0 %vm5432_vm3, %v5414_v63  ;;  %v4236_v5 = vsel %vm4234_vm13, %v13867_v28, %v13866_v57  ;;  %v4438_v46 = vand.u32 3, %v13868_v3  ;;  %v13869_v63 = vld [vmem:[#allocation16_spill] sm:$0xff] }
 0x3a9   : > { %7648 = vmatpush3.bf16.msra.mxu1 %v7645_v34  ;;  %v13870_v34 = vxor.u32 2147483648, %v13867_v28  ;;  %v13900_v28 = vld [vmem:[#allocation63_spill] sm:$0xff] }
 0x3aa   : > { %vm4440_vm1 = vcmp.eq.s32.totalorder %v4438_v46, 0  ;;  %vm4443_vm11 = vcmp.eq.s32.totalorder %v4438_v46, 2  ;;  %vm4439_vm6 = vcmp.lt.s32.totalorder %v4438_v46, 2 }
 0x3ab   : > { %7327 = vmatmul.mubr.msk.f32.gmra.mrb[6].mxu0 %vm5432_vm3, %v5415_v61  ;;  %v4239_v39 = vsel %vm4237_vm5, %v13870_v34, %v13865_v2  ;;  %v13871_v61 = vld [vmem:[#allocation56_spill] sm:$0xff]  ;;  %vm4646_vm5 = vcmp.eq.s32.totalorder %v4644_v4, 0  ;;  %v13898_v2 = vld [vmem:[#allocation58_spill] sm:$0xff] }
 0x3ac   : > { %7329 = vmatprep.mubr.msk.f32.mxu0 %vm5432_vm3, %v5416_v18  ;;  %v13872_v13 = vxor.u32 2147483648, %v13871_v61  ;;  %v13873_v18 = vld [vmem:[#allocation55_spill] sm:$0xff]  ;;  %v4240_v54 = vsel %vm4233_vm4, %v4236_v5, %v4239_v39  ;;  %v4648_v36 = vsel %vm4646_vm5, %v13895_v31, %v13894_v6  ;;  %vm13899_vm4 = vweird.f32 %v13898_v2  ;;  %v6241_v39 = vld [vmem:[%s13044_s8 + $0x10] sm:$0xff]  ;;  %v6251_v2 = vld [vmem:[%s13044_s8 + $0x60] sm:$0xff] }
 0x3ae   : > { %v4339_v26 = vsel %vm4337_vm10, %v13873_v18, %v13872_v13  ;;  %vm4649_vm10 = vcmp.eq.s32.totalorder %v4644_v4, 2 }
 0x3af   : > { %7330 = vmatmul.mubr.msk.f32.gmra.mrb[8].mxu0 %vm5432_vm3, %v5417_v47  ;;  %v13874_v47 = vxor.u32 2147483648, %v13873_v18 }
 0x3b0   : > { %7332 = vmatprep.mubr.msk.f32.mxu0 %vm5432_vm3, %v5418_v22  ;;  %v13875_v22 = vld [vmem:[#allocation54_spill] sm:$0xff] }
 0x3b1   : > { %v4342_v24 = vsel %vm4340_vm8, %v13874_v47, %v13871_v61  ;;  %v4541_v33 = vand.u32 3, %v13875_v22  ;;  %vm4749_vm8 = vcmp.eq.s32.totalorder %v4747_v19, 0  ;;  %v6242_v61 = vld [vmem:[%s13044_s8 + $0x18] sm:$0xff]  ;;  %v6243_v22 = vld [vmem:[%s13044_s8 + $0x20] sm:$0xff] }
 0x3b2   : > { %v4343_v59 = vsel %vm4336_vm2, %v4339_v26, %v4342_v24  ;;  %vm4645_vm2 = vcmp.lt.s32.totalorder %v4644_v4, 2  ;;  %v7657_v47 = vpack.c.bf16 %v6242_v61, %v6241_v39 }
 0x3b3   : > { %7333 = vmatmul.mubr.msk.f32.gmra.mrb[10].mxu0 %vm5432_vm3, %v5419_v17  ;;  %v4035_v17 = vsel %vm2364_vm0, nan, %v4034_v32  ;;  %vm4543_vm7 = vcmp.eq.s32.totalorder %v4541_v33, 0  ;;  %vm4546_vm9 = vcmp.eq.s32.totalorder %v4541_v33, 2  ;;  %vm13890_vm0 = vweird.f32 %v13889_v12 }
 0x3b4   : > { %7335 = vmatprep.mubr.msk.f32.mxu0 %vm5432_vm3, %v5420_v8  ;;  %v4138_v8 = vsel %vm13878_vm15, nan, %v4137_v62  ;;  %v4548_v7 = vsel %vm4546_vm9, %v13887_v48, %v13884_v42  ;;  %v4241_v35 = vsel %vm13890_vm0, nan, %v4240_v54  ;;  %v4344_v44 = vsel %vm13892_vm12, nan, %v4343_v59  ;;  %v6245_v59 = vld [vmem:[%s13044_s8 + $0x30] sm:$0xff] }
 0x3b5   : > { %vm4542_vm13 = vcmp.lt.s32.totalorder %v4541_v33, 2  ;;  %vm4752_vm15 = vcmp.eq.s32.totalorder %v4747_v19, 2  ;;  %v13897_v32 = vxor.u32 2147483648, %v12146_v14  ;;  %vm13904_vm9 = vweird.f32 %v13797_v20  ;;  %v6069_v20 = vld [vmem:[%s13042_s6 + $0x70] sm:$0xff]  ;;  %v6244_v33 = vld [vmem:[%s13044_s8 + $0x28] sm:$0xff] }
 0x3b7   : > { %7336 = vmatmul.mubr.msk.f32.gmra.mrb[12].mxu0 %vm5432_vm3, %v5421_v16  ;;  %v13879_v16 = vld [vmem:[#allocation23_spill] sm:$0xff]  ;;  %v4754_v62 = vsel %vm4752_vm15, %v13897_v32, %v12154_v41  ;;  %v6250_v32 = vld [vmem:[%s13044_s8 + $0x58] sm:$0xff] }
 0x3b8   : > { %7338 = vmatprep.mubr.msk.f32.mxu0 %vm5432_vm3, %v5422_v29  ;;  %v13880_v37 = vxor.u32 2147483648, %v13879_v16  ;;  %v4445_v29 = vsel %vm4443_vm11, %v13883_v1, %v13879_v16  ;;  %vm4748_vm11 = vcmp.lt.s32.totalorder %v4747_v19, 2  ;;  %v6246_v16 = vld [vmem:[%s13044_s8 + $0x38] sm:$0xff]  ;;  %v6247_v1 = vld [vmem:[%s13044_s8 + $0x40] sm:$0xff] }
 0x3b9   : > { %v7665_v55 = vpack.c.bf16 %v6246_v16, %v6245_v59  ;;  %v6428_v59 = vld [vmem:[%s13046_s10 + $0x28] sm:$0xff] }
 0x3ba   : > { %v4442_v50 = vsel %vm4440_vm1, %v13881_v25, %v13880_v37  ;;  %vm13901_vm1 = vweird.f32 %v13900_v28 }
 0x3bb   : > { %7339 = vmatmul.mubr.msk.f32.gmra.mrb[14].mxu0 %vm5432_vm3, %v5423_v15  ;;  %v13885_v15 = vxor.u32 2147483648, %v13884_v42  ;;  %v4446_v23 = vsel %vm4439_vm6, %v4442_v50, %v4445_v29  ;;  %v6248_v29 = vld [vmem:[%s13044_s8 + $0x48] sm:$0xff] }
 0x3bc   : > { %7349 = vmatprep.mubr.msk.f32.mxu0 %vm5432_vm3, %v13863_v40  ;;  %v13896_v40 = vxor.u32 2147483648, %v13895_v31  ;;  %v4447_v57 = vsel %vm13899_vm4, nan, %v4446_v23 }
 0x3bd   : > { %v4545_v27 = vsel %vm4543_vm7, %v13886_v0, %v13885_v15 }
 0x3be   : > { %v4549_v53 = vsel %vm4542_vm13, %v4545_v27, %v4548_v7  ;;  %v4651_v43 = vsel %vm4649_vm10, %v13896_v40, %v13893_v11  ;;  %v7669_v27 = vpack.c.bf16 %v6248_v29, %v6247_v1  ;;  %v6429_v29 = vld [vmem:[%s13046_s10 + $0x30] sm:$0xff] }
 0x3bf   : > { %7350 = vmatmul.mubr.msk.f32.vlgmr.msra.gmra.mrb[0].mxu0 %vm5432_vm3, %v13869_v63  ;;  %v4550_v5 = vsel %vm13901_vm1, nan, %v4549_v53  ;;  %v4652_v3 = vsel %vm4645_vm2, %v4648_v36, %v4651_v43  ;;  %v13902_v63 = vld [vmem:[#allocation72_spill] sm:$0xff] }
 0x3c0   : > { %7352 = vmatprep.mubr.msk.f32.mxu0 %vm5432_vm3, %v3932_v56  ;;  %v4751_v56 = vsel %vm4749_vm8, %v12146_v14, %v3097_v45  ;;  %vm13903_vm7 = vweird.f32 %v13902_v63  ;;  %v5168_v14 = vsel %vm3508_vm14, nan, %v12522_v30  ;;  %v6423_v63 = vld [vmem:[%s13046_s10] sm:$0xff] }
 0x3c1   : > { %v4755_v46 = vsel %vm4748_vm11, %v4751_v56, %v4754_v62  ;;  %v4653_v45 = vsel %vm13903_vm7, nan, %v4652_v3  ;;  %v6249_v56 = vld [vmem:[%s13044_s8 + $0x50] sm:$0xff]  ;;  %v6254_v3 = vld [vmem:[%s13044_s8 + $0x78] sm:$0xff] }
 0x3c2   : > { %v4756_v41 = vsel %vm13904_vm9, nan, %v4755_v46  ;;  %v7673_v62 = vpack.c.bf16 %v6250_v32, %v6249_v56 }
 0x3c3   : > { %7353 = vmatmul.mubr.msk.f32.gmra.mrb[2].mxu0 %vm5432_vm3, %v4035_v17 }
 0x3c4   : > { %7355 = vmatprep.mubr.msk.f32.mxu0 %vm5432_vm3, %v4138_v8  ;;  %v7661_v8 = vpack.c.bf16 %v6244_v33, %v6243_v22 }
 0x3c7   : > { %7356 = vmatmul.mubr.msk.f32.gmra.mrb[4].mxu0 %vm5432_vm3, %v4241_v35 }
 0x3c8   : > { %7358 = vmatprep.mubr.msk.f32.mxu0 %vm5432_vm3, %v4344_v44 }
 0x3cb   : > { %7359 = vmatmul.mubr.msk.f32.gmra.mrb[6].mxu0 %vm5432_vm3, %v4447_v57  ;;  %v6252_v57 = vld [vmem:[%s13044_s8 + $0x68] sm:$0xff] }
 0x3cc   : > { %7361 = vmatprep.mubr.msk.f32.mxu0 %vm5432_vm3, %v4550_v5  ;;  %v7677_v28 = vpack.c.bf16 %v6252_v57, %v6251_v2  ;;  %v6253_v5 = vld [vmem:[%s13044_s8 + $0x70] sm:$0xff] }
 0x3cd   : > { %v7681_v46 = vpack.c.bf16 %v6254_v3, %v6253_v5 }
 0x3cf   : > { %7362 = vmatmul.mubr.msk.f32.gmra.mrb[8].mxu0 %vm5432_vm3, %v4653_v45  ;;  %v6424_v45 = vld [vmem:[%s13046_s10 + $0x8] sm:$0xff] }
 0x3d0   : > { %7364 = vmatprep.mubr.msk.f32.mxu0 %vm5432_vm3, %v4756_v41  ;;  %v7685_v41 = vpack.c.bf16 %v6424_v45, %v6423_v63  ;;  %v6433_v63 = vld [vmem:[%s13046_s10 + $0x50] sm:$0xff]  ;;  %v6434_v45 = vld [vmem:[%s13046_s10 + $0x58] sm:$0xff] }
 0x3d3   : > { %7365 = vmatmul.mubr.msk.f32.gmra.mrb[10].mxu0 %vm5432_vm3, %v12462_v52  ;;  %v6070_v52 = vld [vmem:[%s13042_s6 + $0x78] sm:$0xff] }
 0x3d4   : > { %7367 = vmatprep.mubr.msk.f32.mxu0 %vm5432_vm3, %v12473_v10  ;;  %v7649_v10 = vpack.c.bf16 %v6070_v52, %v6069_v20 }
 0x3d6   : > { %7650 = vmatprep.subr.bf16.mxu1 %v7649_v10 }
 0x3d7   : > { %7368 = vmatmul.mubr.msk.f32.gmra.mrb[12].mxu0 %vm5432_vm3, %v12492_v58  ;;  %7652 = vmatpush3.bf16.msra.mxu1 %v7649_v10  ;;  %v6240_v58 = vld [vmem:[%s13044_s8 + $0x8] sm:$0xff] }
 0x3d8   : > { %7370 = vmatprep.mubr.msk.f32.mxu0 %vm5432_vm3, %v5168_v14  ;;  %v7653_v30 = vpack.c.bf16 %v6240_v58, %v6239_v21  ;;  %v12795_v14 = vld [vmem:[%s13043_s7] ss:$0 sm:$0xff] }
 0x3da   : > { %7654 = vmatprep.subr.bf16.mxu1 %v7653_v30 }
 0x3db   : > { %7371 = vmatmul.mubr.msk.f32.gmra.mrb[14].mxu0 %vm5432_vm3, %v12526_v49  ;;  %v12726_v49 = vld [vmem:[%s13041_s5] ss:$0 sm:$0xff]  ;;  %vm6807_vm3 = vcmask 15360  }
 0x492   : > { %v7351_v34 = vpop.f32.mrb[0].mxu0 }
 0x493   : > { %v5937_v13 = vpop.f32.mrb[1].mxu0  ;;  %v6040_v26 = vadd.f32 %v7351_v34, %v12726_v49 }
 0x494   : > { %v6039_v18 = vadd.f32 %v12726_v49, %v5937_v13 }
 0x496   : > { %v7354_v24 = vpop.f32.mrb[2].mxu0  ;;  %7405 = vmatprep.mubr.f32.mxu1 %v6039_v18 }
 0x497   : > { %v5947_v38 = vpop.f32.mrb[3].mxu0  ;;  %7406 = vmatmul.mubr.f32.vlgmr.msra.gmra.mrb[0].mxu1 %v6040_v26  ;;  %v6042_v60 = vadd.f32 %v7354_v24, %v12726_v49  ;;  %v6425_v26 = vld [vmem:[%s13046_s10 + $0x10] sm:$0xff] }
 0x498   : > { %v6041_v17 = vadd.f32 %v12726_v49, %v5947_v38  ;;  %7656 = vmatpush3.bf16.msra.mxu1 %v7653_v30 }
 0x499   : > { %7658 = vmatprep.subr.bf16.mxu1 %v7657_v47 }
 0x49a   : > { %v7357_v54 = vpop.f32.mrb[4].mxu0  ;;  %7408 = vmatprep.mubr.f32.mxu1 %v6041_v17 }
 0x49b   : > { %v5957_v37 = vpop.f32.mrb[5].mxu0  ;;  %7409 = vmatmul.mubr.f32.gmra.mrb[2].mxu1 %v6042_v60  ;;  %v6044_v50 = vadd.f32 %v7357_v54, %v12726_v49  ;;  %v6427_v54 = vld [vmem:[%s13046_s10 + $0x20] sm:$0xff] }
 0x49c   : > { %v6043_v25 = vadd.f32 %v12726_v49, %v5957_v37  ;;  %7660 = vmatpush3.bf16.msra.mxu1 %v7657_v47  ;;  %v6426_v47 = vld [vmem:[%s13046_s10 + $0x18] sm:$0xff] }
 0x49d   : > { %7662 = vmatprep.subr.bf16.mxu1 %v7661_v8  ;;  %v7689_v60 = vpack.c.bf16 %v6426_v47, %v6425_v26  ;;  %v6612_v26 = vld [vmem:[%s13048_s12 + $0x28] sm:$0xff] }
 0x49e   : > { %v7360_v4 = vpop.f32.mrb[6].mxu0  ;;  %7411 = vmatprep.mubr.f32.mxu1 %v6043_v25 }
 0x49f   : > { %v5967_v42 = vpop.f32.mrb[7].mxu0  ;;  %7412 = vmatmul.mubr.f32.gmra.mrb[4].mxu1 %v6044_v50  ;;  %v6046_v0 = vadd.f32 %v7360_v4, %v12726_v49  ;;  %v7693_v4 = vpack.c.bf16 %v6428_v59, %v6427_v54 }
 0x4a0   : > { %v6045_v15 = vadd.f32 %v12726_v49, %v5967_v42  ;;  %7664 = vmatpush3.bf16.msra.mxu1 %v7661_v8  ;;  %v6430_v42 = vld [vmem:[%s13046_s10 + $0x38] sm:$0xff] }
 0x4a1   : > { %7666 = vmatprep.subr.bf16.mxu1 %v7665_v55 }
 0x4a2   : > { %v7363_v48 = vpop.f32.mrb[8].mxu0  ;;  %7414 = vmatprep.mubr.f32.mxu1 %v6045_v15 }
 0x4a3   : > { %v5977_v7 = vpop.f32.mrb[9].mxu0  ;;  %7415 = vmatmul.mubr.f32.gmra.mrb[6].mxu1 %v6046_v0  ;;  %v6048_v19 = vadd.f32 %v7363_v48, %v12726_v49 }
 0x4a4   : > { %v6047_v51 = vadd.f32 %v12726_v49, %v5977_v7  ;;  %7668 = vmatpush3.bf16.msra.mxu1 %v7665_v55 }
 0x4a5   : > { %7670 = vmatprep.subr.bf16.mxu1 %v7669_v27 }
 0x4a6   : > { %v7366_v12 = vpop.f32.mrb[10].mxu0  ;;  %7417 = vmatprep.mubr.f32.mxu1 %v6047_v51  ;;  %v7697_v51 = vpack.c.bf16 %v6430_v42, %v6429_v29 }
 0x4a7   : > { %v5987_v35 = vpop.f32.mrb[11].mxu0  ;;  %7418 = vmatmul.mubr.f32.gmra.mrb[8].mxu1 %v6048_v19  ;;  %v6050_v44 = vadd.f32 %v7366_v12, %v12726_v49  ;;  %v6431_v12 = vld [vmem:[%s13046_s10 + $0x40] sm:$0xff] }
 0x4a8   : > { %v6049_v9 = vadd.f32 %v12726_v49, %v5987_v35  ;;  %7672 = vmatpush3.bf16.msra.mxu1 %v7669_v27  ;;  %v6432_v35 = vld [vmem:[%s13046_s10 + $0x48] sm:$0xff] }
 0x4a9   : > { %7674 = vmatprep.subr.bf16.mxu1 %v7673_v62 }
 0x4aa   : > { %v7369_v23 = vpop.f32.mrb[12].mxu0  ;;  %7420 = vmatprep.mubr.f32.mxu1 %v6049_v9 }
 0x4ab   : > { %v5997_v53 = vpop.f32.mrb[13].mxu0  ;;  %7421 = vmatmul.mubr.f32.gmra.mrb[10].mxu1 %v6050_v44  ;;  %v6052_v6 = vadd.f32 %v7369_v23, %v12726_v49 }
 0x4ac   : > { %v6051_v11 = vadd.f32 %v12726_v49, %v5997_v53  ;;  %7676 = vmatpush3.bf16.msra.mxu1 %v7673_v62 }
 0x4ad   : > { %7678 = vmatprep.subr.bf16.mxu1 %v7677_v28 }
 0x4ae   : > { %v7372_v31 = vpop.f32.mrb[14].mxu0  ;;  %7423 = vmatprep.mubr.f32.mxu1 %v6051_v11 }
 0x4af   : > { %v6007_v36 = vpop.f32.mrb[15].mxu0  ;;  %7424 = vmatmul.mubr.f32.gmra.mrb[12].mxu1 %v6052_v6  ;;  %v6054_v43 = vadd.f32 %v7372_v31, %v12726_v49  ;;  %v7701_v6 = vpack.c.bf16 %v6432_v35, %v6431_v12 }
 0x4b0   : > { %v6053_v40 = vadd.f32 %v12726_v49, %v6007_v36  ;;  %7680 = vmatpush3.bf16.msra.mxu1 %v7677_v28 }
 0x4b1   : > { %7682 = vmatprep.subr.bf16.mxu1 %v7681_v46 }
 0x4b2   : > { %7426 = vmatprep.mubr.f32.mxu1 %v6053_v40 }
 0x4b3   : > { %7427 = vmatmul.mubr.f32.gmra.mrb[14].mxu1 %v6054_v43 }
 0x4b4   : > { %7684 = vmatpush3.bf16.msra.mxu1 %v7681_v46 }
 0x4b5   : > { %7686 = vmatprep.subr.bf16.mxu1 %v7685_v41 }
 0x56a   : > { %v7407_v20 = vpop.f32.mrb[0].mxu1 }
 0x56b   : > { %v6150_v52 = vadd.f32 %v7407_v20, %v12795_v14  ;;  %v6144_v10 = vpop.f32.mrb[1].mxu1  ;;  %v6436_v20 = vld [vmem:[%s13046_s10 + $0x68] sm:$0xff] }
 0x56c   : > { %v6145_v21 = vadd.f32 %v12795_v14, %v6144_v10  ;;  %v6437_v10 = vld [vmem:[%s13046_s10 + $0x70] sm:$0xff] }
 0x56e   : > { %8041 = vtanh.f32 %v6145_v21  ;;  %v7410_v58 = vpop.f32.mrb[2].mxu1  ;;  %v6438_v21 = vld [vmem:[%s13046_s10 + $0x78] sm:$0xff] }
 0x56f   : > { %8043 = vtanh.f32 %v6150_v52  ;;  %v6160_v30 = vadd.f32 %v7410_v58, %v12795_v14  ;;  %v6154_v49 = vpop.f32.mrb[3].mxu1  ;;  %v7713_v58 = vpack.c.bf16 %v6438_v21, %v6437_v10  ;;  %v6615_v10 = vld [vmem:[%s13048_s12 + $0x40] sm:$0xff]  ;;  %v6616_v21 = vld [vmem:[%s13048_s12 + $0x48] sm:$0xff] }
 0x570   : > { %v6155_v34 = vadd.f32 %v12795_v14, %v6154_v49  ;;  %v6608_v49 = vld [vmem:[%s13048_s12 + $0x8] sm:$0xff] }
 0x572   : > { %8045 = vtanh.f32 %v6155_v34  ;;  %v7413_v39 = vpop.f32.mrb[4].mxu1  ;;  %v6609_v34 = vld [vmem:[%s13048_s12 + $0x10] sm:$0xff] }
 0x573   : > { %8047 = vtanh.f32 %v6160_v30  ;;  %v6170_v61 = vadd.f32 %v7413_v39, %v12795_v14  ;;  %v6164_v13 = vpop.f32.mrb[5].mxu1  ;;  %v6607_v30 = vld [vmem:[%s13048_s12] sm:$0xff] }
 0x574   : > { %v6165_v18 = vadd.f32 %v12795_v14, %v6164_v13  ;;  %v7717_v39 = vpack.c.bf16 %v6608_v49, %v6607_v30  ;;  %v6617_v30 = vld [vmem:[%s13048_s12 + $0x50] sm:$0xff]  ;;  %v6618_v49 = vld [vmem:[%s13048_s12 + $0x58] sm:$0xff] }
 0x576   : > { %8049 = vtanh.f32 %v6165_v18  ;;  %v7416_v24 = vpop.f32.mrb[6].mxu1  ;;  %v6611_v18 = vld [vmem:[%s13048_s12 + $0x20] sm:$0xff]  ;;  %7718 = vmatprep.subr.bf16.mxu0 %v7717_v39 }
 0x577   : > { %8051 = vtanh.f32 %v6170_v61  ;;  %v6180_v22 = vadd.f32 %v7416_v24, %v12795_v14  ;;  %v6174_v33 = vpop.f32.mrb[7].mxu1  ;;  %v6610_v61 = vld [vmem:[%s13048_s12 + $0x18] sm:$0xff]  ;;  %7720 = vmatpush3.bf16.msra.mxu0 %v7717_v39  ;;  %v12873_v47 = vpack.c.bf16 %v6612_v26, %v6611_v18  ;;  %v6613_v24 = vld [vmem:[%s13048_s12 + $0x30] sm:$0xff] }
 0x578   : > { %v8042_v38 = vpop.eup %8041  ;;  %v6175_v17 = vadd.f32 %v12795_v14, %v6174_v33  ;;  %v7721_v13 = vpack.c.bf16 %v6610_v61, %v6609_v34  ;;  %v7737_v34 = vpack.c.bf16 %v6618_v49, %v6617_v30  ;;  %v6620_v61 = vld [vmem:[%s13048_s12 + $0x68] sm:$0xff]  ;;  %v6621_v18 = vld [vmem:[%s13048_s12 + $0x70] sm:$0xff]  ;;  %v6622_v26 = vld [vmem:[%s13048_s12 + $0x78] sm:$0xff] }
 0x579   : > { %v8044_v8 = vpop.eup %8043  ;;  %7461 = vmatprep.mubr.f32.mxu1 %v8042_v38  ;;  %v12890_v38 = vld [vmem:[%s13045_s9] ss:$0 sm:$0xff] }
 0x57a   : > { %8053 = vtanh.f32 %v6175_v17  ;;  %v7419_v16 = vpop.f32.mrb[8].mxu1  ;;  %7462 = vmatmul.mubr.f32.vlgmr.msra.gmra.mrb[16].mxu1 %v8044_v8  ;;  %7722 = vmatprep.subr.bf16.mxu0 %v7721_v13  ;;  %v8142_v49 = vld [vmem:[%s8270_s19] sm:$0xff] }
 0x57b   : > { %8055 = vtanh.f32 %v6180_v22  ;;  %v6190_v37 = vadd.f32 %v7419_v16, %v12795_v14  ;;  %v6184_v25 = vpop.f32.mrb[9].mxu1  ;;  %7688 = vmatpush3.bf16.msra.mxu1 %v7685_v41  ;;  %v7705_v41 = vpack.c.bf16 %v6434_v45, %v6433_v63  ;;  %v6614_v22 = vld [vmem:[%s13048_s12 + $0x38] sm:$0xff]  ;;  %7724 = vmatpush3.bf16.msra.mxu0 %v7721_v13 }
 0x57c   : > { %v8046_v50 = vpop.eup %8045  ;;  %v6185_v55 = vadd.f32 %v12795_v14, %v6184_v25  ;;  %7690 = vmatprep.subr.bf16.mxu1 %v7689_v60  ;;  %7726 = vmatprep.subr.bf16.mxu0 %v12873_v47  ;;  %v12882_v33 = vpack.c.bf16 %v6614_v22, %v6613_v24  ;;  %v12939_v24 = vld [vmem:[%s13047_s11] ss:$0 sm:$0xff] }
 0x57d   : > { %v8048_v1 = vpop.eup %8047  ;;  %7464 = vmatprep.mubr.f32.mxu1 %v8046_v50 }
 0x57e   : > { %8057 = vtanh.f32 %v6185_v55  ;;  %v7422_v15 = vpop.f32.mrb[10].mxu1  ;;  %7465 = vmatmul.mubr.f32.gmra.mrb[18].mxu1 %v8048_v1 }
 0x57f   : > { %8059 = vtanh.f32 %v6190_v37  ;;  %v6200_v0 = vadd.f32 %v7422_v15, %v12795_v14  ;;  %v6194_v27 = vpop.f32.mrb[11].mxu1  ;;  %7692 = vmatpush3.bf16.msra.mxu1 %v7689_v60  ;;  %7728 = vmatpush3.bf16.msra.mxu0 %v12873_v47 }
 0x580   : > { %v8050_v48 = vpop.eup %8049  ;;  %v6195_v7 = vadd.f32 %v12795_v14, %v6194_v27  ;;  %7694 = vmatprep.subr.bf16.mxu1 %v7693_v4  ;;  %7730 = vmatprep.subr.bf16.mxu0 %v12882_v33 }
 0x581   : > { %v8052_v19 = vpop.eup %8051  ;;  %7467 = vmatprep.mubr.f32.mxu1 %v8050_v48 }
 0x582   : > { %8061 = vtanh.f32 %v6195_v7  ;;  %v7425_v9 = vpop.f32.mrb[12].mxu1  ;;  %7468 = vmatmul.mubr.f32.gmra.mrb[20].mxu1 %v8052_v19 }
 0x583   : > { %8063 = vtanh.f32 %v6200_v0  ;;  %v6210_v44 = vadd.f32 %v7425_v9, %v12795_v14  ;;  %v6204_v23 = vpop.f32.mrb[13].mxu1  ;;  %7696 = vmatpush3.bf16.msra.mxu1 %v7693_v4  ;;  %7732 = vmatpush3.bf16.msra.mxu0 %v12882_v33 }
 0x584   : > { %v8054_v53 = vpop.eup %8053  ;;  %v6205_v11 = vadd.f32 %v12795_v14, %v6204_v23  ;;  %7698 = vmatprep.subr.bf16.mxu1 %v7697_v51 }
 0x585   : > { %v8056_v31 = vpop.eup %8055  ;;  %7470 = vmatprep.mubr.f32.mxu1 %v8054_v53 }
 0x586   : > { %8065 = vtanh.f32 %v6205_v11  ;;  %v7428_v36 = vpop.f32.mrb[14].mxu1  ;;  %7471 = vmatmul.mubr.f32.gmra.mrb[22].mxu1 %v8056_v31 }
 0x587   : > { %8067 = vtanh.f32 %v6210_v44  ;;  %v6220_v40 = vadd.f32 %v7428_v36, %v12795_v14  ;;  %v6214_v43 = vpop.f32.mrb[15].mxu1  ;;  %7700 = vmatpush3.bf16.msra.mxu1 %v7697_v51 }
 0x588   : > { %v8058_v56 = vpop.eup %8057  ;;  %v6215_v32 = vadd.f32 %v12795_v14, %v6214_v43  ;;  %7702 = vmatprep.subr.bf16.mxu1 %v7701_v6  ;;  %v6435_v14 = vld [vmem:[%s13046_s10 + $0x60] sm:$0xff] }
 0x589   : > { %v8060_v62 = vpop.eup %8059  ;;  %7473 = vmatprep.mubr.f32.mxu1 %v8058_v56  ;;  %v7709_v52 = vpack.c.bf16 %v6436_v20, %v6435_v14 }
 0x58a   : > { %8069 = vtanh.f32 %v6215_v32  ;;  %7474 = vmatmul.mubr.f32.gmra.mrb[24].mxu1 %v8060_v62 }
 0x58b   : > { %8071 = vtanh.f32 %v6220_v40  ;;  %7704 = vmatpush3.bf16.msra.mxu1 %v7701_v6 }
 0x58c   : > { %v8062_v2 = vpop.eup %8061  ;;  %7706 = vmatprep.subr.bf16.mxu1 %v7705_v41 }
 0x58d   : > { %v8064_v57 = vpop.eup %8063  ;;  %7476 = vmatprep.mubr.f32.mxu1 %v8062_v2 }
 0x58e   : > { %7477 = vmatmul.mubr.f32.gmra.mrb[26].mxu1 %v8064_v57 }
 0x58f   : > { %7708 = vmatpush3.bf16.msra.mxu1 %v7705_v41 }
 0x590   : > { %v8066_v28 = vpop.eup %8065  ;;  %7710 = vmatprep.subr.bf16.mxu1 %v7709_v52 }
 0x591   : > { %v8068_v5 = vpop.eup %8067  ;;  %7479 = vmatprep.mubr.f32.mxu1 %v8066_v28 }
 0x592   : > { %7480 = vmatmul.mubr.f32.gmra.mrb[28].mxu1 %v8068_v5 }
 0x593   : > { %7712 = vmatpush3.bf16.msra.mxu1 %v7709_v52 }
 0x594   : > { %v8070_v3 = vpop.eup %8069  ;;  %7714 = vmatprep.subr.bf16.mxu1 %v7713_v58 }
 0x595   : > { %v8072_v46 = vpop.eup %8071  ;;  %7482 = vmatprep.mubr.f32.mxu1 %v8070_v3 }
 0x596   : > { %7483 = vmatmul.mubr.f32.gmra.mrb[30].mxu1 %v8072_v46 }
 0x597   : > { %7716 = vmatpush3.bf16.msra.mxu1 %v7713_v58  ;;  %v7733_v58 = vpack.c.bf16 %v6616_v21, %v6615_v10 }
 0x598   : > { %7749 = vmatprep.subr.bf16.mxu1 %v7717_v39 }
 0x599   : > { %7734 = vmatprep.subr.bf16.mxu0 %v7733_v58 }
 0x59a   : > { %7736 = vmatpush3.bf16.msra.mxu0 %v7733_v58 }
 0x59b   : > { %7738 = vmatprep.subr.bf16.mxu0 %v7737_v34 }
 0x59e   : > { %7740 = vmatpush3.bf16.msra.mxu0 %v7737_v34 }
 0x64d   : > { %v7463_v17 = vpop.f32.mrb[16].mxu1 }
 0x64e   : > { %v6334_v60 = vadd.f32 %v7463_v17, %v12890_v38  ;;  %v6328_v8 = vpop.f32.mrb[17].mxu1 }
 0x64f   : > { %v6329_v54 = vadd.f32 %v12890_v38, %v6328_v8 }
 0x651   : > { %8073 = vtanh.f32 %v6329_v54  ;;  %v7466_v59 = vpop.f32.mrb[18].mxu1 }
 0x652   : > { %8075 = vtanh.f32 %v6334_v60  ;;  %v6344_v16 = vadd.f32 %v7466_v59, %v12890_v38  ;;  %v6338_v37 = vpop.f32.mrb[19].mxu1 }
 0x653   : > { %v6339_v25 = vadd.f32 %v12890_v38, %v6338_v37 }
 0x655   : > { %8077 = vtanh.f32 %v6339_v25  ;;  %v7469_v50 = vpop.f32.mrb[20].mxu1 }
 0x656   : > { %8079 = vtanh.f32 %v6344_v16  ;;  %v6354_v55 = vadd.f32 %v7469_v50, %v12890_v38  ;;  %v6348_v4 = vpop.f32.mrb[21].mxu1 }
 0x657   : > { %v6349_v1 = vadd.f32 %v12890_v38, %v6348_v4 }
 0x659   : > { %8081 = vtanh.f32 %v6349_v1  ;;  %v7472_v29 = vpop.f32.mrb[22].mxu1 }
 0x65a   : > { %8083 = vtanh.f32 %v6354_v55  ;;  %v6364_v42 = vadd.f32 %v7472_v29, %v12890_v38  ;;  %v6358_v15 = vpop.f32.mrb[23].mxu1 }
 0x65b   : > { %v8074_v0 = vpop.eup %8073  ;;  %v6359_v27 = vadd.f32 %v12890_v38, %v6358_v15 }
 0x65c   : > { %v8076_v48 = vpop.eup %8075  ;;  %7517 = vmatprep.mubr.f32.mxu1 %v8074_v0 }
 0x65d   : > { %8085 = vtanh.f32 %v6359_v27  ;;  %v7475_v7 = vpop.f32.mrb[24].mxu1  ;;  %7518 = vmatmul.mubr.f32.vlgmr.msra.gmra.mrb[32].mxu1 %v8076_v48 }
 0x65e   : > { %8087 = vtanh.f32 %v6364_v42  ;;  %v6374_v51 = vadd.f32 %v7475_v7, %v12890_v38  ;;  %v6368_v19 = vpop.f32.mrb[25].mxu1  ;;  %7757 = vmatpush3.bf16.msra.mxu1 %v7717_v39  ;;  %v6619_v39 = vld [vmem:[%s13048_s12 + $0x60] sm:$0xff] }
 0x65f   : > { %v8078_v12 = vpop.eup %8077  ;;  %v6369_v35 = vadd.f32 %v12890_v38, %v6368_v19  ;;  %7750 = vmatprep.subr.bf16.mxu1 %v7721_v13 }
 0x660   : > { %v8080_v9 = vpop.eup %8079  ;;  %7520 = vmatprep.mubr.f32.mxu1 %v8078_v12 }
 0x661   : > { %8089 = vtanh.f32 %v6369_v35  ;;  %v7478_v44 = vpop.f32.mrb[26].mxu1  ;;  %7521 = vmatmul.mubr.f32.gmra.mrb[34].mxu1 %v8080_v9 }
 0x662   : > { %8091 = vtanh.f32 %v6374_v51  ;;  %v6384_v23 = vadd.f32 %v7478_v44, %v12890_v38  ;;  %v6378_v53 = vpop.f32.mrb[27].mxu1  ;;  %7758 = vmatpush3.bf16.msra.mxu1 %v7721_v13  ;;  %v7741_v13 = vpack.c.bf16 %v6620_v61, %v6619_v39 }
 0x663   : > { %v8082_v11 = vpop.eup %8081  ;;  %v6379_v6 = vadd.f32 %v12890_v38, %v6378_v53  ;;  %7751 = vmatprep.subr.bf16.mxu1 %v12873_v47 }
 0x664   : > { %v8084_v31 = vpop.eup %8083  ;;  %7523 = vmatprep.mubr.f32.mxu1 %v8082_v11  ;;  %7742 = vmatprep.subr.bf16.mxu0 %v7741_v13 }
 0x665   : > { %8093 = vtanh.f32 %v6379_v6  ;;  %v7481_v36 = vpop.f32.mrb[28].mxu1  ;;  %7524 = vmatmul.mubr.f32.gmra.mrb[36].mxu1 %v8084_v31  ;;  %7744 = vmatpush3.bf16.msra.mxu0 %v7741_v13 }
 0x666   : > { %8095 = vtanh.f32 %v6384_v23  ;;  %v6394_v40 = vadd.f32 %v7481_v36, %v12890_v38  ;;  %v6388_v43 = vpop.f32.mrb[29].mxu1  ;;  %7759 = vmatpush3.bf16.msra.mxu1 %v12873_v47  ;;  %v7745_v47 = vpack.c.bf16 %v6622_v26, %v6621_v18 }
 0x667   : > { %v8086_v56 = vpop.eup %8085  ;;  %v6389_v32 = vadd.f32 %v12890_v38, %v6388_v43  ;;  %7752 = vmatprep.subr.bf16.mxu1 %v12882_v33 }
 0x668   : > { %v8088_v62 = vpop.eup %8087  ;;  %7526 = vmatprep.mubr.f32.mxu1 %v8086_v56  ;;  %7746 = vmatprep.subr.bf16.mxu0 %v7745_v47 }
 0x669   : > { %8097 = vtanh.f32 %v6389_v32  ;;  %v7484_v2 = vpop.f32.mrb[30].mxu1  ;;  %7527 = vmatmul.mubr.f32.gmra.mrb[38].mxu1 %v8088_v62  ;;  %7748 = vmatpush3.bf16.msra.mxu0 %v7745_v47 }
 0x66a   : > { %8099 = vtanh.f32 %v6394_v40  ;;  %v6404_v57 = vadd.f32 %v7484_v2, %v12890_v38  ;;  %v6398_v28 = vpop.f32.mrb[31].mxu1  ;;  %7760 = vmatpush3.bf16.msra.mxu1 %v12882_v33 }
 0x66b   : > { %v8090_v5 = vpop.eup %8089  ;;  %v6399_v3 = vadd.f32 %v12890_v38, %v6398_v28  ;;  %7753 = vmatprep.subr.bf16.mxu1 %v7733_v58 }
 0x66c   : > { %v8092_v46 = vpop.eup %8091  ;;  %7529 = vmatprep.mubr.f32.mxu1 %v8090_v5 }
 0x66d   : > { %8101 = vtanh.f32 %v6399_v3  ;;  %7530 = vmatmul.mubr.f32.gmra.mrb[40].mxu1 %v8092_v46 }
 0x66e   : > { %8103 = vtanh.f32 %v6404_v57  ;;  %7761 = vmatpush3.bf16.msra.mxu1 %v7733_v58  ;;  %v8141_v58 = vld [vmem:[%s8270_s19 + $0x8] sm:$0xff] }
 0x66f   : > { %v8094_v63 = vpop.eup %8093  ;;  %7754 = vmatprep.subr.bf16.mxu1 %v7737_v34 }
 0x670   : > { %v8096_v45 = vpop.eup %8095  ;;  %7532 = vmatprep.mubr.f32.mxu1 %v8094_v63 }
 0x671   : > { %7533 = vmatmul.mubr.f32.gmra.mrb[42].mxu1 %v8096_v45 }
 0x672   : > { %7762 = vmatpush3.bf16.msra.mxu1 %v7737_v34 }
 0x673   : > { %v8098_v41 = vpop.eup %8097  ;;  %7755 = vmatprep.subr.bf16.mxu1 %v7741_v13 }
 0x674   : > { %v8100_v14 = vpop.eup %8099  ;;  %7535 = vmatprep.mubr.f32.mxu1 %v8098_v41 }
 0x675   : > { %7536 = vmatmul.mubr.f32.gmra.mrb[44].mxu1 %v8100_v14  ;;  %v12960_v14 = vld [vmem:[%s13049_s13] ss:$0 sm:$0xff] }
 0x676   : > { %7763 = vmatpush3.bf16.msra.mxu1 %v7741_v13 }
 0x677   : > { %v8102_v20 = vpop.eup %8101  ;;  %7756 = vmatprep.subr.bf16.mxu1 %v7745_v47 }
 0x678   : > { %v8104_v52 = vpop.eup %8103  ;;  %7538 = vmatprep.mubr.f32.mxu1 %v8102_v20 }
 0x679   : > { %7539 = vmatmul.mubr.f32.gmra.mrb[46].mxu1 %v8104_v52 }
 0x67a   : > { %7764 = vmatpush3.bf16.msra.mxu1 %v7745_v47 }
 0x730   : > { %v7519_v22 = vpop.f32.mrb[32].mxu1 }
 0x731   : > { %v6518_v33 = vadd.f32 %v7519_v22, %v12939_v24  ;;  %v6512_v38 = vpop.f32.mrb[33].mxu1 }
 0x732   : > { %v6513_v17 = vadd.f32 %v12939_v24, %v6512_v38 }
 0x734   : > { %8105 = vtanh.f32 %v6513_v17  ;;  %v7522_v60 = vpop.f32.mrb[34].mxu1 }
 0x735   : > { %8107 = vtanh.f32 %v6518_v33  ;;  %v6528_v8 = vadd.f32 %v7522_v60, %v12939_v24  ;;  %v6522_v54 = vpop.f32.mrb[35].mxu1  ;;  %v8144_v33 = vld [vmem:[%s8270_s19 + $0x10] sm:$0xff] }
 0x736   : > { %v6523_v59 = vadd.f32 %v12939_v24, %v6522_v54 }
 0x738   : > { %8109 = vtanh.f32 %v6523_v59  ;;  %v7525_v16 = vpop.f32.mrb[36].mxu1 }
 0x739   : > { %8111 = vtanh.f32 %v6528_v8  ;;  %v6538_v37 = vadd.f32 %v7525_v16, %v12939_v24  ;;  %v6532_v25 = vpop.f32.mrb[37].mxu1 }
 0x73a   : > { %v6533_v50 = vadd.f32 %v12939_v24, %v6532_v25 }
 0x73c   : > { %8113 = vtanh.f32 %v6533_v50  ;;  %v7528_v55 = vpop.f32.mrb[38].mxu1  ;;  %v8146_v50 = vld [vmem:[%s8270_s19 + $0x20] sm:$0xff] }
 0x73d   : > { %8115 = vtanh.f32 %v6538_v37  ;;  %v6548_v4 = vadd.f32 %v7528_v55, %v12939_v24  ;;  %v6542_v1 = vpop.f32.mrb[39].mxu1  ;;  %v8145_v37 = vld [vmem:[%s8270_s19 + $0x28] sm:$0xff] }
 0x73e   : > { %v8106_v29 = vpop.eup %8105  ;;  %v6543_v42 = vadd.f32 %v12939_v24, %v6542_v1 }
 0x73f   : > { %v8108_v15 = vpop.eup %8107  ;;  %7573 = vmatprep.mubr.f32.mxu0 %v8106_v29 }
 0x740   : > { %8117 = vtanh.f32 %v6543_v42  ;;  %v7531_v0 = vpop.f32.mrb[40].mxu1  ;;  %7574 = vmatmul.mubr.f32.vlgmr.msra.gmra.mrb[16].mxu0 %v8108_v15 }
 0x741   : > { %8119 = vtanh.f32 %v6548_v4  ;;  %v6558_v27 = vadd.f32 %v7531_v0, %v12939_v24  ;;  %v6552_v48 = vpop.f32.mrb[41].mxu1 }
 0x742   : > { %v8110_v7 = vpop.eup %8109  ;;  %v6553_v51 = vadd.f32 %v12939_v24, %v6552_v48 }
 0x743   : > { %v8112_v19 = vpop.eup %8111  ;;  %7576 = vmatprep.mubr.f32.mxu0 %v8110_v7  ;;  %v8148_v7 = vld [vmem:[%s8270_s19 + $0x30] sm:$0xff] }
 0x744   : > { %8121 = vtanh.f32 %v6553_v51  ;;  %v7534_v12 = vpop.f32.mrb[42].mxu1  ;;  %7577 = vmatmul.mubr.f32.gmra.mrb[18].mxu0 %v8112_v19 }
 0x745   : > { %8123 = vtanh.f32 %v6558_v27  ;;  %v6568_v35 = vadd.f32 %v7534_v12, %v12939_v24  ;;  %v6562_v9 = vpop.f32.mrb[43].mxu1  ;;  %v8147_v27 = vld [vmem:[%s8270_s19 + $0x38] sm:$0xff] }
 0x746   : > { %v8114_v44 = vpop.eup %8113  ;;  %v6563_v23 = vadd.f32 %v12939_v24, %v6562_v9 }
 0x747   : > { %v8116_v53 = vpop.eup %8115  ;;  %7579 = vmatprep.mubr.f32.mxu0 %v8114_v44 }
 0x748   : > { %8125 = vtanh.f32 %v6563_v23  ;;  %v7537_v11 = vpop.f32.mrb[44].mxu1  ;;  %7580 = vmatmul.mubr.f32.gmra.mrb[20].mxu0 %v8116_v53  ;;  %v8149_v53 = vld [vmem:[%s8270_s19 + $0x48] sm:$0xff] }
 0x749   : > { %8127 = vtanh.f32 %v6568_v35  ;;  %v6578_v6 = vadd.f32 %v7537_v11, %v12939_v24  ;;  %v6572_v31 = vpop.f32.mrb[45].mxu1 }
 0x74a   : > { %v8118_v36 = vpop.eup %8117  ;;  %v6573_v40 = vadd.f32 %v12939_v24, %v6572_v31 }
 0x74b   : > { %v8120_v43 = vpop.eup %8119  ;;  %7582 = vmatprep.mubr.f32.mxu0 %v8118_v36 }
 0x74c   : > { %8129 = vtanh.f32 %v6573_v40  ;;  %v7540_v56 = vpop.f32.mrb[46].mxu1  ;;  %7583 = vmatmul.mubr.f32.gmra.mrb[22].mxu0 %v8120_v43 }
 0x74d   : > { %8131 = vtanh.f32 %v6578_v6  ;;  %v6588_v32 = vadd.f32 %v7540_v56, %v12939_v24  ;;  %v6582_v62 = vpop.f32.mrb[47].mxu1  ;;  %v8150_v6 = vld [vmem:[%s8270_s19 + $0x40] sm:$0xff] }
 0x74e   : > { %v8122_v2 = vpop.eup %8121  ;;  %v6583_v57 = vadd.f32 %v12939_v24, %v6582_v62  ;;  %v8143_v24 = vld [vmem:[%s8270_s19 + $0x18] sm:$0xff] }
 0x74f   : > { %v8124_v28 = vpop.eup %8123  ;;  %7585 = vmatprep.mubr.f32.mxu0 %v8122_v2  ;;  %v8151_v2 = vld [vmem:[%s8270_s19 + $0x58] sm:$0xff] }
 0x750   : > { %8133 = vtanh.f32 %v6583_v57  ;;  %7586 = vmatmul.mubr.f32.gmra.mrb[24].mxu0 %v8124_v28  ;;  %v8152_v28 = vld [vmem:[%s8270_s19 + $0x50] sm:$0xff] }
 0x751   : > { %8135 = vtanh.f32 %v6588_v32 }
 0x752   : > { %v8126_v5 = vpop.eup %8125 }
 0x753   : > { %v8128_v3 = vpop.eup %8127  ;;  %7588 = vmatprep.mubr.f32.mxu0 %v8126_v5 }
 0x754   : > { %7589 = vmatmul.mubr.f32.gmra.mrb[26].mxu0 %v8128_v3 }
 0x756   : > { %v8130_v46 = vpop.eup %8129 }
 0x757   : > { %v8132_v63 = vpop.eup %8131  ;;  %7591 = vmatprep.mubr.f32.mxu0 %v8130_v46 }
 0x758   : > { %7592 = vmatmul.mubr.f32.gmra.mrb[28].mxu0 %v8132_v63 }
 0x75a   : > { %v8134_v45 = vpop.eup %8133 }
 0x75b   : > { %v8136_v41 = vpop.eup %8135  ;;  %7594 = vmatprep.mubr.f32.mxu1 %v8134_v45 }
 0x75c   : > { %7595 = vmatmul.mubr.f32.vlgmr.msra.gmra.mrb[48].mxu1 %v8136_v41 }
 0x813   : > { %v7575_v20 = vpop.f32.mrb[16].mxu0 }
 0x814   : > { %v6702_v52 = vadd.f32 %v7575_v20, %v12960_v14  ;;  %v6696_v10 = vpop.f32.mrb[17].mxu0 }
 0x815   : > { %v6697_v21 = vadd.f32 %v12960_v14, %v6696_v10 }
 0x816   : > { %v6776_v30 = vmul.f32 %v8141_v58, %v6702_v52  ;;  %v8153_v52 = vld [vmem:[%s8270_s19 + $0x68] sm:$0xff] }
 0x817   : > { %v6775_v34 = vmul.f32 %v8142_v49, %v6697_v21  ;;  %v7578_v39 = vpop.f32.mrb[18].mxu0  ;;  %v8154_v21 = vld [vmem:[%s8270_s19 + $0x60] sm:$0xff] }
 0x818   : > { %v6792_v61 = vadd.f32 %v8141_v58, %v6776_v30  ;;  %v6712_v13 = vadd.f32 %v7578_v39, %v12960_v14  ;;  %v6706_v18 = vpop.f32.mrb[19].mxu0 }
 0x819   : > { %v6791_v26 = vadd.f32 %v8142_v49, %v6775_v34  ;;  %v6707_v47 = vadd.f32 %v12960_v14, %v6706_v18  ;;  %v8155_v18 = vld [vmem:[%s8270_s19 + $0x78] sm:$0xff] }
 0x81a   : > { %6809 = vst.msk [vmem:[%s12970_s24 + $0x8] sm:$0xff] %vm6807_vm3, %v6792_v61  ;;  %v6778_v22 = vmul.f32 %v8143_v24, %v6712_v13 }
 0x81b   : > { %6808 = vst.msk [vmem:[%s12970_s24] sm:$0xff] %vm6807_vm3, %v6791_v26  ;;  %v6777_v38 = vmul.f32 %v8144_v33, %v6707_v47  ;;  %v7581_v17 = vpop.f32.mrb[20].mxu0  ;;  %v8156_v47 = vld [vmem:[%s8270_s19 + $0x70] sm:$0xff] }
 0x81c   : > { %v6794_v60 = vadd.f32 %v8143_v24, %v6778_v22  ;;  %v6722_v8 = vadd.f32 %v7581_v17, %v12960_v14  ;;  %v6716_v54 = vpop.f32.mrb[21].mxu0 }
 0x81d   : > { %v6793_v59 = vadd.f32 %v8144_v33, %v6777_v38  ;;  %v6717_v16 = vadd.f32 %v12960_v14, %v6716_v54 }
 0x81e   : > { %6811 = vst.msk [vmem:[%s12970_s24 + $0x18] sm:$0xff] %vm6807_vm3, %v6794_v60  ;;  %v6780_v25 = vmul.f32 %v8145_v37, %v6722_v8 }
 0x81f   : > { %6810 = vst.msk [vmem:[%s12970_s24 + $0x10] sm:$0xff] %vm6807_vm3, %v6793_v59  ;;  %v6779_v55 = vmul.f32 %v8146_v50, %v6717_v16  ;;  %v7584_v4 = vpop.f32.mrb[22].mxu0 }
 0x820   : > { %v6796_v1 = vadd.f32 %v8145_v37, %v6780_v25  ;;  %v6732_v29 = vadd.f32 %v7584_v4, %v12960_v14  ;;  %v6726_v42 = vpop.f32.mrb[23].mxu0 }
 0x821   : > { %v6795_v15 = vadd.f32 %v8146_v50, %v6779_v55  ;;  %v6727_v0 = vadd.f32 %v12960_v14, %v6726_v42 }
 0x822   : > { %6813 = vst.msk [vmem:[%s12970_s24 + $0x28] sm:$0xff] %vm6807_vm3, %v6796_v1  ;;  %v6782_v48 = vmul.f32 %v8147_v27, %v6732_v29 }
 0x823   : > { %6812 = vst.msk [vmem:[%s12970_s24 + $0x20] sm:$0xff] %vm6807_vm3, %v6795_v15  ;;  %v6781_v51 = vmul.f32 %v8148_v7, %v6727_v0  ;;  %v7587_v19 = vpop.f32.mrb[24].mxu0 }
 0x824   : > { %v6798_v12 = vadd.f32 %v8147_v27, %v6782_v48  ;;  %v6742_v35 = vadd.f32 %v7587_v19, %v12960_v14  ;;  %v6736_v9 = vpop.f32.mrb[25].mxu0 }
 0x825   : > { %v6797_v44 = vadd.f32 %v8148_v7, %v6781_v51  ;;  %v6737_v23 = vadd.f32 %v12960_v14, %v6736_v9 }
 0x826   : > { %6815 = vst.msk [vmem:[%s12970_s24 + $0x38] sm:$0xff] %vm6807_vm3, %v6798_v12  ;;  %v6784_v11 = vmul.f32 %v8149_v53, %v6742_v35 }
 0x827   : > { %6814 = vst.msk [vmem:[%s12970_s24 + $0x30] sm:$0xff] %vm6807_vm3, %v6797_v44  ;;  %v6783_v31 = vmul.f32 %v8150_v6, %v6737_v23  ;;  %v7590_v36 = vpop.f32.mrb[26].mxu0 }
 0x828   : > { %v6800_v40 = vadd.f32 %v8149_v53, %v6784_v11  ;;  %v6752_v43 = vadd.f32 %v7590_v36, %v12960_v14  ;;  %v6746_v56 = vpop.f32.mrb[27].mxu0 }
 0x829   : > { %v6799_v32 = vadd.f32 %v8150_v6, %v6783_v31  ;;  %v6747_v62 = vadd.f32 %v12960_v14, %v6746_v56 }
 0x82a   : > { %6817 = vst.msk [vmem:[%s12970_s24 + $0x48] sm:$0xff] %vm6807_vm3, %v6800_v40  ;;  %v6786_v57 = vmul.f32 %v8151_v2, %v6752_v43 }
 0x82b   : > { %6816 = vst.msk [vmem:[%s12970_s24 + $0x40] sm:$0xff] %vm6807_vm3, %v6799_v32  ;;  %v6785_v5 = vmul.f32 %v8152_v28, %v6747_v62  ;;  %v7593_v3 = vpop.f32.mrb[28].mxu0 }
 0x82c   : > { %v6802_v46 = vadd.f32 %v8151_v2, %v6786_v57  ;;  %v6762_v63 = vadd.f32 %v7593_v3, %v12960_v14  ;;  %v6756_v45 = vpop.f32.mrb[29].mxu0 }
 0x82d   : > { %v6801_v41 = vadd.f32 %v8152_v28, %v6785_v5  ;;  %v6757_v20 = vadd.f32 %v12960_v14, %v6756_v45 }
 0x82e   : > { %6819 = vst.msk [vmem:[%s12970_s24 + $0x58] sm:$0xff] %vm6807_vm3, %v6802_v46  ;;  %v6788_v10 = vmul.f32 %v8153_v52, %v6762_v63 }
 0x82f   : > { %6818 = vst.msk [vmem:[%s12970_s24 + $0x50] sm:$0xff] %vm6807_vm3, %v6801_v41  ;;  %v6787_v58 = vmul.f32 %v8154_v21, %v6757_v20  ;;  %v7596_v30 = vpop.f32.mrb[48].mxu1 }
 0x830   : > { %v6804_v49 = vadd.f32 %v8153_v52, %v6788_v10  ;;  %v6772_v34 = vadd.f32 %v7596_v30, %v12960_v14  ;;  %v6766_v39 = vpop.f32.mrb[49].mxu1 }
 0x831   : > { %v6803_v61 = vadd.f32 %v8154_v21, %v6787_v58  ;;  %v6767_v13 = vadd.f32 %v12960_v14, %v6766_v39 }
 0x832   : > { %6821 = vst.msk [vmem:[%s12970_s24 + $0x68] sm:$0xff] %vm6807_vm3, %v6804_v49  ;;  %v6790_v26 = vmul.f32 %v8155_v18, %v6772_v34 }
 0x833   : > { %6820 = vst.msk [vmem:[%s12970_s24 + $0x60] sm:$0xff] %vm6807_vm3, %v6803_v61  ;;  %v6789_v24 = vmul.f32 %v8156_v47, %v6767_v13 }
 0x834   : > { %v6806_v22 = vadd.f32 %v8155_v18, %v6790_v26 }
 0x835   : > { %v6805_v33 = vadd.f32 %v8156_v47, %v6789_v24 }
 0x836   : > { %6823 = vst.msk [vmem:[%s12970_s24 + $0x78] sm:$0xff] %vm6807_vm3, %v6806_v22 }
 0x837   : > { %6822 = vst.msk [vmem:[%s12970_s24 + $0x70] sm:$0xff] %vm6807_vm3, %v6805_v33 }
 0x838 PF: > { %s24_s29 = sadd.s32 1, %s8163_s29  }
 0x839   : > { %p21_p4 = scmp.ge.s32.totalorder %s24_s29, 6  }
 0x83b   :  { %23 = sbr.rel (!%p21_p4) target bundleno = 1 (0x1), region = 106 }

</bundles_post_ra>
